<compile_context>
chip_gen: v5e
topology: v5e:2x2
jax: 0.10.0
libtpu: 0.0.40
codegen_flags: <defaults>
</compile_context>

<pallas_src>
import functools

import jax
import jax.numpy as jnp
import numpy as np
from jax.experimental import pallas as pl
from jax.experimental.pallas import tpu as pltpu

EPS = 1e-5        # nn.InstanceNorm2d default eps (affine=False, no running stats)
NEG_SLOPE = 0.1   # LeakyReLU(0.1)


# ----------------------------------------------------------------------------
# Kernel
# ----------------------------------------------------------------------------
def _resblock_stack_kernel(x_ref, w1_ref, w2_ref, seg_ref, bct_ref, sch_ref,
                           o_ref, *, H, num_blocks):
    """Nb images (stacked along sublanes) through `num_blocks` fused res-blocks.

    x_ref  : (M, WC)        M = Nb*H rows; lane l = w*C + c (lane-flattened HWC)
    w*_ref : (B, 3*WC, WC)  bf16 banded conv-as-matmul weights (col reflect folded)
    seg_ref: (Nb, M)        per-image row pool, scaled by 1/(H*W)
    bct_ref: (M, Nb)        per-image broadcast-back (0/1 membership)
    sch_ref: (WC, WC)       same-channel lane pool (0/1, unscaled)
    o_ref  : (M, WC)        lane-dense f32 output
    """
    x = x_ref[...]
    M, WC = x.shape
    seg = seg_ref[...]
    bct = bct_ref[...]
    sch = sch_ref[...]

    # Row-within-image index: fixes the two reflection rows of every image
    # after a whole-slab sublane shift (image boundaries land exactly there).
    rid = jax.lax.broadcasted_iota(jnp.int32, (M, WC), 0) % H
    is_top = rid == 0
    is_bot = rid == (H - 1)

    def conv3x3(img, w_bf16):
        # Two sublane-shifted copies of the whole (M, WC) slab + boundary masks
        # (no padded (H+2) intermediate, no overlapping 3-way reads; a
        #  pltpu.roll(img, +/-1, axis=0) pair is an equivalent XLU-side variant).
        up = jnp.concatenate([img[1:, :], img[M - 1:, :]], axis=0)   # ~ row h+1
        dn = jnp.concatenate([img[:1, :], img[:M - 1, :]], axis=0)   # ~ row h-1
        prev = jnp.where(is_top, up, dn)     # reflect at h == 0
        nxt = jnp.where(is_bot, dn, up)      # reflect at h == H-1
        # All 9 taps of the 3x3 conv in ONE MXU matmul on the bf16 path
        # (column reflection is folded into the weight matrix; f32 accumulate).
        cat = jnp.concatenate([prev, img, nxt], axis=1).astype(jnp.bfloat16)
        return jnp.dot(cat, w_bf16, preferred_element_type=jnp.float32)

    def instance_norm(y):
        # Per-image stats: segment row-sum first (tiny (Nb, M) matmul), then
        # the channel pool (@ sch), then broadcast back per image (bct @ .).
        rs = jnp.dot(seg, y, preferred_element_type=jnp.float32)          # (Nb, WC)
        mean = jnp.dot(bct,
                       jnp.dot(rs, sch, preferred_element_type=jnp.float32),
                       preferred_element_type=jnp.float32)                # (M, WC)
        yc = y - mean
        rs2 = jnp.dot(seg, yc * yc, preferred_element_type=jnp.float32)
        var = jnp.dot(bct,
                      jnp.dot(rs2, sch, preferred_element_type=jnp.float32),
                      preferred_element_type=jnp.float32)
        return yc * jax.lax.rsqrt(var + EPS)

    h = x
    for b in range(num_blocks):              # static unroll; weights stay in VMEM
        y = conv3x3(h, w1_ref[b])
        y = instance_norm(y)
        y = jnp.where(y >= 0, y, NEG_SLOPE * y)        # LeakyReLU(0.1)
        y = conv3x3(y, w2_ref[b])
        y = instance_norm(y)
        h = h + y                                      # residual add (f32)
    o_ref[...] = h.astype(o_ref.dtype)


# ----------------------------------------------------------------------------
# Host-side weight / pooling-matrix preprocessing
# ----------------------------------------------------------------------------
def build_conv_matrix(w_oihw, W):
    """Torch conv weight (Cout, Cin, 3, 3) -> banded (3*W*C, W*C) matmul weight.

    out[h, w*C+co] = sum_j cat[h, j] * M[j, w*C+co], where
    cat[h, ky*W*C + col*C + ci] is the row-reflected image value at
    (row h+ky-1, col, ci).  Column reflection (pad=1) is folded in (+= at edges).
    """
    w_np = np.asarray(w_oihw, dtype=np.float32)
    Cout, Cin, KH, KW = w_np.shape
    assert Cout == Cin and KH == 3 and KW == 3
    C = Cin
    WC = W * C

    def reflect(c):
        if c < 0:
            return -c
        if c >= W:
            return 2 * (W - 1) - c
        return c

    M = np.zeros((3 * WC, WC), dtype=np.float32)
    for ky in range(3):
        for kx in range(3):
            blk = w_np[:, :, ky, kx].T                       # (ci, co)
            for w in range(W):
                icol = reflect(w + kx - 1)
                r0 = ky * WC + icol * C
                M[r0:r0 + C, w * C:w * C + C] += blk         # += handles edge dup
    return M


def build_pool_matrices(Nb, H, W, C):
    """seg (Nb, M): per-image row sum scaled 1/(H*W); bct (M, Nb): broadcast back;
    sch (WC, WC): same-channel lane pool (unscaled)."""
    M = Nb * H
    r = np.arange(M)
    n = np.arange(Nb)
    seg = (r[None, :] // H == n[:, None]).astype(np.float32) / float(H * W)
    bct = (r[:, None] // H == n[None, :]).astype(np.float32)
    lanes = np.arange(W * C)
    sch = (lanes[:, None] % C == lanes[None, :] % C).astype(np.float32)
    return seg, bct, sch


def _choose_block_images(N, H, target_rows=256):
    """Images per grid step: fill the MXU M dimension (~128-256 rows) but keep
    >= 2 grid steps so v7x's two TensorCores both get work on the 'parallel'
    batch axis."""
    nb = max(1, min(N, target_rows // max(H, 1)))
    while nb > 1 and N % nb:
        nb -= 1
    while nb > 1 and N // nb < 2:
        nb -= 1
        while nb > 1 and N % nb:
            nb -= 1
    return nb


# ----------------------------------------------------------------------------
# Wrapper
# ----------------------------------------------------------------------------
@functools.partial(jax.jit, static_argnames=("H", "W", "C", "block_images"))
def residual_stack(x_flat, w1_stack, w2_stack, *, H, W, C, block_images=None):
    """Applies B fused _Residual_Block layers.

    x_flat   : (N, H, W*C) lane-flattened NHWC activations (f32).  The layout is
               kept across the whole res-block stack; the NCHW<->flattened
               relayout happens once at Generator entry/exit, outside this path.
    w*_stack : (B, 3*W*C, W*C) bf16 banded conv weights, one pair per block.
    Returns  : (N, H, W*C) f32 in the same layout.
    """
    N = x_flat.shape[0]
    WC = W * C
    assert x_flat.shape == (N, H, WC)
    assert WC % 128 == 0, "lane-flattened width W*C must be a multiple of 128"
    assert H >= 2
    Nb = block_images if block_images is not None else _choose_block_images(N, H)
    assert N % Nb == 0
    M = Nb * H
    assert M % 8 == 0, "rows per grid step must be a multiple of 8"
    B = w1_stack.shape[0]

    seg, bct, sch = build_pool_matrices(Nb, H, W, C)
    seg = jnp.asarray(seg)
    bct = jnp.asarray(bct)
    sch = jnp.asarray(sch)

    # Collapsing the leading (N, H) dims is a free metadata reshape (no HBM
    # relayout pass) -- the hot path stays transpose-free.
    x2 = x_flat.reshape(N * H, WC).astype(jnp.float32)

    kernel = functools.partial(_resblock_stack_kernel, H=H, num_blocks=B)
    out2 = pl.pallas_call(
        kernel,
        out_shape=jax.ShapeDtypeStruct((N * H, WC), jnp.float32),
        grid_spec=pltpu.PrefetchScalarGridSpec(
            num_scalar_prefetch=0,
            grid=(N // Nb,),
            in_specs=[
                pl.BlockSpec((M, WC), lambda n: (n, 0)),            # activations
                # Grid-invariant operands: constant index_map -> DMA'd once and
                # kept resident (pipeline_mode=pl.Buffered(1) would also drop
                # the idle second buffer; left at default for compatibility).
                pl.BlockSpec((B, 3 * WC, WC), lambda n: (0, 0, 0)),  # w1 stack
                pl.BlockSpec((B, 3 * WC, WC), lambda n: (0, 0, 0)),  # w2 stack
                pl.BlockSpec((Nb, M), lambda n: (0, 0)),             # seg
                pl.BlockSpec((M, Nb), lambda n: (0, 0)),             # bct
                pl.BlockSpec((WC, WC), lambda n: (0, 0)),            # sch
            ],
            out_specs=pl.BlockSpec((M, WC), lambda n: (n, 0)),
        ),
        compiler_params=pltpu.CompilerParams(
            dimension_semantics=("parallel",),   # batch axis: v7x 2-TC split
            vmem_limit_bytes=32 * 1024 * 1024,
        ),
    )(x2, w1_stack, w2_stack, seg, bct, sch)

    return out2.reshape(N, H, WC)


# ----------------------------------------------------------------------------
# Pure-JAX reference (identical semantics to the PyTorch _Residual_Block stack)
# ----------------------------------------------------------------------------
def ref_residual_stack(x_nchw, w1_list, w2_list):
    def conv(a, w):
        ap = jnp.pad(a, ((0, 0), (0, 0), (1, 1), (1, 1)), mode="reflect")
        return jax.lax.conv_general_dilated(
            ap, w, window_strides=(1, 1), padding="VALID",
            dimension_numbers=("NCHW", "OIHW", "NCHW"))

    def inorm(a):
        m = a.mean(axis=(2, 3), keepdims=True)
        v = jnp.square(a - m).mean(axis=(2, 3), keepdims=True)
        return (a - m) * jax.lax.rsqrt(v + EPS)

    h = x_nchw
    for w1, w2 in zip(w1_list, w2_list):
        y = inorm(conv(h, w1))
        y = jnp.where(y >= 0, y, NEG_SLOPE * y)
        y = inorm(conv(y, w2))
        h = h + y
    return h


# ----------------------------------------------------------------------------
# Test
# ----------------------------------------------------------------------------
if __name__ == "__main__":
    # Small deterministic problem. W*C = 128 (one full lane tile); N=16 so the
    # kernel runs 2 grid steps of Nb=8 images (Nb*H = 128 MXU rows per step).
    N, C, H, W = 16, 8, 16, 16
    B = 4                                   # decoder_blocks=4 consecutive blocks
    WC = W * C

    key = jax.random.PRNGKey(0)
    keys = jax.random.split(key, 1 + 2 * B)
    x = jax.random.normal(keys[0], (N, C, H, W), dtype=jnp.float32)
    w1_list, w2_list = [], []
    for b in range(B):
        w1_list.append(0.2 * jax.random.normal(keys[1 + 2 * b], (C, C, 3, 3),
                                               dtype=jnp.float32))
        w2_list.append(0.2 * jax.random.normal(keys[2 + 2 * b], (C, C, 3, 3),
                                               dtype=jnp.float32))

    # bf16 weight path: round-trip the conv weights through bf16 so the kernel
    # and the f32 reference use the exact same weight values.
    w1q = [w.astype(jnp.bfloat16).astype(jnp.float32) for w in w1_list]
    w2q = [w.astype(jnp.bfloat16).astype(jnp.float32) for w in w2_list]

    # Host-side preprocessing: conv -> banded matmul weights, stacked per block.
    w1_stack = jnp.stack(
        [jnp.asarray(build_conv_matrix(w, W)) for w in w1q]).astype(jnp.bfloat16)
    w2_stack = jnp.stack(
        [jnp.asarray(build_conv_matrix(w, W)) for w in w2q]).astype(jnp.bfloat16)

    # Lane-flattened NHWC activations.  (This one-time relayout belongs at the
    # Generator's entry, not inside the per-block hot path.)
    x_flat = jnp.transpose(x, (0, 2, 3, 1)).reshape(N, H, WC)

    out_flat = jax.block_until_ready(
        residual_stack(x_flat, w1_stack, w2_stack, H=H, W=W, C=C))

    ref_nchw = jax.block_until_ready(ref_residual_stack(x, w1q, w2q))
    ref_flat = jnp.transpose(ref_nchw, (0, 2, 3, 1)).reshape(N, H, WC)

    # bf16 matmul operands -> loosen the tolerance (was 2e-4 in all-f32 version).
    np.testing.assert_allclose(np.asarray(out_flat), np.asarray(ref_flat),
                               rtol=5e-2, atol=5e-2)
    print("KERNEL_OK")
</pallas_src>

<mosaic_0001>
module attributes {stable_mosaic.version = 11 : i64} {
  func.func @_resblock_stack_kernel(%arg0: i32, %arg1: memref<128x128xf32, #tpu.memory_space<vmem>>, %arg2: memref<4x384x128xbf16, #tpu.memory_space<vmem>>, %arg3: memref<4x384x128xbf16, #tpu.memory_space<vmem>>, %arg4: memref<8x128xf32, #tpu.memory_space<vmem>>, %arg5: memref<128x8xf32, #tpu.memory_space<vmem>>, %arg6: memref<128x128xf32, #tpu.memory_space<vmem>>, %arg7: memref<128x128xf32, #tpu.memory_space<vmem>>) attributes {dimension_semantics = [#tpu.dimension_semantics<parallel>], iteration_bounds = array<i64: 2>, scalar_prefetch = 0 : i64, scratch_operands = 0 : i64, tpu.core_type = #tpu.core_type<tc>, window_params = [{transform_indices = @transform_0, window_bounds = array<i64: 128, 128>}, {pipeline_mode = #tpu.pipeline_mode<synchronous>, transform_indices = @transform_1, window_bounds = array<i64: 4, 384, 128>}, {pipeline_mode = #tpu.pipeline_mode<synchronous>, transform_indices = @transform_2, window_bounds = array<i64: 4, 384, 128>}, {pipeline_mode = #tpu.pipeline_mode<synchronous>, transform_indices = @transform_3, window_bounds = array<i64: 8, 128>}, {pipeline_mode = #tpu.pipeline_mode<synchronous>, transform_indices = @transform_4, window_bounds = array<i64: 128, 8>}, {pipeline_mode = #tpu.pipeline_mode<synchronous>, transform_indices = @transform_5, window_bounds = array<i64: 128, 128>}, {transform_indices = @transform_6, window_bounds = array<i64: 128, 128>}]} {
    %c0 = arith.constant 0 : index
    %c0_0 = arith.constant 0 : index
    %0 = vector.load %arg1[%c0, %c0_0] : memref<128x128xf32, #tpu.memory_space<vmem>>, vector<128x128xf32>
    %c0_1 = arith.constant 0 : index
    %c0_2 = arith.constant 0 : index
    %1 = vector.load %arg4[%c0_1, %c0_2] : memref<8x128xf32, #tpu.memory_space<vmem>>, vector<8x128xf32>
    %c0_3 = arith.constant 0 : index
    %c0_4 = arith.constant 0 : index
    %2 = vector.load %arg5[%c0_3, %c0_4] : memref<128x8xf32, #tpu.memory_space<vmem>>, vector<128x8xf32>
    %c0_5 = arith.constant 0 : index
    %c0_6 = arith.constant 0 : index
    %3 = vector.load %arg6[%c0_5, %c0_6] : memref<128x128xf32, #tpu.memory_space<vmem>>, vector<128x128xf32>
    %4 = tpu.iota {dimensions = array<i32: 0>} : vector<128x128xi32>
    %c16_i32 = arith.constant 16 : i32
    %c0_i32 = arith.constant 0 : i32
    %5 = arith.cmpi eq, %c16_i32, %c0_i32 : i32
    %c1_i32 = arith.constant 1 : i32
    %6 = arith.select %5, %c1_i32, %c16_i32 : i32
    %7 = vector.broadcast %6 : i32 to vector<128x128xi32>
    %8 = arith.remsi %4, %7 : vector<128x128xi32>
    %c0_i32_7 = arith.constant 0 : i32
    %9 = vector.broadcast %c0_i32_7 : i32 to vector<128x128xi32>
    %10 = arith.cmpi ne, %8, %9 : vector<128x128xi32>
    %c0_i32_8 = arith.constant 0 : i32
    %11 = vector.broadcast %c0_i32_8 : i32 to vector<128x128xi32>
    %12 = arith.cmpi slt, %8, %11 : vector<128x128xi32>
    %c0_i32_9 = arith.constant 0 : i32
    %13 = arith.cmpi slt, %6, %c0_i32_9 : i32
    %14 = vector.broadcast %13 : i1 to vector<128x128xi1>
    %15 = vector.broadcast %14 : vector<128x128xi1> to vector<128x128xi1>
    %16 = arith.xori %12, %15 : vector<128x128xi1>
    %17 = arith.andi %16, %10 : vector<128x128xi1>
    %18 = vector.broadcast %6 : i32 to vector<128x128xi32>
    %19 = arith.addi %8, %18 : vector<128x128xi32>
    %20 = arith.select %17, %19, %8 : vector<128x128xi1>, vector<128x128xi32>
    %c0_i32_10 = arith.constant 0 : i32
    %21 = vector.broadcast %c0_i32_10 : i32 to vector<128x128xi32>
    %22 = arith.cmpi eq, %20, %21 : vector<128x128xi32>
    %c15_i32 = arith.constant 15 : i32
    %23 = vector.broadcast %c15_i32 : i32 to vector<128x128xi32>
    %24 = arith.cmpi eq, %20, %23 : vector<128x128xi32>
    %c0_11 = arith.constant 0 : index
    %c0_12 = arith.constant 0 : index
    %c0_13 = arith.constant 0 : index
    %25 = vector.load %arg2[%c0_11, %c0_12, %c0_13] : memref<4x384x128xbf16, #tpu.memory_space<vmem>>, vector<1x384x128xbf16>
    %26 = vector.shape_cast %25 : vector<1x384x128xbf16> to vector<384x128xbf16>
    %27 = vector.extract_strided_slice %0 {offsets = [1, 0], sizes = [127, 128], strides = [1, 1]} : vector<128x128xf32> to vector<127x128xf32>
    %28 = vector.extract_strided_slice %0 {offsets = [127, 0], sizes = [1, 128], strides = [1, 1]} : vector<128x128xf32> to vector<1x128xf32>
    %29 = tpu.concatenate %27, %28 in 0 : vector<127x128xf32>, vector<1x128xf32> -> vector<128x128xf32>
    %30 = vector.extract_strided_slice %0 {offsets = [0, 0], sizes = [1, 128], strides = [1, 1]} : vector<128x128xf32> to vector<1x128xf32>
    %31 = vector.extract_strided_slice %0 {offsets = [0, 0], sizes = [127, 128], strides = [1, 1]} : vector<128x128xf32> to vector<127x128xf32>
    %32 = tpu.concatenate %30, %31 in 0 : vector<1x128xf32>, vector<127x128xf32> -> vector<128x128xf32>
    %33 = arith.select %22, %29, %32 : vector<128x128xi1>, vector<128x128xf32>
    %34 = arith.select %24, %32, %29 : vector<128x128xi1>, vector<128x128xf32>
    %35 = tpu.concatenate %33, %0, %34 in 1 : vector<128x128xf32>, vector<128x128xf32>, vector<128x128xf32> -> vector<128x384xf32>
    %36 = arith.truncf %35 : vector<128x384xf32> to vector<128x384xbf16>
    %cst = arith.constant dense<0.000000e+00> : vector<128x128xf32>
    %37 = tpu.matmul %36, %26, %cst {dimension_numbers = #tpu.dot_dimension_numbers<[1], [0], [0], [1], [0, 0, 1, 1], [], []>} : vector<128x384xbf16>, vector<384x128xbf16>, vector<128x128xf32> -> vector<128x128xf32>
    %cst_14 = arith.constant dense<0.000000e+00> : vector<8x128xf32>
    %38 = tpu.matmul %1, %37, %cst_14 {dimension_numbers = #tpu.dot_dimension_numbers<[1], [0], [0], [1], [0, 0, 1, 1], [], []>} : vector<8x128xf32>, vector<128x128xf32>, vector<8x128xf32> -> vector<8x128xf32>
    %cst_15 = arith.constant dense<0.000000e+00> : vector<8x128xf32>
    %39 = tpu.matmul %38, %3, %cst_15 {dimension_numbers = #tpu.dot_dimension_numbers<[1], [0], [0], [1], [0, 0, 1, 1], [], []>} : vector<8x128xf32>, vector<128x128xf32>, vector<8x128xf32> -> vector<8x128xf32>
    %cst_16 = arith.constant dense<0.000000e+00> : vector<128x128xf32>
    %40 = tpu.matmul %2, %39, %cst_16 {dimension_numbers = #tpu.dot_dimension_numbers<[1], [0], [0], [1], [0, 0, 1, 1], [], []>} : vector<128x8xf32>, vector<8x128xf32>, vector<128x128xf32> -> vector<128x128xf32>
    %41 = arith.subf %37, %40 : vector<128x128xf32>
    %42 = arith.mulf %41, %41 : vector<128x128xf32>
    %cst_17 = arith.constant dense<0.000000e+00> : vector<8x128xf32>
    %43 = tpu.matmul %1, %42, %cst_17 {dimension_numbers = #tpu.dot_dimension_numbers<[1], [0], [0], [1], [0, 0, 1, 1], [], []>} : vector<8x128xf32>, vector<128x128xf32>, vector<8x128xf32> -> vector<8x128xf32>
    %cst_18 = arith.constant dense<0.000000e+00> : vector<8x128xf32>
    %44 = tpu.matmul %43, %3, %cst_18 {dimension_numbers = #tpu.dot_dimension_numbers<[1], [0], [0], [1], [0, 0, 1, 1], [], []>} : vector<8x128xf32>, vector<128x128xf32>, vector<8x128xf32> -> vector<8x128xf32>
    %cst_19 = arith.constant dense<0.000000e+00> : vector<128x128xf32>
    %45 = tpu.matmul %2, %44, %cst_19 {dimension_numbers = #tpu.dot_dimension_numbers<[1], [0], [0], [1], [0, 0, 1, 1], [], []>} : vector<128x8xf32>, vector<8x128xf32>, vector<128x128xf32> -> vector<128x128xf32>
    %cst_20 = arith.constant 9.99999974E-6 : f32
    %46 = vector.broadcast %cst_20 : f32 to vector<128x128xf32>
    %47 = arith.addf %45, %46 : vector<128x128xf32>
    %48 = math.rsqrt %47 : vector<128x128xf32>
    %49 = arith.mulf %41, %48 : vector<128x128xf32>
    %cst_21 = arith.constant 0.000000e+00 : f32
    %50 = vector.broadcast %cst_21 : f32 to vector<128x128xf32>
    %51 = arith.cmpf oge, %49, %50 : vector<128x128xf32>
    %cst_22 = arith.constant 1.000000e-01 : f32
    %52 = vector.broadcast %cst_22 : f32 to vector<128x128xf32>
    %53 = arith.mulf %52, %49 : vector<128x128xf32>
    %54 = arith.select %51, %49, %53 : vector<128x128xi1>, vector<128x128xf32>
    %c0_23 = arith.constant 0 : index
    %c0_24 = arith.constant 0 : index
    %c0_25 = arith.constant 0 : index
    %55 = vector.load %arg3[%c0_23, %c0_24, %c0_25] : memref<4x384x128xbf16, #tpu.memory_space<vmem>>, vector<1x384x128xbf16>
    %56 = vector.shape_cast %55 : vector<1x384x128xbf16> to vector<384x128xbf16>
    %57 = vector.extract_strided_slice %54 {offsets = [1, 0], sizes = [127, 128], strides = [1, 1]} : vector<128x128xf32> to vector<127x128xf32>
    %58 = vector.extract_strided_slice %54 {offsets = [127, 0], sizes = [1, 128], strides = [1, 1]} : vector<128x128xf32> to vector<1x128xf32>
    %59 = tpu.concatenate %57, %58 in 0 : vector<127x128xf32>, vector<1x128xf32> -> vector<128x128xf32>
    %60 = vector.extract_strided_slice %54 {offsets = [0, 0], sizes = [1, 128], strides = [1, 1]} : vector<128x128xf32> to vector<1x128xf32>
    %61 = vector.extract_strided_slice %54 {offsets = [0, 0], sizes = [127, 128], strides = [1, 1]} : vector<128x128xf32> to vector<127x128xf32>
    %62 = tpu.concatenate %60, %61 in 0 : vector<1x128xf32>, vector<127x128xf32> -> vector<128x128xf32>
    %63 = arith.select %22, %59, %62 : vector<128x128xi1>, vector<128x128xf32>
    %64 = arith.select %24, %62, %59 : vector<128x128xi1>, vector<128x128xf32>
    %65 = tpu.concatenate %63, %54, %64 in 1 : vector<128x128xf32>, vector<128x128xf32>, vector<128x128xf32> -> vector<128x384xf32>
    %66 = arith.truncf %65 : vector<128x384xf32> to vector<128x384xbf16>
    %cst_26 = arith.constant dense<0.000000e+00> : vector<128x128xf32>
    %67 = tpu.matmul %66, %56, %cst_26 {dimension_numbers = #tpu.dot_dimension_numbers<[1], [0], [0], [1], [0, 0, 1, 1], [], []>} : vector<128x384xbf16>, vector<384x128xbf16>, vector<128x128xf32> -> vector<128x128xf32>
    %cst_27 = arith.constant dense<0.000000e+00> : vector<8x128xf32>
    %68 = tpu.matmul %1, %67, %cst_27 {dimension_numbers = #tpu.dot_dimension_numbers<[1], [0], [0], [1], [0, 0, 1, 1], [], []>} : vector<8x128xf32>, vector<128x128xf32>, vector<8x128xf32> -> vector<8x128xf32>
    %cst_28 = arith.constant dense<0.000000e+00> : vector<8x128xf32>
    %69 = tpu.matmul %68, %3, %cst_28 {dimension_numbers = #tpu.dot_dimension_numbers<[1], [0], [0], [1], [0, 0, 1, 1], [], []>} : vector<8x128xf32>, vector<128x128xf32>, vector<8x128xf32> -> vector<8x128xf32>
    %cst_29 = arith.constant dense<0.000000e+00> : vector<128x128xf32>
    %70 = tpu.matmul %2, %69, %cst_29 {dimension_numbers = #tpu.dot_dimension_numbers<[1], [0], [0], [1], [0, 0, 1, 1], [], []>} : vector<128x8xf32>, vector<8x128xf32>, vector<128x128xf32> -> vector<128x128xf32>
    %71 = arith.subf %67, %70 : vector<128x128xf32>
    %72 = arith.mulf %71, %71 : vector<128x128xf32>
    %cst_30 = arith.constant dense<0.000000e+00> : vector<8x128xf32>
    %73 = tpu.matmul %1, %72, %cst_30 {dimension_numbers = #tpu.dot_dimension_numbers<[1], [0], [0], [1], [0, 0, 1, 1], [], []>} : vector<8x128xf32>, vector<128x128xf32>, vector<8x128xf32> -> vector<8x128xf32>
    %cst_31 = arith.constant dense<0.000000e+00> : vector<8x128xf32>
    %74 = tpu.matmul %73, %3, %cst_31 {dimension_numbers = #tpu.dot_dimension_numbers<[1], [0], [0], [1], [0, 0, 1, 1], [], []>} : vector<8x128xf32>, vector<128x128xf32>, vector<8x128xf32> -> vector<8x128xf32>
    %cst_32 = arith.constant dense<0.000000e+00> : vector<128x128xf32>
    %75 = tpu.matmul %2, %74, %cst_32 {dimension_numbers = #tpu.dot_dimension_numbers<[1], [0], [0], [1], [0, 0, 1, 1], [], []>} : vector<128x8xf32>, vector<8x128xf32>, vector<128x128xf32> -> vector<128x128xf32>
    %cst_33 = arith.constant 9.99999974E-6 : f32
    %76 = vector.broadcast %cst_33 : f32 to vector<128x128xf32>
    %77 = arith.addf %75, %76 : vector<128x128xf32>
    %78 = math.rsqrt %77 : vector<128x128xf32>
    %79 = arith.mulf %71, %78 : vector<128x128xf32>
    %80 = arith.addf %0, %79 : vector<128x128xf32>
    %c1 = arith.constant 1 : index
    %c0_34 = arith.constant 0 : index
    %c0_35 = arith.constant 0 : index
    %81 = vector.load %arg2[%c1, %c0_34, %c0_35] : memref<4x384x128xbf16, #tpu.memory_space<vmem>>, vector<1x384x128xbf16>
    %82 = vector.shape_cast %81 : vector<1x384x128xbf16> to vector<384x128xbf16>
    %83 = vector.extract_strided_slice %80 {offsets = [1, 0], sizes = [127, 128], strides = [1, 1]} : vector<128x128xf32> to vector<127x128xf32>
    %84 = vector.extract_strided_slice %80 {offsets = [127, 0], sizes = [1, 128], strides = [1, 1]} : vector<128x128xf32> to vector<1x128xf32>
    %85 = tpu.concatenate %83, %84 in 0 : vector<127x128xf32>, vector<1x128xf32> -> vector<128x128xf32>
    %86 = vector.extract_strided_slice %80 {offsets = [0, 0], sizes = [1, 128], strides = [1, 1]} : vector<128x128xf32> to vector<1x128xf32>
    %87 = vector.extract_strided_slice %80 {offsets = [0, 0], sizes = [127, 128], strides = [1, 1]} : vector<128x128xf32> to vector<127x128xf32>
    %88 = tpu.concatenate %86, %87 in 0 : vector<1x128xf32>, vector<127x128xf32> -> vector<128x128xf32>
    %89 = arith.select %22, %85, %88 : vector<128x128xi1>, vector<128x128xf32>
    %90 = arith.select %24, %88, %85 : vector<128x128xi1>, vector<128x128xf32>
    %91 = tpu.concatenate %89, %80, %90 in 1 : vector<128x128xf32>, vector<128x128xf32>, vector<128x128xf32> -> vector<128x384xf32>
    %92 = arith.truncf %91 : vector<128x384xf32> to vector<128x384xbf16>
    %cst_36 = arith.constant dense<0.000000e+00> : vector<128x128xf32>
    %93 = tpu.matmul %92, %82, %cst_36 {dimension_numbers = #tpu.dot_dimension_numbers<[1], [0], [0], [1], [0, 0, 1, 1], [], []>} : vector<128x384xbf16>, vector<384x128xbf16>, vector<128x128xf32> -> vector<128x128xf32>
    %cst_37 = arith.constant dense<0.000000e+00> : vector<8x128xf32>
    %94 = tpu.matmul %1, %93, %cst_37 {dimension_numbers = #tpu.dot_dimension_numbers<[1], [0], [0], [1], [0, 0, 1, 1], [], []>} : vector<8x128xf32>, vector<128x128xf32>, vector<8x128xf32> -> vector<8x128xf32>
    %cst_38 = arith.constant dense<0.000000e+00> : vector<8x128xf32>
    %95 = tpu.matmul %94, %3, %cst_38 {dimension_numbers = #tpu.dot_dimension_numbers<[1], [0], [0], [1], [0, 0, 1, 1], [], []>} : vector<8x128xf32>, vector<128x128xf32>, vector<8x128xf32> -> vector<8x128xf32>
    %cst_39 = arith.constant dense<0.000000e+00> : vector<128x128xf32>
    %96 = tpu.matmul %2, %95, %cst_39 {dimension_numbers = #tpu.dot_dimension_numbers<[1], [0], [0], [1], [0, 0, 1, 1], [], []>} : vector<128x8xf32>, vector<8x128xf32>, vector<128x128xf32> -> vector<128x128xf32>
    %97 = arith.subf %93, %96 : vector<128x128xf32>
    %98 = arith.mulf %97, %97 : vector<128x128xf32>
    %cst_40 = arith.constant dense<0.000000e+00> : vector<8x128xf32>
    %99 = tpu.matmul %1, %98, %cst_40 {dimension_numbers = #tpu.dot_dimension_numbers<[1], [0], [0], [1], [0, 0, 1, 1], [], []>} : vector<8x128xf32>, vector<128x128xf32>, vector<8x128xf32> -> vector<8x128xf32>
    %cst_41 = arith.constant dense<0.000000e+00> : vector<8x128xf32>
    %100 = tpu.matmul %99, %3, %cst_41 {dimension_numbers = #tpu.dot_dimension_numbers<[1], [0], [0], [1], [0, 0, 1, 1], [], []>} : vector<8x128xf32>, vector<128x128xf32>, vector<8x128xf32> -> vector<8x128xf32>
    %cst_42 = arith.constant dense<0.000000e+00> : vector<128x128xf32>
    %101 = tpu.matmul %2, %100, %cst_42 {dimension_numbers = #tpu.dot_dimension_numbers<[1], [0], [0], [1], [0, 0, 1, 1], [], []>} : vector<128x8xf32>, vector<8x128xf32>, vector<128x128xf32> -> vector<128x128xf32>
    %cst_43 = arith.constant 9.99999974E-6 : f32
    %102 = vector.broadcast %cst_43 : f32 to vector<128x128xf32>
    %103 = arith.addf %101, %102 : vector<128x128xf32>
    %104 = math.rsqrt %103 : vector<128x128xf32>
    %105 = arith.mulf %97, %104 : vector<128x128xf32>
    %cst_44 = arith.constant 0.000000e+00 : f32
    %106 = vector.broadcast %cst_44 : f32 to vector<128x128xf32>
    %107 = arith.cmpf oge, %105, %106 : vector<128x128xf32>
    %cst_45 = arith.constant 1.000000e-01 : f32
    %108 = vector.broadcast %cst_45 : f32 to vector<128x128xf32>
    %109 = arith.mulf %108, %105 : vector<128x128xf32>
    %110 = arith.select %107, %105, %109 : vector<128x128xi1>, vector<128x128xf32>
    %c1_46 = arith.constant 1 : index
    %c0_47 = arith.constant 0 : index
    %c0_48 = arith.constant 0 : index
    %111 = vector.load %arg3[%c1_46, %c0_47, %c0_48] : memref<4x384x128xbf16, #tpu.memory_space<vmem>>, vector<1x384x128xbf16>
    %112 = vector.shape_cast %111 : vector<1x384x128xbf16> to vector<384x128xbf16>
    %113 = vector.extract_strided_slice %110 {offsets = [1, 0], sizes = [127, 128], strides = [1, 1]} : vector<128x128xf32> to vector<127x128xf32>
    %114 = vector.extract_strided_slice %110 {offsets = [127, 0], sizes = [1, 128], strides = [1, 1]} : vector<128x128xf32> to vector<1x128xf32>
    %115 = tpu.concatenate %113, %114 in 0 : vector<127x128xf32>, vector<1x128xf32> -> vector<128x128xf32>
    %116 = vector.extract_strided_slice %110 {offsets = [0, 0], sizes = [1, 128], strides = [1, 1]} : vector<128x128xf32> to vector<1x128xf32>
    %117 = vector.extract_strided_slice %110 {offsets = [0, 0], sizes = [127, 128], strides = [1, 1]} : vector<128x128xf32> to vector<127x128xf32>
    %118 = tpu.concatenate %116, %117 in 0 : vector<1x128xf32>, vector<127x128xf32> -> vector<128x128xf32>
    %119 = arith.select %22, %115, %118 : vector<128x128xi1>, vector<128x128xf32>
    %120 = arith.select %24, %118, %115 : vector<128x128xi1>, vector<128x128xf32>
    %121 = tpu.concatenate %119, %110, %120 in 1 : vector<128x128xf32>, vector<128x128xf32>, vector<128x128xf32> -> vector<128x384xf32>
    %122 = arith.truncf %121 : vector<128x384xf32> to vector<128x384xbf16>
    %cst_49 = arith.constant dense<0.000000e+00> : vector<128x128xf32>
    %123 = tpu.matmul %122, %112, %cst_49 {dimension_numbers = #tpu.dot_dimension_numbers<[1], [0], [0], [1], [0, 0, 1, 1], [], []>} : vector<128x384xbf16>, vector<384x128xbf16>, vector<128x128xf32> -> vector<128x128xf32>
    %cst_50 = arith.constant dense<0.000000e+00> : vector<8x128xf32>
    %124 = tpu.matmul %1, %123, %cst_50 {dimension_numbers = #tpu.dot_dimension_numbers<[1], [0], [0], [1], [0, 0, 1, 1], [], []>} : vector<8x128xf32>, vector<128x128xf32>, vector<8x128xf32> -> vector<8x128xf32>
    %cst_51 = arith.constant dense<0.000000e+00> : vector<8x128xf32>
    %125 = tpu.matmul %124, %3, %cst_51 {dimension_numbers = #tpu.dot_dimension_numbers<[1], [0], [0], [1], [0, 0, 1, 1], [], []>} : vector<8x128xf32>, vector<128x128xf32>, vector<8x128xf32> -> vector<8x128xf32>
    %cst_52 = arith.constant dense<0.000000e+00> : vector<128x128xf32>
    %126 = tpu.matmul %2, %125, %cst_52 {dimension_numbers = #tpu.dot_dimension_numbers<[1], [0], [0], [1], [0, 0, 1, 1], [], []>} : vector<128x8xf32>, vector<8x128xf32>, vector<128x128xf32> -> vector<128x128xf32>
    %127 = arith.subf %123, %126 : vector<128x128xf32>
    %128 = arith.mulf %127, %127 : vector<128x128xf32>
    %cst_53 = arith.constant dense<0.000000e+00> : vector<8x128xf32>
    %129 = tpu.matmul %1, %128, %cst_53 {dimension_numbers = #tpu.dot_dimension_numbers<[1], [0], [0], [1], [0, 0, 1, 1], [], []>} : vector<8x128xf32>, vector<128x128xf32>, vector<8x128xf32> -> vector<8x128xf32>
    %cst_54 = arith.constant dense<0.000000e+00> : vector<8x128xf32>
    %130 = tpu.matmul %129, %3, %cst_54 {dimension_numbers = #tpu.dot_dimension_numbers<[1], [0], [0], [1], [0, 0, 1, 1], [], []>} : vector<8x128xf32>, vector<128x128xf32>, vector<8x128xf32> -> vector<8x128xf32>
    %cst_55 = arith.constant dense<0.000000e+00> : vector<128x128xf32>
    %131 = tpu.matmul %2, %130, %cst_55 {dimension_numbers = #tpu.dot_dimension_numbers<[1], [0], [0], [1], [0, 0, 1, 1], [], []>} : vector<128x8xf32>, vector<8x128xf32>, vector<128x128xf32> -> vector<128x128xf32>
    %cst_56 = arith.constant 9.99999974E-6 : f32
    %132 = vector.broadcast %cst_56 : f32 to vector<128x128xf32>
    %133 = arith.addf %131, %132 : vector<128x128xf32>
    %134 = math.rsqrt %133 : vector<128x128xf32>
    %135 = arith.mulf %127, %134 : vector<128x128xf32>
    %136 = arith.addf %80, %135 : vector<128x128xf32>
    %c2 = arith.constant 2 : index
    %c0_57 = arith.constant 0 : index
    %c0_58 = arith.constant 0 : index
    %137 = vector.load %arg2[%c2, %c0_57, %c0_58] : memref<4x384x128xbf16, #tpu.memory_space<vmem>>, vector<1x384x128xbf16>
    %138 = vector.shape_cast %137 : vector<1x384x128xbf16> to vector<384x128xbf16>
    %139 = vector.extract_strided_slice %136 {offsets = [1, 0], sizes = [127, 128], strides = [1, 1]} : vector<128x128xf32> to vector<127x128xf32>
    %140 = vector.extract_strided_slice %136 {offsets = [127, 0], sizes = [1, 128], strides = [1, 1]} : vector<128x128xf32> to vector<1x128xf32>
    %141 = tpu.concatenate %139, %140 in 0 : vector<127x128xf32>, vector<1x128xf32> -> vector<128x128xf32>
    %142 = vector.extract_strided_slice %136 {offsets = [0, 0], sizes = [1, 128], strides = [1, 1]} : vector<128x128xf32> to vector<1x128xf32>
    %143 = vector.extract_strided_slice %136 {offsets = [0, 0], sizes = [127, 128], strides = [1, 1]} : vector<128x128xf32> to vector<127x128xf32>
    %144 = tpu.concatenate %142, %143 in 0 : vector<1x128xf32>, vector<127x128xf32> -> vector<128x128xf32>
    %145 = arith.select %22, %141, %144 : vector<128x128xi1>, vector<128x128xf32>
    %146 = arith.select %24, %144, %141 : vector<128x128xi1>, vector<128x128xf32>
    %147 = tpu.concatenate %145, %136, %146 in 1 : vector<128x128xf32>, vector<128x128xf32>, vector<128x128xf32> -> vector<128x384xf32>
    %148 = arith.truncf %147 : vector<128x384xf32> to vector<128x384xbf16>
    %cst_59 = arith.constant dense<0.000000e+00> : vector<128x128xf32>
    %149 = tpu.matmul %148, %138, %cst_59 {dimension_numbers = #tpu.dot_dimension_numbers<[1], [0], [0], [1], [0, 0, 1, 1], [], []>} : vector<128x384xbf16>, vector<384x128xbf16>, vector<128x128xf32> -> vector<128x128xf32>
    %cst_60 = arith.constant dense<0.000000e+00> : vector<8x128xf32>
    %150 = tpu.matmul %1, %149, %cst_60 {dimension_numbers = #tpu.dot_dimension_numbers<[1], [0], [0], [1], [0, 0, 1, 1], [], []>} : vector<8x128xf32>, vector<128x128xf32>, vector<8x128xf32> -> vector<8x128xf32>
    %cst_61 = arith.constant dense<0.000000e+00> : vector<8x128xf32>
    %151 = tpu.matmul %150, %3, %cst_61 {dimension_numbers = #tpu.dot_dimension_numbers<[1], [0], [0], [1], [0, 0, 1, 1], [], []>} : vector<8x128xf32>, vector<128x128xf32>, vector<8x128xf32> -> vector<8x128xf32>
    %cst_62 = arith.constant dense<0.000000e+00> : vector<128x128xf32>
    %152 = tpu.matmul %2, %151, %cst_62 {dimension_numbers = #tpu.dot_dimension_numbers<[1], [0], [0], [1], [0, 0, 1, 1], [], []>} : vector<128x8xf32>, vector<8x128xf32>, vector<128x128xf32> -> vector<128x128xf32>
    %153 = arith.subf %149, %152 : vector<128x128xf32>
    %154 = arith.mulf %153, %153 : vector<128x128xf32>
    %cst_63 = arith.constant dense<0.000000e+00> : vector<8x128xf32>
    %155 = tpu.matmul %1, %154, %cst_63 {dimension_numbers = #tpu.dot_dimension_numbers<[1], [0], [0], [1], [0, 0, 1, 1], [], []>} : vector<8x128xf32>, vector<128x128xf32>, vector<8x128xf32> -> vector<8x128xf32>
    %cst_64 = arith.constant dense<0.000000e+00> : vector<8x128xf32>
    %156 = tpu.matmul %155, %3, %cst_64 {dimension_numbers = #tpu.dot_dimension_numbers<[1], [0], [0], [1], [0, 0, 1, 1], [], []>} : vector<8x128xf32>, vector<128x128xf32>, vector<8x128xf32> -> vector<8x128xf32>
    %cst_65 = arith.constant dense<0.000000e+00> : vector<128x128xf32>
    %157 = tpu.matmul %2, %156, %cst_65 {dimension_numbers = #tpu.dot_dimension_numbers<[1], [0], [0], [1], [0, 0, 1, 1], [], []>} : vector<128x8xf32>, vector<8x128xf32>, vector<128x128xf32> -> vector<128x128xf32>
    %cst_66 = arith.constant 9.99999974E-6 : f32
    %158 = vector.broadcast %cst_66 : f32 to vector<128x128xf32>
    %159 = arith.addf %157, %158 : vector<128x128xf32>
    %160 = math.rsqrt %159 : vector<128x128xf32>
    %161 = arith.mulf %153, %160 : vector<128x128xf32>
    %cst_67 = arith.constant 0.000000e+00 : f32
    %162 = vector.broadcast %cst_67 : f32 to vector<128x128xf32>
    %163 = arith.cmpf oge, %161, %162 : vector<128x128xf32>
    %cst_68 = arith.constant 1.000000e-01 : f32
    %164 = vector.broadcast %cst_68 : f32 to vector<128x128xf32>
    %165 = arith.mulf %164, %161 : vector<128x128xf32>
    %166 = arith.select %163, %161, %165 : vector<128x128xi1>, vector<128x128xf32>
    %c2_69 = arith.constant 2 : index
    %c0_70 = arith.constant 0 : index
    %c0_71 = arith.constant 0 : index
    %167 = vector.load %arg3[%c2_69, %c0_70, %c0_71] : memref<4x384x128xbf16, #tpu.memory_space<vmem>>, vector<1x384x128xbf16>
    %168 = vector.shape_cast %167 : vector<1x384x128xbf16> to vector<384x128xbf16>
    %169 = vector.extract_strided_slice %166 {offsets = [1, 0], sizes = [127, 128], strides = [1, 1]} : vector<128x128xf32> to vector<127x128xf32>
    %170 = vector.extract_strided_slice %166 {offsets = [127, 0], sizes = [1, 128], strides = [1, 1]} : vector<128x128xf32> to vector<1x128xf32>
    %171 = tpu.concatenate %169, %170 in 0 : vector<127x128xf32>, vector<1x128xf32> -> vector<128x128xf32>
    %172 = vector.extract_strided_slice %166 {offsets = [0, 0], sizes = [1, 128], strides = [1, 1]} : vector<128x128xf32> to vector<1x128xf32>
    %173 = vector.extract_strided_slice %166 {offsets = [0, 0], sizes = [127, 128], strides = [1, 1]} : vector<128x128xf32> to vector<127x128xf32>
    %174 = tpu.concatenate %172, %173 in 0 : vector<1x128xf32>, vector<127x128xf32> -> vector<128x128xf32>
    %175 = arith.select %22, %171, %174 : vector<128x128xi1>, vector<128x128xf32>
    %176 = arith.select %24, %174, %171 : vector<128x128xi1>, vector<128x128xf32>
    %177 = tpu.concatenate %175, %166, %176 in 1 : vector<128x128xf32>, vector<128x128xf32>, vector<128x128xf32> -> vector<128x384xf32>
    %178 = arith.truncf %177 : vector<128x384xf32> to vector<128x384xbf16>
    %cst_72 = arith.constant dense<0.000000e+00> : vector<128x128xf32>
    %179 = tpu.matmul %178, %168, %cst_72 {dimension_numbers = #tpu.dot_dimension_numbers<[1], [0], [0], [1], [0, 0, 1, 1], [], []>} : vector<128x384xbf16>, vector<384x128xbf16>, vector<128x128xf32> -> vector<128x128xf32>
    %cst_73 = arith.constant dense<0.000000e+00> : vector<8x128xf32>
    %180 = tpu.matmul %1, %179, %cst_73 {dimension_numbers = #tpu.dot_dimension_numbers<[1], [0], [0], [1], [0, 0, 1, 1], [], []>} : vector<8x128xf32>, vector<128x128xf32>, vector<8x128xf32> -> vector<8x128xf32>
    %cst_74 = arith.constant dense<0.000000e+00> : vector<8x128xf32>
    %181 = tpu.matmul %180, %3, %cst_74 {dimension_numbers = #tpu.dot_dimension_numbers<[1], [0], [0], [1], [0, 0, 1, 1], [], []>} : vector<8x128xf32>, vector<128x128xf32>, vector<8x128xf32> -> vector<8x128xf32>
    %cst_75 = arith.constant dense<0.000000e+00> : vector<128x128xf32>
    %182 = tpu.matmul %2, %181, %cst_75 {dimension_numbers = #tpu.dot_dimension_numbers<[1], [0], [0], [1], [0, 0, 1, 1], [], []>} : vector<128x8xf32>, vector<8x128xf32>, vector<128x128xf32> -> vector<128x128xf32>
    %183 = arith.subf %179, %182 : vector<128x128xf32>
    %184 = arith.mulf %183, %183 : vector<128x128xf32>
    %cst_76 = arith.constant dense<0.000000e+00> : vector<8x128xf32>
    %185 = tpu.matmul %1, %184, %cst_76 {dimension_numbers = #tpu.dot_dimension_numbers<[1], [0], [0], [1], [0, 0, 1, 1], [], []>} : vector<8x128xf32>, vector<128x128xf32>, vector<8x128xf32> -> vector<8x128xf32>
    %cst_77 = arith.constant dense<0.000000e+00> : vector<8x128xf32>
    %186 = tpu.matmul %185, %3, %cst_77 {dimension_numbers = #tpu.dot_dimension_numbers<[1], [0], [0], [1], [0, 0, 1, 1], [], []>} : vector<8x128xf32>, vector<128x128xf32>, vector<8x128xf32> -> vector<8x128xf32>
    %cst_78 = arith.constant dense<0.000000e+00> : vector<128x128xf32>
    %187 = tpu.matmul %2, %186, %cst_78 {dimension_numbers = #tpu.dot_dimension_numbers<[1], [0], [0], [1], [0, 0, 1, 1], [], []>} : vector<128x8xf32>, vector<8x128xf32>, vector<128x128xf32> -> vector<128x128xf32>
    %cst_79 = arith.constant 9.99999974E-6 : f32
    %188 = vector.broadcast %cst_79 : f32 to vector<128x128xf32>
    %189 = arith.addf %187, %188 : vector<128x128xf32>
    %190 = math.rsqrt %189 : vector<128x128xf32>
    %191 = arith.mulf %183, %190 : vector<128x128xf32>
    %192 = arith.addf %136, %191 : vector<128x128xf32>
    %c3 = arith.constant 3 : index
    %c0_80 = arith.constant 0 : index
    %c0_81 = arith.constant 0 : index
    %193 = vector.load %arg2[%c3, %c0_80, %c0_81] : memref<4x384x128xbf16, #tpu.memory_space<vmem>>, vector<1x384x128xbf16>
    %194 = vector.shape_cast %193 : vector<1x384x128xbf16> to vector<384x128xbf16>
    %195 = vector.extract_strided_slice %192 {offsets = [1, 0], sizes = [127, 128], strides = [1, 1]} : vector<128x128xf32> to vector<127x128xf32>
    %196 = vector.extract_strided_slice %192 {offsets = [127, 0], sizes = [1, 128], strides = [1, 1]} : vector<128x128xf32> to vector<1x128xf32>
    %197 = tpu.concatenate %195, %196 in 0 : vector<127x128xf32>, vector<1x128xf32> -> vector<128x128xf32>
    %198 = vector.extract_strided_slice %192 {offsets = [0, 0], sizes = [1, 128], strides = [1, 1]} : vector<128x128xf32> to vector<1x128xf32>
    %199 = vector.extract_strided_slice %192 {offsets = [0, 0], sizes = [127, 128], strides = [1, 1]} : vector<128x128xf32> to vector<127x128xf32>
    %200 = tpu.concatenate %198, %199 in 0 : vector<1x128xf32>, vector<127x128xf32> -> vector<128x128xf32>
    %201 = arith.select %22, %197, %200 : vector<128x128xi1>, vector<128x128xf32>
    %202 = arith.select %24, %200, %197 : vector<128x128xi1>, vector<128x128xf32>
    %203 = tpu.concatenate %201, %192, %202 in 1 : vector<128x128xf32>, vector<128x128xf32>, vector<128x128xf32> -> vector<128x384xf32>
    %204 = arith.truncf %203 : vector<128x384xf32> to vector<128x384xbf16>
    %cst_82 = arith.constant dense<0.000000e+00> : vector<128x128xf32>
    %205 = tpu.matmul %204, %194, %cst_82 {dimension_numbers = #tpu.dot_dimension_numbers<[1], [0], [0], [1], [0, 0, 1, 1], [], []>} : vector<128x384xbf16>, vector<384x128xbf16>, vector<128x128xf32> -> vector<128x128xf32>
    %cst_83 = arith.constant dense<0.000000e+00> : vector<8x128xf32>
    %206 = tpu.matmul %1, %205, %cst_83 {dimension_numbers = #tpu.dot_dimension_numbers<[1], [0], [0], [1], [0, 0, 1, 1], [], []>} : vector<8x128xf32>, vector<128x128xf32>, vector<8x128xf32> -> vector<8x128xf32>
    %cst_84 = arith.constant dense<0.000000e+00> : vector<8x128xf32>
    %207 = tpu.matmul %206, %3, %cst_84 {dimension_numbers = #tpu.dot_dimension_numbers<[1], [0], [0], [1], [0, 0, 1, 1], [], []>} : vector<8x128xf32>, vector<128x128xf32>, vector<8x128xf32> -> vector<8x128xf32>
    %cst_85 = arith.constant dense<0.000000e+00> : vector<128x128xf32>
    %208 = tpu.matmul %2, %207, %cst_85 {dimension_numbers = #tpu.dot_dimension_numbers<[1], [0], [0], [1], [0, 0, 1, 1], [], []>} : vector<128x8xf32>, vector<8x128xf32>, vector<128x128xf32> -> vector<128x128xf32>
    %209 = arith.subf %205, %208 : vector<128x128xf32>
    %210 = arith.mulf %209, %209 : vector<128x128xf32>
    %cst_86 = arith.constant dense<0.000000e+00> : vector<8x128xf32>
    %211 = tpu.matmul %1, %210, %cst_86 {dimension_numbers = #tpu.dot_dimension_numbers<[1], [0], [0], [1], [0, 0, 1, 1], [], []>} : vector<8x128xf32>, vector<128x128xf32>, vector<8x128xf32> -> vector<8x128xf32>
    %cst_87 = arith.constant dense<0.000000e+00> : vector<8x128xf32>
    %212 = tpu.matmul %211, %3, %cst_87 {dimension_numbers = #tpu.dot_dimension_numbers<[1], [0], [0], [1], [0, 0, 1, 1], [], []>} : vector<8x128xf32>, vector<128x128xf32>, vector<8x128xf32> -> vector<8x128xf32>
    %cst_88 = arith.constant dense<0.000000e+00> : vector<128x128xf32>
    %213 = tpu.matmul %2, %212, %cst_88 {dimension_numbers = #tpu.dot_dimension_numbers<[1], [0], [0], [1], [0, 0, 1, 1], [], []>} : vector<128x8xf32>, vector<8x128xf32>, vector<128x128xf32> -> vector<128x128xf32>
    %cst_89 = arith.constant 9.99999974E-6 : f32
    %214 = vector.broadcast %cst_89 : f32 to vector<128x128xf32>
    %215 = arith.addf %213, %214 : vector<128x128xf32>
    %216 = math.rsqrt %215 : vector<128x128xf32>
    %217 = arith.mulf %209, %216 : vector<128x128xf32>
    %cst_90 = arith.constant 0.000000e+00 : f32
    %218 = vector.broadcast %cst_90 : f32 to vector<128x128xf32>
    %219 = arith.cmpf oge, %217, %218 : vector<128x128xf32>
    %cst_91 = arith.constant 1.000000e-01 : f32
    %220 = vector.broadcast %cst_91 : f32 to vector<128x128xf32>
    %221 = arith.mulf %220, %217 : vector<128x128xf32>
    %222 = arith.select %219, %217, %221 : vector<128x128xi1>, vector<128x128xf32>
    %c3_92 = arith.constant 3 : index
    %c0_93 = arith.constant 0 : index
    %c0_94 = arith.constant 0 : index
    %223 = vector.load %arg3[%c3_92, %c0_93, %c0_94] : memref<4x384x128xbf16, #tpu.memory_space<vmem>>, vector<1x384x128xbf16>
    %224 = vector.shape_cast %223 : vector<1x384x128xbf16> to vector<384x128xbf16>
    %225 = vector.extract_strided_slice %222 {offsets = [1, 0], sizes = [127, 128], strides = [1, 1]} : vector<128x128xf32> to vector<127x128xf32>
    %226 = vector.extract_strided_slice %222 {offsets = [127, 0], sizes = [1, 128], strides = [1, 1]} : vector<128x128xf32> to vector<1x128xf32>
    %227 = tpu.concatenate %225, %226 in 0 : vector<127x128xf32>, vector<1x128xf32> -> vector<128x128xf32>
    %228 = vector.extract_strided_slice %222 {offsets = [0, 0], sizes = [1, 128], strides = [1, 1]} : vector<128x128xf32> to vector<1x128xf32>
    %229 = vector.extract_strided_slice %222 {offsets = [0, 0], sizes = [127, 128], strides = [1, 1]} : vector<128x128xf32> to vector<127x128xf32>
    %230 = tpu.concatenate %228, %229 in 0 : vector<1x128xf32>, vector<127x128xf32> -> vector<128x128xf32>
    %231 = arith.select %22, %227, %230 : vector<128x128xi1>, vector<128x128xf32>
    %232 = arith.select %24, %230, %227 : vector<128x128xi1>, vector<128x128xf32>
    %233 = tpu.concatenate %231, %222, %232 in 1 : vector<128x128xf32>, vector<128x128xf32>, vector<128x128xf32> -> vector<128x384xf32>
    %234 = arith.truncf %233 : vector<128x384xf32> to vector<128x384xbf16>
    %cst_95 = arith.constant dense<0.000000e+00> : vector<128x128xf32>
    %235 = tpu.matmul %234, %224, %cst_95 {dimension_numbers = #tpu.dot_dimension_numbers<[1], [0], [0], [1], [0, 0, 1, 1], [], []>} : vector<128x384xbf16>, vector<384x128xbf16>, vector<128x128xf32> -> vector<128x128xf32>
    %cst_96 = arith.constant dense<0.000000e+00> : vector<8x128xf32>
    %236 = tpu.matmul %1, %235, %cst_96 {dimension_numbers = #tpu.dot_dimension_numbers<[1], [0], [0], [1], [0, 0, 1, 1], [], []>} : vector<8x128xf32>, vector<128x128xf32>, vector<8x128xf32> -> vector<8x128xf32>
    %cst_97 = arith.constant dense<0.000000e+00> : vector<8x128xf32>
    %237 = tpu.matmul %236, %3, %cst_97 {dimension_numbers = #tpu.dot_dimension_numbers<[1], [0], [0], [1], [0, 0, 1, 1], [], []>} : vector<8x128xf32>, vector<128x128xf32>, vector<8x128xf32> -> vector<8x128xf32>
    %cst_98 = arith.constant dense<0.000000e+00> : vector<128x128xf32>
    %238 = tpu.matmul %2, %237, %cst_98 {dimension_numbers = #tpu.dot_dimension_numbers<[1], [0], [0], [1], [0, 0, 1, 1], [], []>} : vector<128x8xf32>, vector<8x128xf32>, vector<128x128xf32> -> vector<128x128xf32>
    %239 = arith.subf %235, %238 : vector<128x128xf32>
    %240 = arith.mulf %239, %239 : vector<128x128xf32>
    %cst_99 = arith.constant dense<0.000000e+00> : vector<8x128xf32>
    %241 = tpu.matmul %1, %240, %cst_99 {dimension_numbers = #tpu.dot_dimension_numbers<[1], [0], [0], [1], [0, 0, 1, 1], [], []>} : vector<8x128xf32>, vector<128x128xf32>, vector<8x128xf32> -> vector<8x128xf32>
    %cst_100 = arith.constant dense<0.000000e+00> : vector<8x128xf32>
    %242 = tpu.matmul %241, %3, %cst_100 {dimension_numbers = #tpu.dot_dimension_numbers<[1], [0], [0], [1], [0, 0, 1, 1], [], []>} : vector<8x128xf32>, vector<128x128xf32>, vector<8x128xf32> -> vector<8x128xf32>
    %cst_101 = arith.constant dense<0.000000e+00> : vector<128x128xf32>
    %243 = tpu.matmul %2, %242, %cst_101 {dimension_numbers = #tpu.dot_dimension_numbers<[1], [0], [0], [1], [0, 0, 1, 1], [], []>} : vector<128x8xf32>, vector<8x128xf32>, vector<128x128xf32> -> vector<128x128xf32>
    %cst_102 = arith.constant 9.99999974E-6 : f32
    %244 = vector.broadcast %cst_102 : f32 to vector<128x128xf32>
    %245 = arith.addf %243, %244 : vector<128x128xf32>
    %246 = math.rsqrt %245 : vector<128x128xf32>
    %247 = arith.mulf %239, %246 : vector<128x128xf32>
    %248 = arith.addf %192, %247 : vector<128x128xf32>
    %c0_103 = arith.constant 0 : index
    %c0_104 = arith.constant 0 : index
    %249 = vector.load %arg7[%c0_103, %c0_104] : memref<128x128xf32, #tpu.memory_space<vmem>>, vector<128x128xf32>
    tpu.vector_store %arg7[%c0_103, %c0_104], %248 {strides = array<i32>} : memref<128x128xf32, #tpu.memory_space<vmem>>, vector<128x128xf32>,
    return
  }
  func.func @transform_0(%arg0: i32) -> (i32, i32) {
    %c0_i32 = arith.constant 0 : i32
    %c0_i32_0 = arith.constant 0 : i32
    return %arg0, %c0_i32 : i32, i32
  }
  func.func @transform_1(%arg0: i32) -> (i32, i32, i32) {
    %c0_i32 = arith.constant 0 : i32
    %c0_i32_0 = arith.constant 0 : i32
    %c0_i32_1 = arith.constant 0 : i32
    %c0_i32_2 = arith.constant 0 : i32
    return %c0_i32, %c0_i32_0, %c0_i32_1 : i32, i32, i32
  }
  func.func @transform_2(%arg0: i32) -> (i32, i32, i32) {
    %c0_i32 = arith.constant 0 : i32
    %c0_i32_0 = arith.constant 0 : i32
    %c0_i32_1 = arith.constant 0 : i32
    %c0_i32_2 = arith.constant 0 : i32
    return %c0_i32, %c0_i32_0, %c0_i32_1 : i32, i32, i32
  }
  func.func @transform_3(%arg0: i32) -> (i32, i32) {
    %c0_i32 = arith.constant 0 : i32
    %c0_i32_0 = arith.constant 0 : i32
    %c0_i32_1 = arith.constant 0 : i32
    return %c0_i32, %c0_i32_0 : i32, i32
  }
  func.func @transform_4(%arg0: i32) -> (i32, i32) {
    %c0_i32 = arith.constant 0 : i32
    %c0_i32_0 = arith.constant 0 : i32
    %c0_i32_1 = arith.constant 0 : i32
    return %c0_i32, %c0_i32_0 : i32, i32
  }
  func.func @transform_5(%arg0: i32) -> (i32, i32) {
    %c0_i32 = arith.constant 0 : i32
    %c0_i32_0 = arith.constant 0 : i32
    %c0_i32_1 = arith.constant 0 : i32
    return %c0_i32, %c0_i32_0 : i32, i32
  }
  func.func @transform_6(%arg0: i32) -> (i32, i32) {
    %c0_i32 = arith.constant 0 : i32
    %c0_i32_0 = arith.constant 0 : i32
    return %arg0, %c0_i32 : i32, i32
  }
}

</mosaic_0001>

<bundles_post_ra>
// kernel: residual_stack.1
= control target key start
LH: loop header
LB: loop body
LE: loop exit
PB: predicated region body
PF: predicated region fallthrough
CT: control target
= control target key end

     0   :  { %11 = vsyncpa [#allocation3], 0  ;;  %s14870_s0 = inlined_call_operand.hbm [shape: f32[256,128], index: 0, kind: input, shape index: {}]   ;;  %s14871_s1 = inlined_call_operand.hbm [shape: bf16[4,384,128], index: 1, kind: input, shape index: {}]   ;;  %s14872_s2 = inlined_call_operand.hbm [shape: bf16[4,384,128], index: 2, kind: input, shape index: {}]   ;;  %s14873_s3 = inlined_call_operand.hbm [shape: f32[8,128], index: 3, kind: input, shape index: {}]   ;;  %s14874_s4 = inlined_call_operand.hbm [shape: f32[128,8], index: 4, kind: input, shape index: {}]   ;;  %s14875_s5 = inlined_call_operand.hbm [shape: f32[128,128], index: 5, kind: input, shape index: {}]   ;;  %s14876_s6 = inlined_call_operand.hbm [shape: f32[256,128], index: 6, kind: output, shape index: {}]  }
   0x1   :  { %13 = vsyncpa [#allocation3 + $0x1], 0 }
   0x2   :  { %14 = vsyncpa [#allocation6], 0 }
   0x3   :  { %15 = vsyncpa [#allocation9], 0 }
   0x4   :  { %16 = vsyncpa [#allocation12], 0 }
   0x5   :  { %17 = vsyncpa [#allocation4], 0 }
   0x6   :  { %19 = vsyncpa [#allocation4 + $0x1], 0  ;;  %s10652_s21 = smov 0   ;;  %s10654_s22 = smov 0  }
   0x7   :  { %s10656_s23 = smov 0   ;;  %s10658_s24 = smov 0  }
   0x8 LB: > { %s198_s27 = sshll.u32 %s14871_s1, 4  ;;  %s10676_s28 = sadd.s32 4294967295, %s10604_s24   ;;  %s10604_s24 = sphi %s10658_s24, %s15835_s24   ;;  %s10600_s23 = sphi %s10656_s23, %s15834_s23   ;;  %s10596_s22 = sphi %s10654_s22, %s15833_s22   ;;  %s10592_s21 = sphi %s10652_s21, %s15832_s21   ;;  %s199_s27 = int_to_ptr.hbm [resolvable:$true] %s198_s27 }
   0x9   : > { %p8512_p0 = scmp.ge.s32.totalorder %s10604_s24, 1  ;;  %p46_p1 = scmp.eq.s32.totalorder %s10676_s28, 0 }
   0xa   : > { %p187_p2 = scmp.lt.s32.totalorder %s10604_s24, 3  ;;  %s10606_s30 = smov [#allocation5]  }
   0xb   : > { %s200_s7 = sshll.u32 %s10606_s30, 4  ;;  %s227_s10 = sshll.u32 %s14873_s3, 4  ;;  %s201_s7 = int_to_ptr.vmem [resolvable:$true] %s200_s7  ;;  %s228_s10 = int_to_ptr.hbm [resolvable:$true] %s227_s10 }
   0xc   : > { %p10681_p3 = pnand %p8512_p0, %p187_p2  ;;  %s212_s14 = sshll.u32 %s14872_s2, 4  ;;  %s213_s14 = int_to_ptr.hbm [resolvable:$true] %s212_s14 }
   0xd   : > { %s10607_s15 = smov [#allocation8]   ;;  %s10608_s17 = smov 64  }
   0xe   : > { %p9780_p4 = pneg %p10681_p3  ;;  %s229_s16 = sshll.u32 %s10607_s15, 4  ;;  %s230_s16 = int_to_ptr.vmem [resolvable:$true] %s229_s16 }
   0xf   : > { %s10609_s18 = smov 4   ;;  %s238_s25 = sshll.u32 %s14874_s4, 4  ;;  %s239_s25 = int_to_ptr.hbm [resolvable:$true] %s238_s25 }
  0x10   : > { %p10693_p6 = pnand %p9780_p4, %p46_p1  ;;  %s10610_s26 = smov [#allocation7]  }
  0x11   : > { %s214_s30 = sshll.u32 %s10610_s26, 4  ;;  %s14877_s8 = smov 128   ;;  %s215_s30 = int_to_ptr.vmem [resolvable:$true] %s214_s30 }
  0x12   : > { %9783 = dma.hbm_to_vmem [thread:$0]  (!%p10693_p6), %s199_s27, 12288, %s201_s7, [#allocation6], %s10608_s17, %s10608_s17, %s10609_s18  }
  0x13   : > { %9789 = dma.hbm_to_vmem [thread:$0]  (!%p10693_p6), %s228_s10, 128, %s230_s16, [#allocation9]  }
  0x14   : > { %9786 = dma.hbm_to_vmem [thread:$0]  (!%p10693_p6), %s213_s14, 12288, %s215_s30, [#allocation6], %s10608_s17, %s10608_s17, %s10609_s18  }
  0x15   : > { %s10611_s27 = smov [#allocation10]   ;;  %s14878_s9 = smov 8  }
  0x16   : > { %s240_s7 = sshll.u32 %s10611_s27, 4  ;;  %s252_s13 = sshll.u32 %s14875_s5, 4  ;;  %s241_s7 = int_to_ptr.vmem [resolvable:$true] %s240_s7  ;;  %s253_s13 = int_to_ptr.hbm [resolvable:$true] %s252_s13 }
  0x17   : > { %9792 = dma.hbm_to_vmem [thread:$0]  (!%p10693_p6), %s239_s25, 2048, %s241_s7, [#allocation9], %s14877_s8, %s14877_s8, %s14878_s9  }
  0x18   : > { %s10614_s14 = smov [#allocation11]   ;;  %s8511_s16 = sadd.s32 4294967294, %s10604_s24  }
  0x19   : > { %s254_s15 = sshll.u32 %s10614_s14, 4  ;;  %s10724_s17 = sadd.s32 1, %s10604_s24   ;;  %s255_s15 = int_to_ptr.vmem [resolvable:$true] %s254_s15 }
  0x1a   : > { %9795 = dma.hbm_to_vmem [thread:$0]  (!%p10693_p6), %s253_s13, 2048, %s255_s15, [#allocation12], %s14877_s8, %s14877_s8, %s14878_s9  }
  0x1b   : > { %s32_s18 = sadd.s32 1, %s10600_s23  ;;  %s29_s19 = ssub.s32 %s10604_s24, %s10724_s17 }
  0x1c   : > { %p39_p7 = scmp.ne.s32.totalorder %s10600_s23, %s10596_s22  ;;  %p30_p8 = scmp.eq.s32.totalorder %s29_s19, 0 }
  0x1d   : > { %p40_p9 = scmp.eq.s32.totalorder %s10604_s24, 0  ;;  %p45_p10 = scmp.ne.s32.totalorder %s10596_s22, %s10592_s21 }
  0x1e   : > { %p174_p11 = scmp.eq.s32.totalorder %s10676_s28, 1  ;;  %p180_p0 = scmp.eq.s32.totalorder %s8511_s16, 1 }
  0x1f   : > { %s10736_s20 = scalar_select %p30_p8, %s10600_s23, %s32_s18  }
  0x20   : > { %p10740_p12 = por %p46_p1, %p45_p10  ;;  %p10744_p13 = por %p174_p11, %p39_p7 }
  0x21   : > { %p41_p2 = por %p40_p9, %p39_p7  ;;  %s268_s26 = sand.u32 1, %s10600_s23  }
  0x22   : > { %p10749_p4 = por %p180_p0, %p45_p10  ;;  %p9809_p6 = scmp.lt.s32.totalorder %s10604_s24, 2 }
  0x23   : > { %s8519_s27 = sshll.u32 %s268_s26, 7  ;;  %s9559_s7 = sshll.u32 %s10604_s24, 7 }
  0x24   : > { %s277_s13 = scalar_lea.hbm %s14870_s0, %s9559_s7  ;;  %s272_s15 = scalar_lea.vmem [#allocation2], %s8519_s27 }
  0x25   : > { %s278_s14 = sshll.u32 %s277_s13, 4  ;;  %s280_s18 = sshll.u32 %s272_s15, 4  ;;  %s279_s14 = int_to_ptr.hbm [resolvable:$true] %s278_s14  ;;  %s281_s18 = int_to_ptr.vmem [resolvable:$true] %s280_s18 }
  0x26   : > { %p10758_p8 = pnand %p9809_p6, %p41_p2  ;;  %s269_s19 = scalar_lea.sflag [#allocation3], %s268_s26 }
  0x27   : > { %s10496_s8 = sshra.s32 %s279_s14, 4  ;;  %s10503_s27 = scalar_lea.hbm %s14870_s0, 256  ;;  %s10497_s8 = int_to_ptr.hbm [resolvable:$true] %s10496_s8 }
  0x28   : > { %s10498_s9 = scalar_lea.hbm %s10497_s8, 128  ;;  %p10500_p9 = pneg %p10758_p8 }
  0x29   : > { %p10499_p7 = scmp.ne.s32.totalorder %s10497_s8, %s10498_s9  ;;  %p10504_p0 = scmp.lt.s32.totalorder %s10497_s8, %s14870_s0 }
  0x2a   : > { %p10505_p2 = scmp.lt.s32.totalorder %s10503_s27, %s10498_s9 }
  0x2b   : > { %p10501_p10 = pnand %p10500_p9, %p10499_p7 }
  0x2c   : > { %p10506_p6 = por %p10505_p2, %p10504_p0 }
  0x2d   : > { %p10502_p11 = pneg %p10501_p10 }
  0x2f   : > { %p10507_p5 = pnand %p10506_p6, %p10502_p11 }
  0x31   : > { %10510 = shalt.err (!%p10507_p5)
}
  0x32   : > { %s15050_s26 = smov 8   ;;  %s15051_s15 = smov 128  }
  0x33   : > { %9799 = dma.hbm_to_vmem [thread:$0]  (!%p10758_p8), %s279_s14, 2048, %s281_s18, %s269_s19, %s15051_s15, %s15051_s15, %s15050_s26  }
  0x34   : > { %292 = sbr.rel (%p10681_p3) target bundleno = 10223 (0x27ef), region = 44 }
  0x39   : > { %s10778_s7 = sand.u32 1, %s10596_s22  }
  0x3a   : > { %s8523_s8 = sshll.u32 %s10778_s7, 7  ;;  %s295_s9 = scalar_lea.sflag [#allocation3], %s10778_s7 }
  0x3b   : > { %s10784_s10 = scalar_lea.vmem [#allocation2], %s8523_s8 }
  0x3c   : > { %10571 = dma.done.wait (%p10740_p12), %s295_s9, 2048  }
  0x3d   : > { %10573 = vsyncadd (%p10740_p12), %s295_s9, 4294965248 }
  0x3e   : > { %10575 = dma.done.wait (%p46_p1), [#allocation6], 24576  }
  0x3f   : > { %10577 = vsyncadd (%p46_p1), [#allocation6], 4294942720 }
  0x40   : > { %10579 = dma.done.wait (%p46_p1), [#allocation9], 2176  }
  0x41   : > { %10581 = vsyncadd (%p46_p1), [#allocation9], 4294965120 }
  0x42   : > { %10583 = dma.done.wait (%p46_p1), [#allocation12], 2048  }
  0x43   : > { %10585 = vsyncadd (%p46_p1), [#allocation12], 4294965248  ;;  %v9567_v0 = vld [vmem:[#allocation5 + $0x38] sm:$0xff]  ;;  %v9566_v3 = vld [vmem:[#allocation5 + $0x30] sm:$0xff]  ;;  %v404_v9 = vlaneseq  ;;  %vm14935_vm0 = vcmask 1046528   ;;  %vm14879_vm1 = vcmask 1040384  }
  0x44   : > { %v9575_v1 = vld [vmem:[#allocation5 + $0x78] sm:$0xff]  ;;  %1007 = vmatpush.bf16.msra.mxu0 %v9567_v0  ;;  %v9574_v4 = vld [vmem:[#allocation5 + $0x70] sm:$0xff]  ;;  %v9565_v6 = vld [vmem:[#allocation5 + $0x28] sm:$0xff]  ;;  %v15052_v34 = vmov 0  ;;  %v15055_v38 = vmov 0  ;;  %v15058_v58 = vmov 0 }
  0x45   : > { %v9583_v2 = vld [vmem:[#allocation5 + $0xb8] sm:$0xff]  ;;  %1056 = vmatpush.bf16.msra.mxu1 %v9575_v1  ;;  %v9582_v5 = vld [vmem:[#allocation5 + $0xb0] sm:$0xff]  ;;  %v9573_v7 = vld [vmem:[#allocation5 + $0x68] sm:$0xff]  ;;  %v10802_v13 = vshrl.u32 %v404_v9, 7  ;;  %v15061_v62 = vmov 0  ;;  %s14788_s29 = scalar_lea.vmem [#allocation13], %s8523_s8 }
  0x46   : > { %1105 = vmatpush.bf16.msra.mxu2 %v9583_v2  ;;  %v9581_v8 = vld [vmem:[#allocation5 + $0xa8] sm:$0xff]  ;;  %v9564_v10 = vld [vmem:[#allocation5 + $0x20] sm:$0xff]  ;;  %v9563_v14 = vld [vmem:[#allocation5 + $0x18] sm:$0xff]  ;;  %s9752_s11 = sshll.u32 %s10676_s28, 7  ;;  %s8387_s19 = sshll.u32 %s14788_s29, 4  ;;  %s8388_s19 = int_to_ptr.vmem [resolvable:$true] %s8387_s19 }
  0x47   : > { %v9572_v11 = vld [vmem:[#allocation5 + $0x60] sm:$0xff]  ;;  %v9571_v15 = vld [vmem:[#allocation5 + $0x58] sm:$0xff]  ;;  %v356_v18 = vld [vmem:[%s10784_s10 + $0x8] sm:$0xff]  ;;  %v406_v19 = vadd.s32 8, %v10802_v13  ;;  %v425_v23 = vand.u32 15, %v10802_v13  ;;  %v407_v48 = vadd.s32 16, %v10802_v13  ;;  %s8386_s16 = scalar_lea.hbm %s14876_s6, %s9752_s11 }
  0x48   : > { %1008 = vmatpush.bf16.msra.mxu0 %v9566_v3  ;;  %v9580_v12 = vld [vmem:[#allocation5 + $0xa0] sm:$0xff]  ;;  %v9579_v16 = vld [vmem:[#allocation5 + $0x98] sm:$0xff]  ;;  %v10808_v20 = vld [vmem:[%s10784_s10 + $0x10] sm:$0xff]  ;;  %v711_v26 = vrot.slane %v356_v18, 1  ;;  %v760_v28 = vrot.slane %v356_v18, 7  ;;  %v408_v50 = vadd.s32 24, %v10802_v13 }
  0x49   : > { %1057 = vmatpush.bf16.msra.mxu1 %v9574_v4  ;;  %v355_v17 = vld [vmem:[%s10784_s10] sm:$0xff]  ;;  %v9562_v21 = vld [vmem:[#allocation5 + $0x10] sm:$0xff]  ;;  %v432_v29 = vand.u32 15, %v406_v19  ;;  %v713_v30 = vrot.slane %v10808_v20, 1  ;;  %v9561_v31 = vld [vmem:[#allocation5 + $0x8] sm:$0xff]  ;;  %vm10812_vm2 = vcmp.eq.s32.totalorder %v425_v23, 0 }
  0x4a   : > { %1106 = vmatpush.bf16.msra.mxu2 %v9582_v5  ;;  %v9570_v22 = vld [vmem:[#allocation5 + $0x50] sm:$0xff]  ;;  %v710_v25 = vrot.slane %v355_v17, 1  ;;  %v759_v27 = vrot.slane %v355_v17, 7  ;;  %v9569_v32 = vld [vmem:[#allocation5 + $0x48] sm:$0xff]  ;;  %v15053_v34 = vsel %vm10812_vm2, 4294967295, %v15052_v34  ;;  %v9560_v40 = vld [vmem:[#allocation5] sm:$0xff]  ;;  %v840_v46 = vpack.c.bf16 %v356_v18, %v355_v17 }
  0x4b   : > { %v9578_v24 = vld [vmem:[#allocation5 + $0x90] sm:$0xff]  ;;  %v9577_v33 = vld [vmem:[#allocation5 + $0x88] sm:$0xff]  ;;  %15054 = vst [vmem:[#allocation19_spill] sm:$0xff] %v15053_v34  ;;  %vm10819_vm3 = vcmp.eq.s32.totalorder %v432_v29, 15  ;;  %v714_v39 = vsel %vm14935_vm0, %v711_v26, %v713_v30  ;;  %v9568_v41 = vld [vmem:[#allocation5 + $0x40] sm:$0xff]  ;;  %v439_v52 = vand.u32 15, %v407_v48 }
  0x4c   : > { %1009 = vmatpush.bf16.msra.mxu0 %v9565_v6  ;;  %v712_v35 = vsel %vm14935_vm0, %v710_v25, %v711_v26  ;;  %v806_v36 = vsel %vm14879_vm1, %v355_v17, %v759_v27  ;;  %v761_v37 = vsel %vm14879_vm1, %v759_v27, %v760_v28  ;;  %v15056_v38 = vsel %vm10819_vm3, 4294967295, %v15055_v38  ;;  %v9576_v43 = vld [vmem:[#allocation5 + $0x80] sm:$0xff]  ;;  %v358_v49 = vld [vmem:[%s10784_s10 + $0x18] sm:$0xff]  ;;  %v360_v6 = vld [vmem:[%s10784_s10 + $0x28] sm:$0xff]  ;;  %s8389_s27 = sshll.u32 %s8386_s16, 4  ;;  %s8375_s28 = scalar_lea.sflag [#allocation4], %s10778_s7  ;;  %s8390_s27 = int_to_ptr.hbm [resolvable:$true] %s8389_s27 }
  0x4d   : > { %1058 = vmatpush.bf16.msra.mxu1 %v9573_v7  ;;  %15057 = vst [vmem:[#allocation20_spill] sm:$0xff] %v15056_v38  ;;  %v807_v42 = vsel %vm10812_vm2, %v712_v35, %v806_v36  ;;  %v824_v44 = vsel %vm10819_vm3, %v761_v37, %v714_v39  ;;  %v359_v51 = vld [vmem:[%s10784_s10 + $0x20] sm:$0xff]  ;;  %v715_v53 = vrot.slane %v358_v49, 1  ;;  %v762_v54 = vrot.slane %v10808_v20, 7  ;;  %s10540_s12 = sshra.s32 %s8390_s27, 4  ;;  %s10546_s8 = scalar_lea.hbm %s14876_s6, 256  ;;  %s10541_s12 = int_to_ptr.hbm [resolvable:$true] %s10540_s12 }
  0x4e   : > { %1107 = vmatpush.bf16.msra.mxu2 %v9581_v8  ;;  %v839_v45 = vpack.c.bf16 %v761_v37, %v807_v42  ;;  %v841_v47 = vpack.c.bf16 %v824_v44, %v712_v35  ;;  %v764_v55 = vrot.slane %v358_v49, 7  ;;  %v446_v56 = vand.u32 15, %v408_v50  ;;  %v361_v8 = vld [vmem:[%s10784_s10 + $0x30] sm:$0xff]  ;;  %s10542_s13 = scalar_lea.hbm %s10541_s12, 128  ;;  %p10547_p12 = scmp.lt.s32.totalorder %s10541_s12, %s14876_s6 }
  0x4f   : > { %v717_v57 = vrot.slane %v359_v51, 1  ;;  %vm10833_vm4 = vcmp.eq.s32.totalorder %v439_v52, 0  ;;  %v716_v59 = vsel %vm14935_vm0, %v713_v30, %v715_v53  ;;  %v763_v60 = vsel %vm14879_vm1, %v760_v28, %v762_v54  ;;  %v362_v28 = vld [vmem:[%s10784_s10 + $0x38] sm:$0xff]  ;;  %v363_v30 = vld [vmem:[%s10784_s10 + $0x40] sm:$0xff]  ;;  %p10543_p1 = scmp.ne.s32.totalorder %s10541_s12, %s10542_s13  ;;  %p10548_p8 = scmp.lt.s32.totalorder %s10546_s8, %s10542_s13 }
  0x50   : > { %1010 = vmatpush.bf16.msra.mxu0 %v9564_v10  ;;  %v15059_v58 = vsel %vm10833_vm4, 4294967295, %v15058_v58  ;;  %v765_v61 = vsel %vm14879_vm1, %v762_v54, %v764_v55  ;;  %vm10840_vm5 = vcmp.eq.s32.totalorder %v446_v56, 15  ;;  %v809_v0 = vsel %vm10833_vm4, %v716_v59, %v763_v60 }
  0x51   : > { %1059 = vmatpush.bf16.msra.mxu1 %v9572_v11  ;;  %15060 = vst [vmem:[#allocation21_spill] sm:$0xff] %v15059_v58  ;;  %v15062_v62 = vsel %vm10840_vm5, 4294967295, %v15061_v62  ;;  %v718_v63 = vsel %vm14935_vm0, %v715_v53, %v717_v57  ;;  %v842_v2 = vpack.c.bf16 %v765_v61, %v809_v0  ;;  %v843_v3 = vpack.c.bf16 %v358_v49, %v10808_v20  ;;  %v365_v53 = vld [vmem:[%s10784_s10 + $0x50] sm:$0xff]  ;;  %p10544_p3 = pnand %p10543_p1, %p10744_p13  ;;  %p10549_p7 = por %p10548_p8, %p10547_p12 }
  0x52   : > { %1108 = vmatpush.bf16.msra.mxu2 %v9580_v12  ;;  %15063 = vst [vmem:[#allocation22_spill] sm:$0xff] %v15062_v62  ;;  %v826_v1 = vsel %vm10840_vm5, %v765_v61, %v718_v63  ;;  %v409_v5 = vadd.s32 32, %v10802_v13  ;;  %v410_v7 = vadd.s32 40, %v10802_v13  ;;  %v719_v10 = vrot.slane %v360_v6, 1 }
  0x53   : > { %v844_v4 = vpack.c.bf16 %v826_v1, %v716_v59  ;;  %v766_v11 = vrot.slane %v359_v51, 7  ;;  %v768_v12 = vrot.slane %v360_v6, 7  ;;  %v15067_v20 = vmov 0  ;;  %p10545_p5 = pneg %p10544_p3 }
  0x54   : > { %1011 = vmatpush.bf16.msra.mxu0 %v9563_v14  ;;  %v453_v9 = vand.u32 15, %v409_v5  ;;  %v460_v14 = vand.u32 15, %v410_v7  ;;  %v720_v17 = vsel %vm14935_vm0, %v717_v57, %v719_v10  ;;  %v846_v25 = vpack.c.bf16 %v360_v6, %v359_v51  ;;  %v364_v51 = vld [vmem:[%s10784_s10 + $0x48] sm:$0xff] }
  0x55   : > { %1060 = vmatpush.bf16.msra.mxu1 %v9571_v15  ;;  %v721_v15 = vrot.slane %v361_v8, 1  ;;  %v767_v18 = vsel %vm14879_vm1, %v764_v55, %v766_v11  ;;  %v769_v19 = vsel %vm14879_vm1, %v766_v11, %v768_v12  ;;  %v411_v27 = vadd.s32 48, %v10802_v13  ;;  %p10550_p9 = pnand %p10549_p7, %p10545_p5 }
  0x56   : > { %1109 = vmatpush.bf16.msra.mxu2 %v9579_v16  ;;  %vm10854_vm6 = vcmp.eq.s32.totalorder %v453_v9, 0  ;;  %v15064_v16 = vmov 0  ;;  %vm10861_vm7 = vcmp.eq.s32.totalorder %v460_v14, 15  ;;  %v412_v29 = vadd.s32 56, %v10802_v13 }
  0x57   : > { %v15065_v16 = vsel %vm10854_vm6, 4294967295, %v15064_v16  ;;  %v15068_v20 = vsel %vm10861_vm7, 4294967295, %v15067_v20  ;;  %v772_v35 = vrot.slane %v362_v28, 7  ;;  %v725_v37 = vrot.slane %v363_v30, 1 }
  0x58   : > { %1012 = vmatpush.bf16.msra.mxu0 %v9562_v21  ;;  %15066 = vst [vmem:[#allocation23_spill] sm:$0xff] %v15065_v16  ;;  %v722_v21 = vsel %vm14935_vm0, %v719_v10, %v721_v15  ;;  %v474_v36 = vand.u32 15, %v412_v29  ;;  %v15070_v39 = vmov 0  ;;  %v849_v48 = vpack.c.bf16 %v362_v28, %v361_v8  ;;  %v366_v10 = vld [vmem:[%s10784_s10 + $0x58] sm:$0xff] }
  0x59   : > { %1061 = vmatpush.bf16.msra.mxu1 %v9570_v22  ;;  %15069 = vst [vmem:[#allocation24_spill] sm:$0xff] %v15068_v20  ;;  %v811_v22 = vsel %vm10854_vm6, %v720_v17, %v767_v18  ;;  %v828_v23 = vsel %vm10861_vm7, %v769_v19, %v722_v21  ;;  %v413_v50 = vadd.s32 64, %v10802_v13  ;;  %v414_v52 = vadd.s32 72, %v10802_v13 }
  0x5a   : > { %1110 = vmatpush.bf16.msra.mxu2 %v9578_v24  ;;  %v845_v24 = vpack.c.bf16 %v769_v19, %v811_v22  ;;  %v847_v26 = vpack.c.bf16 %v828_v23, %v720_v17  ;;  %vm10881_vm9 = vcmp.eq.s32.totalorder %v474_v36, 15  ;;  %v727_v55 = vrot.slane %v364_v51, 1 }
  0x5b   : > { %v481_v54 = vand.u32 15, %v413_v50  ;;  %v774_v56 = vrot.slane %v363_v30, 7  ;;  %v776_v57 = vrot.slane %v364_v51, 7  ;;  %v488_v59 = vand.u32 15, %v414_v52 }
  0x5c   : > { %1013 = vmatpush.bf16.msra.mxu0 %v9561_v31  ;;  %v467_v31 = vand.u32 15, %v411_v27  ;;  %v729_v60 = vrot.slane %v365_v53, 1  ;;  %v15076_v61 = vmov 0  ;;  %v728_v63 = vsel %vm14935_vm0, %v725_v37, %v727_v55 }
  0x5d   : > { %1062 = vmatpush.bf16.msra.mxu1 %v9569_v32  ;;  %v723_v32 = vrot.slane %v362_v28, 1  ;;  %vm10894_vm10 = vcmp.eq.s32.totalorder %v481_v54, 0  ;;  %v775_v0 = vsel %vm14879_vm1, %v772_v35, %v774_v56  ;;  %v777_v1 = vsel %vm14879_vm1, %v774_v56, %v776_v57 }
  0x5e   : > { %1111 = vmatpush.bf16.msra.mxu2 %v9577_v33  ;;  %v770_v33 = vrot.slane %v361_v8, 7  ;;  %vm10874_vm8 = vcmp.eq.s32.totalorder %v467_v31, 0  ;;  %v15077_v61 = vsel %vm10894_vm10, 4294967295, %v15076_v61  ;;  %vm10901_vm11 = vcmp.eq.s32.totalorder %v488_v59, 15 }
  0x5f   : > { %v15071_v39 = vsel %vm10874_vm8, 4294967295, %v15070_v39  ;;  %v726_v44 = vsel %vm14935_vm0, %v723_v32, %v725_v37  ;;  %15078 = vst [vmem:[#allocation27_spill] sm:$0xff] %v15077_v61  ;;  %v852_v7 = vpack.c.bf16 %v364_v51, %v363_v30  ;;  %v415_v9 = vadd.s32 80, %v10802_v13  ;;  %v369_v37 = vld [vmem:[%s10784_s10 + $0x70] sm:$0xff] }
  0x60   : > { %1014 = vmatpush.bf16.msra.mxu0 %v9560_v40  ;;  %15072 = vst [vmem:[#allocation25_spill] sm:$0xff] %v15071_v39  ;;  %v724_v40 = vsel %vm14935_vm0, %v721_v15, %v723_v32  ;;  %v773_v42 = vsel %vm14879_vm1, %v770_v33, %v772_v35  ;;  %v416_v11 = vadd.s32 88, %v10802_v13  ;;  %v731_v15 = vrot.slane %v366_v10, 1  ;;  %v368_v35 = vld [vmem:[%s10784_s10 + $0x68] sm:$0xff] }
  0x61   : > { %1063 = vmatpush.bf16.msra.mxu1 %v9568_v41  ;;  %v771_v41 = vsel %vm14879_vm1, %v768_v12, %v770_v33  ;;  %v367_v12 = vld [vmem:[%s10784_s10 + $0x60] sm:$0xff]  ;;  %v495_v14 = vand.u32 15, %v415_v9  ;;  %v778_v17 = vrot.slane %v365_v53, 7  ;;  %v780_v18 = vrot.slane %v366_v10, 7 }
  0x62   : > { %1112 = vmatpush.bf16.msra.mxu2 %v9576_v43  ;;  %v15073_v43 = vmov 0  ;;  %v502_v19 = vand.u32 15, %v416_v11  ;;  %v733_v21 = vrot.slane %v367_v12, 1  ;;  %v15082_v22 = vmov 0 }
  0x63   : > { %1015 = vmatmul.bf16.vlgmr.msra.gmra.mxu0 %v839_v45  ;;  %v15074_v43 = vsel %vm10881_vm9, 4294967295, %v15073_v43  ;;  %v813_v45 = vsel %vm10874_vm8, %v724_v40, %v771_v41  ;;  %vm10914_vm12 = vcmp.eq.s32.totalorder %v495_v14, 0  ;;  %v732_v23 = vsel %vm14935_vm0, %v729_v60, %v731_v15 }
  0x64   : > { %1064 = vmatmul.bf16.vlgmr.msra.gmra.mxu1 %v840_v46  ;;  %15075 = vst [vmem:[#allocation26_spill] sm:$0xff] %v15074_v43  ;;  %v830_v46 = vsel %vm10881_vm9, %v773_v42, %v726_v44  ;;  %v15083_v22 = vsel %vm10914_vm12, 4294967295, %v15082_v22  ;;  %vm10921_vm13 = vcmp.eq.s32.totalorder %v502_v19, 15  ;;  %v734_v27 = vsel %vm14935_vm0, %v731_v15, %v733_v21 }
  0x65   : > { %1113 = vmatmul.bf16.vlgmr.msra.gmra.mxu2 %v841_v47  ;;  %v848_v47 = vpack.c.bf16 %v773_v42, %v813_v45  ;;  %v850_v49 = vpack.c.bf16 %v830_v46, %v724_v40  ;;  %15084 = vst [vmem:[#allocation29_spill] sm:$0xff] %v15083_v22  ;;  %v855_v31 = vpack.c.bf16 %v366_v10, %v365_v53  ;;  %v417_v33 = vadd.s32 96, %v10802_v13 }
  0x66   : > { %v418_v36 = vadd.s32 104, %v10802_v13  ;;  %v735_v41 = vrot.slane %v368_v35, 1  ;;  %v782_v42 = vrot.slane %v367_v12, 7  ;;  %v784_v44 = vrot.slane %v368_v35, 7 }
  0x67   : > { %v509_v40 = vand.u32 15, %v417_v33  ;;  %v737_v46 = vrot.slane %v369_v37, 1  ;;  %v15091_v51 = vmov 0  ;;  %v858_v56 = vpack.c.bf16 %v368_v35, %v367_v12 }
  0x68   : > { %v516_v45 = vand.u32 15, %v418_v36  ;;  %v785_v50 = vsel %vm14879_vm1, %v782_v42, %v784_v44  ;;  %v419_v59 = vadd.s32 112, %v10802_v13 }
  0x69   : > { %vm10934_vm14 = vcmp.eq.s32.totalorder %v509_v40, 0  ;;  %v738_v52 = vsel %vm14935_vm0, %v735_v41, %v737_v46 }
  0x6a   : > { %vm10941_vm15 = vcmp.eq.s32.totalorder %v516_v45, 15 }
  0x6b   : > { %v15092_v51 = vsel %vm10941_vm15, 4294967295, %v15091_v51  ;;  %v836_v54 = vsel %vm10941_vm15, %v785_v50, %v738_v52  ;;  %vm15097_vm15 = vcmask 1040384  }
  0x6c   : > { %15093 = vst [vmem:[#allocation32_spill] sm:$0xff] %v15092_v51 }
  0x73   : > { %1020 = vmatmul.bf16.gmra.mxu0 %v842_v2  ;;  %v15079_v2 = vmov 0 }
  0x74   : > { %1069 = vmatmul.bf16.gmra.mxu1 %v843_v3  ;;  %v15080_v2 = vsel %vm10901_vm11, 4294967295, %v15079_v2  ;;  %v730_v3 = vsel %vm14935_vm0, %v727_v55, %v729_v60  ;;  %v370_v60 = vld [vmem:[%s10784_s10 + $0x78] sm:$0xff] }
  0x75   : > { %1118 = vmatmul.bf16.gmra.mxu2 %v844_v4  ;;  %15081 = vst [vmem:[#allocation28_spill] sm:$0xff] %v15080_v2  ;;  %v815_v4 = vsel %vm10894_vm10, %v728_v63, %v775_v0  ;;  %v832_v5 = vsel %vm10901_vm11, %v777_v1, %v730_v3  ;;  %v523_v0 = vand.u32 15, %v419_v59  ;;  %v786_v3 = vrot.slane %v369_v37, 7 }
  0x76   : > { %v851_v6 = vpack.c.bf16 %v777_v1, %v815_v4  ;;  %v853_v8 = vpack.c.bf16 %v832_v5, %v728_v63  ;;  %v420_v63 = vadd.s32 120, %v10802_v13  ;;  %v739_v1 = vrot.slane %v370_v60, 1 }
  0x77   : > { %v788_v4 = vrot.slane %v370_v60, 7  ;;  %v15099_v13 = vmov 0  ;;  %v861_v15 = vpack.c.bf16 %v370_v60, %v369_v37 }
  0x78   : > { %v530_v5 = vand.u32 15, %v420_v63  ;;  %v757_v10 = vsel %vm14935_vm0, %v739_v1, %v370_v60 }
  0x83   : > { %1025 = vmatmul.bf16.gmra.mxu0 %v845_v24  ;;  %v779_v24 = vsel %vm14879_vm1, %v776_v57, %v778_v17 }
  0x84   : > { %1074 = vmatmul.bf16.gmra.mxu1 %v846_v25  ;;  %v781_v25 = vsel %vm14879_vm1, %v778_v17, %v780_v18  ;;  %v817_v28 = vsel %vm10914_vm12, %v732_v23, %v779_v24 }
  0x85   : > { %1123 = vmatmul.bf16.gmra.mxu2 %v847_v26  ;;  %v15085_v26 = vmov 0  ;;  %v834_v29 = vsel %vm10921_vm13, %v781_v25, %v734_v27  ;;  %v854_v30 = vpack.c.bf16 %v781_v25, %v817_v28 }
  0x86   : > { %v15086_v26 = vsel %vm10921_vm13, 4294967295, %v15085_v26  ;;  %v856_v32 = vpack.c.bf16 %v834_v29, %v732_v23  ;;  %vm10960_vm13 = vcmp.eq.s32.totalorder %v530_v5, 15 }
  0x87   : > { %15087 = vst [vmem:[#allocation30_spill] sm:$0xff] %v15086_v26  ;;  %v15100_v13 = vsel %vm10960_vm13, 4294967295, %v15099_v13 }
  0x88   : > { %15101 = vst [vmem:[#allocation34_spill] sm:$0xff] %v15100_v13 }
  0x93   : > { %1030 = vmatmul.bf16.gmra.mxu0 %v848_v47  ;;  %v15088_v47 = vmov 0 }
  0x94   : > { %1079 = vmatmul.bf16.gmra.mxu1 %v849_v48  ;;  %v15089_v47 = vsel %vm10934_vm14, 4294967295, %v15088_v47  ;;  %v736_v48 = vsel %vm14935_vm0, %v733_v21, %v735_v41 }
  0x95   : > { %1128 = vmatmul.bf16.gmra.mxu2 %v850_v49  ;;  %15090 = vst [vmem:[#allocation31_spill] sm:$0xff] %v15089_v47  ;;  %v783_v49 = vsel %vm14879_vm1, %v780_v18, %v782_v42  ;;  %v859_v57 = vpack.c.bf16 %v836_v54, %v736_v48  ;;  %vm10953_vm1 = vcmp.eq.s32.totalorder %v523_v0, 0  ;;  %v11017_v47 = vld [vmem:[#allocation11 + $0x70] sm:$0xff] }
  0x96   : > { %v819_v53 = vsel %vm10934_vm14, %v736_v48, %v783_v49  ;;  %vm15098_vm14 = vmmov %vm15097_vm15 }
  0x97   : > { %v857_v55 = vpack.c.bf16 %v785_v50, %v819_v53  ;;  %v789_v9 = vsel %vm15098_vm14, %v786_v3, %v788_v4  ;;  %vm14934_vm14 = vcmask 64512  }
  0x98   : > { %v838_v12 = vsel %vm10960_vm13, %v789_v9, %v757_v10 }
  0xa3   : > { %1035 = vmatmul.bf16.gmra.mxu0 %v851_v6  ;;  %v15094_v6 = vmov 0 }
  0xa4   : > { %1084 = vmatmul.bf16.gmra.mxu1 %v852_v7  ;;  %v15095_v6 = vsel %vm10953_vm1, 4294967295, %v15094_v6  ;;  %v740_v7 = vsel %vm14935_vm0, %v737_v46, %v739_v1 }
  0xa5   : > { %1133 = vmatmul.bf16.gmra.mxu2 %v853_v8  ;;  %15096 = vst [vmem:[#allocation33_spill] sm:$0xff] %v15095_v6  ;;  %v787_v8 = vsel %vm15097_vm15, %v784_v44, %v786_v3  ;;  %v862_v17 = vpack.c.bf16 %v838_v12, %v740_v7 }
  0xa6   : > { %v821_v11 = vsel %vm10953_vm1, %v740_v7, %v787_v8 }
  0xa7   : > { %v860_v14 = vpack.c.bf16 %v789_v9, %v821_v11 }
  0xb3   : > { %1040 = vmatmul.bf16.gmra.mxu0 %v854_v30 }
  0xb4   : > { %1089 = vmatmul.bf16.gmra.mxu1 %v855_v31 }
  0xb5   : > { %1138 = vmatmul.bf16.gmra.mxu2 %v856_v32 }
  0xc3   : > { %1045 = vmatmul.bf16.gmra.mxu0 %v857_v55 }
  0xc4   : > { %1094 = vmatmul.bf16.gmra.mxu1 %v858_v56 }
  0xc5   : > { %1143 = vmatmul.bf16.gmra.mxu2 %v859_v57 }
  0xd3   : > { %1050 = vmatmul.bf16.gmra.mxu0 %v860_v14 }
  0xd4   : > { %1099 = vmatmul.bf16.gmra.mxu1 %v861_v15 }
  0xd5   : > { %1148 = vmatmul.bf16.gmra.mxu2 %v862_v17 }
  0xe0   : > { %v10969_v18 = vpop.f32.mrf.mxu0 }
  0xe1   : > { %v10971_v19 = vpop.f32.mrf.mxu1 }
  0xe8   : > { %v10973_v21 = vpop.f32.mrf.mxu2  ;;  %v1018_v23 = vpop.f32.mrf.mxu0 }
  0xe9   : > { %v1067_v24 = vpop.f32.mrf.mxu1 }
  0xea   : > { %v10975_v25 = vadd.f32 %v1067_v24, %v1018_v23 }
  0xf0   : > { %v10977_v27 = vpop.f32.mrf.mxu2  ;;  %v10979_v28 = vpop.f32.mrf.mxu0 }
  0xf1   : > { %v10981_v29 = vpop.f32.mrf.mxu1 }
  0xf8   : > { %v10983_v30 = vpop.f32.mrf.mxu2  ;;  %v1023_v31 = vpop.f32.mrf.mxu0 }
  0xf9   : > { %v1072_v32 = vpop.f32.mrf.mxu1 }
  0xfa   : > { %v10985_v33 = vadd.f32 %v1072_v32, %v1023_v31 }
 0x100   : > { %v10987_v35 = vpop.f32.mrf.mxu2  ;;  %v10989_v36 = vpop.f32.mrf.mxu0 }
 0x101   : > { %v10991_v37 = vpop.f32.mrf.mxu1 }
 0x108   : > { %v10993_v40 = vpop.f32.mrf.mxu2  ;;  %v1028_v41 = vpop.f32.mrf.mxu0 }
 0x109   : > { %v1077_v42 = vpop.f32.mrf.mxu1 }
 0x10a   : > { %v10995_v44 = vadd.f32 %v1077_v42, %v1028_v41 }
 0x110   : > { %v10997_v45 = vpop.f32.mrf.mxu2  ;;  %v10999_v46 = vpop.f32.mrf.mxu0 }
 0x111   : > { %v11001_v48 = vpop.f32.mrf.mxu1 }
 0x118   : > { %v11003_v49 = vpop.f32.mrf.mxu2  ;;  %v1033_v50 = vpop.f32.mrf.mxu0 }
 0x119   : > { %v1082_v52 = vpop.f32.mrf.mxu1 }
 0x11a   : > { %v11005_v53 = vadd.f32 %v1082_v52, %v1033_v50  ;;  %v11011_v52 = vld [vmem:[#allocation11 + $0x78] sm:$0xff] }
 0x11b   : > { %1360 = vmatpush.msrb.mxu1 %v11011_v52 }
 0x11d   : > { %1361 = vmatpush.msrb.mxu1 %v11017_v47 }
 0x120   : > { %v11007_v54 = vpop.f32.mrf.mxu2  ;;  %v1036_v55 = vpop.f32.mrf.mxu0 }
 0x121   : > { %v1085_v56 = vpop.f32.mrf.mxu1 }
 0x128   : > { %v1134_v57 = vpop.f32.mrf.mxu2  ;;  %v1038_v59 = vpop.f32.mrf.mxu0 }
 0x129   : > { %v1087_v60 = vpop.f32.mrf.mxu1 }
 0x130   : > { %v1136_v63 = vpop.f32.mrf.mxu2  ;;  %v1041_v0 = vpop.f32.mrf.mxu0 }
 0x131   : > { %v1090_v1 = vpop.f32.mrf.mxu1 }
 0x138   : > { %v1139_v3 = vpop.f32.mrf.mxu2  ;;  %v1043_v4 = vpop.f32.mrf.mxu0 }
 0x139   : > { %v1092_v5 = vpop.f32.mrf.mxu1 }
 0x140   : > { %v1141_v7 = vpop.f32.mrf.mxu2  ;;  %v1046_v8 = vpop.f32.mrf.mxu0 }
 0x141   : > { %v1095_v9 = vpop.f32.mrf.mxu1 }
 0x142   : > { %v1096_v13 = vadd.f32 %v1095_v9, %v1046_v8  ;;  %v11029_v9 = vld [vmem:[#allocation11 + $0x60] sm:$0xff] }
 0x148   : > { %v1144_v10 = vpop.f32.mrf.mxu2  ;;  %v1048_v11 = vpop.f32.mrf.mxu0 }
 0x149   : > { %v1097_v12 = vpop.f32.mrf.mxu1  ;;  %v11026_v8 = vadd.f32 %v1144_v10, %v1096_v13  ;;  %v11041_v13 = vld [vmem:[#allocation11 + $0x50] sm:$0xff]  ;;  %v11160_v10 = vld [vmem:[#allocation10 + $0x20] sm:$0xff] }
 0x14a   : > { %v1098_v6 = vadd.f32 %v1097_v12, %v1048_v11  ;;  %v1086_v12 = vadd.f32 %v1085_v56, %v1036_v55  ;;  %v1081_v55 = vadd.f32 %v11001_v48, %v10999_v46  ;;  %v1076_v46 = vadd.f32 %v10991_v37, %v10989_v36 }
 0x14b   : > { %v1071_v36 = vadd.f32 %v10981_v29, %v10979_v28  ;;  %v1066_v28 = vadd.f32 %v10971_v19, %v10969_v18  ;;  %v11120_v19 = vld [vmem:[#allocation8] sm:$0xff] }
 0x14c   : > { %v11052_v56 = vadd.f32 %v1134_v57, %v1086_v12  ;;  %v11069_v48 = vadd.f32 %v11003_v49, %v1081_v55  ;;  %v11072_v57 = vld [vmem:[#allocation11 + $0x30] sm:$0xff]  ;;  %v11086_v37 = vadd.f32 %v10993_v40, %v1076_v46  ;;  %v11089_v49 = vld [vmem:[#allocation11 + $0x20] sm:$0xff]  ;;  %v11204_v46 = vld [vmem:[#allocation10 + $0x78] sm:$0xff] }
 0x14d   : > { %15103 = vst [vmem:[#allocation36_spill] sm:$0xff] %v11072_v57  ;;  %v11103_v29 = vadd.f32 %v10983_v30, %v1071_v36  ;;  %v11106_v40 = vld [vmem:[#allocation11 + $0x10] sm:$0xff]  ;;  %v11118_v18 = vadd.f32 %v10973_v21, %v1066_v28  ;;  %v11140_v21 = vld [vmem:[#allocation11] sm:$0xff] }
 0x14e   : > { %15105 = vst [vmem:[#allocation38_spill] sm:$0xff] %v11089_v49  ;;  %v11192_v12 = vld [vmem:[#allocation10 + $0x60] sm:$0xff]  ;;  %v11200_v55 = vld [vmem:[#allocation10 + $0x70] sm:$0xff] }
 0x14f   : > { %15107 = vst [vmem:[#allocation40_spill] sm:$0xff] %v11106_v40 }
 0x150   : > { %v1146_v14 = vpop.f32.mrf.mxu2  ;;  %v1051_v15 = vpop.f32.mrf.mxu0  ;;  %15109 = vst [vmem:[#allocation42_spill] sm:$0xff] %v11140_v21 }
 0x151   : > { %v1100_v17 = vpop.f32.mrf.mxu1  ;;  %v11020_v26 = vadd.f32 %v1146_v14, %v1098_v6  ;;  %v11035_v6 = vld [vmem:[#allocation11 + $0x58] sm:$0xff]  ;;  %v1088_v14 = vadd.f32 %v1087_v60, %v1038_v59  ;;  %v11055_v59 = vld [vmem:[#allocation11 + $0x40] sm:$0xff]  ;;  %v11060_v60 = vadd.f32 %v11007_v54, %v11005_v53  ;;  %v11077_v53 = vadd.f32 %v10997_v45, %v10995_v44  ;;  %v11080_v54 = vld [vmem:[#allocation11 + $0x28] sm:$0xff] }
 0x152   : > { %v1101_v32 = vadd.f32 %v1100_v17, %v1051_v15  ;;  %v11023_v15 = vld [vmem:[#allocation11 + $0x68] sm:$0xff]  ;;  %v1091_v17 = vadd.f32 %v1090_v1, %v1041_v0  ;;  %15104 = vst [vmem:[#allocation37_spill] sm:$0xff] %v11080_v54  ;;  %v11094_v44 = vadd.f32 %v10987_v35, %v10985_v33  ;;  %v11097_v45 = vld [vmem:[#allocation11 + $0x18] sm:$0xff]  ;;  %v11111_v33 = vadd.f32 %v10977_v27, %v10975_v25  ;;  %v11144_v27 = vld [vmem:[#allocation10] sm:$0xff] }
 0x153   : > { %1362 = vmatpush.msrb.mxu1 %v11023_v15  ;;  %v11044_v1 = vadd.f32 %v1136_v63, %v1088_v14  ;;  %v11063_v63 = vld [vmem:[#allocation11 + $0x38] sm:$0xff]  ;;  %15106 = vst [vmem:[#allocation39_spill] sm:$0xff] %v11097_v45  ;;  %v11114_v35 = vld [vmem:[#allocation11 + $0x8] sm:$0xff] }
 0x154   : > { %v11038_v0 = vadd.f32 %v1139_v3, %v1091_v17  ;;  %15102 = vst [vmem:[#allocation35_spill] sm:$0xff] %v11063_v63  ;;  %v11148_v3 = vld [vmem:[#allocation10 + $0x8] sm:$0xff]  ;;  %v11184_v17 = vld [vmem:[#allocation10 + $0x50] sm:$0xff] }
 0x155   : > { %1363 = vmatpush.msrb.mxu1 %v11029_v9  ;;  %15108 = vst [vmem:[#allocation41_spill] sm:$0xff] %v11114_v35  ;;  %v11196_v14 = vld [vmem:[#allocation10 + $0x68] sm:$0xff] }
 0x157   : > { %1364 = vmatpush.msrb.mxu1 %v11035_v6 }
 0x158   : > { %v1149_v23 = vpop.f32.mrf.mxu2  ;;  %v1053_v24 = vpop.f32.mrf.mxu0 }
 0x159   : > { %v1102_v31 = vpop.f32.mrf.mxu1  ;;  %v11014_v51 = vadd.f32 %v1149_v23, %v1101_v32  ;;  %1365 = vmatpush.msrb.mxu1 %v11041_v13  ;;  %v11164_v23 = vld [vmem:[#allocation10 + $0x28] sm:$0xff]  ;;  %v11172_v32 = vld [vmem:[#allocation10 + $0x38] sm:$0xff] }
 0x15a   : > { %v1103_v41 = vadd.f32 %v1102_v31, %v1053_v24  ;;  %v1093_v24 = vadd.f32 %v1092_v5, %v1043_v4  ;;  %v11047_v4 = vld [vmem:[#allocation11 + $0x48] sm:$0xff]  ;;  %v11152_v5 = vld [vmem:[#allocation10 + $0x10] sm:$0xff] }
 0x15b   : > { %1366 = vmatpush.msrb.mxu1 %v11047_v4  ;;  %v11168_v31 = vld [vmem:[#allocation10 + $0x30] sm:$0xff] }
 0x15c   : > { %v11032_v11 = vadd.f32 %v1141_v7, %v1093_v24  ;;  %v11156_v7 = vld [vmem:[#allocation10 + $0x18] sm:$0xff] }
 0x15d   : > { %1367 = vmatpush.msrb.mxu1 %v11055_v59  ;;  %v11188_v24 = vld [vmem:[#allocation10 + $0x58] sm:$0xff] }
 0x15f   : > { %1368 = vmatpush.msrb.mxu1 %v11063_v63 }
 0x160   : > { %v1151_v42 = vpop.f32.mrf.mxu2 }
 0x161   : > { %v11009_v50 = vadd.f32 %v1151_v42, %v1103_v41  ;;  %1369 = vmatpush.msrb.mxu1 %v11072_v57  ;;  %v11176_v41 = vld [vmem:[#allocation10 + $0x40] sm:$0xff]  ;;  %v11180_v42 = vld [vmem:[#allocation10 + $0x48] sm:$0xff] }
 0x163   : > { %1154 = vmatpush.msra.mxu3 %v11009_v50  ;;  %1370 = vmatpush.msrb.mxu1 %v11080_v54 }
 0x165   : > { %1155 = vmatpush.msra.mxu3 %v11014_v51  ;;  %1371 = vmatpush.msrb.mxu1 %v11089_v49 }
 0x167   : > { %1156 = vmatpush.msra.mxu3 %v11020_v26  ;;  %1372 = vmatpush.msrb.mxu1 %v11097_v45 }
 0x169   : > { %1157 = vmatpush.msra.mxu3 %v11026_v8  ;;  %1373 = vmatpush.msrb.mxu1 %v11106_v40 }
 0x16b   : > { %1158 = vmatpush.msra.mxu3 %v11032_v11  ;;  %1374 = vmatpush.msrb.mxu1 %v11114_v35 }
 0x16d   : > { %1159 = vmatpush.msra.mxu3 %v11038_v0  ;;  %1375 = vmatpush.msrb.mxu1 %v11140_v21 }
 0x16f   : > { %1160 = vmatpush.msra.mxu3 %v11044_v1 }
 0x171   : > { %1161 = vmatpush.msra.mxu3 %v11052_v56 }
 0x173   : > { %1162 = vmatpush.msra.mxu3 %v11060_v60 }
 0x175   : > { %1163 = vmatpush.msra.mxu3 %v11069_v48 }
 0x177   : > { %1164 = vmatpush.msra.mxu3 %v11077_v53 }
 0x179   : > { %1165 = vmatpush.msra.mxu3 %v11086_v37 }
 0x17b   : > { %1166 = vmatpush.msra.mxu3 %v11094_v44 }
 0x17d   : > { %1167 = vmatpush.msra.mxu3 %v11103_v29 }
 0x17f   : > { %1168 = vmatpush.msra.mxu3 %v11111_v33 }
 0x181   : > { %1169 = vmatpush.msra.mxu3 %v11118_v18 }
 0x182   : > { %1170 = vmatmul.f32.vlgmr.msra.gmra.mxu3 %v11120_v19 }
 0x183   : > { %1174 = vmatpush.msrb.mxu3 %v11011_v52 }
 0x185   : > { %1175 = vmatpush.msrb.mxu3 %v11017_v47 }
 0x187   : > { %1176 = vmatpush.msrb.mxu3 %v11023_v15 }
 0x189   : > { %1177 = vmatpush.msrb.mxu3 %v11029_v9 }
 0x18b   : > { %1178 = vmatpush.msrb.mxu3 %v11035_v6 }
 0x18d   : > { %1179 = vmatpush.msrb.mxu3 %v11041_v13 }
 0x18f   : > { %1180 = vmatpush.msrb.mxu3 %v11047_v4 }
 0x191   : > { %1181 = vmatpush.msrb.mxu3 %v11055_v59 }
 0x193   : > { %1182 = vmatpush.msrb.mxu3 %v11063_v63 }
 0x195   : > { %1183 = vmatpush.msrb.mxu3 %v11072_v57 }
 0x197   : > { %1184 = vmatpush.msrb.mxu3 %v11080_v54 }
 0x199   : > { %1185 = vmatpush.msrb.mxu3 %v11089_v49 }
 0x19b   : > { %1186 = vmatpush.msrb.mxu3 %v11097_v45 }
 0x19d   : > { %1187 = vmatpush.msrb.mxu3 %v11106_v40 }
 0x19f   : > { %1188 = vmatpush.msrb.mxu3 %v11114_v35 }
 0x1a1   : > { %1189 = vmatpush.msrb.mxu3 %v11140_v21 }
 0x205   : > { %v1171_v25 = vpop.f32.mrf.mxu3 }
 0x206   : > { %1190 = vmatmul.f32.vlgmr.msrb.gmra.mxu3 %v1171_v25 }
 0x289   : > { %v1191_v30 = vpop.f32.mrf.mxu3 }
 0x28a   : > { %1258 = vmatpush.msra.mxu3 %v1191_v30 }
 0x28b   : > { %8626 = vmatmul.msk.f32.vlgmr.msra.gmra.mxu3 %vm14934_vm14, %v11144_v27 }
 0x293   : > { %8627 = vmatmul.msk.f32.gmra.mxu3 %vm14934_vm14, %v11148_v3 }
 0x29b   : > { %8628 = vmatmul.msk.f32.gmra.mxu3 %vm14934_vm14, %v11152_v5 }
 0x2a3   : > { %8629 = vmatmul.msk.f32.gmra.mxu3 %vm14934_vm14, %v11156_v7 }
 0x2ab   : > { %8630 = vmatmul.msk.f32.gmra.mxu3 %vm14934_vm14, %v11160_v10 }
 0x2b3   : > { %8631 = vmatmul.msk.f32.gmra.mxu3 %vm14934_vm14, %v11164_v23 }
 0x2bb   : > { %8632 = vmatmul.msk.f32.gmra.mxu3 %vm14934_vm14, %v11168_v31 }
 0x2c3   : > { %8633 = vmatmul.msk.f32.gmra.mxu3 %vm14934_vm14, %v11172_v32 }
 0x2cb   : > { %8634 = vmatmul.msk.f32.gmra.mxu3 %vm14934_vm14, %v11176_v41 }
 0x2d3   : > { %8635 = vmatmul.msk.f32.gmra.mxu3 %vm14934_vm14, %v11180_v42 }
 0x2db   : > { %8636 = vmatmul.msk.f32.gmra.mxu3 %vm14934_vm14, %v11184_v17 }
 0x2e3   : > { %8637 = vmatmul.msk.f32.gmra.mxu3 %vm14934_vm14, %v11188_v24 }
 0x2eb   : > { %8638 = vmatmul.msk.f32.gmra.mxu3 %vm14934_vm14, %v11192_v12 }
 0x2f3   : > { %8639 = vmatmul.msk.f32.gmra.mxu3 %vm14934_vm14, %v11196_v14 }
 0x2fb   : > { %8640 = vmatmul.msk.f32.gmra.mxu3 %vm14934_vm14, %v11200_v55 }
 0x303   : > { %8641 = vmatmul.msk.f32.gmra.mxu3 %vm14934_vm14, %v11204_v46 }
 0x30e   : > { %v1260_v36 = vpop.f32.mrf.mxu3 }
 0x316   : > { %v1263_v28 = vpop.f32.mrf.mxu3 }
 0x31e   : > { %v1266_v25 = vpop.f32.mrf.mxu3 }
 0x326   : > { %v1269_v30 = vpop.f32.mrf.mxu3 }
 0x32e   : > { %v1272_v22 = vpop.f32.mrf.mxu3 }
 0x336   : > { %v1275_v2 = vpop.f32.mrf.mxu3 }
 0x33e   : > { %v1278_v61 = vpop.f32.mrf.mxu3 }
 0x346   : > { %v1281_v43 = vpop.f32.mrf.mxu3 }
 0x34e   : > { %v1284_v39 = vpop.f32.mrf.mxu3 }
 0x356   : > { %v1287_v20 = vpop.f32.mrf.mxu3 }
 0x35e   : > { %v1290_v16 = vpop.f32.mrf.mxu3 }
 0x366   : > { %v1293_v62 = vpop.f32.mrf.mxu3 }
 0x367   : > { %v11225_v63 = vsub.f32 %v11032_v11, %v1293_v62  ;;  %v11240_v62 = vsub.f32 %v11052_v56, %v1284_v39  ;;  %v11255_v39 = vsub.f32 %v11077_v53, %v1275_v2  ;;  %v11270_v2 = vsub.f32 %v11103_v29, %v1266_v25  ;;  %v9584_v25 = vld [vmem:[#allocation7] sm:$0xff] }
 0x369   : > { %v1332_v11 = vmul.f32 %v11240_v62, %v11240_v62  ;;  %v1329_v56 = vmul.f32 %v11255_v39, %v11255_v39  ;;  %v1326_v53 = vmul.f32 %v11270_v2, %v11270_v2 }
 0x36e   : > { %v1296_v58 = vpop.f32.mrf.mxu3 }
 0x36f   : > { %v11220_v54 = vsub.f32 %v11026_v8, %v1296_v58  ;;  %v11235_v58 = vsub.f32 %v11044_v1, %v1287_v20  ;;  %v11250_v20 = vsub.f32 %v11069_v48, %v1278_v61  ;;  %v11265_v61 = vsub.f32 %v11094_v44, %v1269_v30  ;;  %v9602_v30 = vld [vmem:[#allocation7 + $0x90] sm:$0xff] }
 0x371   : > { %v1333_v8 = vmul.f32 %v11235_v58, %v11235_v58  ;;  %v1330_v1 = vmul.f32 %v11250_v20, %v11250_v20  ;;  %v1327_v48 = vmul.f32 %v11265_v61, %v11265_v61 }
 0x376   : > { %v1299_v38 = vpop.f32.mrf.mxu3 }
 0x377   : > { %v11215_v45 = vsub.f32 %v11020_v26, %v1299_v38  ;;  %v11230_v38 = vsub.f32 %v11038_v0, %v1290_v16  ;;  %v1336_v26 = vmul.f32 %v11220_v54, %v11220_v54  ;;  %v11245_v16 = vsub.f32 %v11060_v60, %v1281_v43 }
 0x378   : > { %v11260_v43 = vsub.f32 %v11086_v37, %v1272_v22  ;;  %v11275_v22 = vsub.f32 %v11111_v33, %v1263_v28  ;;  %v9599_v33 = vld [vmem:[#allocation7 + $0x78] sm:$0xff] }
 0x379   : > { %v1331_v0 = vmul.f32 %v11245_v16, %v11245_v16  ;;  %2078 = vmatpush.bf16.msra.mxu1 %v9599_v33 }
 0x37a   : > { %v1328_v60 = vmul.f32 %v11260_v43, %v11260_v43  ;;  %v1325_v37 = vmul.f32 %v11275_v22, %v11275_v22 }
 0x37e   : > { %v1302_v21 = vpop.f32.mrf.mxu3 }
 0x37f   : > { %v11209_v35 = vsub.f32 %v11014_v51, %v1302_v21  ;;  %v1335_v51 = vmul.f32 %v11225_v63, %v11225_v63  ;;  %v9590_v21 = vld [vmem:[#allocation7 + $0x30] sm:$0xff] }
 0x381   : > { %v1338_v57 = vmul.f32 %v11209_v35, %v11209_v35 }
 0x386   : > { %v1305_v34 = vpop.f32.mrf.mxu3 }
 0x387   : > { %v11212_v40 = vsub.f32 %v11009_v50, %v1305_v34  ;;  %v1337_v34 = vmul.f32 %v11215_v45, %v11215_v45  ;;  %v1334_v50 = vmul.f32 %v11230_v38, %v11230_v38 }
 0x389   : > { %v1339_v49 = vmul.f32 %v11212_v40, %v11212_v40 }
 0x38b   : > { %1340 = vmatpush.msrb.mxu0 %v1339_v49 }
 0x38d   : > { %1341 = vmatpush.msrb.mxu0 %v1338_v57  ;;  %v11280_v57 = vsub.f32 %v11118_v18, %v1260_v36  ;;  %v9591_v18 = vld [vmem:[#allocation7 + $0x38] sm:$0xff] }
 0x38e   : > { %v9603_v36 = vld [vmem:[#allocation7 + $0x98] sm:$0xff] }
 0x38f   : > { %1342 = vmatpush.msrb.mxu0 %v1337_v34  ;;  %v1324_v49 = vmul.f32 %v11280_v57, %v11280_v57 }
 0x391   : > { %1343 = vmatpush.msrb.mxu0 %v1336_v26  ;;  %v9601_v26 = vld [vmem:[#allocation7 + $0x88] sm:$0xff] }
 0x393   : > { %1344 = vmatpush.msrb.mxu0 %v1335_v51 }
 0x395   : > { %1345 = vmatpush.msrb.mxu0 %v1334_v50 }
 0x397   : > { %1346 = vmatpush.msrb.mxu0 %v1333_v8 }
 0x399   : > { %1347 = vmatpush.msrb.mxu0 %v1332_v11 }
 0x39b   : > { %1348 = vmatpush.msrb.mxu0 %v1331_v0  ;;  %v9600_v0 = vld [vmem:[#allocation7 + $0x80] sm:$0xff] }
 0x39d   : > { %1349 = vmatpush.msrb.mxu0 %v1330_v1 }
 0x39f   : > { %1350 = vmatpush.msrb.mxu0 %v1329_v56 }
 0x3a1   : > { %1351 = vmatpush.msrb.mxu0 %v1328_v60 }
 0x3a3   : > { %1352 = vmatpush.msrb.mxu0 %v1327_v48 }
 0x3a5   : > { %1353 = vmatpush.msrb.mxu0 %v1326_v53 }
 0x3a7   : > { %1354 = vmatpush.msrb.mxu0 %v1325_v37 }
 0x3a9   : > { %1355 = vmatpush.msrb.mxu0 %v1324_v49 }
 0x3aa   : > { %1356 = vmatmul.f32.vlgmr.msrb.gmra.mxu0 %v11120_v19  ;;  %v9598_v19 = vld [vmem:[#allocation7 + $0x70] sm:$0xff] }
 0x3ab   : > { %2029 = vmatpush.bf16.msra.mxu0 %v9591_v18  ;;  %2079 = vmatpush.bf16.msra.mxu1 %v9598_v19  ;;  %v15110_v18 = vld [vmem:[#allocation35_spill] sm:$0xff] }
 0x3af   : > { %2030 = vmatpush.bf16.msra.mxu0 %v9590_v21 }
 0x427   : > { %v1357_v44 = vpop.f32.mrf.mxu0 }
 0x428   : > { %1376 = vmatmul.f32.vlgmr.msrb.gmra.mxu1 %v1357_v44 }
 0x4a5   : > { %v1377_v29 = vpop.f32.mrf.mxu1 }
 0x4a6   : > { %1395 = vmatpush.msrb.mxu2 %v1377_v29 }
 0x4a7   : > { %8642 = vmatmul.msk.f32.vlgmr.msrb.gmra.mxu2 %vm14934_vm14, %v11144_v27  ;;  %v9597_v27 = vld [vmem:[#allocation7 + $0x68] sm:$0xff] }
 0x4a8   : > { %2080 = vmatpush.bf16.msra.mxu1 %v9597_v27 }
 0x4af   : > { %8643 = vmatmul.msk.f32.gmra.mxu2 %vm14934_vm14, %v11148_v3  ;;  %v9589_v3 = vld [vmem:[#allocation7 + $0x28] sm:$0xff] }
 0x4b0   : > { %2031 = vmatpush.bf16.msra.mxu0 %v9589_v3 }
 0x4b7   : > { %8644 = vmatmul.msk.f32.gmra.mxu2 %vm14934_vm14, %v11152_v5  ;;  %v9596_v5 = vld [vmem:[#allocation7 + $0x60] sm:$0xff] }
 0x4b8   : > { %2081 = vmatpush.bf16.msra.mxu1 %v9596_v5 }
 0x4bf   : > { %8645 = vmatmul.msk.f32.gmra.mxu2 %vm14934_vm14, %v11156_v7  ;;  %v9607_v7 = vld [vmem:[#allocation7 + $0xb8] sm:$0xff] }
 0x4c0   : > { %2127 = vmatpush.bf16.msrb.mxu3 %v9607_v7 }
 0x4c7   : > { %8646 = vmatmul.msk.f32.gmra.mxu2 %vm14934_vm14, %v11160_v10  ;;  %v9588_v10 = vld [vmem:[#allocation7 + $0x20] sm:$0xff] }
 0x4c8   : > { %2032 = vmatpush.bf16.msra.mxu0 %v9588_v10 }
 0x4cf   : > { %8647 = vmatmul.msk.f32.gmra.mxu2 %vm14934_vm14, %v11164_v23  ;;  %v9595_v23 = vld [vmem:[#allocation7 + $0x58] sm:$0xff] }
 0x4d0   : > { %2082 = vmatpush.bf16.msra.mxu1 %v9595_v23 }
 0x4d7   : > { %8648 = vmatmul.msk.f32.gmra.mxu2 %vm14934_vm14, %v11168_v31  ;;  %v9606_v31 = vld [vmem:[#allocation7 + $0xb0] sm:$0xff] }
 0x4d8   : > { %2128 = vmatpush.bf16.msrb.mxu3 %v9606_v31  ;;  %v15113_v31 = vld [vmem:[#allocation38_spill] sm:$0xff] }
 0x4df   : > { %8649 = vmatmul.msk.f32.gmra.mxu2 %vm14934_vm14, %v11172_v32  ;;  %v9587_v32 = vld [vmem:[#allocation7 + $0x18] sm:$0xff] }
 0x4e0   : > { %2033 = vmatpush.bf16.msra.mxu0 %v9587_v32 }
 0x4e7   : > { %8650 = vmatmul.msk.f32.gmra.mxu2 %vm14934_vm14, %v11176_v41  ;;  %v9594_v41 = vld [vmem:[#allocation7 + $0x50] sm:$0xff] }
 0x4e8   : > { %2083 = vmatpush.bf16.msra.mxu1 %v9594_v41  ;;  %v15114_v41 = vld [vmem:[#allocation39_spill] sm:$0xff] }
 0x4ef   : > { %8651 = vmatmul.msk.f32.gmra.mxu2 %vm14934_vm14, %v11180_v42  ;;  %v9605_v42 = vld [vmem:[#allocation7 + $0xa8] sm:$0xff] }
 0x4f0   : > { %2129 = vmatpush.bf16.msrb.mxu3 %v9605_v42 }
 0x4f7   : > { %8652 = vmatmul.msk.f32.gmra.mxu2 %vm14934_vm14, %v11184_v17  ;;  %v9586_v17 = vld [vmem:[#allocation7 + $0x10] sm:$0xff] }
 0x4f8   : > { %2034 = vmatpush.bf16.msra.mxu0 %v9586_v17 }
 0x4ff   : > { %8653 = vmatmul.msk.f32.gmra.mxu2 %vm14934_vm14, %v11188_v24  ;;  %v9593_v24 = vld [vmem:[#allocation7 + $0x48] sm:$0xff] }
 0x500   : > { %2084 = vmatpush.bf16.msra.mxu1 %v9593_v24 }
 0x507   : > { %8654 = vmatmul.msk.f32.gmra.mxu2 %vm14934_vm14, %v11192_v12  ;;  %v9604_v12 = vld [vmem:[#allocation7 + $0xa0] sm:$0xff] }
 0x508   : > { %2130 = vmatpush.bf16.msrb.mxu3 %v9604_v12 }
 0x50c   : > { %2131 = vmatpush.bf16.msrb.mxu3 %v9603_v36 }
 0x50f   : > { %8655 = vmatmul.msk.f32.gmra.mxu2 %vm14934_vm14, %v11196_v14  ;;  %v9585_v14 = vld [vmem:[#allocation7 + $0x8] sm:$0xff] }
 0x510   : > { %2035 = vmatpush.bf16.msra.mxu0 %v9585_v14  ;;  %2132 = vmatpush.bf16.msrb.mxu3 %v9602_v30  ;;  %v15115_v14 = vld [vmem:[#allocation40_spill] sm:$0xff]  ;;  %v15116_v30 = vld [vmem:[#allocation41_spill] sm:$0xff] }
 0x514   : > { %2036 = vmatpush.bf16.msra.mxu0 %v9584_v25  ;;  %2133 = vmatpush.bf16.msrb.mxu3 %v9601_v26 }
 0x517   : > { %8656 = vmatmul.msk.f32.gmra.mxu2 %vm14934_vm14, %v11200_v55  ;;  %v9592_v55 = vld [vmem:[#allocation7 + $0x40] sm:$0xff] }
 0x518   : > { %2085 = vmatpush.bf16.msra.mxu1 %v9592_v55  ;;  %2196 = vmatpush.msrb.mxu0 %v11011_v52 }
 0x519   : > { %2134 = vmatpush.bf16.msrb.mxu3 %v9600_v0 }
 0x51a   : > { %2197 = vmatpush.msrb.mxu0 %v11017_v47 }
 0x51c   : > { %2198 = vmatpush.msrb.mxu0 %v11023_v15 }
 0x51d   : > { %2333 = vmatpush.msra.mxu3 %v11011_v52 }
 0x51e   : > { %2199 = vmatpush.msrb.mxu0 %v11029_v9 }
 0x51f   : > { %8657 = vmatmul.msk.f32.gmra.mxu2 %vm14934_vm14, %v11204_v46  ;;  %2334 = vmatpush.msra.mxu3 %v11017_v47 }
 0x520   : > { %2200 = vmatpush.msrb.mxu0 %v11035_v6 }
 0x521   : > { %2335 = vmatpush.msra.mxu3 %v11023_v15  ;;  %v15111_v15 = vld [vmem:[#allocation36_spill] sm:$0xff] }
 0x522   : > { %2201 = vmatpush.msrb.mxu0 %v11041_v13 }
 0x523   : > { %2336 = vmatpush.msra.mxu3 %v11029_v9  ;;  %v15112_v9 = vld [vmem:[#allocation37_spill] sm:$0xff] }
 0x524   : > { %2202 = vmatpush.msrb.mxu0 %v11047_v4 }
 0x525   : > { %2337 = vmatpush.msra.mxu3 %v11035_v6 }
 0x526   : > { %2203 = vmatpush.msrb.mxu0 %v11055_v59 }
 0x527   : > { %2338 = vmatpush.msra.mxu3 %v11041_v13 }
 0x528   : > { %2204 = vmatpush.msrb.mxu0 %v15110_v18 }
 0x529   : > { %2339 = vmatpush.msra.mxu3 %v11047_v4 }
 0x52a   : > { %v1397_v28 = vpop.f32.mrf.mxu2  ;;  %2205 = vmatpush.msrb.mxu0 %v15111_v15 }
 0x52b   : > { %v1398_v46 = vadd.f32 1e-05, %v1397_v28  ;;  %2340 = vmatpush.msra.mxu3 %v11055_v59 }
 0x52c   : > { %2206 = vmatpush.msrb.mxu0 %v15112_v9 }
 0x52d   : > { %9859 = vrsqrt.f32 %v1398_v46  ;;  %vm1451_vm14 = vweird.f32 %v1398_v46  ;;  %2341 = vmatpush.msra.mxu3 %v15110_v18 }
 0x52e   : > { %2207 = vmatpush.msrb.mxu0 %v15113_v31 }
 0x52f   : > { %2342 = vmatpush.msra.mxu3 %v15111_v15 }
 0x530   : > { %2208 = vmatpush.msrb.mxu0 %v15114_v41 }
 0x531   : > { %2343 = vmatpush.msra.mxu3 %v15112_v9 }
 0x532   : > { %v1400_v34 = vpop.f32.mrf.mxu2  ;;  %2209 = vmatpush.msrb.mxu0 %v15115_v14 }
 0x533   : > { %v9860_v51 = vpop.eup %9859  ;;  %v1401_v50 = vadd.f32 1e-05, %v1400_v34  ;;  %2344 = vmatpush.msra.mxu3 %v15113_v31 }
 0x534   : > { %v1446_v8 = vmul.f32 %v9860_v51, %v1398_v46  ;;  %vm1452_vm15 = vweird.f32 %v9860_v51  ;;  %2210 = vmatpush.msrb.mxu0 %v15116_v30 }
 0x535   : > { %9861 = vrsqrt.f32 %v1401_v50  ;;  %vm1453_vm0 = vmor %vm1451_vm14, %vm1452_vm15  ;;  %2345 = vmatpush.msra.mxu3 %v15114_v41 }
 0x536   : > { %v1447_v11 = vmul.f32 %v9860_v51, %v1446_v8 }
 0x537   : > { %2346 = vmatpush.msra.mxu3 %v15115_v14 }
 0x538   : > { %v1448_v1 = vmul.f32 0.5, %v1447_v11 }
 0x539   : > { %2347 = vmatpush.msra.mxu3 %v15116_v30 }
 0x53a   : > { %v1449_v56 = vsub.f32 1.5, %v1448_v1  ;;  %v1403_v60 = vpop.f32.mrf.mxu2 }
 0x53b   : > { %v9862_v48 = vpop.eup %9861  ;;  %v1404_v53 = vadd.f32 1e-05, %v1403_v60 }
 0x53c   : > { %v1450_v37 = vmul.f32 %v9860_v51, %v1449_v56  ;;  %v1456_v49 = vmul.f32 %v9862_v48, %v1401_v50  ;;  %vm1462_vm14 = vweird.f32 %v9862_v48  ;;  %v15121_v56 = vld [vmem:[#allocation42_spill] sm:$0xff] }
 0x53d   : > { %9863 = vrsqrt.f32 %v1404_v53  ;;  %2211 = vmatpush.msrb.mxu0 %v15121_v56  ;;  %2348 = vmatpush.msra.mxu3 %v15121_v56 }
 0x53e   : > { %v1454_v44 = vsel %vm1453_vm0, %v9860_v51, %v1450_v37  ;;  %v1457_v52 = vmul.f32 %v9862_v48, %v1456_v49  ;;  %vm1461_vm0 = vweird.f32 %v1401_v50 }
 0x53f   : > { %v1605_v29 = vmul.f32 %v1454_v44, %v11280_v57  ;;  %vm1463_vm13 = vmor %vm1461_vm0, %vm1462_vm14 }
 0x540   : > { %v1458_v33 = vmul.f32 0.5, %v1457_v52 }
 0x541   : > { %v1637_v27 = vmul.f32 0.1, %v1605_v29  ;;  %vm1621_vm15 = vcmp.ge.f32.partialorder %v1605_v29, 0.0 }
 0x542   : > { %v1459_v47 = vsub.f32 1.5, %v1458_v33  ;;  %v1406_v19 = vpop.f32.mrf.mxu2 }
 0x543   : > { %v9864_v21 = vpop.eup %9863  ;;  %v11336_v3 = vadd.f32 1e-05, %v1406_v19  ;;  %v1653_v23 = vsel %vm1621_vm15, %v1605_v29, %v1637_v27  ;;  %vm15118_vm15 = vcmask 1040384   ;;  %v15123_v27 = vld [vmem:[#allocation20_spill] sm:$0xff] }
 0x544   : > { %v1460_v57 = vmul.f32 %v9862_v48, %v1459_v47  ;;  %v1466_v5 = vmul.f32 %v9864_v21, %v1404_v53  ;;  %vm1472_vm14 = vweird.f32 %v9864_v21  ;;  %v1781_v4 = vrot.slane %v1653_v23, 7 }
 0x545   : > { %9865 = vrsqrt.f32 %v11336_v3  ;;  %v1733_v28 = vrot.slane %v1653_v23, 1 }
 0x546   : > { %v1464_v6 = vsel %vm1463_vm13, %v9862_v48, %v1460_v57  ;;  %v1467_v7 = vmul.f32 %v9864_v21, %v1466_v5  ;;  %vm1471_vm13 = vweird.f32 %v1404_v53  ;;  %v1828_v50 = vsel %vm15118_vm15, %v1653_v23, %v1781_v4 }
 0x547   : > { %v1606_v10 = vmul.f32 %v1464_v6, %v11275_v22  ;;  %vm1473_vm0 = vmor %vm1471_vm13, %vm1472_vm14 }
 0x548   : > { %v1468_v13 = vmul.f32 0.5, %v1467_v7  ;;  %vm15119_vm14 = vmmov %vm15118_vm15 }
 0x549   : > { %vm1622_vm1 = vcmp.ge.f32.partialorder %v1606_v10, 0.0  ;;  %v1638_v32 = vmul.f32 0.1, %v1606_v10 }
 0x54a   : > { %v1469_v42 = vsub.f32 1.5, %v1468_v13  ;;  %v1409_v17 = vpop.f32.mrf.mxu2 }
 0x54b   : > { %v9866_v24 = vpop.eup %9865  ;;  %v11348_v12 = vadd.f32 1e-05, %v1409_v17  ;;  %v11350_v22 = vsel %vm1622_vm1, %v1606_v10, %v1638_v32  ;;  %vm15117_vm1 = vcmask 1046528  }
 0x54c   : > { %v1470_v59 = vmul.f32 %v9864_v21, %v1469_v42  ;;  %v1476_v55 = vmul.f32 %v9866_v24, %v11336_v3  ;;  %v1734_v36 = vrot.slane %v11350_v22, 1  ;;  %v1782_v46 = vrot.slane %v11350_v22, 7 }
 0x54d   : > { %9867 = vrsqrt.f32 %v11348_v12  ;;  %v1862_v25 = vpack.c.bf16 %v11350_v22, %v1653_v23 }
 0x54e   : > { %v1474_v34 = vsel %vm1473_vm0, %v9864_v21, %v1470_v59  ;;  %v1477_v26 = vmul.f32 %v9866_v24, %v1476_v55  ;;  %v1735_v51 = vsel %vm15117_vm1, %v1733_v28, %v1734_v36  ;;  %v1783_v11 = vsel %vm15119_vm14, %v1781_v4, %v1782_v46 }
 0x54f   : > { %v1607_v8 = vmul.f32 %v1474_v34, %v11270_v2  ;;  %2086 = vmatmul.bf16.vlgmr.msra.gmra.mxu1 %v1862_v25  ;;  %v1829_v1 = vsel %vm10812_vm2, %v1735_v51, %v1828_v50  ;;  %vm1482_vm0 = vweird.f32 %v9866_v24  ;;  %vm1481_vm1 = vweird.f32 %v11336_v3 }
 0x550   : > { %v1478_v60 = vmul.f32 0.5, %v1477_v26  ;;  %v1861_v48 = vpack.c.bf16 %v1783_v11, %v1829_v1  ;;  %vm1483_vm15 = vmor %vm1481_vm1, %vm1482_vm0  ;;  %vm15122_vm14 = vcmask 1046528   ;;  %vm1491_vm1 = vweird.f32 %v11348_v12 }
 0x551   : > { %vm1623_vm13 = vcmp.ge.f32.partialorder %v1607_v8, 0.0  ;;  %v1639_v53 = vmul.f32 0.1, %v1607_v8 }
 0x552   : > { %v1479_v37 = vsub.f32 1.5, %v1478_v60  ;;  %v1412_v49 = vpop.f32.mrf.mxu2  ;;  %2037 = vmatmul.bf16.vlgmr.msra.gmra.mxu0 %v1861_v48 }
 0x553   : > { %v9868_v2 = vpop.eup %9867  ;;  %v1655_v44 = vsel %vm1623_vm13, %v1607_v8, %v1639_v53  ;;  %v1413_v52 = vadd.f32 1e-05, %v1412_v49 }
 0x554   : > { %v1480_v29 = vmul.f32 %v9866_v24, %v1479_v37  ;;  %v1486_v33 = vmul.f32 %v9868_v2, %v11348_v12  ;;  %v1736_v18 = vrot.slane %v1655_v44, 1  ;;  %vm1492_vm0 = vweird.f32 %v9868_v2 }
 0x555   : > { %9869 = vrsqrt.f32 %v1413_v52  ;;  %v1784_v10 = vrot.slane %v1655_v44, 7 }
 0x556   : > { %v1487_v47 = vmul.f32 %v9868_v2, %v1486_v33  ;;  %v1737_v19 = vsel %vm15122_vm14, %v1734_v36, %v1736_v18  ;;  %v1484_v21 = vsel %vm1483_vm15, %v9866_v24, %v1480_v29  ;;  %vm1493_vm15 = vmor %vm1491_vm1, %vm1492_vm0 }
 0x557   : > { %v1846_v15 = vsel %vm10819_vm3, %v1783_v11, %v1737_v19  ;;  %v1608_v57 = vmul.f32 %v1484_v21, %v11265_v61 }
 0x558   : > { %v1488_v5 = vmul.f32 0.5, %v1487_v47  ;;  %v1863_v3 = vpack.c.bf16 %v1846_v15, %v1735_v51 }
 0x559   : > { %vm1624_vm13 = vcmp.ge.f32.partialorder %v1608_v57, 0.0  ;;  %v1640_v9 = vmul.f32 0.1, %v1608_v57 }
 0x55a   : > { %v1489_v6 = vsub.f32 1.5, %v1488_v5  ;;  %v1415_v7 = vpop.f32.mrf.mxu2  ;;  %2135 = vmatmul.bf16.vlgmr.msrb.gmra.mxu3 %v1863_v3 }
 0x55b   : > { %v9870_v23 = vpop.eup %9869  ;;  %v1416_v31 = vadd.f32 1e-05, %v1415_v7  ;;  %v11381_v13 = vsel %vm1624_vm13, %v1608_v57, %v1640_v9  ;;  %vm15124_vm13 = vcmask 1040384  }
 0x55c   : > { %v1490_v32 = vmul.f32 %v9868_v2, %v1489_v6  ;;  %v1496_v41 = vmul.f32 %v9870_v23, %v1413_v52  ;;  %v1738_v61 = vrot.slane %v11381_v13, 1  ;;  %v1786_v42 = vrot.slane %v11381_v13, 7  ;;  %vm15125_vm3 = vmmov %vm15124_vm13 }
 0x55d   : > { %9871 = vrsqrt.f32 %v1416_v31  ;;  %v1865_v17 = vpack.c.bf16 %v11381_v13, %v1655_v44  ;;  %v1785_v59 = vsel %vm15124_vm13, %v1782_v46, %v1784_v10  ;;  %vm1502_vm1 = vweird.f32 %v9870_v23 }
 0x55e   : > { %v1494_v4 = vsel %vm1493_vm15, %v9868_v2, %v1490_v32  ;;  %v1497_v24 = vmul.f32 %v9870_v23, %v1496_v41  ;;  %v1739_v14 = vsel %vm15122_vm14, %v1736_v18, %v1738_v61  ;;  %v1787_v12 = vsel %vm15125_vm3, %v1784_v10, %v1786_v42 }
 0x55f   : > { %v1609_v55 = vmul.f32 %v1494_v4, %v11260_v43  ;;  %2091 = vmatmul.bf16.gmra.mxu1 %v1865_v17  ;;  %v1831_v28 = vsel %vm10833_vm4, %v1739_v14, %v1785_v59  ;;  %vm1501_vm15 = vweird.f32 %v1413_v52  ;;  %vm15127_vm3 = vcmask 1046528  }
 0x560   : > { %v1498_v25 = vmul.f32 0.5, %v1497_v24  ;;  %v1864_v30 = vpack.c.bf16 %v1787_v12, %v1831_v28  ;;  %vm1503_vm14 = vmor %vm1501_vm15, %vm1502_vm1  ;;  %vm1511_vm1 = vweird.f32 %v1416_v31 }
 0x561   : > { %v1641_v34 = vmul.f32 0.1, %v1609_v55  ;;  %vm1625_vm0 = vcmp.ge.f32.partialorder %v1609_v55, 0.0 }
 0x562   : > { %v1499_v26 = vsub.f32 1.5, %v1498_v25  ;;  %v1418_v51 = vpop.f32.mrf.mxu2  ;;  %2042 = vmatmul.bf16.gmra.mxu0 %v1864_v30 }
 0x563   : > { %v9872_v50 = vpop.eup %9871  ;;  %v1419_v22 = vadd.f32 1e-05, %v1418_v51  ;;  %v1657_v8 = vsel %vm1625_vm0, %v1609_v55, %v1641_v34 }
 0x564   : > { %v1500_v46 = vmul.f32 %v9870_v23, %v1499_v26  ;;  %v1506_v43 = vmul.f32 %v9872_v50, %v1416_v31  ;;  %v1740_v11 = vrot.slane %v1657_v8, 1  ;;  %vm1512_vm0 = vweird.f32 %v9872_v50 }
 0x565   : > { %9873 = vrsqrt.f32 %v1419_v22  ;;  %v1788_v33 = vrot.slane %v1657_v8, 7  ;;  %vm1513_vm15 = vmor %vm1511_vm1, %vm1512_vm0 }
 0x566   : > { %v1507_v1 = vmul.f32 %v9872_v50, %v1506_v43  ;;  %v1741_v56 = vsel %vm15127_vm3, %v1738_v61, %v1740_v11  ;;  %v1504_v60 = vsel %vm1503_vm14, %v9870_v23, %v1500_v46  ;;  %vm15129_vm14 = vmmov %vm15127_vm3  ;;  %vm15130_vm3 = vcmask 1040384  }
 0x567   : > { %v1848_v53 = vsel %vm10840_vm5, %v1787_v12, %v1741_v56  ;;  %v1610_v37 = vmul.f32 %v1504_v60, %v11255_v39  ;;  %v1789_v7 = vsel %vm15130_vm3, %v1786_v42, %v1788_v33 }
 0x568   : > { %v1508_v49 = vmul.f32 0.5, %v1507_v1  ;;  %v1866_v2 = vpack.c.bf16 %v1848_v53, %v1739_v14 }
 0x569   : > { %vm1626_vm13 = vcmp.ge.f32.partialorder %v1610_v37, 0.0  ;;  %v1642_v44 = vmul.f32 0.1, %v1610_v37 }
 0x56a   : > { %v1509_v29 = vsub.f32 1.5, %v1508_v49  ;;  %v1421_v52 = vpop.f32.mrf.mxu2  ;;  %2140 = vmatmul.bf16.gmra.mxu3 %v1866_v2 }
 0x56b   : > { %v9874_v18 = vpop.eup %9873  ;;  %v1422_v47 = vadd.f32 1e-05, %v1421_v52  ;;  %v11399_v19 = vsel %vm1626_vm13, %v1610_v37, %v1642_v44  ;;  %vm15131_vm13 = vmmov %vm15130_vm3  ;;  %vm15133_vm3 = vcmask 1046528  }
 0x56c   : > { %v1510_v21 = vmul.f32 %v9872_v50, %v1509_v29  ;;  %v1516_v15 = vmul.f32 %v9874_v18, %v1419_v22  ;;  %v1742_v57 = vrot.slane %v11399_v19, 1  ;;  %v1790_v39 = vrot.slane %v11399_v19, 7 }
 0x56d   : > { %9875 = vrsqrt.f32 %v1422_v47  ;;  %v1868_v5 = vpack.c.bf16 %v11399_v19, %v1657_v8  ;;  %vm1522_vm1 = vweird.f32 %v9874_v18 }
 0x56e   : > { %v1514_v3 = vsel %vm1513_vm15, %v9872_v50, %v1510_v21  ;;  %v1517_v9 = vmul.f32 %v9874_v18, %v1516_v15  ;;  %v1743_v6 = vsel %vm15129_vm14, %v1740_v11, %v1742_v57  ;;  %v1791_v23 = vsel %vm15131_vm13, %v1788_v33, %v1790_v39 }
 0x56f   : > { %v1611_v10 = vmul.f32 %v1514_v3, %v11250_v20  ;;  %2096 = vmatmul.bf16.gmra.mxu1 %v1868_v5  ;;  %v1833_v13 = vsel %vm10854_vm6, %v1743_v6, %v1789_v7  ;;  %vm1521_vm15 = vweird.f32 %v1419_v22 }
 0x570   : > { %v1518_v32 = vmul.f32 0.5, %v1517_v9  ;;  %v1867_v41 = vpack.c.bf16 %v1791_v23, %v1833_v13  ;;  %vm1523_vm14 = vmor %vm1521_vm15, %vm1522_vm1  ;;  %vm1531_vm1 = vweird.f32 %v1422_v47 }
 0x571   : > { %v1643_v61 = vmul.f32 0.1, %v1611_v10  ;;  %vm1627_vm0 = vcmp.ge.f32.partialorder %v1611_v10, 0.0 }
 0x572   : > { %v1519_v17 = vsub.f32 1.5, %v1518_v32  ;;  %v1424_v4 = vpop.f32.mrf.mxu2  ;;  %2047 = vmatmul.bf16.gmra.mxu0 %v1867_v41 }
 0x573   : > { %v9876_v24 = vpop.eup %9875  ;;  %v1425_v14 = vadd.f32 1e-05, %v1424_v4  ;;  %v1659_v59 = vsel %vm1627_vm0, %v1611_v10, %v1643_v61  ;;  %v15140_v61 = vld [vmem:[#allocation26_spill] sm:$0xff] }
 0x574   : > { %v1520_v42 = vmul.f32 %v9874_v18, %v1519_v17  ;;  %v1526_v20 = vmul.f32 %v9876_v24, %v1422_v47  ;;  %v1744_v55 = vrot.slane %v1659_v59, 1  ;;  %vm1532_vm0 = vweird.f32 %v9876_v24 }
 0x575   : > { %9877 = vrsqrt.f32 %v1425_v14  ;;  %v1792_v43 = vrot.slane %v1659_v59, 7  ;;  %vm1533_vm15 = vmor %vm1531_vm1, %vm1532_vm0 }
 0x576   : > { %v1524_v12 = vsel %vm1523_vm14, %v9874_v18, %v1520_v42  ;;  %v1527_v28 = vmul.f32 %v9876_v24, %v1526_v20  ;;  %v1745_v25 = vsel %vm15133_vm3, %v1742_v57, %v1744_v55  ;;  %vm15135_vm14 = vmmov %vm15133_vm3  ;;  %vm15136_vm3 = vcmask 1040384  }
 0x577   : > { %v1612_v30 = vmul.f32 %v1524_v12, %v11245_v16  ;;  %v1850_v26 = vsel %vm10861_vm7, %v1791_v23, %v1745_v25  ;;  %v1793_v52 = vsel %vm15136_vm3, %v1790_v39, %v1792_v43 }
 0x578   : > { %v1528_v51 = vmul.f32 0.5, %v1527_v28  ;;  %v1869_v50 = vpack.c.bf16 %v1850_v26, %v1743_v6 }
 0x579   : > { %vm1628_vm13 = vcmp.ge.f32.partialorder %v1612_v30, 0.0  ;;  %v1644_v8 = vmul.f32 0.1, %v1612_v30 }
 0x57a   : > { %v1529_v46 = vsub.f32 1.5, %v1528_v51  ;;  %v1427_v22 = vpop.f32.mrf.mxu2  ;;  %2145 = vmatmul.bf16.gmra.mxu3 %v1869_v50 }
 0x57b   : > { %v9878_v11 = vpop.eup %9877  ;;  %v1428_v1 = vadd.f32 1e-05, %v1427_v22  ;;  %v11414_v56 = vsel %vm1628_vm13, %v1612_v30, %v1644_v8  ;;  %vm15137_vm13 = vmmov %vm15136_vm3  ;;  %vm15139_vm3 = vcmask 1046528  }
 0x57c   : > { %v1530_v60 = vmul.f32 %v9876_v24, %v1529_v46  ;;  %v1536_v53 = vmul.f32 %v9878_v11, %v1425_v14  ;;  %v1746_v16 = vrot.slane %v11414_v56, 1  ;;  %v1794_v37 = vrot.slane %v11414_v56, 7 }
 0x57d   : > { %9879 = vrsqrt.f32 %v1428_v1  ;;  %v1871_v49 = vpack.c.bf16 %v11414_v56, %v1659_v59  ;;  %vm1542_vm1 = vweird.f32 %v9878_v11 }
 0x57e   : > { %v1534_v2 = vsel %vm1533_vm15, %v9876_v24, %v1530_v60  ;;  %v1537_v44 = vmul.f32 %v9878_v11, %v1536_v53  ;;  %v1747_v29 = vsel %vm15135_vm14, %v1744_v55, %v1746_v16  ;;  %v1795_v18 = vsel %vm15137_vm13, %v1792_v43, %v1794_v37 }
 0x57f   : > { %v1613_v33 = vmul.f32 %v1534_v2, %v11240_v62  ;;  %2101 = vmatmul.bf16.gmra.mxu1 %v1871_v49  ;;  %v1835_v19 = vsel %vm10874_vm8, %v1747_v29, %v1793_v52  ;;  %vm1541_vm15 = vweird.f32 %v1425_v14 }
 0x580   : > { %v1538_v21 = vmul.f32 0.5, %v1537_v44  ;;  %v1870_v15 = vpack.c.bf16 %v1795_v18, %v1835_v19  ;;  %vm1543_vm14 = vmor %vm1541_vm15, %vm1542_vm1  ;;  %vm1551_vm1 = vweird.f32 %v1428_v1 }
 0x581   : > { %vm1629_vm0 = vcmp.ge.f32.partialorder %v1613_v33, 0.0  ;;  %v1645_v57 = vmul.f32 0.1, %v1613_v33 }
 0x582   : > { %v1539_v5 = vsub.f32 1.5, %v1538_v21  ;;  %v1430_v3 = vpop.f32.mrf.mxu2  ;;  %2052 = vmatmul.bf16.gmra.mxu0 %v1870_v15 }
 0x583   : > { %v9880_v9 = vpop.eup %9879  ;;  %v1431_v6 = vadd.f32 1e-05, %v1430_v3  ;;  %v1661_v7 = vsel %vm1629_vm0, %v1613_v33, %v1645_v57 }
 0x584   : > { %v1540_v39 = vmul.f32 %v9878_v11, %v1539_v5  ;;  %v1546_v62 = vmul.f32 %v9880_v9, %v1428_v1  ;;  %v1748_v10 = vrot.slane %v1661_v7, 1  ;;  %vm1552_vm0 = vweird.f32 %v9880_v9 }
 0x585   : > { %9881 = vrsqrt.f32 %v1431_v6  ;;  %v1796_v20 = vrot.slane %v1661_v7, 7  ;;  %vm1553_vm15 = vmor %vm1551_vm1, %vm1552_vm0 }
 0x586   : > { %v1544_v23 = vsel %vm1543_vm14, %v9878_v11, %v1540_v39  ;;  %v1547_v13 = vmul.f32 %v9880_v9, %v1546_v62  ;;  %v1749_v32 = vsel %vm15139_vm3, %v1746_v16, %v1748_v10  ;;  %vm15141_vm14 = vmmov %vm15139_vm3  ;;  %vm15142_vm3 = vcmask 1040384  }
 0x587   : > { %v1614_v41 = vmul.f32 %v1544_v23, %v11235_v58  ;;  %v1852_v17 = vsel %vm10881_vm9, %v1795_v18, %v1749_v32  ;;  %v1797_v22 = vsel %vm15142_vm3, %v1794_v37, %v1796_v20 }
 0x588   : > { %v1548_v4 = vmul.f32 0.5, %v1547_v13  ;;  %v1872_v24 = vpack.c.bf16 %v1852_v17, %v1747_v29 }
 0x589   : > { %vm1630_vm13 = vcmp.ge.f32.partialorder %v1614_v41, 0.0  ;;  %v1646_v59 = vmul.f32 0.1, %v1614_v41 }
 0x58a   : > { %v1549_v42 = vsub.f32 1.5, %v1548_v4  ;;  %v1433_v14 = vpop.f32.mrf.mxu2  ;;  %2150 = vmatmul.bf16.gmra.mxu3 %v1872_v24 }
 0x58b   : > { %v9882_v55 = vpop.eup %9881  ;;  %v1434_v12 = vadd.f32 1e-05, %v1433_v14  ;;  %v11429_v28 = vsel %vm1630_vm13, %v1614_v41, %v1646_v59  ;;  %vm15143_vm13 = vmmov %vm15142_vm3  ;;  %vm15145_vm3 = vcmask 1046528  }
 0x58c   : > { %v1550_v25 = vmul.f32 %v9880_v9, %v1549_v42  ;;  %v1556_v30 = vmul.f32 %v9882_v55, %v1431_v6  ;;  %v1750_v58 = vrot.slane %v11429_v28, 1  ;;  %v1798_v26 = vrot.slane %v11429_v28, 7 }
 0x58d   : > { %9883 = vrsqrt.f32 %v1434_v12  ;;  %v1874_v51 = vpack.c.bf16 %v11429_v28, %v1661_v7  ;;  %vm1562_vm1 = vweird.f32 %v9882_v55 }
 0x58e   : > { %v1554_v50 = vsel %vm1553_vm15, %v9880_v9, %v1550_v25  ;;  %v1557_v8 = vmul.f32 %v9882_v55, %v1556_v30  ;;  %v1751_v46 = vsel %vm15141_vm14, %v1748_v10, %v1750_v58  ;;  %v1799_v11 = vsel %vm15143_vm13, %v1796_v20, %v1798_v26 }
 0x58f   : > { %v1615_v43 = vmul.f32 %v1554_v50, %v11230_v38  ;;  %2106 = vmatmul.bf16.gmra.mxu1 %v1874_v51  ;;  %v1837_v56 = vsel %vm10894_vm10, %v1751_v46, %v1797_v22  ;;  %vm1561_vm15 = vweird.f32 %v1431_v6 }
 0x590   : > { %v1558_v60 = vmul.f32 0.5, %v1557_v8  ;;  %v1873_v53 = vpack.c.bf16 %v1799_v11, %v1837_v56  ;;  %vm1563_vm14 = vmor %vm1561_vm15, %vm1562_vm1  ;;  %vm1571_vm1 = vweird.f32 %v1434_v12 }
 0x591   : > { %vm1631_vm0 = vcmp.ge.f32.partialorder %v1615_v43, 0.0  ;;  %v1647_v16 = vmul.f32 0.1, %v1615_v43 }
 0x592   : > { %v1559_v49 = vsub.f32 1.5, %v1558_v60  ;;  %v1436_v2 = vpop.f32.mrf.mxu2  ;;  %2057 = vmatmul.bf16.gmra.mxu0 %v1873_v53 }
 0x593   : > { %v9884_v44 = vpop.eup %9883  ;;  %v1437_v29 = vadd.f32 1e-05, %v1436_v2  ;;  %v1663_v52 = vsel %vm1631_vm0, %v1615_v43, %v1647_v16  ;;  %v15152_v16 = vld [vmem:[#allocation30_spill] sm:$0xff] }
 0x594   : > { %v1560_v37 = vmul.f32 %v9882_v55, %v1559_v49  ;;  %v1566_v38 = vmul.f32 %v9884_v44, %v1434_v12  ;;  %v1752_v33 = vrot.slane %v1663_v52, 1  ;;  %vm1572_vm0 = vweird.f32 %v9884_v44 }
 0x595   : > { %9885 = vrsqrt.f32 %v1437_v29  ;;  %v1800_v62 = vrot.slane %v1663_v52, 7  ;;  %vm1573_vm15 = vmor %vm1571_vm1, %vm1572_vm0  ;;  %vm1581_vm1 = vweird.f32 %v1437_v29 }
 0x596   : > { %v1564_v18 = vsel %vm1563_vm14, %v9882_v55, %v1560_v37  ;;  %v1567_v19 = vmul.f32 %v9884_v44, %v1566_v38  ;;  %v1753_v21 = vsel %vm15145_vm3, %v1750_v58, %v1752_v33  ;;  %vm15147_vm14 = vmmov %vm15145_vm3  ;;  %vm15148_vm3 = vcmask 1040384  }
 0x597   : > { %v1616_v15 = vmul.f32 %v1564_v18, %v11225_v63  ;;  %v1854_v5 = vsel %vm10901_vm11, %v1799_v11, %v1753_v21  ;;  %v1801_v14 = vsel %vm15148_vm3, %v1798_v26, %v1800_v62  ;;  %vm15149_vm11 = vmmov %vm15148_vm3 }
 0x598   : > { %v1568_v3 = vmul.f32 0.5, %v1567_v19  ;;  %v1875_v9 = vpack.c.bf16 %v1854_v5, %v1751_v46 }
 0x599   : > { %vm1632_vm13 = vcmp.ge.f32.partialorder %v1616_v15, 0.0  ;;  %v1648_v7 = vmul.f32 0.1, %v1616_v15 }
 0x59a   : > { %v1569_v39 = vsub.f32 1.5, %v1568_v3  ;;  %v1439_v6 = vpop.f32.mrf.mxu2  ;;  %2155 = vmatmul.bf16.gmra.mxu3 %v1875_v9 }
 0x59b   : > { %v9886_v10 = vpop.eup %9885  ;;  %v1440_v23 = vadd.f32 1e-05, %v1439_v6  ;;  %v1664_v13 = vsel %vm1632_vm13, %v1616_v15, %v1648_v7 }
 0x59c   : > { %v1570_v32 = vmul.f32 %v9884_v44, %v1569_v39  ;;  %v1576_v41 = vmul.f32 %v9886_v10, %v1437_v29  ;;  %v1754_v17 = vrot.slane %v1664_v13, 1  ;;  %v1802_v63 = vrot.slane %v1664_v13, 7 }
 0x59d   : > { %9887 = vrsqrt.f32 %v1440_v23  ;;  %v1877_v4 = vpack.c.bf16 %v1664_v13, %v1663_v52  ;;  %vm1582_vm0 = vweird.f32 %v9886_v10 }
 0x59e   : > { %v1574_v24 = vsel %vm1573_vm15, %v9884_v44, %v1570_v32  ;;  %v1577_v59 = vmul.f32 %v9886_v10, %v1576_v41  ;;  %v1755_v42 = vsel %vm15147_vm14, %v1752_v33, %v1754_v17  ;;  %v1803_v55 = vsel %vm15149_vm11, %v1800_v62, %v1802_v63  ;;  %vm1583_vm15 = vmor %vm1581_vm1, %vm1582_vm0  ;;  %v15157_v62 = vld [vmem:[#allocation31_spill] sm:$0xff] }
 0x59f   : > { %v1617_v20 = vmul.f32 %v1574_v24, %v11220_v54  ;;  %2111 = vmatmul.bf16.gmra.mxu1 %v1877_v4  ;;  %v1839_v12 = vsel %vm10914_vm12, %v1755_v42, %v1801_v14  ;;  %vm15151_vm11 = vmmov %vm15147_vm14  ;;  %vm15153_vm14 = vnez %v15152_v16  ;;  %vm1591_vm0 = vweird.f32 %v1440_v23 }
 0x5a0   : > { %v1578_v25 = vmul.f32 0.5, %v1577_v59  ;;  %v1876_v30 = vpack.c.bf16 %v1803_v55, %v1839_v12 }
 0x5a1   : > { %vm1633_vm13 = vcmp.ge.f32.partialorder %v1617_v20, 0.0  ;;  %v1649_v58 = vmul.f32 0.1, %v1617_v20 }
 0x5a2   : > { %v1579_v51 = vsub.f32 1.5, %v1578_v25  ;;  %v1442_v50 = vpop.f32.mrf.mxu2  ;;  %2062 = vmatmul.bf16.gmra.mxu0 %v1876_v30 }
 0x5a3   : > { %v9888_v8 = vpop.eup %9887  ;;  %v1443_v46 = vadd.f32 1e-05, %v1442_v50  ;;  %v1665_v22 = vsel %vm1633_vm13, %v1617_v20, %v1649_v58 }
 0x5a4   : > { %v1580_v26 = vmul.f32 %v9886_v10, %v1579_v51  ;;  %v1586_v54 = vmul.f32 %v9888_v8, %v1440_v23  ;;  %v1756_v43 = vrot.slane %v1665_v22, 1  ;;  %vm1592_vm13 = vweird.f32 %v9888_v8 }
 0x5a5   : > { %9889 = vrsqrt.f32 %v1443_v46  ;;  %v1804_v29 = vrot.slane %v1665_v22, 7  ;;  %vm1593_vm1 = vmor %vm1591_vm0, %vm1592_vm13  ;;  %vm1601_vm13 = vweird.f32 %v1443_v46 }
 0x5a6   : > { %v1584_v11 = vsel %vm1583_vm15, %v9886_v10, %v1580_v26  ;;  %v1587_v56 = vmul.f32 %v9888_v8, %v1586_v54  ;;  %v1757_v60 = vsel %vm15151_vm11, %v1754_v17, %v1756_v43  ;;  %vm15154_vm15 = vmmov %vm15151_vm11  ;;  %vm15155_vm11 = vcmask 1040384  }
 0x5a7   : > { %v1618_v53 = vmul.f32 %v1584_v11, %v11215_v45  ;;  %v1856_v49 = vsel %vm15153_vm14, %v1803_v55, %v1757_v60  ;;  %v1805_v7 = vsel %vm15155_vm11, %v1802_v63, %v1804_v29  ;;  %vm15156_vm14 = vmmov %vm15155_vm11 }
 0x5a8   : > { %v1588_v2 = vmul.f32 0.5, %v1587_v56  ;;  %v1878_v44 = vpack.c.bf16 %v1856_v49, %v1755_v42  ;;  %v15159_v42 = vld [vmem:[#allocation32_spill] sm:$0xff] }
 0x5a9   : > { %vm1634_vm3 = vcmp.ge.f32.partialorder %v1618_v53, 0.0  ;;  %v1650_v52 = vmul.f32 0.1, %v1618_v53 }
 0x5aa   : > { %v1589_v37 = vsub.f32 1.5, %v1588_v2  ;;  %2160 = vmatmul.bf16.gmra.mxu3 %v1878_v44 }
 0x5ab   : > { %v9890_v38 = vpop.eup %9889  ;;  %v1666_v33 = vsel %vm1634_vm3, %v1618_v53, %v1650_v52  ;;  %vm15158_vm3 = vnez %v15157_v62 }
 0x5ac   : > { %v1590_v18 = vmul.f32 %v9888_v8, %v1589_v37  ;;  %v1596_v19 = vmul.f32 %v9890_v38, %v1443_v46  ;;  %v1758_v21 = vrot.slane %v1666_v33, 1  ;;  %v1806_v15 = vrot.slane %v1666_v33, 7 }
 0x5ad   : > { %v1880_v45 = vpack.c.bf16 %v1666_v33, %v1665_v22  ;;  %vm1602_vm0 = vweird.f32 %v9890_v38 }
 0x5ae   : > { %v1594_v5 = vsel %vm1593_vm1, %v9888_v8, %v1590_v18  ;;  %v1597_v3 = vmul.f32 %v9890_v38, %v1596_v19  ;;  %v1759_v9 = vsel %vm15154_vm15, %v1756_v43, %v1758_v21  ;;  %v1807_v6 = vsel %vm15156_vm14, %v1804_v29, %v1806_v15  ;;  %vm1603_vm1 = vmor %vm1601_vm13, %vm1602_vm0  ;;  %v15167_v43 = vld [vmem:[#allocation34_spill] sm:$0xff] }
 0x5af   : > { %v1619_v39 = vmul.f32 %v1594_v5, %v11209_v35  ;;  %2116 = vmatmul.bf16.gmra.mxu1 %v1880_v45  ;;  %v1841_v10 = vsel %vm15158_vm3, %v1759_v9, %v1805_v7  ;;  %vm15160_vm14 = vnez %v15159_v42  ;;  %vm15162_vm13 = vcmask 1040384  }
 0x5b0   : > { %v1598_v23 = vmul.f32 0.5, %v1597_v3  ;;  %v1879_v13 = vpack.c.bf16 %v1807_v6, %v1841_v10  ;;  %vm15163_vm0 = vmmov %vm15162_vm13 }
 0x5b1   : > { %vm1635_vm12 = vcmp.ge.f32.partialorder %v1619_v39, 0.0  ;;  %v1651_v32 = vmul.f32 0.1, %v1619_v39 }
 0x5b2   : > { %v1599_v41 = vsub.f32 1.5, %v1598_v23  ;;  %2067 = vmatmul.bf16.gmra.mxu0 %v1879_v13 }
 0x5b3   : > { %v1667_v17 = vsel %vm1635_vm12, %v1619_v39, %v1651_v32  ;;  %vm15161_vm12 = vmmov %vm15154_vm15 }
 0x5b4   : > { %v1600_v4 = vmul.f32 %v9890_v38, %v1599_v41  ;;  %v1760_v24 = vrot.slane %v1667_v17, 1  ;;  %v1808_v12 = vrot.slane %v1667_v17, 7 }
 0x5b6   : > { %v1604_v63 = vsel %vm1603_vm1, %v9890_v38, %v1600_v4  ;;  %v1761_v35 = vsel %vm15154_vm15, %v1758_v21, %v1760_v24  ;;  %v1809_v8 = vsel %vm15162_vm13, %v1806_v15, %v1808_v12  ;;  %vm15166_vm15 = vmmov %vm15161_vm12 }
 0x5b7   : > { %v1620_v59 = vmul.f32 %v1604_v63, %v11212_v40  ;;  %v1858_v14 = vsel %vm15160_vm14, %v1807_v6, %v1761_v35  ;;  %v15164_v40 = vld [vmem:[#allocation33_spill] sm:$0xff]  ;;  %vm15168_vm14 = vnez %v15167_v43 }
 0x5b8   : > { %v1881_v20 = vpack.c.bf16 %v1858_v14, %v1759_v9  ;;  %vm15165_vm1 = vnez %v15164_v40 }
 0x5b9   : > { %vm1636_vm11 = vcmp.ge.f32.partialorder %v1620_v59, 0.0  ;;  %v1652_v55 = vmul.f32 0.1, %v1620_v59 }
 0x5ba   : > { %2165 = vmatmul.bf16.gmra.mxu3 %v1881_v20 }
 0x5bb   : > { %v1668_v25 = vsel %vm1636_vm11, %v1620_v59, %v1652_v55  ;;  %vm15169_vm11 = vcmask 64512  }
 0x5bc   : > { %v1883_v30 = vpack.c.bf16 %v1668_v25, %v1667_v17  ;;  %v1762_v58 = vrot.slane %v1668_v25, 1  ;;  %v1810_v51 = vrot.slane %v1668_v25, 7  ;;  %vm15171_vm13 = vmmov %vm15169_vm11 }
 0x5be   : > { %v1763_v50 = vsel %vm15161_vm12, %v1760_v24, %v1762_v58  ;;  %v1811_v46 = vsel %vm15163_vm0, %v1808_v12, %v1810_v51  ;;  %v1780_v54 = vsel %vm15166_vm15, %v1762_v58, %v1668_v25  ;;  %vm15170_vm12 = vmmov %vm15169_vm11 }
 0x5bf   : > { %2121 = vmatmul.bf16.gmra.mxu1 %v1883_v30  ;;  %v1843_v22 = vsel %vm15165_vm1, %v1763_v50, %v1809_v8  ;;  %v1860_v11 = vsel %vm15168_vm14, %v1811_v46, %v1780_v54  ;;  %vm15172_vm0 = vmmov %vm15169_vm11 }
 0x5c0   : > { %v1882_v26 = vpack.c.bf16 %v1811_v46, %v1843_v22  ;;  %v1884_v56 = vpack.c.bf16 %v1860_v11, %v1763_v50  ;;  %vm15173_vm15 = vmmov %vm15172_vm0 }
 0x5c1   : > { %vm15190_vm14 = vmmov %vm15172_vm0 }
 0x5c2   : > { %2072 = vmatmul.bf16.gmra.mxu0 %v1882_v26  ;;  %vm15191_vm1 = vmmov %vm15172_vm0 }
 0x5ca   : > { %2170 = vmatmul.bf16.gmra.mxu3 %v1884_v56 }
 0x5cc   : > { %v11472_v60 = vpop.f32.mrf.mxu1 }
 0x5cf   : > { %v11474_v53 = vpop.f32.mrf.mxu0 }
 0x5d4   : > { %v2089_v49 = vpop.f32.mrf.mxu1 }
 0x5d7   : > { %v2040_v2 = vpop.f32.mrf.mxu0 }
 0x5d8   : > { %v2090_v29 = vadd.f32 %v2089_v49, %v2040_v2 }
 0x5dc   : > { %v11476_v44 = vpop.f32.mrf.mxu1 }
 0x5dd   : > { %v11478_v52 = vpop.f32.mrf.mxu3 }
 0x5df   : > { %v11480_v37 = vpop.f32.mrf.mxu0 }
 0x5e4   : > { %v2094_v38 = vpop.f32.mrf.mxu1 }
 0x5e5   : > { %v2138_v33 = vpop.f32.mrf.mxu3 }
 0x5e6   : > { %v11482_v18 = vadd.f32 %v2138_v33, %v2090_v29 }
 0x5e7   : > { %v2045_v19 = vpop.f32.mrf.mxu0 }
 0x5e8   : > { %v2095_v5 = vadd.f32 %v2094_v38, %v2045_v19 }
 0x5ec   : > { %v11484_v21 = vpop.f32.mrf.mxu1 }
 0x5ed   : > { %v11486_v15 = vpop.f32.mrf.mxu3 }
 0x5ef   : > { %v11488_v45 = vpop.f32.mrf.mxu0 }
 0x5f4   : > { %v2099_v3 = vpop.f32.mrf.mxu1 }
 0x5f5   : > { %v2143_v9 = vpop.f32.mrf.mxu3 }
 0x5f6   : > { %v11490_v7 = vadd.f32 %v2143_v9, %v2095_v5 }
 0x5f7   : > { %v2050_v39 = vpop.f32.mrf.mxu0 }
 0x5f8   : > { %v2100_v13 = vadd.f32 %v2099_v3, %v2050_v39 }
 0x5fc   : > { %v2102_v6 = vpop.f32.mrf.mxu1 }
 0x5fd   : > { %v11492_v10 = vpop.f32.mrf.mxu3 }
 0x5ff   : > { %v2053_v23 = vpop.f32.mrf.mxu0 }
 0x604   : > { %v2104_v32 = vpop.f32.mrf.mxu1 }
 0x605   : > { %v2148_v41 = vpop.f32.mrf.mxu3 }
 0x606   : > { %v11494_v17 = vadd.f32 %v2148_v41, %v2100_v13 }
 0x607   : > { %v2055_v4 = vpop.f32.mrf.mxu0 }
 0x608   : > { %v2105_v59 = vadd.f32 %v2104_v32, %v2055_v4 }
 0x60c   : > { %v2107_v24 = vpop.f32.mrf.mxu1 }
 0x60d   : > { %v2151_v63 = vpop.f32.mrf.mxu3 }
 0x60f   : > { %v2058_v35 = vpop.f32.mrf.mxu0 }
 0x614   : > { %v2109_v55 = vpop.f32.mrf.mxu1 }
 0x615   : > { %v2153_v14 = vpop.f32.mrf.mxu3 }
 0x616   : > { %v11496_v20 = vadd.f32 %v2153_v14, %v2105_v59 }
 0x617   : > { %v2060_v12 = vpop.f32.mrf.mxu0 }
 0x61c   : > { %v2112_v58 = vpop.f32.mrf.mxu1 }
 0x61d   : > { %v2156_v25 = vpop.f32.mrf.mxu3 }
 0x61f   : > { %v2063_v30 = vpop.f32.mrf.mxu0 }
 0x624   : > { %v2114_v8 = vpop.f32.mrf.mxu1 }
 0x625   : > { %v2158_v51 = vpop.f32.mrf.mxu3 }
 0x627   : > { %v2065_v50 = vpop.f32.mrf.mxu0 }
 0x628   : > { %v2115_v14 = vadd.f32 %v2114_v8, %v2065_v50  ;;  %v2103_v8 = vadd.f32 %v2102_v6, %v2053_v23  ;;  %v11566_v23 = vld [vmem:[#allocation10 + $0x20] sm:$0xff] }
 0x62c   : > { %v2117_v26 = vpop.f32.mrf.mxu1 }
 0x62d   : > { %v2161_v46 = vpop.f32.mrf.mxu3 }
 0x62f   : > { %v2068_v22 = vpop.f32.mrf.mxu0 }
 0x630   : > { %v2118_v4 = vadd.f32 %v2117_v26, %v2068_v22  ;;  %v2108_v22 = vadd.f32 %v2107_v24, %v2058_v35  ;;  %v2093_v35 = vadd.f32 %v11476_v44, %v11480_v37  ;;  %v11547_v44 = vld [vmem:[#allocation8] sm:$0xff] }
 0x632   : > { %v11518_v50 = vadd.f32 %v2156_v25, %v2108_v22  ;;  %v11536_v6 = vadd.f32 %v11486_v15, %v2093_v35  ;;  %v11578_v25 = vld [vmem:[#allocation10 + $0x38] sm:$0xff] }
 0x634   : > { %v2119_v49 = vpop.f32.mrf.mxu1 }
 0x635   : > { %v2163_v54 = vpop.f32.mrf.mxu3 }
 0x637   : > { %v2070_v11 = vpop.f32.mrf.mxu0 }
 0x638   : > { %v2120_v32 = vadd.f32 %v2119_v49, %v2070_v11  ;;  %v2110_v11 = vadd.f32 %v2109_v55, %v2060_v12  ;;  %v2098_v55 = vadd.f32 %v11484_v21, %v11488_v45  ;;  %v2088_v21 = vadd.f32 %v11472_v60, %v11474_v53  ;;  %v11554_v60 = vld [vmem:[#allocation10 + $0x8] sm:$0xff]  ;;  %v11558_v53 = vld [vmem:[#allocation10 + $0x10] sm:$0xff] }
 0x639   : > { %v11574_v12 = vld [vmem:[#allocation10 + $0x30] sm:$0xff] }
 0x63a   : > { %v11515_v26 = vadd.f32 %v2158_v51, %v2110_v11  ;;  %v11529_v24 = vadd.f32 %v11492_v10, %v2098_v55  ;;  %v11543_v45 = vadd.f32 %v11478_v52, %v2088_v21  ;;  %v11550_v10 = vld [vmem:[#allocation10] sm:$0xff]  ;;  %v11562_v52 = vld [vmem:[#allocation10 + $0x18] sm:$0xff]  ;;  %v11586_v51 = vld [vmem:[#allocation10 + $0x48] sm:$0xff] }
 0x63c   : > { %v2122_v38 = vpop.f32.mrf.mxu1 }
 0x63d   : > { %v2166_v56 = vpop.f32.mrf.mxu3 }
 0x63e   : > { %v11506_v43 = vadd.f32 %v2166_v56, %v2118_v4  ;;  %v11598_v56 = vld [vmem:[#allocation10 + $0x60] sm:$0xff] }
 0x63f   : > { %v2073_v29 = vpop.f32.mrf.mxu0 }
 0x640   : > { %v2123_v39 = vadd.f32 %v2122_v38, %v2073_v29  ;;  %v11606_v29 = vld [vmem:[#allocation10 + $0x70] sm:$0xff]  ;;  %v11610_v38 = vld [vmem:[#allocation10 + $0x78] sm:$0xff] }
 0x644   : > { %v2124_v5 = vpop.f32.mrf.mxu1 }
 0x645   : > { %v2168_v2 = vpop.f32.mrf.mxu3 }
 0x646   : > { %v11503_v59 = vadd.f32 %v2168_v2, %v2120_v32  ;;  %v11602_v2 = vld [vmem:[#allocation10 + $0x68] sm:$0xff] }
 0x647   : > { %v2075_v19 = vpop.f32.mrf.mxu0 }
 0x648   : > { %v2125_v3 = vadd.f32 %v2124_v5, %v2075_v19  ;;  %v2113_v19 = vadd.f32 %v2112_v58, %v2063_v30  ;;  %v11509_v5 = vadd.f32 %v2163_v54, %v2115_v14  ;;  %v11522_v30 = vadd.f32 %v2151_v63, %v2103_v8  ;;  %v11570_v63 = vld [vmem:[#allocation10 + $0x28] sm:$0xff]  ;;  %v11582_v58 = vld [vmem:[#allocation10 + $0x40] sm:$0xff]  ;;  %v11594_v54 = vld [vmem:[#allocation10 + $0x58] sm:$0xff] }
 0x64a   : > { %v11512_v49 = vadd.f32 %v2161_v46, %v2113_v19  ;;  %v11590_v46 = vld [vmem:[#allocation10 + $0x50] sm:$0xff] }
 0x64d   : > { %v2171_v33 = vpop.f32.mrf.mxu3 }
 0x64e   : > { %v11500_v41 = vadd.f32 %v2171_v33, %v2123_v39 }
 0x655   : > { %v2173_v9 = vpop.f32.mrf.mxu3 }
 0x656   : > { %v11498_v13 = vadd.f32 %v2173_v9, %v2125_v3 }
 0x658   : > { %2176 = vmatpush.msra.mxu2 %v11498_v13 }
 0x65a   : > { %2177 = vmatpush.msra.mxu2 %v11500_v41 }
 0x65c   : > { %2178 = vmatpush.msra.mxu2 %v11503_v59 }
 0x65e   : > { %2179 = vmatpush.msra.mxu2 %v11506_v43 }
 0x660   : > { %2180 = vmatpush.msra.mxu2 %v11509_v5 }
 0x662   : > { %2181 = vmatpush.msra.mxu2 %v11512_v49 }
 0x664   : > { %2182 = vmatpush.msra.mxu2 %v11515_v26 }
 0x666   : > { %2183 = vmatpush.msra.mxu2 %v11518_v50 }
 0x668   : > { %2184 = vmatpush.msra.mxu2 %v11496_v20 }
 0x66a   : > { %2185 = vmatpush.msra.mxu2 %v11522_v30 }
 0x66c   : > { %2186 = vmatpush.msra.mxu2 %v11494_v17 }
 0x66e   : > { %2187 = vmatpush.msra.mxu2 %v11529_v24 }
 0x670   : > { %2188 = vmatpush.msra.mxu2 %v11490_v7 }
 0x672   : > { %2189 = vmatpush.msra.mxu2 %v11536_v6 }
 0x674   : > { %2190 = vmatpush.msra.mxu2 %v11482_v18 }
 0x676   : > { %2191 = vmatpush.msra.mxu2 %v11543_v45 }
 0x677   : > { %2192 = vmatmul.f32.vlgmr.msra.gmra.mxu2 %v11547_v44 }
 0x6fa   : > { %v2193_v37 = vpop.f32.mrf.mxu2 }
 0x6fb   : > { %2212 = vmatmul.f32.vlgmr.msrb.gmra.mxu0 %v2193_v37 }
 0x778   : > { %v2213_v15 = vpop.f32.mrf.mxu0 }
 0x779   : > { %2231 = vmatpush.msrb.mxu2 %v2213_v15 }
 0x77a   : > { %8754 = vmatmul.msk.f32.vlgmr.msrb.gmra.mxu2 %vm15169_vm11, %v11550_v10  ;;  %vm15174_vm11 = vmmov %vm15172_vm0 }
 0x782   : > { %8755 = vmatmul.msk.f32.gmra.mxu2 %vm15170_vm12, %v11554_v60  ;;  %vm15175_vm12 = vmmov %vm15172_vm0 }
 0x78a   : > { %8756 = vmatmul.msk.f32.gmra.mxu2 %vm15171_vm13, %v11558_v53  ;;  %vm15176_vm13 = vmmov %vm15172_vm0 }
 0x792   : > { %8757 = vmatmul.msk.f32.gmra.mxu2 %vm15172_vm0, %v11562_v52 }
 0x79a   : > { %8758 = vmatmul.msk.f32.gmra.mxu2 %vm15173_vm15, %v11566_v23  ;;  %vm15177_vm15 = vmmov %vm15172_vm0 }
 0x7a2   : > { %8759 = vmatmul.msk.f32.gmra.mxu2 %vm15174_vm11, %v11570_v63  ;;  %vm15178_vm11 = vmmov %vm15172_vm0 }
 0x7aa   : > { %8760 = vmatmul.msk.f32.gmra.mxu2 %vm15175_vm12, %v11574_v12  ;;  %vm15179_vm12 = vmmov %vm15172_vm0 }
 0x7b2   : > { %8761 = vmatmul.msk.f32.gmra.mxu2 %vm15176_vm13, %v11578_v25  ;;  %vm15180_vm13 = vmmov %vm15172_vm0 }
 0x7ba   : > { %8762 = vmatmul.msk.f32.gmra.mxu2 %vm15172_vm0, %v11582_v58 }
 0x7c2   : > { %8763 = vmatmul.msk.f32.gmra.mxu2 %vm15177_vm15, %v11586_v51  ;;  %vm15181_vm15 = vmmov %vm15172_vm0 }
 0x7ca   : > { %8764 = vmatmul.msk.f32.gmra.mxu2 %vm15178_vm11, %v11590_v46  ;;  %vm15182_vm11 = vmmov %vm15172_vm0 }
 0x7d2   : > { %8765 = vmatmul.msk.f32.gmra.mxu2 %vm15179_vm12, %v11594_v54  ;;  %vm15186_vm12 = vmmov %vm15172_vm0 }
 0x7da   : > { %8766 = vmatmul.msk.f32.gmra.mxu2 %vm15180_vm13, %v11598_v56  ;;  %vm15187_vm13 = vmmov %vm15172_vm0 }
 0x7e2   : > { %8767 = vmatmul.msk.f32.gmra.mxu2 %vm15172_vm0, %v11602_v2 }
 0x7ea   : > { %8768 = vmatmul.msk.f32.gmra.mxu2 %vm15181_vm15, %v11606_v29  ;;  %vm15188_vm15 = vmmov %vm15172_vm0 }
 0x7f2   : > { %8769 = vmatmul.msk.f32.gmra.mxu2 %vm15182_vm11, %v11610_v38  ;;  %vm15189_vm11 = vmmov %vm15172_vm0 }
 0x7fd   : > { %v2233_v33 = vpop.f32.mrf.mxu2 }
 0x805   : > { %v2236_v3 = vpop.f32.mrf.mxu2 }
 0x80d   : > { %v2239_v9 = vpop.f32.mrf.mxu2 }
 0x815   : > { %v2242_v39 = vpop.f32.mrf.mxu2 }
 0x81d   : > { %v2245_v32 = vpop.f32.mrf.mxu2 }
 0x825   : > { %v2248_v4 = vpop.f32.mrf.mxu2 }
 0x82d   : > { %v2251_v14 = vpop.f32.mrf.mxu2 }
 0x835   : > { %v2254_v19 = vpop.f32.mrf.mxu2 }
 0x83d   : > { %v2257_v11 = vpop.f32.mrf.mxu2 }
 0x845   : > { %v2260_v22 = vpop.f32.mrf.mxu2 }
 0x84d   : > { %v2263_v8 = vpop.f32.mrf.mxu2 }
 0x855   : > { %v2266_v55 = vpop.f32.mrf.mxu2 }
 0x856   : > { %v11631_v1 = vsub.f32 %v11509_v5, %v2266_v55  ;;  %v11646_v5 = vsub.f32 %v11518_v50, %v2257_v11  ;;  %v11661_v50 = vsub.f32 %v11494_v17, %v2248_v4  ;;  %v11676_v17 = vsub.f32 %v11536_v6, %v2239_v9 }
 0x85d   : > { %v2269_v35 = vpop.f32.mrf.mxu2 }
 0x85e   : > { %v11626_v28 = vsub.f32 %v11506_v43, %v2269_v35  ;;  %v11641_v43 = vsub.f32 %v11515_v26, %v2260_v22  ;;  %v11656_v26 = vsub.f32 %v11522_v30, %v2251_v14  ;;  %v2305_v22 = vmul.f32 %v11646_v5, %v11646_v5  ;;  %v9609_v35 = vld [vmem:[#allocation5 + $0xc8] sm:$0xff] }
 0x85f   : > { %v11671_v30 = vsub.f32 %v11490_v7, %v2242_v39  ;;  %v2302_v14 = vmul.f32 %v11661_v50, %v11661_v50  ;;  %v11686_v7 = vsub.f32 %v11543_v45, %v2233_v33  ;;  %v2299_v39 = vmul.f32 %v11676_v17, %v11676_v17  ;;  %v9623_v45 = vld [vmem:[#allocation5 + $0x138] sm:$0xff]  ;;  %v9628_v33 = vld [vmem:[#allocation5 + $0x160] sm:$0xff] }
 0x861   : > { %v2297_v9 = vmul.f32 %v11686_v7, %v11686_v7 }
 0x865   : > { %v2272_v21 = vpop.f32.mrf.mxu2 }
 0x866   : > { %v11621_v62 = vsub.f32 %v11503_v59, %v2272_v21  ;;  %v2309_v59 = vmul.f32 %v11626_v28, %v11626_v28  ;;  %v9616_v21 = vld [vmem:[#allocation5 + $0x100] sm:$0xff] }
 0x868   : > { %15185 = vst [vmem:[#allocation37_spill] sm:$0xff] %v11621_v62 }
 0x86d   : > { %v2275_v37 = vpop.f32.mrf.mxu2 }
 0x86e   : > { %v11615_v40 = vsub.f32 %v11500_v41, %v2275_v37  ;;  %v11636_v41 = vsub.f32 %v11512_v49, %v2263_v8  ;;  %v11651_v49 = vsub.f32 %v11496_v20, %v2254_v19  ;;  %v2306_v8 = vmul.f32 %v11641_v43, %v11641_v43  ;;  %v9627_v37 = vld [vmem:[#allocation5 + $0x158] sm:$0xff] }
 0x86f   : > { %v11666_v20 = vsub.f32 %v11529_v24, %v2245_v32  ;;  %v2303_v19 = vmul.f32 %v11656_v26, %v11656_v26  ;;  %v11681_v24 = vsub.f32 %v11482_v18, %v2236_v3  ;;  %v2300_v32 = vmul.f32 %v11671_v30, %v11671_v30 }
 0x870   : > { %15183 = vst [vmem:[#allocation35_spill] sm:$0xff] %v11615_v40  ;;  %v2311_v57 = vmul.f32 %v11615_v40, %v11615_v40  ;;  %v2304_v11 = vmul.f32 %v11651_v49, %v11651_v49 }
 0x871   : > { %v2301_v4 = vmul.f32 %v11666_v20, %v11666_v20  ;;  %v2298_v6 = vmul.f32 %v11681_v24, %v11681_v24 }
 0x875   : > { %v2278_v15 = vpop.f32.mrf.mxu2 }
 0x876   : > { %v11618_v42 = vsub.f32 %v11498_v13, %v2278_v15  ;;  %v2310_v13 = vmul.f32 %v11621_v62, %v11621_v62 }
 0x878   : > { %15184 = vst [vmem:[#allocation36_spill] sm:$0xff] %v11618_v42  ;;  %v2312_v16 = vmul.f32 %v11618_v42, %v11618_v42 }
 0x87a   : > { %2313 = vmatpush.msrb.mxu1 %v2312_v16  ;;  %v2308_v16 = vmul.f32 %v11631_v1, %v11631_v1 }
 0x87c   : > { %2314 = vmatpush.msrb.mxu1 %v2311_v57  ;;  %v2307_v57 = vmul.f32 %v11636_v41, %v11636_v41 }
 0x87e   : > { %2315 = vmatpush.msrb.mxu1 %v2310_v13 }
 0x880   : > { %2316 = vmatpush.msrb.mxu1 %v2309_v59 }
 0x882   : > { %2317 = vmatpush.msrb.mxu1 %v2308_v16  ;;  %v9608_v16 = vld [vmem:[#allocation5 + $0xc0] sm:$0xff] }
 0x884   : > { %2318 = vmatpush.msrb.mxu1 %v2307_v57  ;;  %v9626_v57 = vld [vmem:[#allocation5 + $0x150] sm:$0xff] }
 0x886   : > { %2319 = vmatpush.msrb.mxu1 %v2306_v8 }
 0x888   : > { %2320 = vmatpush.msrb.mxu1 %v2305_v22 }
 0x88a   : > { %2321 = vmatpush.msrb.mxu1 %v2304_v11 }
 0x88c   : > { %2322 = vmatpush.msrb.mxu1 %v2303_v19 }
 0x88e   : > { %2323 = vmatpush.msrb.mxu1 %v2302_v14  ;;  %v11737_v14 = vld [vmem:[#allocation11 + $0x78] sm:$0xff] }
 0x890   : > { %2324 = vmatpush.msrb.mxu1 %v2301_v4  ;;  %v11741_v4 = vld [vmem:[#allocation11 + $0x70] sm:$0xff] }
 0x892   : > { %2325 = vmatpush.msrb.mxu1 %v2300_v32 }
 0x894   : > { %2326 = vmatpush.msrb.mxu1 %v2299_v39 }
 0x896   : > { %2327 = vmatpush.msrb.mxu1 %v2298_v6  ;;  %v11744_v6 = vld [vmem:[#allocation11 + $0x68] sm:$0xff] }
 0x898   : > { %2328 = vmatpush.msrb.mxu1 %v2297_v9 }
 0x899   : > { %2329 = vmatmul.f32.vlgmr.msrb.gmra.mxu1 %v11547_v44  ;;  %v9615_v44 = vld [vmem:[#allocation5 + $0xf8] sm:$0xff] }
 0x916   : > { %v2330_v18 = vpop.f32.mrf.mxu1 }
 0x917   : > { %2349 = vmatmul.f32.vlgmr.msra.gmra.mxu3 %v2330_v18 }
 0x99a   : > { %v2350_v3 = vpop.f32.mrf.mxu3 }
 0x99b   : > { %2368 = vmatpush.msra.mxu0 %v2350_v3  ;;  %9753 = vmatpush.msra.mxu1 %v2350_v3 }
 0x99c   : > { %9754 = vmatpush.msrb.mxu3 %v2350_v3  ;;  %8770 = vmatmul.msk.f32.vlgmr.msra.gmra.mxu0 %vm15186_vm12, %v11550_v10  ;;  %vm15192_vm12 = vmmov %vm15172_vm0  ;;  %v9622_v10 = vld [vmem:[#allocation5 + $0x130] sm:$0xff] }
 0x99d   : > { %8774 = vmatmul.msk.f32.vlgmr.msra.gmra.mxu1 %vm15187_vm13, %v11566_v23  ;;  %8778 = vmatmul.msk.f32.vlgmr.msrb.gmra.mxu3 %vm15172_vm0, %v11582_v58  ;;  %vm15193_vm13 = vmmov %vm15172_vm0  ;;  %v9620_v23 = vld [vmem:[#allocation5 + $0x120] sm:$0xff]  ;;  %v9630_v58 = vld [vmem:[#allocation5 + $0x170] sm:$0xff] }
 0x99e   : > { %3020 = vmatpush.bf16.msra.mxu3 %v9623_v45  ;;  %2971 = vmatpush.bf16.msrb.mxu1 %v9615_v44  ;;  %v11749_v45 = vld [vmem:[#allocation11 + $0x60] sm:$0xff] }
 0x9a2   : > { %3021 = vmatpush.bf16.msra.mxu3 %v9622_v10 }
 0x9a4   : > { %8771 = vmatmul.msk.f32.gmra.mxu0 %vm15188_vm15, %v11554_v60  ;;  %vm15194_vm15 = vmmov %vm15172_vm0  ;;  %v9614_v60 = vld [vmem:[#allocation5 + $0xf0] sm:$0xff] }
 0x9a5   : > { %8775 = vmatmul.msk.f32.gmra.mxu1 %vm15189_vm11, %v11570_v63  ;;  %8779 = vmatmul.msk.f32.gmra.mxu3 %vm15190_vm14, %v11586_v51  ;;  %vm15195_vm11 = vmmov %vm15172_vm0  ;;  %v9631_v63 = vld [vmem:[#allocation5 + $0x178] sm:$0xff] }
 0x9a6   : > { %vm15196_vm14 = vmmov %vm15172_vm0  ;;  %2972 = vmatpush.bf16.msrb.mxu1 %v9614_v60  ;;  %3069 = vmatpush.bf16.msra.mxu2 %v9631_v63  ;;  %v9611_v51 = vld [vmem:[#allocation5 + $0xd8] sm:$0xff]  ;;  %v9625_v63 = vld [vmem:[#allocation5 + $0x148] sm:$0xff] }
 0x9aa   : > { %3070 = vmatpush.bf16.msra.mxu2 %v9630_v58 }
 0x9ac   : > { %8772 = vmatmul.msk.f32.gmra.mxu0 %vm15191_vm1, %v11558_v53  ;;  %vm15197_vm1 = vmmov %vm15172_vm0  ;;  %v9621_v53 = vld [vmem:[#allocation5 + $0x128] sm:$0xff] }
 0x9ad   : > { %8776 = vmatmul.msk.f32.gmra.mxu1 %vm15192_vm12, %v11574_v12  ;;  %8780 = vmatmul.msk.f32.gmra.mxu3 %vm15193_vm13, %v11590_v46  ;;  %vm15198_vm12 = vmmov %vm15172_vm0  ;;  %v9612_v12 = vld [vmem:[#allocation5 + $0xe0] sm:$0xff]  ;;  %v9618_v46 = vld [vmem:[#allocation5 + $0x110] sm:$0xff] }
 0x9ae   : > { %vm15199_vm13 = vmmov %vm15172_vm0  ;;  %3022 = vmatpush.bf16.msra.mxu3 %v9621_v53  ;;  %v11755_v53 = vld [vmem:[#allocation11 + $0x58] sm:$0xff] }
 0x9b2   : > { %3023 = vmatpush.bf16.msra.mxu3 %v9620_v23 }
 0x9b4   : > { %8773 = vmatmul.msk.f32.gmra.mxu0 %vm15172_vm0, %v11562_v52  ;;  %v9613_v52 = vld [vmem:[#allocation5 + $0xe8] sm:$0xff] }
 0x9b5   : > { %8777 = vmatmul.msk.f32.gmra.mxu1 %vm15194_vm15, %v11578_v25  ;;  %8781 = vmatmul.msk.f32.gmra.mxu3 %vm15195_vm11, %v11594_v54  ;;  %v9619_v25 = vld [vmem:[#allocation5 + $0x118] sm:$0xff]  ;;  %v9629_v54 = vld [vmem:[#allocation5 + $0x168] sm:$0xff] }
 0x9b6   : > { %2973 = vmatpush.bf16.msrb.mxu1 %v9613_v52  ;;  %3024 = vmatpush.bf16.msra.mxu3 %v9619_v25 }
 0x9b7   : > { %3071 = vmatpush.bf16.msra.mxu2 %v9629_v54  ;;  %v11767_v54 = vld [vmem:[#allocation11 + $0x48] sm:$0xff] }
 0x9ba   : > { %2974 = vmatpush.bf16.msrb.mxu1 %v9612_v12  ;;  %3025 = vmatpush.bf16.msra.mxu3 %v9618_v46  ;;  %v11758_v12 = vld [vmem:[#allocation11 + $0x50] sm:$0xff] }
 0x9bb   : > { %3072 = vmatpush.bf16.msra.mxu2 %v9628_v33 }
 0x9bd   : > { %8782 = vmatmul.msk.f32.gmra.mxu3 %vm15196_vm14, %v11598_v56 }
 0x9be   : > { %2975 = vmatpush.bf16.msrb.mxu1 %v9611_v51 }
 0x9bf   : > { %3073 = vmatpush.bf16.msra.mxu2 %v9627_v37  ;;  %v11778_v37 = vld [vmem:[#allocation11 + $0x40] sm:$0xff] }
 0x9c3   : > { %3074 = vmatpush.bf16.msra.mxu2 %v9626_v57 }
 0x9c5   : > { %8783 = vmatmul.msk.f32.gmra.mxu3 %vm15197_vm1, %v11602_v2 }
 0x9c7   : > { %3075 = vmatpush.bf16.msra.mxu2 %v9625_v63 }
 0x9cd   : > { %8784 = vmatmul.msk.f32.gmra.mxu3 %vm15198_vm12, %v11606_v29  ;;  %v9610_v29 = vld [vmem:[#allocation5 + $0xd0] sm:$0xff] }
 0x9ce   : > { %2976 = vmatpush.bf16.msrb.mxu1 %v9610_v29 }
 0x9d2   : > { %2977 = vmatpush.bf16.msrb.mxu1 %v9609_v35 }
 0x9d5   : > { %8785 = vmatmul.msk.f32.gmra.mxu3 %vm15199_vm13, %v11610_v38  ;;  %v9617_v38 = vld [vmem:[#allocation5 + $0x108] sm:$0xff] }
 0x9d6   : > { %3026 = vmatpush.bf16.msra.mxu3 %v9617_v38  ;;  %2978 = vmatpush.bf16.msrb.mxu1 %v9608_v16 }
 0x9da   : > { %3027 = vmatpush.bf16.msra.mxu3 %v9616_v21  ;;  %3138 = vmatpush.msra.mxu1 %v11737_v14  ;;  %v9624_v21 = vld [vmem:[#allocation5 + $0x140] sm:$0xff] }
 0x9db   : > { %3076 = vmatpush.bf16.msra.mxu2 %v9624_v21 }
 0x9dc   : > { %3139 = vmatpush.msra.mxu1 %v11741_v4 }
 0x9de   : > { %3140 = vmatpush.msra.mxu1 %v11744_v6 }
 0x9e0   : > { %3141 = vmatpush.msra.mxu1 %v11749_v45 }
 0x9e2   : > { %3142 = vmatpush.msra.mxu1 %v11755_v53 }
 0x9e4   : > { %3143 = vmatpush.msra.mxu1 %v11758_v12 }
 0x9e6   : > { %3144 = vmatpush.msra.mxu1 %v11767_v54 }
 0x9e8   : > { %3145 = vmatpush.msra.mxu1 %v11778_v37 }
 0xa19   : > { %v2370_v56 = vpop.f32.mrf.mxu0 }
 0xa1a   : > { %v11727_v2 = vadd.f32 1e-05, %v2370_v56  ;;  %v2382_v55 = vpop.f32.mrf.mxu1 }
 0xa1b   : > { %v11734_v22 = vadd.f32 1e-05, %v2382_v55 }
 0xa1c   : > { %9891 = vrsqrt.f32 %v11727_v2  ;;  %vm2424_vm11 = vweird.f32 %v11727_v2 }
 0xa20   : > { %v11785_v16 = vpop.f32.mrf.mxu3 }
 0xa21   : > { %v2373_v15 = vpop.f32.mrf.mxu0 }
 0xa22   : > { %v11730_v13 = vpop.eup %9891  ;;  %v2374_v59 = vadd.f32 1e-05, %v2373_v15  ;;  %v2385_v19 = vpop.f32.mrf.mxu1 }
 0xa23   : > { %v2419_v8 = vmul.f32 %v11730_v13, %v11727_v2  ;;  %vm2425_vm0 = vweird.f32 %v11730_v13  ;;  %v11765_v46 = vadd.f32 1e-05, %v2385_v19 }
 0xa24   : > { %9893 = vrsqrt.f32 %v2374_v59  ;;  %vm11773_vm14 = vmor %vm2424_vm11, %vm2425_vm0  ;;  %vm2434_vm1 = vweird.f32 %v2374_v59  ;;  %vm2464_vm11 = vweird.f32 %v11734_v22 }
 0xa25   : > { %v2420_v11 = vmul.f32 %v11730_v13, %v2419_v8  ;;  %9895 = vrsqrt.f32 %v11734_v22 }
 0xa27   : > { %v2421_v32 = vmul.f32 0.5, %v2420_v11  ;;  %v11791_v11 = vld [vmem:[#allocation11 + $0x38] sm:$0xff] }
 0xa28   : > { %3146 = vmatpush.msra.mxu1 %v11791_v11 }
 0xa29   : > { %v2376_v39 = vpop.f32.mrf.mxu0  ;;  %v2422_v44 = vsub.f32 1.5, %v2421_v32 }
 0xa2a   : > { %v9894_v9 = vpop.eup %9893  ;;  %v11747_v18 = vadd.f32 1e-05, %v2376_v39  ;;  %v2388_v23 = vpop.f32.mrf.mxu1  ;;  %v11798_v39 = vld [vmem:[#allocation11 + $0x30] sm:$0xff] }
 0xa2b   : > { %v2429_v3 = vmul.f32 %v9894_v9, %v2374_v59  ;;  %v11753_v10 = vpop.eup %9895  ;;  %v2423_v25 = vmul.f32 %v11730_v13, %v2422_v44  ;;  %vm2435_vm15 = vweird.f32 %v9894_v9  ;;  %v11771_v29 = vadd.f32 1e-05, %v2388_v23  ;;  %3147 = vmatpush.msra.mxu1 %v11798_v39 }
 0xa2c   : > { %9897 = vrsqrt.f32 %v11747_v18  ;;  %v2459_v58 = vmul.f32 %v11753_v10, %v11734_v22  ;;  %vm2436_vm12 = vmor %vm2434_vm1, %vm2435_vm15  ;;  %vm2444_vm0 = vweird.f32 %v11747_v18  ;;  %vm15205_vm1 = vcmask 1046528  }
 0xa2d   : > { %v2430_v60 = vmul.f32 %v9894_v9, %v2429_v3  ;;  %v2427_v2 = vsel %vm11773_vm14, %v11730_v13, %v2423_v25  ;;  %9899 = vrsqrt.f32 %v11765_v46  ;;  %v10142_v3 = vld [vmem:[%s10784_s10 + $0x8] sm:$0xff]  ;;  %vm2465_vm14 = vweird.f32 %v11753_v10 }
 0xa2e   : > { %v2460_v15 = vmul.f32 %v11753_v10, %v2459_v58  ;;  %9901 = vrsqrt.f32 %v11771_v29  ;;  %v2578_v19 = vmul.f32 %v2427_v2, %v11686_v7  ;;  %v10144_v7 = vld [vmem:[%s10784_s10] sm:$0xff]  ;;  %v11813_v25 = vld [vmem:[#allocation11 + $0x20] sm:$0xff]  ;;  %v11826_v2 = vpop.f32.mrf.mxu3 }
 0xa2f   : > { %v2431_v52 = vmul.f32 0.5, %v2430_v60 }
 0xa30   : > { %v11810_v23 = vadd.f32 %v10144_v7, %v2578_v19  ;;  %v11862_v7 = vld [vmem:[#allocation11] sm:$0xff] }
 0xa31   : > { %v2432_v51 = vsub.f32 1.5, %v2431_v52  ;;  %v2379_v38 = vpop.f32.mrf.mxu0  ;;  %v11804_v52 = vld [vmem:[#allocation11 + $0x28] sm:$0xff] }
 0xa32   : > { %v9898_v56 = vpop.eup %9897  ;;  %v11789_v8 = vadd.f32 1e-05, %v2379_v38  ;;  %3148 = vmatpush.msra.mxu1 %v11804_v52  ;;  %15203 = vst [vmem:[#allocation39_spill] sm:$0xff] %v11810_v23 }
 0xa33   : > { %v2433_v55 = vmul.f32 %v9894_v9, %v2432_v51  ;;  %v2439_v35 = vmul.f32 %v9898_v56, %v11747_v18  ;;  %vm2445_vm13 = vweird.f32 %v9898_v56 }
 0xa34   : > { %9903 = vrsqrt.f32 %v11789_v8  ;;  %3149 = vmatpush.msra.mxu1 %v11813_v25  ;;  %vm2446_vm15 = vmor %vm2444_vm0, %vm2445_vm13  ;;  %vm2454_vm13 = vweird.f32 %v11789_v8 }
 0xa35   : > { %v2437_v57 = vsel %vm2436_vm12, %v9894_v9, %v2433_v55  ;;  %v2440_v59 = vmul.f32 %v9898_v56, %v2439_v35  ;;  %v2461_v9 = vmul.f32 0.5, %v2460_v15  ;;  %v11820_v35 = vld [vmem:[#allocation11 + $0x18] sm:$0xff]  ;;  %vm11853_vm12 = vmor %vm2464_vm11, %vm2465_vm14 }
 0xa36   : > { %v2579_v13 = vmul.f32 %v2437_v57, %v11681_v24  ;;  %v11807_v24 = vpop.eup %9899  ;;  %3150 = vmatpush.msra.mxu1 %v11820_v35 }
 0xa37   : > { %v2441_v32 = vmul.f32 0.5, %v2440_v59  ;;  %v11816_v58 = vpop.eup %9901  ;;  %v2462_v38 = vsub.f32 1.5, %v2461_v9  ;;  %v2469_v21 = vmul.f32 %v11807_v24, %v11765_v46  ;;  %v10148_v9 = vld [vmem:[%s10784_s10 + $0x10] sm:$0xff] }
 0xa38   : > { %v11802_v44 = vadd.f32 %v10142_v3, %v2579_v13  ;;  %v2479_v59 = vmul.f32 %v11816_v58, %v11771_v29  ;;  %v11832_v13 = vld [vmem:[#allocation11 + $0x10] sm:$0xff] }
 0xa39   : > { %v2442_v60 = vsub.f32 1.5, %v2441_v32  ;;  %3151 = vmatpush.msra.mxu1 %v11832_v13  ;;  %v2675_v32 = vrot.slane %v11810_v23, 1 }
 0xa3a   : > { %15202 = vst [vmem:[#allocation38_spill] sm:$0xff] %v11802_v44  ;;  %v9904_v51 = vpop.eup %9903  ;;  %v2804_v55 = vpack.c.bf16 %v11802_v44, %v11810_v23  ;;  %v2676_v18 = vrot.slane %v11802_v44, 1 }
 0xa3b   : > { %v2443_v63 = vmul.f32 %v9898_v56, %v2442_v60  ;;  %v2449_v57 = vmul.f32 %v9904_v51, %v11789_v8  ;;  %v2723_v60 = vrot.slane %v11810_v23, 7  ;;  %vm2455_vm0 = vweird.f32 %v9904_v51 }
 0xa3c   : > { %3028 = vmatmul.bf16.vlgmr.msra.gmra.mxu3 %v2804_v55  ;;  %v2470_v55 = vmul.f32 %v11807_v24, %v2469_v21  ;;  %v2677_v42 = vsel %vm15205_vm1, %v2675_v32, %v2676_v18  ;;  %v15208_v21 = vrot.slane %v11802_v44, 7  ;;  %vm2456_vm14 = vmor %vm2454_vm13, %vm2455_vm0  ;;  %vm2475_vm13 = vweird.f32 %v11807_v24 }
 0xa3d   : > { %v2447_v33 = vsel %vm2446_vm15, %v9898_v56, %v2443_v63  ;;  %v2391_v56 = vpop.f32.mrf.mxu1  ;;  %v2450_v19 = vmul.f32 %v9904_v51, %v2449_v57  ;;  %v11845_v63 = vld [vmem:[#allocation11 + $0x8] sm:$0xff]  ;;  %vm15209_vm15 = vcmask 1040384   ;;  %vm2484_vm0 = vweird.f32 %v11771_v29 }
 0xa3e   : > { %v2580_v15 = vmul.f32 %v2447_v33, %v11676_v17  ;;  %v11841_v3 = vadd.f32 1e-05, %v2391_v56  ;;  %3152 = vmatpush.msra.mxu1 %v11845_v63  ;;  %v2463_v33 = vmul.f32 %v11753_v10, %v2462_v38  ;;  %v11858_v56 = vadd.f32 1e-05, %v11785_v16  ;;  %vm15210_vm11 = vmmov %vm15209_vm15 }
 0xa3f   : > { %v2451_v57 = vmul.f32 0.5, %v2450_v19  ;;  %v2725_v22 = vsel %vm15209_vm15, %v2723_v60, %v15208_v21  ;;  %v2770_v19 = vsel %vm15210_vm11, %v11810_v23, %v2723_v60  ;;  %v2471_v32 = vmul.f32 0.5, %v2470_v55  ;;  %v2400_v23 = vpop.f32.mrf.mxu3 }
 0xa40   : > { %v11839_v17 = vadd.f32 %v10148_v9, %v2580_v15  ;;  %v2480_v9 = vmul.f32 %v11816_v58, %v2479_v59  ;;  %3153 = vmatpush.msra.mxu1 %v11862_v7  ;;  %9905 = vrsqrt.f32 %v11841_v3  ;;  %v2771_v16 = vsel %vm10812_vm2, %v2677_v42, %v2770_v19 }
 0xa41   : > { %v2452_v38 = vsub.f32 1.5, %v2451_v57  ;;  %v2467_v59 = vsel %vm11853_vm12, %v11753_v10, %v2463_v33  ;;  %v2803_v40 = vpack.c.bf16 %v2725_v22, %v2771_v16  ;;  %9907 = vrsqrt.f32 %v11858_v56 }
 0xa42   : > { %15204 = vst [vmem:[#allocation40_spill] sm:$0xff] %v11839_v17  ;;  %v2678_v8 = vrot.slane %v11839_v17, 1  ;;  %v2481_v60 = vmul.f32 0.5, %v2480_v9  ;;  %vm15211_vm15 = vnez %v15123_v27  ;;  %v2582_v0 = vmul.f32 %v2467_v59, %v11666_v20 }
 0xa43   : > { %v2453_v57 = vmul.f32 %v9904_v51, %v2452_v38  ;;  %2979 = vmatmul.bf16.vlgmr.msrb.gmra.mxu1 %v2803_v40  ;;  %v2472_v55 = vsub.f32 1.5, %v2471_v32  ;;  %vm2474_vm12 = vweird.f32 %v11765_v46  ;;  %vm2485_vm11 = vweird.f32 %v11816_v58 }
 0xa44   : > { %v2679_v21 = vsel %vm15205_vm1, %v2676_v18, %v2678_v8  ;;  %3275 = vmatpush.msrb.mxu1 %v11737_v14  ;;  %v10151_v18 = vld [vmem:[%s10784_s10 + $0x18] sm:$0xff] }
 0xa45   : > { %v2457_v62 = vsel %vm2456_vm14, %v9904_v51, %v2453_v57  ;;  %v2788_v19 = vsel %vm15211_vm15, %v2725_v22, %v2679_v21  ;;  %v2482_v51 = vsub.f32 1.5, %v2481_v60  ;;  %v2473_v9 = vmul.f32 %v11807_v24, %v2472_v55  ;;  %vm11912_vm14 = vmor %vm2474_vm12, %vm2475_vm13 }
 0xa46   : > { %v2581_v10 = vmul.f32 %v2457_v62, %v11671_v30  ;;  %v2805_v33 = vpack.c.bf16 %v2788_v19, %v2677_v42  ;;  %v11884_v15 = vpop.eup %9905  ;;  %3276 = vmatpush.msrb.mxu1 %v11741_v4  ;;  %v10152_v62 = vld [vmem:[%s10784_s10 + $0x20] sm:$0xff]  ;;  %v2726_v30 = vrot.slane %v11839_v17, 7  ;;  %vm11926_vm15 = vmor %vm2484_vm0, %vm2485_vm11  ;;  %v15218_v57 = vrot.slane %v11802_v44, 7 }
 0xa47   : > { %v11894_v42 = vadd.f32 %v10152_v62, %v2582_v0  ;;  %v11900_v14 = vpop.eup %9907  ;;  %v2489_v22 = vmul.f32 %v11884_v15, %v11841_v3  ;;  %v2483_v59 = vmul.f32 %v11816_v58, %v2482_v51  ;;  %vm15219_vm12 = vcmask 1040384   ;;  %vm15221_vm0 = vmmov %vm15205_vm1 }
 0xa48   : > { %v11887_v38 = vadd.f32 %v10151_v18, %v2581_v10  ;;  %3077 = vmatmul.bf16.vlgmr.msra.gmra.mxu2 %v2805_v33  ;;  %3277 = vmatpush.msrb.mxu1 %v11744_v6  ;;  %v2499_v32 = vmul.f32 %v11900_v14, %v11858_v56  ;;  %v11922_v6 = vadd.f32 1e-05, %v11826_v2  ;;  %v2403_v2 = vpop.f32.mrf.mxu3  ;;  %vm15220_vm13 = vmmov %vm15219_vm12  ;;  %v11944_v10 = vadd.f32 1e-05, %v2400_v23 }
 0xa49   : > { %15213 = vst [vmem:[#allocation42_spill] sm:$0xff] %v11894_v42  ;;  %v2682_v21 = vrot.slane %v11894_v42, 1  ;;  %v2490_v60 = vmul.f32 %v11884_v15, %v2489_v22  ;;  %vm2495_vm11 = vweird.f32 %v11884_v15 }
 0xa4a   : > { %15212 = vst [vmem:[#allocation41_spill] sm:$0xff] %v11887_v38  ;;  %v2807_v40 = vpack.c.bf16 %v11887_v38, %v11839_v17  ;;  %v2680_v20 = vrot.slane %v11887_v38, 1  ;;  %v2728_v4 = vrot.slane %v11887_v38, 7  ;;  %3278 = vmatpush.msrb.mxu1 %v11749_v45  ;;  %v2477_v45 = vsel %vm11912_vm14, %v11807_v24, %v2473_v9  ;;  %v10154_v9 = vld [vmem:[%s10784_s10 + $0x30] sm:$0xff] }
 0xa4b   : > { %v2487_v24 = vsel %vm11926_vm15, %v11816_v58, %v2483_v59  ;;  %v2583_v55 = vmul.f32 %v2477_v45, %v11661_v50  ;;  %9909 = vrsqrt.f32 %v11922_v6  ;;  %v2500_v51 = vmul.f32 %v11900_v14, %v2499_v32 }
 0xa4c   : > { %3033 = vmatmul.bf16.gmra.mxu3 %v2807_v40  ;;  %v2681_v16 = vsel %vm15205_vm1, %v2678_v8, %v2680_v20  ;;  %v2727_v8 = vsel %vm15219_vm12, %v15218_v57, %v2726_v30  ;;  %v2729_v29 = vsel %vm15220_vm13, %v2726_v30, %v2728_v4  ;;  %3279 = vmatpush.msrb.mxu1 %v11755_v53  ;;  %v2491_v53 = vmul.f32 0.5, %v2490_v60 }
 0xa4d   : > { %v2773_v19 = vsel %vm10833_vm4, %v2681_v16, %v2727_v8  ;;  %v2683_v33 = vsel %vm15221_vm0, %v2680_v20, %v2682_v21  ;;  %v2584_v62 = vmul.f32 %v2487_v24, %v11656_v26  ;;  %9911 = vrsqrt.f32 %v11944_v10 }
 0xa4e   : > { %3280 = vmatpush.msrb.mxu1 %v11758_v12  ;;  %v2806_v18 = vpack.c.bf16 %v2729_v29, %v2773_v19  ;;  %v2790_v23 = vsel %vm10840_vm5, %v2729_v29, %v2683_v33  ;;  %v10153_v12 = vld [vmem:[%s10784_s10 + $0x28] sm:$0xff]  ;;  %v2501_v40 = vmul.f32 0.5, %v2500_v51  ;;  %v2492_v20 = vsub.f32 1.5, %v2491_v53 }
 0xa4f   : > { %v2808_v50 = vpack.c.bf16 %v2790_v23, %v2681_v16  ;;  %v11961_v58 = vadd.f32 %v10153_v12, %v2583_v55  ;;  %v11967_v22 = vadd.f32 %v10154_v9, %v2584_v62  ;;  %vm2494_vm15 = vweird.f32 %v11841_v3  ;;  %v10155_v23 = vld [vmem:[%s10784_s10 + $0x38] sm:$0xff] }
 0xa50   : > { %3281 = vmatpush.msrb.mxu1 %v11767_v54  ;;  %v2406_v26 = vpop.f32.mrf.mxu3  ;;  %v2502_v0 = vsub.f32 1.5, %v2501_v40  ;;  %v2493_v16 = vmul.f32 %v11884_v15, %v2492_v20  ;;  %vm11980_vm14 = vmor %vm2494_vm15, %vm2495_vm11  ;;  %v2730_v59 = vrot.slane %v11894_v42, 7  ;;  %vm2504_vm1 = vweird.f32 %v11858_v56  ;;  %v10156_v40 = vld [vmem:[%s10784_s10 + $0x40] sm:$0xff] }
 0xa51   : > { %15222 = vst [vmem:[#allocation43_spill] sm:$0xff] %v11961_v58  ;;  %v11964_v30 = vpop.eup %9909  ;;  %v2686_v32 = vrot.slane %v11967_v22, 1  ;;  %vm2505_vm12 = vweird.f32 %v11900_v14  ;;  %v2732_v8 = vrot.slane %v11961_v58, 7  ;;  %vm15228_vm15 = vcmask 1046528  }
 0xa52   : > { %3282 = vmatpush.msrb.mxu1 %v11778_v37  ;;  %15223 = vst [vmem:[#allocation44_spill] sm:$0xff] %v11967_v22  ;;  %v2810_v37 = vpack.c.bf16 %v11961_v58, %v11894_v42  ;;  %v2731_v57 = vsel %vm15220_vm13, %v2728_v4, %v2730_v59  ;;  %v2503_v45 = vmul.f32 %v11900_v14, %v2502_v0  ;;  %vm12004_vm0 = vmor %vm2504_vm1, %vm2505_vm12  ;;  %vm2514_vm1 = vweird.f32 %v11922_v6 }
 0xa53   : > { %2984 = vmatmul.bf16.gmra.mxu1 %v2806_v18  ;;  %v11972_v54 = vpop.eup %9911  ;;  %v2497_v56 = vsel %vm11980_vm14, %v11884_v15, %v2493_v16  ;;  %vm15229_vm11 = vmmov %vm15228_vm15  ;;  %vm2515_vm12 = vweird.f32 %v11964_v30 }
 0xa54   : > { %3283 = vmatpush.msrb.mxu1 %v11791_v11  ;;  %v2509_v11 = vmul.f32 %v11964_v30, %v11922_v6  ;;  %v2519_v46 = vmul.f32 %v11972_v54, %v11944_v10  ;;  %vm15230_vm14 = vmmov %vm15220_vm13  ;;  %vm2524_vm13 = vweird.f32 %v11944_v10 }
 0xa55   : > { %v2733_v15 = vsel %vm15230_vm14, %v2730_v59, %v2732_v8  ;;  %vm15237_vm14 = vcmask 1046528  }
 0xa56   : > { %3284 = vmatpush.msrb.mxu1 %v11798_v39  ;;  %v2684_v39 = vrot.slane %v11961_v58, 1  ;;  %v2510_v60 = vmul.f32 %v11964_v30, %v2509_v11  ;;  %v2520_v19 = vmul.f32 %v11972_v54, %v2519_v46 }
 0xa58   : > { %3082 = vmatmul.bf16.gmra.mxu2 %v2808_v50  ;;  %3285 = vmatpush.msrb.mxu1 %v11804_v52  ;;  %v11992_v52 = vadd.f32 1e-05, %v2403_v2  ;;  %v12008_v2 = vadd.f32 1e-05, %v2406_v26  ;;  %v2685_v4 = vsel %vm15228_vm15, %v2682_v21, %v2684_v39  ;;  %v2687_v29 = vsel %vm15229_vm11, %v2684_v39, %v2686_v32  ;;  %v2409_v55 = vpop.f32.mrf.mxu3  ;;  %vm12048_vm15 = vmor %vm2514_vm1, %vm2515_vm12 }
 0xa59   : > { %v2775_v33 = vsel %vm10854_vm6, %v2685_v4, %v2731_v57  ;;  %v2507_v21 = vsel %vm12004_vm0, %v11900_v14, %v2503_v45  ;;  %v2511_v24 = vmul.f32 0.5, %v2510_v60  ;;  %v2792_v18 = vsel %vm10861_vm7, %v2733_v15, %v2687_v29 }
 0xa5a   : > { %3286 = vmatpush.msrb.mxu1 %v11813_v25  ;;  %9913 = vrsqrt.f32 %v11992_v52  ;;  %v2586_v51 = vmul.f32 %v2507_v21, %v11646_v5  ;;  %v2811_v53 = vpack.c.bf16 %v2792_v18, %v2685_v4  ;;  %vm2525_vm0 = vweird.f32 %v11972_v54 }
 0xa5b   : > { %9915 = vrsqrt.f32 %v12008_v2  ;;  %v2512_v62 = vsub.f32 1.5, %v2511_v24  ;;  %vm12057_vm11 = vmor %vm2524_vm13, %vm2525_vm0  ;;  %v12061_v39 = vadd.f32 1e-05, %v2409_v55  ;;  %vm15238_vm1 = vcmask 1040384   ;;  %v10157_v24 = vld [vmem:[%s10784_s10 + $0x48] sm:$0xff] }
 0xa5c   : > { %3038 = vmatmul.bf16.gmra.mxu3 %v2810_v37  ;;  %3287 = vmatpush.msrb.mxu1 %v11820_v35  ;;  %v2585_v35 = vmul.f32 %v2497_v56, %v11651_v49  ;;  %v2521_v49 = vmul.f32 0.5, %v2520_v19  ;;  %v2734_v37 = vrot.slane %v11967_v22, 7  ;;  %vm15239_vm12 = vmmov %vm15238_vm1  ;;  %vm2534_vm0 = vweird.f32 %v11992_v52 }
 0xa5d   : > { %v2513_v9 = vmul.f32 %v11964_v30, %v2512_v62  ;;  %vm15240_vm13 = vmmov %vm15237_vm14  ;;  %9917 = vrsqrt.f32 %v12061_v39 }
 0xa5e   : > { %3288 = vmatpush.msrb.mxu1 %v11832_v13  ;;  %v2809_v13 = vpack.c.bf16 %v2733_v15, %v2775_v33  ;;  %v12029_v14 = vadd.f32 %v10155_v23, %v2585_v35  ;;  %v2735_v56 = vsel %vm15238_vm1, %v2732_v8, %v2734_v37 }
 0xa5f   : > { %v2517_v57 = vsel %vm12048_vm15, %v11964_v30, %v2513_v9 }
 0xa60   : > { %3289 = vmatpush.msrb.mxu1 %v11845_v63  ;;  %15231 = vst [vmem:[#allocation45_spill] sm:$0xff] %v12029_v14  ;;  %v12031_v50 = vpop.eup %9913  ;;  %v2522_v63 = vsub.f32 1.5, %v2521_v49  ;;  %v2813_v5 = vpack.c.bf16 %v12029_v14, %v11967_v22  ;;  %v2688_v20 = vrot.slane %v12029_v14, 1  ;;  %v2736_v0 = vrot.slane %v12029_v14, 7  ;;  %v2412_v10 = vpop.f32.mrf.mxu3 }
 0xa61   : > { %v12035_v12 = vpop.eup %9915  ;;  %v2529_v6 = vmul.f32 %v12031_v50, %v11992_v52  ;;  %v12069_v60 = vadd.f32 1e-05, %v2412_v10  ;;  %v2587_v19 = vmul.f32 %v2517_v57, %v11641_v43  ;;  %v10158_v43 = vld [vmem:[%s10784_s10 + $0x50] sm:$0xff]  ;;  %vm2535_vm15 = vweird.f32 %v12031_v50 }
 0xa62   : > { %3290 = vmatpush.msrb.mxu1 %v11862_v7  ;;  %v12038_v7 = vadd.f32 %v10156_v40, %v2586_v51  ;;  %v2523_v11 = vmul.f32 %v11972_v54, %v2522_v63  ;;  %v2539_v16 = vmul.f32 %v12035_v12, %v12008_v2  ;;  %v2689_v59 = vsel %vm15237_vm14, %v2686_v32, %v2688_v20  ;;  %vm12105_vm1 = vmor %vm2534_vm0, %vm2535_vm15 }
 0xa63   : > { %2989 = vmatmul.bf16.gmra.mxu1 %v2809_v13  ;;  %v2530_v45 = vmul.f32 %v12031_v50, %v2529_v6  ;;  %v2737_v25 = vsel %vm15239_vm12, %v2734_v37, %v2736_v0  ;;  %v2777_v30 = vsel %vm10874_vm8, %v2689_v59, %v2735_v56  ;;  %9919 = vrsqrt.f32 %v12069_v60  ;;  %v12089_v13 = vpop.eup %9917 }
 0xa64   : > { %15232 = vst [vmem:[#allocation46_spill] sm:$0xff] %v12038_v7  ;;  %v2690_v46 = vrot.slane %v12038_v7, 1  ;;  %v2527_v32 = vsel %vm12057_vm11, %v11972_v54, %v2523_v11  ;;  %v2540_v29 = vmul.f32 %v12035_v12, %v2539_v16  ;;  %v2812_v15 = vpack.c.bf16 %v2737_v25, %v2777_v30 }
 0xa65   : > { %v2531_v8 = vmul.f32 0.5, %v2530_v45  ;;  %v2588_v35 = vmul.f32 %v2527_v32, %v11636_v41  ;;  %v12087_v55 = vadd.f32 %v10157_v24, %v2587_v19  ;;  %vm2544_vm11 = vweird.f32 %v12008_v2 }
 0xa66   : > { %v2691_v4 = vsel %vm15240_vm13, %v2688_v20, %v2690_v46  ;;  %v2541_v54 = vmul.f32 0.5, %v2540_v29  ;;  %vm2545_vm14 = vweird.f32 %v12035_v12  ;;  %v2549_v62 = vmul.f32 %v12089_v13, %v12061_v39 }
 0xa67   : > { %v2794_v33 = vsel %vm10881_vm9, %v2737_v25, %v2691_v4  ;;  %15241 = vst [vmem:[#allocation47_spill] sm:$0xff] %v12087_v55  ;;  %v2532_v18 = vsub.f32 1.5, %v2531_v8  ;;  %v12092_v49 = vadd.f32 %v10158_v43, %v2588_v35  ;;  %v2692_v40 = vrot.slane %v12087_v55, 1  ;;  %vm12115_vm12 = vmor %vm2544_vm11, %vm2545_vm14  ;;  %v10159_v8 = vld [vmem:[%s10784_s10 + $0x58] sm:$0xff] }
 0xa68   : > { %3087 = vmatmul.bf16.gmra.mxu2 %v2811_v53  ;;  %v2814_v21 = vpack.c.bf16 %v2794_v33, %v2689_v59  ;;  %v2542_v41 = vsub.f32 1.5, %v2541_v54  ;;  %v2816_v53 = vpack.c.bf16 %v12087_v55, %v12038_v7  ;;  %v2415_v63 = vpop.f32.mrf.mxu3  ;;  %vm15247_vm13 = vcmask 1040384  }
 0xa69   : > { %15242 = vst [vmem:[#allocation48_spill] sm:$0xff] %v12092_v49  ;;  %v12096_v51 = vpop.eup %9919  ;;  %v2533_v23 = vmul.f32 %v12031_v50, %v2532_v18  ;;  %v2694_v20 = vrot.slane %v12092_v49, 1  ;;  %v12119_v26 = vadd.f32 1e-05, %v2415_v63  ;;  %v2740_v11 = vrot.slane %v12087_v55, 7  ;;  %vm15251_vm11 = vmmov %vm15247_vm13 }
 0xa6a   : > { %v2543_v9 = vmul.f32 %v12035_v12, %v2542_v41  ;;  %v2559_v2 = vmul.f32 %v12096_v51, %v12069_v60  ;;  %v2550_v10 = vmul.f32 %v12089_v13, %v2549_v62  ;;  %vm15248_vm0 = vcmask 1046528  }
 0xa6b   : > { %v2537_v16 = vsel %vm12105_vm1, %v12031_v50, %v2533_v23  ;;  %v2693_v3 = vsel %vm15248_vm0, %v2690_v46, %v2692_v40  ;;  %vm15249_vm15 = vmmov %vm15248_vm0  ;;  %9921 = vrsqrt.f32 %v12119_v26  ;;  %v15252_v46 = vld [vmem:[#allocation28_spill] sm:$0xff]  ;;  %vm2554_vm1 = vweird.f32 %v12061_v39 }
 0xa6c   : > { %3043 = vmatmul.bf16.gmra.mxu3 %v2813_v5  ;;  %v2738_v5 = vrot.slane %v12038_v7, 7  ;;  %v2695_v59 = vsel %vm15249_vm15, %v2692_v40, %v2694_v20  ;;  %v2547_v57 = vsel %vm12115_vm12, %v12035_v12, %v2543_v9  ;;  %v2560_v45 = vmul.f32 %v12096_v51, %v2559_v2  ;;  %v15260_v2 = vld [vmem:[#allocation29_spill] sm:$0xff] }
 0xa6d   : > { %v2589_v25 = vmul.f32 %v2537_v16, %v11631_v1  ;;  %v2551_v4 = vmul.f32 0.5, %v2550_v10  ;;  %vm15253_vm14 = vnez %v15252_v46  ;;  %v2590_v29 = vmul.f32 %v2547_v57, %v11626_v28  ;;  %v10160_v1 = vld [vmem:[%s10784_s10 + $0x60] sm:$0xff] }
 0xa6e   : > { %v2739_v37 = vsel %vm15247_vm13, %v2736_v0, %v2738_v5  ;;  %v15250_v0 = vld [vmem:[#allocation27_spill] sm:$0xff]  ;;  %v2741_v50 = vsel %vm15251_vm11, %v2738_v5, %v2740_v11  ;;  %v2561_v12 = vmul.f32 0.5, %v2560_v45  ;;  %vm2555_vm12 = vweird.f32 %v12089_v13 }
 0xa6f   : > { %v2779_v56 = vsel %vm10894_vm10, %v2693_v3, %v2739_v37  ;;  %v2796_v32 = vsel %vm15253_vm14, %v2741_v50, %v2695_v59  ;;  %v12142_v33 = vadd.f32 %v10159_v8, %v2589_v25  ;;  %v2552_v35 = vsub.f32 1.5, %v2551_v4  ;;  %vm2556_vm15 = vmor %vm2554_vm1, %vm2555_vm12  ;;  %v15262_v37 = vld [vmem:[#allocation37_spill] sm:$0xff]  ;;  %v10161_v45 = vld [vmem:[%s10784_s10 + $0x68] sm:$0xff] }
 0xa70   : > { %v2815_v30 = vpack.c.bf16 %v2741_v50, %v2779_v56  ;;  %v2817_v19 = vpack.c.bf16 %v2796_v32, %v2693_v3  ;;  %v12145_v54 = vadd.f32 %v10160_v1, %v2590_v29  ;;  %vm2564_vm13 = vweird.f32 %v12069_v60  ;;  %v15263_v3 = vld [vmem:[#allocation30_spill] sm:$0xff]  ;;  %v10162_v25 = vld [vmem:[%s10784_s10 + $0x70] sm:$0xff] }
 0xa71   : > { %15254 = vst [vmem:[#allocation49_spill] sm:$0xff] %v12142_v33  ;;  %v2819_v28 = vpack.c.bf16 %v12142_v33, %v12092_v49  ;;  %v2696_v24 = vrot.slane %v12142_v33, 1  ;;  %v2553_v18 = vmul.f32 %v12089_v13, %v2552_v35  ;;  %vm2565_vm0 = vweird.f32 %v12096_v51 }
 0xa72   : > { %15255 = vst [vmem:[#allocation50_spill] sm:$0xff] %v12145_v54  ;;  %v2742_v39 = vrot.slane %v12092_v49, 7  ;;  %v2698_v41 = vrot.slane %v12145_v54, 1  ;;  %v2744_v23 = vrot.slane %v12142_v33, 7  ;;  %vm2566_vm11 = vmor %vm2564_vm13, %vm2565_vm0  ;;  %vm15256_vm14 = vcmask 1046528  }
 0xa73   : > { %2994 = vmatmul.bf16.gmra.mxu1 %v2812_v15  ;;  %v9922_v15 = vpop.eup %9921  ;;  %v2697_v62 = vsel %vm15256_vm14, %v2694_v20, %v2696_v24  ;;  %v2557_v60 = vsel %vm2556_vm15, %v12089_v13, %v2553_v18  ;;  %vm15257_vm10 = vcmask 1040384   ;;  %vm15258_vm1 = vmmov %vm15256_vm14  ;;  %vm15261_vm9 = vnez %v15260_v2  ;;  %v15265_v13 = vld [vmem:[#allocation35_spill] sm:$0xff]  ;;  %v15272_v18 = vld [vmem:[#allocation36_spill] sm:$0xff] }
 0xa74   : > { %v2569_v43 = vmul.f32 %v9922_v15, %v12119_v26  ;;  %v2743_v52 = vsel %vm15257_vm10, %v2740_v11, %v2742_v39  ;;  %v2699_v40 = vsel %vm15258_vm1, %v2696_v24, %v2698_v41  ;;  %vm15259_vm12 = vmmov %vm15257_vm10  ;;  %v2591_v16 = vmul.f32 %v2557_v60, %v15262_v37  ;;  %v10163_v60 = vld [vmem:[%s10784_s10 + $0x78] sm:$0xff] }
 0xa75   : > { %v2745_v9 = vsel %vm15259_vm12, %v2742_v39, %v2744_v23  ;;  %v2781_v6 = vsel %vm15261_vm9, %v2697_v62, %v2743_v52  ;;  %vm15264_vm14 = vnez %v15263_v3  ;;  %vm2574_vm10 = vweird.f32 %v12119_v26  ;;  %vm15268_vm15 = vmmov %vm15258_vm1  ;;  %v15273_v39 = vld [vmem:[#allocation32_spill] sm:$0xff] }
 0xa76   : > { %v2570_v63 = vmul.f32 %v9922_v15, %v2569_v43  ;;  %v2798_v20 = vsel %vm15264_vm14, %v2745_v9, %v2699_v40  ;;  %v2818_v57 = vpack.c.bf16 %v2745_v9, %v2781_v6  ;;  %v12173_v56 = vadd.f32 %v10161_v45, %v2591_v16  ;;  %v15280_v16 = vld [vmem:[#allocation33_spill] sm:$0xff] }
 0xa77   : > { %v2820_v11 = vpack.c.bf16 %v2798_v20, %v2697_v62  ;;  %vm2575_vm13 = vweird.f32 %v9922_v15  ;;  %v15282_v20 = vld [vmem:[#allocation34_spill] sm:$0xff] }
 0xa78   : > { %3092 = vmatmul.bf16.gmra.mxu2 %v2814_v21  ;;  %v2562_v21 = vsub.f32 1.5, %v2561_v12  ;;  %v2571_v10 = vmul.f32 0.5, %v2570_v63  ;;  %15266 = vst [vmem:[#allocation37_spill] sm:$0xff] %v12173_v56  ;;  %v2822_v4 = vpack.c.bf16 %v12173_v56, %v12145_v54  ;;  %v2700_v32 = vrot.slane %v12173_v56, 1  ;;  %vm2576_vm0 = vmor %vm2574_vm10, %vm2575_vm13 }
 0xa79   : > { %vm15274_vm10 = vnez %v15273_v39  ;;  %vm15276_vm13 = vmmov %vm15258_vm1 }
 0xa7a   : > { %v2701_v8 = vsel %vm15268_vm15, %v2698_v41, %v2700_v32 }
 0xa7c   : > { %3048 = vmatmul.bf16.gmra.mxu3 %v2816_v53  ;;  %v2563_v53 = vmul.f32 %v12096_v51, %v2562_v21 }
 0xa7e   : > { %v2567_v5 = vsel %vm2566_vm11, %v12096_v51, %v2563_v53  ;;  %v2572_v51 = vsub.f32 1.5, %v2571_v10  ;;  %vm15269_vm11 = vmmov %vm15259_vm12 }
 0xa7f   : > { %v2592_v59 = vmul.f32 %v2567_v5, %v15265_v13  ;;  %vm15270_vm12 = vmmov %vm15269_vm11 }
 0xa80   : > { %v2573_v29 = vmul.f32 %v9922_v15, %v2572_v51 }
 0xa81   : > { %v12176_v50 = vadd.f32 %v10162_v25, %v2592_v59 }
 0xa82   : > { %v2577_v35 = vsel %vm2576_vm0, %v9922_v15, %v2573_v29  ;;  %vm15277_vm0 = vmmov %vm15269_vm11 }
 0xa83   : > { %2999 = vmatmul.bf16.gmra.mxu1 %v2815_v30  ;;  %15267 = vst [vmem:[#allocation35_spill] sm:$0xff] %v12176_v50  ;;  %v2746_v30 = vrot.slane %v12145_v54, 7  ;;  %v2702_v12 = vrot.slane %v12176_v50, 1  ;;  %v2593_v43 = vmul.f32 %v2577_v35, %v15272_v18  ;;  %v2750_v52 = vrot.slane %v12176_v50, 7  ;;  %vm15278_vm15 = vmmov %vm15277_vm0 }
 0xa85   : > { %v2747_v26 = vsel %vm15269_vm11, %v2744_v23, %v2746_v30  ;;  %v2703_v1 = vsel %vm15258_vm1, %v2700_v32, %v2702_v12  ;;  %v12195_v63 = vadd.f32 %v10163_v60, %v2593_v43  ;;  %vm15279_vm11 = vmmov %vm15258_vm1  ;;  %vm15281_vm1 = vnez %v15280_v16 }
 0xa86   : > { %v2783_v24 = vsel %vm15158_vm3, %v2701_v8, %v2747_v26 }
 0xa87   : > { %15275 = vst [vmem:[#allocation36_spill] sm:$0xff] %v12195_v63  ;;  %v2825_v41 = vpack.c.bf16 %v12195_v63, %v12176_v50  ;;  %v2704_v23 = vrot.slane %v12195_v63, 1  ;;  %v2752_v40 = vrot.slane %v12195_v63, 7 }
 0xa88   : > { %3097 = vmatmul.bf16.gmra.mxu2 %v2817_v19  ;;  %v2748_v19 = vrot.slane %v12173_v56, 7 }
 0xa89   : > { %v2705_v5 = vsel %vm15276_vm13, %v2702_v12, %v2704_v23  ;;  %v2753_v6 = vsel %vm15278_vm15, %v2750_v52, %v2752_v40  ;;  %v2722_v37 = vsel %vm15279_vm11, %v2704_v23, %v12195_v63  ;;  %vm15284_vm13 = vcmask 64512  }
 0xa8a   : > { %v2749_v21 = vsel %vm15270_vm12, %v2746_v30, %v2748_v19  ;;  %v2751_v9 = vsel %vm15277_vm0, %v2748_v19, %v2750_v52  ;;  %vm15283_vm12 = vnez %v15282_v20  ;;  %vm15285_vm0 = vmmov %vm15284_vm13 }
 0xa8b   : > { %v2800_v53 = vsel %vm15274_vm10, %v2749_v21, %v2703_v1  ;;  %v2821_v62 = vpack.c.bf16 %v2749_v21, %v2783_v24  ;;  %v2785_v10 = vsel %vm15281_vm1, %v2705_v5, %v2751_v9  ;;  %v2802_v13 = vsel %vm15283_vm12, %v2753_v6, %v2722_v37  ;;  %vm15286_vm15 = vmmov %vm15285_vm0 }
 0xa8c   : > { %3053 = vmatmul.bf16.gmra.mxu3 %v2819_v28  ;;  %v2823_v15 = vpack.c.bf16 %v2800_v53, %v2701_v8  ;;  %v2824_v59 = vpack.c.bf16 %v2753_v6, %v2785_v10  ;;  %vm15287_vm11 = vmmov %vm15285_vm0 }
 0xa8d   : > { %vm15288_vm12 = vmmov %vm15285_vm0 }
 0xa8e   : > { %vm15302_vm1 = vmmov %vm15285_vm0 }
 0xa8f   : > { %vm15303_vm10 = vmmov %vm15285_vm0 }
 0xa93   : > { %3004 = vmatmul.bf16.gmra.mxu1 %v2818_v57  ;;  %v2826_v57 = vpack.c.bf16 %v2802_v13, %v2705_v5 }
 0xa98   : > { %3102 = vmatmul.bf16.gmra.mxu2 %v2820_v11 }
 0xa9c   : > { %3058 = vmatmul.bf16.gmra.mxu3 %v2822_v4 }
 0xaa3   : > { %3009 = vmatmul.bf16.gmra.mxu1 %v2821_v62 }
 0xaa8   : > { %3107 = vmatmul.bf16.gmra.mxu2 %v2823_v15 }
 0xaac   : > { %3063 = vmatmul.bf16.gmra.mxu3 %v2825_v41 }
 0xab3   : > { %3014 = vmatmul.bf16.gmra.mxu1 %v2824_v59 }
 0xab8   : > { %3112 = vmatmul.bf16.gmra.mxu2 %v2826_v57 }
 0xabf   : > { %v3029_v11 = vpop.f32.mrf.mxu3 }
 0xac0   : > { %v2980_v45 = vpop.f32.mrf.mxu1 }
 0xac1   : > { %v3030_v25 = vadd.f32 %v3029_v11, %v2980_v45 }
 0xac7   : > { %v12211_v51 = vpop.f32.mrf.mxu3 }
 0xac8   : > { %v12213_v4 = vpop.f32.mrf.mxu1 }
 0xacb   : > { %v3078_v32 = vpop.f32.mrf.mxu2 }
 0xacc   : > { %v12215_v29 = vadd.f32 %v3078_v32, %v3030_v25 }
 0xacf   : > { %v3034_v30 = vpop.f32.mrf.mxu3 }
 0xad0   : > { %v2985_v12 = vpop.f32.mrf.mxu1 }
 0xad1   : > { %v3035_v35 = vadd.f32 %v3034_v30, %v2985_v12 }
 0xad3   : > { %v12217_v19 = vpop.f32.mrf.mxu2 }
 0xad7   : > { %v12219_v8 = vpop.f32.mrf.mxu3 }
 0xad8   : > { %v12221_v26 = vpop.f32.mrf.mxu1 }
 0xadb   : > { %v3083_v1 = vpop.f32.mrf.mxu2 }
 0xadc   : > { %v12223_v21 = vadd.f32 %v3083_v1, %v3035_v35 }
 0xadf   : > { %v3039_v24 = vpop.f32.mrf.mxu3 }
 0xae0   : > { %v2990_v18 = vpop.f32.mrf.mxu1 }
 0xae1   : > { %v3040_v62 = vadd.f32 %v3039_v24, %v2990_v18 }
 0xae3   : > { %v12225_v43 = vpop.f32.mrf.mxu2 }
 0xae7   : > { %v12227_v53 = vpop.f32.mrf.mxu3 }
 0xae8   : > { %v2992_v60 = vpop.f32.mrf.mxu1 }
 0xaeb   : > { %v3088_v15 = vpop.f32.mrf.mxu2 }
 0xaec   : > { %v12229_v41 = vadd.f32 %v3088_v15, %v3040_v62 }
 0xaef   : > { %v3044_v23 = vpop.f32.mrf.mxu3 }
 0xaf0   : > { %v2995_v52 = vpop.f32.mrf.mxu1 }
 0xaf1   : > { %v3045_v9 = vadd.f32 %v3044_v23, %v2995_v52 }
 0xaf3   : > { %v3090_v40 = vpop.f32.mrf.mxu2 }
 0xaf7   : > { %v3046_v5 = vpop.f32.mrf.mxu3 }
 0xaf8   : > { %v2997_v6 = vpop.f32.mrf.mxu1 }
 0xafb   : > { %v3093_v37 = vpop.f32.mrf.mxu2 }
 0xafc   : > { %v12231_v10 = vadd.f32 %v3093_v37, %v3045_v9 }
 0xaff   : > { %v3049_v13 = vpop.f32.mrf.mxu3 }
 0xb00   : > { %v3000_v59 = vpop.f32.mrf.mxu1 }
 0xb03   : > { %v3095_v57 = vpop.f32.mrf.mxu2 }
 0xb07   : > { %v3051_v11 = vpop.f32.mrf.mxu3 }
 0xb08   : > { %v3002_v45 = vpop.f32.mrf.mxu1 }
 0xb0b   : > { %v3098_v25 = vpop.f32.mrf.mxu2 }
 0xb0f   : > { %v3054_v32 = vpop.f32.mrf.mxu3 }
 0xb10   : > { %v3005_v30 = vpop.f32.mrf.mxu1 }
 0xb13   : > { %v3100_v12 = vpop.f32.mrf.mxu2 }
 0xb17   : > { %v3056_v35 = vpop.f32.mrf.mxu3 }
 0xb18   : > { %v3007_v1 = vpop.f32.mrf.mxu1 }
 0xb19   : > { %v3057_v17 = vadd.f32 %v3056_v35, %v3007_v1  ;;  %v12335_v35 = vld [vmem:[#allocation10 + $0x68] sm:$0xff]  ;;  %v12339_v1 = vld [vmem:[#allocation10 + $0x70] sm:$0xff] }
 0xb1b   : > { %v3103_v24 = vpop.f32.mrf.mxu2 }
 0xb1f   : > { %v3059_v18 = vpop.f32.mrf.mxu3 }
 0xb20   : > { %v3010_v62 = vpop.f32.mrf.mxu1 }
 0xb21   : > { %v3060_v42 = vadd.f32 %v3059_v18, %v3010_v62 }
 0xb23   : > { %v3105_v15 = vpop.f32.mrf.mxu2 }
 0xb27   : > { %v3061_v23 = vpop.f32.mrf.mxu3 }
 0xb28   : > { %v3012_v63 = vpop.f32.mrf.mxu1 }
 0xb29   : > { %v3062_v22 = vadd.f32 %v3061_v23, %v3012_v63 }
 0xb2b   : > { %v3108_v52 = vpop.f32.mrf.mxu2 }
 0xb2c   : > { %v12241_v44 = vadd.f32 %v3108_v52, %v3060_v42 }
 0xb2f   : > { %v3064_v37 = vpop.f32.mrf.mxu3 }
 0xb30   : > { %v3015_v50 = vpop.f32.mrf.mxu1 }
 0xb31   : > { %v3065_v7 = vadd.f32 %v3064_v37, %v3015_v50 }
 0xb33   : > { %v3110_v9 = vpop.f32.mrf.mxu2 }
 0xb34   : > { %v12238_v38 = vadd.f32 %v3110_v9, %v3062_v22 }
 0xb37   : > { %v3066_v54 = vpop.f32.mrf.mxu3 }
 0xb38   : > { %v3017_v33 = vpop.f32.mrf.mxu1 }
 0xb39   : > { %v3067_v49 = vadd.f32 %v3066_v54, %v3017_v33  ;;  %v3055_v33 = vadd.f32 %v3054_v32, %v3005_v30  ;;  %v12244_v54 = vadd.f32 %v3105_v15, %v3057_v17  ;;  %v3042_v17 = vadd.f32 %v12227_v53, %v2992_v60  ;;  %v12295_v60 = vld [vmem:[#allocation10 + $0x18] sm:$0xff]  ;;  %v12323_v32 = vld [vmem:[#allocation10 + $0x50] sm:$0xff] }
 0xb3a   : > { %v12327_v30 = vld [vmem:[#allocation10 + $0x58] sm:$0xff] }
 0xb3b   : > { %v3113_v56 = vpop.f32.mrf.mxu2  ;;  %v12261_v63 = vadd.f32 %v3090_v40, %v3042_v17  ;;  %v12299_v40 = vld [vmem:[#allocation10 + $0x20] sm:$0xff] }
 0xb3c   : > { %v12235_v58 = vadd.f32 %v3113_v56, %v3065_v7  ;;  %v12247_v7 = vadd.f32 %v3103_v24, %v3055_v33  ;;  %v3047_v56 = vadd.f32 %v3046_v5, %v2997_v6  ;;  %v3032_v6 = vadd.f32 %v12211_v51, %v12213_v4  ;;  %v12283_v51 = vld [vmem:[#allocation10] sm:$0xff]  ;;  %v12287_v4 = vld [vmem:[#allocation10 + $0x8] sm:$0xff]  ;;  %v12343_v24 = vld [vmem:[#allocation10 + $0x78] sm:$0xff] }
 0xb3e   : > { %v12256_v50 = vadd.f32 %v3095_v57, %v3047_v56  ;;  %v12275_v53 = vadd.f32 %v12217_v19, %v3032_v6  ;;  %v12291_v19 = vld [vmem:[#allocation10 + $0x10] sm:$0xff] }
 0xb3f   : > { %v12307_v57 = vld [vmem:[#allocation10 + $0x30] sm:$0xff] }
 0xb43   : > { %v3115_v55 = vpop.f32.mrf.mxu2 }
 0xb44   : > { %v12233_v14 = vadd.f32 %v3115_v55, %v3067_v49  ;;  %v3052_v55 = vadd.f32 %v3051_v11, %v3002_v45  ;;  %v3050_v49 = vadd.f32 %v3049_v13, %v3000_v59  ;;  %v3037_v13 = vadd.f32 %v12219_v8, %v12221_v26  ;;  %v12280_v8 = vld [vmem:[#allocation8] sm:$0xff]  ;;  %v12303_v59 = vld [vmem:[#allocation10 + $0x28] sm:$0xff]  ;;  %v12315_v45 = vld [vmem:[#allocation10 + $0x40] sm:$0xff] }
 0xb45   : > { %v12311_v11 = vld [vmem:[#allocation10 + $0x38] sm:$0xff] }
 0xb46   : > { %3118 = vmatpush.msrb.mxu0 %v12233_v14  ;;  %v12250_v22 = vadd.f32 %v3100_v12, %v3052_v55  ;;  %v12253_v42 = vadd.f32 %v3098_v25, %v3050_v49  ;;  %v12268_v5 = vadd.f32 %v12225_v43, %v3037_v13  ;;  %v12319_v25 = vld [vmem:[#allocation10 + $0x48] sm:$0xff]  ;;  %v12331_v12 = vld [vmem:[#allocation10 + $0x60] sm:$0xff] }
 0xb48   : > { %3119 = vmatpush.msrb.mxu0 %v12235_v58 }
 0xb4a   : > { %3120 = vmatpush.msrb.mxu0 %v12238_v38 }
 0xb4c   : > { %3121 = vmatpush.msrb.mxu0 %v12241_v44 }
 0xb4e   : > { %3122 = vmatpush.msrb.mxu0 %v12244_v54 }
 0xb50   : > { %3123 = vmatpush.msrb.mxu0 %v12247_v7 }
 0xb52   : > { %3124 = vmatpush.msrb.mxu0 %v12250_v22 }
 0xb54   : > { %3125 = vmatpush.msrb.mxu0 %v12253_v42 }
 0xb56   : > { %3126 = vmatpush.msrb.mxu0 %v12256_v50 }
 0xb58   : > { %3127 = vmatpush.msrb.mxu0 %v12231_v10 }
 0xb5a   : > { %3128 = vmatpush.msrb.mxu0 %v12261_v63 }
 0xb5c   : > { %3129 = vmatpush.msrb.mxu0 %v12229_v41 }
 0xb5e   : > { %3130 = vmatpush.msrb.mxu0 %v12268_v5 }
 0xb60   : > { %3131 = vmatpush.msrb.mxu0 %v12223_v21 }
 0xb62   : > { %3132 = vmatpush.msrb.mxu0 %v12275_v53 }
 0xb64   : > { %3133 = vmatpush.msrb.mxu0 %v12215_v29 }
 0xb65   : > { %3134 = vmatmul.f32.vlgmr.msrb.gmra.mxu0 %v12280_v8 }
 0xbe2   : > { %v3135_v26 = vpop.f32.mrf.mxu0 }
 0xbe3   : > { %3154 = vmatmul.f32.vlgmr.msra.gmra.mxu1 %v3135_v26 }
 0xc60   : > { %v3155_v43 = vpop.f32.mrf.mxu1 }
 0xc61   : > { %3173 = vmatpush.msra.mxu0 %v3155_v43 }
 0xc62   : > { %8882 = vmatmul.msk.f32.vlgmr.msra.gmra.mxu0 %vm15284_vm13, %v12283_v51  ;;  %vm15289_vm13 = vmmov %vm15285_vm0 }
 0xc6a   : > { %8883 = vmatmul.msk.f32.gmra.mxu0 %vm15285_vm0, %v12287_v4 }
 0xc72   : > { %8884 = vmatmul.msk.f32.gmra.mxu0 %vm15286_vm15, %v12291_v19  ;;  %vm15290_vm15 = vmmov %vm15285_vm0 }
 0xc7a   : > { %8885 = vmatmul.msk.f32.gmra.mxu0 %vm15287_vm11, %v12295_v60  ;;  %vm15291_vm11 = vmmov %vm15285_vm0 }
 0xc82   : > { %8886 = vmatmul.msk.f32.gmra.mxu0 %vm15288_vm12, %v12299_v40  ;;  %vm15292_vm12 = vmmov %vm15285_vm0 }
 0xc8a   : > { %8887 = vmatmul.msk.f32.gmra.mxu0 %vm15289_vm13, %v12303_v59  ;;  %vm15293_vm13 = vmmov %vm15285_vm0 }
 0xc92   : > { %8888 = vmatmul.msk.f32.gmra.mxu0 %vm15285_vm0, %v12307_v57 }
 0xc9a   : > { %8889 = vmatmul.msk.f32.gmra.mxu0 %vm15290_vm15, %v12311_v11  ;;  %vm15294_vm15 = vmmov %vm15285_vm0 }
 0xca2   : > { %8890 = vmatmul.msk.f32.gmra.mxu0 %vm15291_vm11, %v12315_v45  ;;  %vm15295_vm11 = vmmov %vm15285_vm0 }
 0xcaa   : > { %8891 = vmatmul.msk.f32.gmra.mxu0 %vm15292_vm12, %v12319_v25  ;;  %vm15296_vm12 = vmmov %vm15285_vm0 }
 0xcb2   : > { %8892 = vmatmul.msk.f32.gmra.mxu0 %vm15293_vm13, %v12323_v32  ;;  %vm15297_vm13 = vmmov %vm15285_vm0 }
 0xcba   : > { %8893 = vmatmul.msk.f32.gmra.mxu0 %vm15285_vm0, %v12327_v30 }
 0xcc2   : > { %8894 = vmatmul.msk.f32.gmra.mxu0 %vm15294_vm15, %v12331_v12  ;;  %vm15298_vm15 = vmmov %vm15285_vm0 }
 0xcca   : > { %8895 = vmatmul.msk.f32.gmra.mxu0 %vm15295_vm11, %v12335_v35  ;;  %vm15299_vm11 = vmmov %vm15285_vm0 }
 0xcd2   : > { %8896 = vmatmul.msk.f32.gmra.mxu0 %vm15296_vm12, %v12339_v1  ;;  %vm15300_vm12 = vmmov %vm15285_vm0 }
 0xcda   : > { %8897 = vmatmul.msk.f32.gmra.mxu0 %vm15297_vm13, %v12343_v24  ;;  %vm15301_vm13 = vmmov %vm15285_vm0 }
 0xcdf   : > { %v3175_v18 = vpop.f32.mrf.mxu0 }
 0xce7   : > { %v3178_v62 = vpop.f32.mrf.mxu0 }
 0xcef   : > { %v3181_v15 = vpop.f32.mrf.mxu0 }
 0xcf7   : > { %v3184_v23 = vpop.f32.mrf.mxu0 }
 0xcff   : > { %v3187_v52 = vpop.f32.mrf.mxu0 }
 0xd07   : > { %v3190_v9 = vpop.f32.mrf.mxu0 }
 0xd0f   : > { %v3193_v37 = vpop.f32.mrf.mxu0 }
 0xd17   : > { %v3196_v33 = vpop.f32.mrf.mxu0 }
 0xd1f   : > { %v3199_v55 = vpop.f32.mrf.mxu0 }
 0xd27   : > { %v3202_v49 = vpop.f32.mrf.mxu0 }
 0xd2f   : > { %v3205_v56 = vpop.f32.mrf.mxu0 }
 0xd37   : > { %v3208_v17 = vpop.f32.mrf.mxu0 }
 0xd38   : > { %v12364_v46 = vsub.f32 %v12244_v54, %v3208_v17  ;;  %v12379_v54 = vsub.f32 %v12253_v42, %v3199_v55  ;;  %v12394_v42 = vsub.f32 %v12261_v63, %v3190_v9  ;;  %v12409_v63 = vsub.f32 %v12223_v21, %v3181_v15 }
 0xd3f   : > { %v3211_v13 = vpop.f32.mrf.mxu0 }
 0xd40   : > { %v12359_v3 = vsub.f32 %v12241_v44, %v3211_v13  ;;  %v12374_v44 = vsub.f32 %v12250_v22, %v3202_v49  ;;  %v12389_v22 = vsub.f32 %v12231_v10, %v3193_v37  ;;  %v3247_v49 = vmul.f32 %v12379_v54, %v12379_v54 }
 0xd41   : > { %v12404_v10 = vsub.f32 %v12268_v5, %v3184_v23  ;;  %v3244_v37 = vmul.f32 %v12394_v42, %v12394_v42  ;;  %v12419_v5 = vsub.f32 %v12215_v29, %v3175_v18  ;;  %v3241_v23 = vmul.f32 %v12409_v63, %v12409_v63  ;;  %v9647_v29 = vld [vmem:[#allocation7 + $0x138] sm:$0xff] }
 0xd42   : > { %3994 = vmatpush.bf16.msrb.mxu2 %v9647_v29 }
 0xd43   : > { %v3239_v15 = vmul.f32 %v12419_v5, %v12419_v5 }
 0xd47   : > { %v3214_v6 = vpop.f32.mrf.mxu0 }
 0xd48   : > { %v12354_v39 = vsub.f32 %v12238_v38, %v3214_v6  ;;  %v12369_v38 = vsub.f32 %v12247_v7, %v3205_v56  ;;  %v12384_v7 = vsub.f32 %v12256_v50, %v3196_v33  ;;  %v3248_v56 = vmul.f32 %v12374_v44, %v12374_v44  ;;  %v9635_v6 = vld [vmem:[#allocation7 + $0xd8] sm:$0xff] }
 0xd49   : > { %v12399_v50 = vsub.f32 %v12229_v41, %v3187_v52  ;;  %v3245_v33 = vmul.f32 %v12389_v22, %v12389_v22  ;;  %v12414_v41 = vsub.f32 %v12275_v53, %v3178_v62  ;;  %v3242_v52 = vmul.f32 %v12404_v10, %v12404_v10 }
 0xd4a   : > { %v3246_v55 = vmul.f32 %v12384_v7, %v12384_v7 }
 0xd4b   : > { %v3243_v9 = vmul.f32 %v12399_v50, %v12399_v50  ;;  %v3240_v21 = vmul.f32 %v12414_v41, %v12414_v41 }
 0xd4f   : > { %v3217_v26 = vpop.f32.mrf.mxu0 }
 0xd50   : > { %v12348_v20 = vsub.f32 %v12235_v58, %v3217_v26  ;;  %v3252_v58 = vmul.f32 %v12354_v39, %v12354_v39  ;;  %v9642_v26 = vld [vmem:[#allocation7 + $0x110] sm:$0xff] }
 0xd52   : > { %v3253_v2 = vmul.f32 %v12348_v20, %v12348_v20 }
 0xd57   : > { %v3220_v43 = vpop.f32.mrf.mxu0 }
 0xd58   : > { %v12351_v16 = vsub.f32 %v12233_v14, %v3220_v43  ;;  %v3251_v14 = vmul.f32 %v12359_v3, %v12359_v3 }
 0xd5a   : > { %v3254_v28 = vmul.f32 %v12351_v16, %v12351_v16 }
 0xd5c   : > { %3255 = vmatpush.msrb.mxu3 %v3254_v28  ;;  %v3250_v28 = vmul.f32 %v12364_v46, %v12364_v46 }
 0xd5e   : > { %3256 = vmatpush.msrb.mxu3 %v3253_v2  ;;  %v3249_v2 = vmul.f32 %v12369_v38, %v12369_v38 }
 0xd60   : > { %3257 = vmatpush.msrb.mxu3 %v3252_v58 }
 0xd62   : > { %3258 = vmatpush.msrb.mxu3 %v3251_v14  ;;  %v9653_v14 = vld [vmem:[#allocation7 + $0x168] sm:$0xff] }
 0xd64   : > { %3259 = vmatpush.msrb.mxu3 %v3250_v28 }
 0xd66   : > { %3260 = vmatpush.msrb.mxu3 %v3249_v2 }
 0xd68   : > { %3261 = vmatpush.msrb.mxu3 %v3248_v56 }
 0xd6a   : > { %3262 = vmatpush.msrb.mxu3 %v3247_v49 }
 0xd6c   : > { %3263 = vmatpush.msrb.mxu3 %v3246_v55  ;;  %v9634_v55 = vld [vmem:[#allocation7 + $0xd0] sm:$0xff] }
 0xd6e   : > { %3264 = vmatpush.msrb.mxu3 %v3245_v33  ;;  %v9641_v33 = vld [vmem:[#allocation7 + $0x108] sm:$0xff] }
 0xd70   : > { %3265 = vmatpush.msrb.mxu3 %v3244_v37 }
 0xd72   : > { %3266 = vmatpush.msrb.mxu3 %v3243_v9  ;;  %v9652_v9 = vld [vmem:[#allocation7 + $0x160] sm:$0xff] }
 0xd74   : > { %3267 = vmatpush.msrb.mxu3 %v3242_v52 }
 0xd76   : > { %3268 = vmatpush.msrb.mxu3 %v3241_v23 }
 0xd78   : > { %3269 = vmatpush.msrb.mxu3 %v3240_v21 }
 0xd7a   : > { %3270 = vmatpush.msrb.mxu3 %v3239_v15  ;;  %v9633_v15 = vld [vmem:[#allocation7 + $0xc8] sm:$0xff] }
 0xd7b   : > { %3271 = vmatmul.f32.vlgmr.msrb.gmra.mxu3 %v12280_v8  ;;  %v9639_v8 = vld [vmem:[#allocation7 + $0xf8] sm:$0xff] }
 0xd7c   : > { %3945 = vmatpush.bf16.msra.mxu1 %v9639_v8 }
 0xdfe   : > { %v3272_v53 = vpop.f32.mrf.mxu3 }
 0xdff   : > { %3291 = vmatmul.f32.vlgmr.msrb.gmra.mxu1 %v3272_v53  ;;  %v9640_v53 = vld [vmem:[#allocation7 + $0x100] sm:$0xff] }
 0xe7c   : > { %v3292_v62 = vpop.f32.mrf.mxu1 }
 0xe7d   : > { %3310 = vmatpush.msra.mxu3 %v3292_v62 }
 0xe7e   : > { %8898 = vmatmul.msk.f32.vlgmr.msra.gmra.mxu3 %vm15285_vm0, %v12283_v51  ;;  %v9646_v51 = vld [vmem:[#allocation7 + $0x130] sm:$0xff] }
 0xe7f   : > { %3995 = vmatpush.bf16.msrb.mxu2 %v9646_v51  ;;  %v9651_v51 = vld [vmem:[#allocation7 + $0x158] sm:$0xff] }
 0xe86   : > { %8899 = vmatmul.msk.f32.gmra.mxu3 %vm15298_vm15, %v12287_v4  ;;  %vm15304_vm15 = vmmov %vm15285_vm0 }
 0xe8e   : > { %8900 = vmatmul.msk.f32.gmra.mxu3 %vm15299_vm11, %v12291_v19  ;;  %vm15305_vm11 = vmmov %vm15285_vm0 }
 0xe96   : > { %8901 = vmatmul.msk.f32.gmra.mxu3 %vm15300_vm12, %v12295_v60  ;;  %vm15306_vm12 = vmmov %vm15285_vm0  ;;  %v9638_v60 = vld [vmem:[#allocation7 + $0xf0] sm:$0xff] }
 0xe97   : > { %3946 = vmatpush.bf16.msra.mxu1 %v9638_v60 }
 0xe9e   : > { %8902 = vmatmul.msk.f32.gmra.mxu3 %vm15301_vm13, %v12299_v40  ;;  %vm15307_vm13 = vmmov %vm15285_vm0  ;;  %v9645_v40 = vld [vmem:[#allocation7 + $0x128] sm:$0xff] }
 0xe9f   : > { %3996 = vmatpush.bf16.msrb.mxu2 %v9645_v40  ;;  %v9632_v40 = vld [vmem:[#allocation7 + $0xc0] sm:$0xff] }
 0xea6   : > { %8903 = vmatmul.msk.f32.gmra.mxu3 %vm15302_vm1, %v12303_v59  ;;  %vm15308_vm1 = vmmov %vm15285_vm0 }
 0xeae   : > { %8904 = vmatmul.msk.f32.gmra.mxu3 %vm15303_vm10, %v12307_v57  ;;  %vm15309_vm10 = vmmov %vm15285_vm0 }
 0xeb6   : > { %8905 = vmatmul.msk.f32.gmra.mxu3 %vm15285_vm0, %v12311_v11 }
 0xebe   : > { %8906 = vmatmul.msk.f32.gmra.mxu3 %vm15304_vm15, %v12315_v45  ;;  %vm15310_vm15 = vmmov %vm15285_vm0 }
 0xec6   : > { %8907 = vmatmul.msk.f32.gmra.mxu3 %vm15305_vm11, %v12319_v25  ;;  %v9637_v25 = vld [vmem:[#allocation7 + $0xe8] sm:$0xff] }
 0xec7   : > { %3947 = vmatpush.bf16.msra.mxu1 %v9637_v25  ;;  %v12470_v25 = vld [vmem:[#allocation11 + $0x78] sm:$0xff] }
 0xece   : > { %8908 = vmatmul.msk.f32.gmra.mxu3 %vm15306_vm12, %v12323_v32  ;;  %v9644_v32 = vld [vmem:[#allocation7 + $0x120] sm:$0xff] }
 0xecf   : > { %3997 = vmatpush.bf16.msrb.mxu2 %v9644_v32 }
 0xed6   : > { %8909 = vmatmul.msk.f32.gmra.mxu3 %vm15307_vm13, %v12327_v30  ;;  %v9655_v30 = vld [vmem:[#allocation7 + $0x178] sm:$0xff] }
 0xed7   : > { %4043 = vmatpush.bf16.msrb.mxu0 %v9655_v30  ;;  %v12473_v30 = vld [vmem:[#allocation11 + $0x70] sm:$0xff] }
 0xede   : > { %8910 = vmatmul.msk.f32.gmra.mxu3 %vm15308_vm1, %v12331_v12 }
 0xee6   : > { %8911 = vmatmul.msk.f32.gmra.mxu3 %vm15309_vm10, %v12335_v35  ;;  %v9636_v35 = vld [vmem:[#allocation7 + $0xe0] sm:$0xff] }
 0xee7   : > { %3948 = vmatpush.bf16.msra.mxu1 %v9636_v35 }
 0xeeb   : > { %3949 = vmatpush.bf16.msra.mxu1 %v9635_v6 }
 0xeee   : > { %8912 = vmatmul.msk.f32.gmra.mxu3 %vm15285_vm0, %v12339_v1  ;;  %v9643_v1 = vld [vmem:[#allocation7 + $0x118] sm:$0xff] }
 0xeef   : > { %3998 = vmatpush.bf16.msrb.mxu2 %v9643_v1  ;;  %3950 = vmatpush.bf16.msra.mxu1 %v9634_v55 }
 0xef3   : > { %3999 = vmatpush.bf16.msrb.mxu2 %v9642_v26  ;;  %3951 = vmatpush.bf16.msra.mxu1 %v9633_v15 }
 0xef6   : > { %8913 = vmatmul.msk.f32.gmra.mxu3 %vm15310_vm15, %v12343_v24  ;;  %v9654_v24 = vld [vmem:[#allocation7 + $0x170] sm:$0xff] }
 0xef7   : > { %4044 = vmatpush.bf16.msrb.mxu0 %v9654_v24  ;;  %4000 = vmatpush.bf16.msrb.mxu2 %v9641_v33 }
 0xef8   : > { %3952 = vmatpush.bf16.msra.mxu1 %v9632_v40 }
 0xefb   : > { %4045 = vmatpush.bf16.msrb.mxu0 %v9653_v14  ;;  %4001 = vmatpush.bf16.msrb.mxu2 %v9640_v53 }
 0xeff   : > { %4046 = vmatpush.bf16.msrb.mxu0 %v9652_v9  ;;  %4249 = vmatpush.msra.mxu2 %v12470_v25 }
 0xf01   : > { %v3312_v4 = vpop.f32.mrf.mxu3  ;;  %4250 = vmatpush.msra.mxu2 %v12473_v30 }
 0xf02   : > { %v3313_v19 = vadd.f32 1e-05, %v3312_v4 }
 0xf03   : > { %4047 = vmatpush.bf16.msrb.mxu0 %v9651_v51 }
 0xf04   : > { %9923 = vrsqrt.f32 %v3313_v19  ;;  %vm3366_vm12 = vweird.f32 %v3313_v19 }
 0xf09   : > { %v3315_v59 = vpop.f32.mrf.mxu3 }
 0xf0a   : > { %v9924_v57 = vpop.eup %9923  ;;  %v3316_v11 = vadd.f32 1e-05, %v3315_v59 }
 0xf0b   : > { %v3361_v45 = vmul.f32 %v9924_v57, %v3313_v19  ;;  %vm3367_vm11 = vweird.f32 %v9924_v57 }
 0xf0c   : > { %9925 = vrsqrt.f32 %v3316_v11  ;;  %vm3368_vm13 = vmor %vm3366_vm12, %vm3367_vm11  ;;  %vm3376_vm0 = vweird.f32 %v3316_v11 }
 0xf0d   : > { %v3362_v12 = vmul.f32 %v9924_v57, %v3361_v45  ;;  %v9650_v45 = vld [vmem:[#allocation7 + $0x150] sm:$0xff] }
 0xf0e   : > { %4048 = vmatpush.bf16.msrb.mxu0 %v9650_v45  ;;  %v12511_v45 = vld [vmem:[#allocation11 + $0x48] sm:$0xff] }
 0xf0f   : > { %v3363_v18 = vmul.f32 0.5, %v3362_v12 }
 0xf11   : > { %v3364_v17 = vsub.f32 1.5, %v3363_v18  ;;  %v3318_v13 = vpop.f32.mrf.mxu3 }
 0xf12   : > { %v9926_v43 = vpop.eup %9925  ;;  %v12460_v58 = vadd.f32 1e-05, %v3318_v13  ;;  %v12481_v13 = vld [vmem:[#allocation11 + $0x68] sm:$0xff] }
 0xf13   : > { %v3365_v28 = vmul.f32 %v9924_v57, %v3364_v17  ;;  %v3371_v2 = vmul.f32 %v9926_v43, %v3316_v11  ;;  %vm3377_vm1 = vweird.f32 %v9926_v43  ;;  %v9649_v17 = vld [vmem:[#allocation7 + $0x148] sm:$0xff]  ;;  %4251 = vmatpush.msra.mxu2 %v12481_v13 }
 0xf14   : > { %9927 = vrsqrt.f32 %v12460_v58  ;;  %vm3378_vm15 = vmor %vm3376_vm0, %vm3377_vm1  ;;  %vm15312_vm0 = vcmask 1040384   ;;  %4049 = vmatpush.bf16.msrb.mxu0 %v9649_v17 }
 0xf15   : > { %v3369_v56 = vsel %vm3368_vm13, %v9924_v57, %v3365_v28  ;;  %v3372_v49 = vmul.f32 %v9926_v43, %v3371_v2  ;;  %vm3386_vm13 = vweird.f32 %v12460_v58  ;;  %v12490_v2 = vld [vmem:[#allocation11 + $0x60] sm:$0xff] }
 0xf16   : > { %v3520_v37 = vmul.f32 %v3369_v56, %v12419_v5  ;;  %4252 = vmatpush.msra.mxu2 %v12490_v2 }
 0xf17   : > { %v3373_v52 = vmul.f32 0.5, %v3372_v49 }
 0xf18   : > { %v3552_v29 = vmul.f32 0.1, %v3520_v37  ;;  %vm3536_vm10 = vcmp.ge.f32.partialorder %v3520_v37, 0.0 }
 0xf19   : > { %v3374_v23 = vsub.f32 1.5, %v3373_v52  ;;  %v3321_v21 = vpop.f32.mrf.mxu3 }
 0xf1a   : > { %v9928_v62 = vpop.eup %9927  ;;  %v12464_v8 = vadd.f32 1e-05, %v3321_v21  ;;  %v3568_v59 = vsel %vm3536_vm10, %v3520_v37, %v3552_v29  ;;  %vm15311_vm10 = vcmask 1046528   ;;  %v9648_v21 = vld [vmem:[#allocation7 + $0x140] sm:$0xff] }
 0xf1b   : > { %v3375_v4 = vmul.f32 %v9926_v43, %v3374_v23  ;;  %v3381_v5 = vmul.f32 %v9928_v62, %v12460_v58  ;;  %vm3387_vm12 = vweird.f32 %v9928_v62  ;;  %v3697_v1 = vrot.slane %v3568_v59, 7  ;;  %4050 = vmatpush.bf16.msrb.mxu0 %v9648_v21 }
 0xf1c   : > { %9929 = vrsqrt.f32 %v12464_v8  ;;  %v3649_v6 = vrot.slane %v3568_v59, 1  ;;  %vm3388_vm1 = vmor %vm3386_vm13, %vm3387_vm12  ;;  %vm3396_vm13 = vweird.f32 %v12464_v8 }
 0xf1d   : > { %v3379_v19 = vsel %vm3378_vm15, %v9926_v43, %v3375_v4  ;;  %v3382_v60 = vmul.f32 %v9928_v62, %v3381_v5  ;;  %v3744_v33 = vsel %vm15312_vm0, %v3568_v59, %v3697_v1  ;;  %vm15313_vm15 = vmmov %vm15312_vm0  ;;  %v12504_v4 = vld [vmem:[#allocation11 + $0x50] sm:$0xff]  ;;  %vm15316_vm0 = vnez %v15123_v27 }
 0xf1e   : > { %v3521_v57 = vmul.f32 %v3379_v19, %v12414_v41 }
 0xf1f   : > { %v3383_v11 = vmul.f32 0.5, %v3382_v60 }
 0xf20   : > { %vm3537_vm11 = vcmp.ge.f32.partialorder %v3521_v57, 0.0  ;;  %v3553_v32 = vmul.f32 0.1, %v3521_v57 }
 0xf21   : > { %v3384_v12 = vsub.f32 1.5, %v3383_v11  ;;  %v3324_v35 = vpop.f32.mrf.mxu3 }
 0xf22   : > { %v9930_v24 = vpop.eup %9929  ;;  %v12477_v41 = vadd.f32 1e-05, %v3324_v35  ;;  %v12479_v18 = vsel %vm3537_vm11, %v3521_v57, %v3553_v32  ;;  %v12517_v35 = vld [vmem:[#allocation11 + $0x40] sm:$0xff] }
 0xf23   : > { %v3385_v26 = vmul.f32 %v9928_v62, %v3384_v12  ;;  %v3391_v43 = vmul.f32 %v9930_v24, %v12464_v8  ;;  %v3650_v14 = vrot.slane %v12479_v18, 1  ;;  %v3698_v58 = vrot.slane %v12479_v18, 7  ;;  %15315 = vst [vmem:[#allocation51_spill] sm:$0xff] %v12517_v35 }
 0xf24   : > { %9931 = vrsqrt.f32 %v12477_v41  ;;  %v3778_v28 = vpack.c.bf16 %v12479_v18, %v3568_v59  ;;  %vm3397_vm12 = vweird.f32 %v9930_v24 }
 0xf25   : > { %v3389_v56 = vsel %vm3388_vm1, %v9928_v62, %v3385_v26  ;;  %v3392_v49 = vmul.f32 %v9930_v24, %v3391_v43  ;;  %v3651_v55 = vsel %vm15311_vm10, %v3649_v6, %v3650_v14  ;;  %v3699_v9 = vsel %vm15313_vm15, %v3697_v1, %v3698_v58  ;;  %v12501_v62 = vld [vmem:[#allocation11 + $0x58] sm:$0xff]  ;;  %vm3398_vm1 = vmor %vm3396_vm13, %vm3397_vm12 }
 0xf26   : > { %v3522_v37 = vmul.f32 %v3389_v56, %v12409_v63  ;;  %4002 = vmatmul.bf16.vlgmr.msrb.gmra.mxu2 %v3778_v28  ;;  %v3745_v23 = vsel %vm10812_vm2, %v3651_v55, %v3744_v33  ;;  %v12523_v26 = vld [vmem:[#allocation11 + $0x38] sm:$0xff]  ;;  %v12526_v56 = vld [vmem:[#allocation11 + $0x30] sm:$0xff]  ;;  %vm3406_vm12 = vweird.f32 %v12477_v41 }
 0xf27   : > { %v3393_v15 = vmul.f32 0.5, %v3392_v49  ;;  %v3777_v53 = vpack.c.bf16 %v3699_v9, %v3745_v23  ;;  %4253 = vmatpush.msra.mxu2 %v12501_v62  ;;  %15317 = vst [vmem:[#allocation52_spill] sm:$0xff] %v12523_v26  ;;  %v12536_v23 = vld [vmem:[#allocation11 + $0x28] sm:$0xff] }
 0xf28   : > { %vm3538_vm11 = vcmp.ge.f32.partialorder %v3522_v37, 0.0  ;;  %v3554_v29 = vmul.f32 0.1, %v3522_v37  ;;  %15318 = vst [vmem:[#allocation53_spill] sm:$0xff] %v12526_v56 }
 0xf29   : > { %v3394_v51 = vsub.f32 1.5, %v3393_v15  ;;  %v3327_v63 = vpop.f32.mrf.mxu3  ;;  %3953 = vmatmul.bf16.vlgmr.msra.gmra.mxu1 %v3777_v53  ;;  %4254 = vmatpush.msra.mxu2 %v12504_v4  ;;  %15319 = vst [vmem:[#allocation54_spill] sm:$0xff] %v12536_v23 }
 0xf2a   : > { %v9932_v5 = vpop.eup %9931  ;;  %v3570_v19 = vsel %vm3538_vm11, %v3522_v37, %v3554_v29  ;;  %v12507_v60 = vadd.f32 1e-05, %v3327_v63  ;;  %v12547_v63 = vld [vmem:[#allocation11 + $0x20] sm:$0xff] }
 0xf2b   : > { %v3652_v40 = vrot.slane %v3570_v19, 1  ;;  %v3395_v59 = vmul.f32 %v9930_v24, %v3394_v51  ;;  %v3401_v57 = vmul.f32 %v9932_v5, %v12477_v41  ;;  %4255 = vmatpush.msra.mxu2 %v12511_v45  ;;  %vm3407_vm11 = vweird.f32 %v9932_v5  ;;  %15322 = vst [vmem:[#allocation55_spill] sm:$0xff] %v12547_v63 }
 0xf2c   : > { %9933 = vrsqrt.f32 %v12507_v60  ;;  %v3700_v28 = vrot.slane %v3570_v19, 7  ;;  %vm3408_vm13 = vmor %vm3406_vm12, %vm3407_vm11 }
 0xf2d   : > { %v3399_v11 = vsel %vm3398_vm1, %v9930_v24, %v3395_v59  ;;  %v3402_v32 = vmul.f32 %v9932_v5, %v3401_v57  ;;  %v3653_v12 = vsel %vm15311_vm10, %v3650_v14, %v3652_v40  ;;  %4256 = vmatpush.msra.mxu2 %v12517_v35  ;;  %vm15320_vm1 = vmmov %vm15311_vm10  ;;  %vm15321_vm10 = vcmask 1040384  }
 0xf2e   : > { %v3523_v8 = vmul.f32 %v3399_v11, %v12404_v10  ;;  %v3762_v1 = vsel %vm15316_vm0, %v3699_v9, %v3653_v12  ;;  %v3701_v51 = vsel %vm15321_vm10, %v3698_v58, %v3700_v28  ;;  %v12556_v11 = vld [vmem:[#allocation11 + $0x18] sm:$0xff] }
 0xf2f   : > { %v3403_v17 = vmul.f32 0.5, %v3402_v32  ;;  %v3779_v6 = vpack.c.bf16 %v3762_v1, %v3651_v55  ;;  %4257 = vmatpush.msra.mxu2 %v12523_v26  ;;  %15324 = vst [vmem:[#allocation56_spill] sm:$0xff] %v12556_v11 }
 0xf30   : > { %vm3539_vm15 = vcmp.ge.f32.partialorder %v3523_v8, 0.0  ;;  %v3555_v24 = vmul.f32 0.1, %v3523_v8 }
 0xf31   : > { %v3404_v43 = vsub.f32 1.5, %v3403_v17  ;;  %v3330_v14 = vpop.f32.mrf.mxu3  ;;  %4051 = vmatmul.bf16.vlgmr.msrb.gmra.mxu0 %v3779_v6  ;;  %4258 = vmatpush.msra.mxu2 %v12526_v56 }
 0xf32   : > { %v9934_v10 = vpop.eup %9933  ;;  %v12529_v49 = vadd.f32 1e-05, %v3330_v14  ;;  %v12531_v33 = vsel %vm3539_vm15, %v3523_v8, %v3555_v24  ;;  %vm15323_vm15 = vmmov %vm15321_vm10  ;;  %vm15327_vm10 = vcmask 1046528  }
 0xf33   : > { %v3405_v55 = vmul.f32 %v9932_v5, %v3404_v43  ;;  %v3411_v37 = vmul.f32 %v9934_v10, %v12507_v60  ;;  %v3654_v9 = vrot.slane %v12531_v33, 1  ;;  %4259 = vmatpush.msra.mxu2 %v12536_v23  ;;  %v3702_v21 = vrot.slane %v12531_v33, 7  ;;  %v12564_v43 = vld [vmem:[#allocation11 + $0x8] sm:$0xff] }
 0xf34   : > { %9935 = vrsqrt.f32 %v12529_v49  ;;  %v3781_v15 = vpack.c.bf16 %v12531_v33, %v3570_v19  ;;  %vm3417_vm12 = vweird.f32 %v9934_v10  ;;  %15326 = vst [vmem:[#allocation58_spill] sm:$0xff] %v12564_v43 }
 0xf35   : > { %v3409_v53 = vsel %vm3408_vm13, %v9932_v5, %v3405_v55  ;;  %v3412_v29 = vmul.f32 %v9934_v10, %v3411_v37  ;;  %v3655_v41 = vsel %vm15320_vm1, %v3652_v40, %v3654_v9  ;;  %4260 = vmatpush.msra.mxu2 %v12547_v63  ;;  %v3703_v57 = vsel %vm15323_vm15, %v3700_v28, %v3702_v21  ;;  %v12568_v37 = vld [vmem:[#allocation11] sm:$0xff] }
 0xf36   : > { %v3524_v59 = vmul.f32 %v3409_v53, %v12399_v50  ;;  %4007 = vmatmul.bf16.gmra.mxu2 %v3781_v15  ;;  %v3747_v5 = vsel %vm10833_vm4, %v3655_v41, %v3701_v51  ;;  %v12559_v50 = vld [vmem:[#allocation11 + $0x10] sm:$0xff]  ;;  %vm3416_vm13 = vweird.f32 %v12507_v60  ;;  %15328 = vst [vmem:[#allocation59_spill] sm:$0xff] %v12568_v37 }
 0xf37   : > { %v3413_v19 = vmul.f32 0.5, %v3412_v29  ;;  %v3780_v40 = vpack.c.bf16 %v3703_v57, %v3747_v5  ;;  %4261 = vmatpush.msra.mxu2 %v12556_v11  ;;  %15325 = vst [vmem:[#allocation57_spill] sm:$0xff] %v12559_v50  ;;  %vm3418_vm1 = vmor %vm3416_vm13, %vm3417_vm12  ;;  %vm3426_vm12 = vweird.f32 %v12529_v49 }
 0xf38   : > { %vm3540_vm11 = vcmp.ge.f32.partialorder %v3524_v59, 0.0  ;;  %v3556_v18 = vmul.f32 0.1, %v3524_v59 }
 0xf39   : > { %v3414_v58 = vsub.f32 1.5, %v3413_v19  ;;  %v3333_v32 = vpop.f32.mrf.mxu3  ;;  %3958 = vmatmul.bf16.gmra.mxu1 %v3780_v40  ;;  %4262 = vmatpush.msra.mxu2 %v12559_v50 }
 0xf3a   : > { %v9936_v12 = vpop.eup %9935  ;;  %v3334_v8 = vadd.f32 1e-05, %v3333_v32  ;;  %v3572_v1 = vsel %vm3540_vm11, %v3524_v59, %v3556_v18 }
 0xf3b   : > { %v3415_v17 = vmul.f32 %v9934_v10, %v3414_v58  ;;  %v3421_v6 = vmul.f32 %v9936_v12, %v12529_v49  ;;  %v3656_v24 = vrot.slane %v3572_v1, 1  ;;  %4263 = vmatpush.msra.mxu2 %v12564_v43  ;;  %vm3427_vm11 = vweird.f32 %v9936_v12 }
 0xf3c   : > { %9937 = vrsqrt.f32 %v3334_v8  ;;  %vm3428_vm13 = vmor %vm3426_vm12, %vm3427_vm11 }
 0xf3d   : > { %v3419_v14 = vsel %vm3418_vm1, %v9934_v10, %v3415_v17  ;;  %v3422_v28 = vmul.f32 %v9936_v12, %v3421_v6  ;;  %v3657_v55 = vsel %vm15327_vm10, %v3654_v9, %v3656_v24  ;;  %4264 = vmatpush.msra.mxu2 %v12568_v37  ;;  %v3704_v10 = vrot.slane %v3572_v1, 7  ;;  %vm15329_vm1 = vmmov %vm15327_vm10 }
 0xf3e   : > { %v3525_v15 = vmul.f32 %v3419_v14, %v12394_v42  ;;  %v3764_v60 = vsel %vm10840_vm5, %v3703_v57, %v3657_v55  ;;  %vm15330_vm10 = vcmask 1040384  }
 0xf3f   : > { %v3423_v53 = vmul.f32 0.5, %v3422_v28  ;;  %v3782_v29 = vpack.c.bf16 %v3764_v60, %v3655_v41  ;;  %v3705_v14 = vsel %vm15330_vm10, %v3702_v21, %v3704_v10 }
 0xf40   : > { %vm3541_vm15 = vcmp.ge.f32.partialorder %v3525_v15, 0.0  ;;  %v3557_v51 = vmul.f32 0.1, %v3525_v15 }
 0xf41   : > { %v3424_v59 = vsub.f32 1.5, %v3423_v53  ;;  %v3336_v5 = vpop.f32.mrf.mxu3  ;;  %4056 = vmatmul.bf16.gmra.mxu0 %v3782_v29 }
 0xf42   : > { %v9938_v19 = vpop.eup %9937  ;;  %v3337_v9 = vadd.f32 1e-05, %v3336_v5  ;;  %v12574_v40 = vsel %vm3541_vm15, %v3525_v15, %v3557_v51  ;;  %vm15331_vm15 = vmmov %vm15330_vm10  ;;  %vm15332_vm10 = vcmask 1046528  }
 0xf43   : > { %v3425_v18 = vmul.f32 %v9936_v12, %v3424_v59  ;;  %v3431_v42 = vmul.f32 %v9938_v19, %v3334_v8  ;;  %v3658_v58 = vrot.slane %v12574_v40, 1  ;;  %v3706_v41 = vrot.slane %v12574_v40, 7 }
 0xf44   : > { %9939 = vrsqrt.f32 %v3337_v9  ;;  %v3784_v57 = vpack.c.bf16 %v12574_v40, %v3572_v1  ;;  %vm3437_vm12 = vweird.f32 %v9938_v19 }
 0xf45   : > { %v3429_v32 = vsel %vm3428_vm13, %v9936_v12, %v3425_v18  ;;  %v3432_v17 = vmul.f32 %v9938_v19, %v3431_v42  ;;  %v3659_v6 = vsel %vm15329_vm1, %v3656_v24, %v3658_v58  ;;  %v3707_v49 = vsel %vm15331_vm15, %v3704_v10, %v3706_v41 }
 0xf46   : > { %v3526_v28 = vmul.f32 %v3429_v32, %v12389_v22  ;;  %4012 = vmatmul.bf16.gmra.mxu2 %v3784_v57  ;;  %v3749_v55 = vsel %vm10854_vm6, %v3659_v6, %v3705_v14  ;;  %vm3436_vm13 = vweird.f32 %v3334_v8 }
 0xf47   : > { %v3433_v15 = vmul.f32 0.5, %v3432_v17  ;;  %v3783_v60 = vpack.c.bf16 %v3707_v49, %v3749_v55  ;;  %vm3438_vm1 = vmor %vm3436_vm13, %vm3437_vm12  ;;  %vm3446_vm12 = vweird.f32 %v3337_v9 }
 0xf48   : > { %vm3542_vm11 = vcmp.ge.f32.partialorder %v3526_v28, 0.0  ;;  %v3558_v1 = vmul.f32 0.1, %v3526_v28 }
 0xf49   : > { %v3434_v12 = vsub.f32 1.5, %v3433_v15  ;;  %v3339_v53 = vpop.f32.mrf.mxu3  ;;  %3963 = vmatmul.bf16.gmra.mxu1 %v3783_v60 }
 0xf4a   : > { %v9940_v24 = vpop.eup %9939  ;;  %v3340_v33 = vadd.f32 1e-05, %v3339_v53  ;;  %v3574_v29 = vsel %vm3542_vm11, %v3526_v28, %v3558_v1 }
 0xf4b   : > { %v3435_v21 = vmul.f32 %v9938_v19, %v3434_v12  ;;  %v3441_v22 = vmul.f32 %v9940_v24, %v3337_v9  ;;  %v3660_v51 = vrot.slane %v3574_v29, 1  ;;  %vm3447_vm11 = vweird.f32 %v9940_v24 }
 0xf4c   : > { %9941 = vrsqrt.f32 %v3340_v33  ;;  %v3708_v14 = vrot.slane %v3574_v29, 7  ;;  %vm3448_vm13 = vmor %vm3446_vm12, %vm3447_vm11 }
 0xf4d   : > { %v3439_v59 = vsel %vm3438_vm1, %v9938_v19, %v3435_v21  ;;  %v3442_v5 = vmul.f32 %v9940_v24, %v3441_v22  ;;  %v3661_v10 = vsel %vm15332_vm10, %v3658_v58, %v3660_v51  ;;  %vm15333_vm1 = vmmov %vm15332_vm10  ;;  %vm15334_vm10 = vcmask 1040384  }
 0xf4e   : > { %v3527_v40 = vmul.f32 %v3439_v59, %v12384_v7  ;;  %v3766_v18 = vsel %vm10861_vm7, %v3707_v49, %v3661_v10  ;;  %v3709_v53 = vsel %vm15334_vm10, %v3706_v41, %v3708_v14 }
 0xf4f   : > { %v3443_v42 = vmul.f32 0.5, %v3442_v5  ;;  %v3785_v57 = vpack.c.bf16 %v3766_v18, %v3659_v6 }
 0xf50   : > { %vm3543_vm15 = vcmp.ge.f32.partialorder %v3527_v40, 0.0  ;;  %v3559_v32 = vmul.f32 0.1, %v3527_v40 }
 0xf51   : > { %v3444_v17 = vsub.f32 1.5, %v3443_v42  ;;  %v3342_v8 = vpop.f32.mrf.mxu3  ;;  %4061 = vmatmul.bf16.gmra.mxu0 %v3785_v57 }
 0xf52   : > { %v9942_v28 = vpop.eup %9941  ;;  %v3343_v55 = vadd.f32 1e-05, %v3342_v8  ;;  %v12592_v19 = vsel %vm3543_vm15, %v3527_v40, %v3559_v32  ;;  %vm15335_vm15 = vmmov %vm15334_vm10  ;;  %vm15336_vm10 = vcmask 1046528  }
 0xf53   : > { %v3445_v15 = vmul.f32 %v9940_v24, %v3444_v17  ;;  %v3451_v58 = vmul.f32 %v9942_v28, %v3340_v33  ;;  %v3662_v7 = vrot.slane %v12592_v19, 1  ;;  %v3710_v6 = vrot.slane %v12592_v19, 7 }
 0xf54   : > { %9943 = vrsqrt.f32 %v3343_v55  ;;  %v3787_v49 = vpack.c.bf16 %v12592_v19, %v3574_v29  ;;  %vm3457_vm12 = vweird.f32 %v9942_v28 }
 0xf55   : > { %v3449_v60 = vsel %vm3448_vm13, %v9940_v24, %v3445_v15  ;;  %v3452_v1 = vmul.f32 %v9942_v28, %v3451_v58  ;;  %v3663_v12 = vsel %vm15333_vm1, %v3660_v51, %v3662_v7  ;;  %v3711_v9 = vsel %vm15335_vm15, %v3708_v14, %v3710_v6 }
 0xf56   : > { %v3528_v21 = vmul.f32 %v3449_v60, %v12379_v54  ;;  %4017 = vmatmul.bf16.gmra.mxu2 %v3787_v49  ;;  %v3751_v22 = vsel %vm10874_vm8, %v3663_v12, %v3709_v53  ;;  %vm3456_vm13 = vweird.f32 %v3340_v33  ;;  %vm15337_vm15 = vnez %v15140_v61 }
 0xf57   : > { %v3453_v59 = vmul.f32 0.5, %v3452_v1  ;;  %v3786_v5 = vpack.c.bf16 %v3711_v9, %v3751_v22  ;;  %vm3458_vm1 = vmor %vm3456_vm13, %vm3457_vm12  ;;  %vm3466_vm12 = vweird.f32 %v3343_v55 }
 0xf58   : > { %vm3544_vm11 = vcmp.ge.f32.partialorder %v3528_v21, 0.0  ;;  %v3560_v10 = vmul.f32 0.1, %v3528_v21 }
 0xf59   : > { %v3454_v40 = vsub.f32 1.5, %v3453_v59  ;;  %v3345_v24 = vpop.f32.mrf.mxu3  ;;  %3968 = vmatmul.bf16.gmra.mxu1 %v3786_v5 }
 0xf5a   : > { %v9944_v29 = vpop.eup %9943  ;;  %v3346_v51 = vadd.f32 1e-05, %v3345_v24  ;;  %v3576_v18 = vsel %vm3544_vm11, %v3528_v21, %v3560_v10 }
 0xf5b   : > { %v3455_v41 = vmul.f32 %v9942_v28, %v3454_v40  ;;  %v3461_v54 = vmul.f32 %v9944_v29, %v3343_v55  ;;  %v3664_v42 = vrot.slane %v3576_v18, 1  ;;  %vm3467_vm11 = vweird.f32 %v9944_v29 }
 0xf5c   : > { %9945 = vrsqrt.f32 %v3346_v51  ;;  %v3712_v60 = vrot.slane %v3576_v18, 7  ;;  %vm3468_vm13 = vmor %vm3466_vm12, %vm3467_vm11 }
 0xf5d   : > { %v3459_v57 = vsel %vm3458_vm1, %v9942_v28, %v3455_v41  ;;  %v3462_v32 = vmul.f32 %v9944_v29, %v3461_v54  ;;  %v3665_v17 = vsel %vm15336_vm10, %v3662_v7, %v3664_v42  ;;  %vm15338_vm1 = vmmov %vm15336_vm10  ;;  %vm15339_vm10 = vcmask 1040384  }
 0xf5e   : > { %v3529_v8 = vmul.f32 %v3459_v57, %v12374_v44  ;;  %v3768_v14 = vsel %vm15337_vm15, %v3711_v9, %v3665_v17  ;;  %v3713_v10 = vsel %vm15339_vm10, %v3710_v6, %v3712_v60  ;;  %vm15341_vm15 = vnez %v15250_v0 }
 0xf5f   : > { %v3463_v19 = vmul.f32 0.5, %v3462_v32  ;;  %v3788_v15 = vpack.c.bf16 %v3768_v14, %v3663_v12 }
 0xf60   : > { %vm3545_vm8 = vcmp.ge.f32.partialorder %v3529_v8, 0.0  ;;  %v3561_v58 = vmul.f32 0.1, %v3529_v8 }
 0xf61   : > { %v3464_v49 = vsub.f32 1.5, %v3463_v19  ;;  %v3348_v33 = vpop.f32.mrf.mxu3  ;;  %4066 = vmatmul.bf16.gmra.mxu0 %v3788_v15 }
 0xf62   : > { %v9946_v1 = vpop.eup %9945  ;;  %v3349_v53 = vadd.f32 1e-05, %v3348_v33  ;;  %v12607_v28 = vsel %vm3545_vm8, %v3529_v8, %v3561_v58  ;;  %vm15340_vm8 = vmmov %vm15339_vm10  ;;  %vm15342_vm10 = vcmask 1046528  }
 0xf63   : > { %v3465_v21 = vmul.f32 %v9944_v29, %v3464_v49  ;;  %v3471_v7 = vmul.f32 %v9946_v1, %v3346_v51  ;;  %v3666_v44 = vrot.slane %v12607_v28, 1  ;;  %v3714_v12 = vrot.slane %v12607_v28, 7  ;;  %v15343_v49 = vld [vmem:[#allocation28_spill] sm:$0xff] }
 0xf64   : > { %9947 = vrsqrt.f32 %v3349_v53  ;;  %v3790_v9 = vpack.c.bf16 %v12607_v28, %v3576_v18  ;;  %vm3477_vm12 = vweird.f32 %v9946_v1 }
 0xf65   : > { %v3469_v22 = vsel %vm3468_vm13, %v9944_v29, %v3465_v21  ;;  %v3472_v59 = vmul.f32 %v9946_v1, %v3471_v7  ;;  %v3667_v5 = vsel %vm15338_vm1, %v3664_v42, %v3666_v44  ;;  %v3715_v55 = vsel %vm15340_vm8, %v3712_v60, %v3714_v12 }
 0xf66   : > { %v3530_v40 = vmul.f32 %v3469_v22, %v12369_v38  ;;  %4022 = vmatmul.bf16.gmra.mxu2 %v3790_v9  ;;  %v3753_v24 = vsel %vm15341_vm15, %v3667_v5, %v3713_v10  ;;  %vm3476_vm13 = vweird.f32 %v3346_v51  ;;  %vm15344_vm8 = vnez %v15343_v49 }
 0xf67   : > { %v3473_v41 = vmul.f32 0.5, %v3472_v59  ;;  %v3789_v54 = vpack.c.bf16 %v3715_v55, %v3753_v24  ;;  %vm3478_vm1 = vmor %vm3476_vm13, %vm3477_vm12  ;;  %vm3486_vm12 = vweird.f32 %v3349_v53 }
 0xf68   : > { %vm3546_vm11 = vcmp.ge.f32.partialorder %v3530_v40, 0.0  ;;  %v3562_v57 = vmul.f32 0.1, %v3530_v40 }
 0xf69   : > { %v3474_v32 = vsub.f32 1.5, %v3473_v41  ;;  %v3351_v29 = vpop.f32.mrf.mxu3  ;;  %3973 = vmatmul.bf16.gmra.mxu1 %v3789_v54 }
 0xf6a   : > { %v9948_v18 = vpop.eup %9947  ;;  %v3578_v42 = vsel %vm3546_vm11, %v3530_v40, %v3562_v57  ;;  %v3352_v17 = vadd.f32 1e-05, %v3351_v29 }
 0xf6b   : > { %v3475_v6 = vmul.f32 %v9946_v1, %v3474_v32  ;;  %v3481_v38 = vmul.f32 %v9948_v18, %v3349_v53  ;;  %v3668_v8 = vrot.slane %v3578_v42, 1  ;;  %vm3487_vm11 = vweird.f32 %v9948_v18 }
 0xf6c   : > { %9949 = vrsqrt.f32 %v3352_v17  ;;  %v3716_v9 = vrot.slane %v3578_v42, 7  ;;  %vm3488_vm13 = vmor %vm3486_vm12, %vm3487_vm11  ;;  %vm3496_vm12 = vweird.f32 %v3352_v17 }
 0xf6d   : > { %v3479_v14 = vsel %vm3478_vm1, %v9946_v1, %v3475_v6  ;;  %v3482_v19 = vmul.f32 %v9948_v18, %v3481_v38  ;;  %v3669_v15 = vsel %vm15342_vm10, %v3666_v44, %v3668_v8  ;;  %vm15345_vm1 = vmmov %vm15342_vm10  ;;  %vm15346_vm10 = vcmask 1040384  }
 0xf6e   : > { %v3531_v58 = vmul.f32 %v3479_v14, %v12364_v46  ;;  %v3770_v33 = vsel %vm15344_vm8, %v3715_v55, %v3669_v15  ;;  %v3717_v54 = vsel %vm15346_vm10, %v3714_v12, %v3716_v9  ;;  %vm15347_vm8 = vmmov %vm15346_vm10 }
 0xf6f   : > { %v3483_v60 = vmul.f32 0.5, %v3482_v19  ;;  %v3791_v28 = vpack.c.bf16 %v3770_v33, %v3667_v5 }
 0xf70   : > { %vm3547_vm15 = vcmp.ge.f32.partialorder %v3531_v58, 0.0  ;;  %v3563_v21 = vmul.f32 0.1, %v3531_v58 }
 0xf71   : > { %v3484_v7 = vsub.f32 1.5, %v3483_v60  ;;  %v3354_v51 = vpop.f32.mrf.mxu3  ;;  %4071 = vmatmul.bf16.gmra.mxu0 %v3791_v28 }
 0xf72   : > { %v9950_v22 = vpop.eup %9949  ;;  %v3355_v59 = vadd.f32 1e-05, %v3354_v51  ;;  %v3579_v1 = vsel %vm3547_vm15, %v3531_v58, %v3563_v21 }
 0xf73   : > { %v3485_v10 = vmul.f32 %v9948_v18, %v3484_v7  ;;  %v3491_v44 = vmul.f32 %v9950_v22, %v3352_v17  ;;  %v3670_v40 = vrot.slane %v3579_v1, 1  ;;  %v3718_v46 = vrot.slane %v3579_v1, 7 }
 0xf74   : > { %9951 = vrsqrt.f32 %v3355_v59  ;;  %v3793_v55 = vpack.c.bf16 %v3579_v1, %v3578_v42  ;;  %vm3497_vm11 = vweird.f32 %v9950_v22 }
 0xf75   : > { %v3489_v24 = vsel %vm3488_vm13, %v9948_v18, %v3485_v10  ;;  %v3492_v5 = vmul.f32 %v9950_v22, %v3491_v44  ;;  %v3671_v41 = vsel %vm15345_vm1, %v3668_v8, %v3670_v40  ;;  %v3719_v32 = vsel %vm15347_vm8, %v3716_v9, %v3718_v46  ;;  %vm3498_vm13 = vmor %vm3496_vm12, %vm3497_vm11 }
 0xf76   : > { %v3532_v57 = vmul.f32 %v3489_v24, %v12359_v3  ;;  %4027 = vmatmul.bf16.gmra.mxu2 %v3793_v55  ;;  %v3755_v53 = vsel %vm15261_vm9, %v3671_v41, %v3717_v54  ;;  %vm15349_vm8 = vmmov %vm15345_vm1 }
 0xf77   : > { %v3493_v6 = vmul.f32 0.5, %v3492_v5  ;;  %v3792_v38 = vpack.c.bf16 %v3719_v32, %v3755_v53  ;;  %vm15351_vm12 = vmmov %vm15349_vm8 }
 0xf78   : > { %vm3548_vm15 = vcmp.ge.f32.partialorder %v3532_v57, 0.0  ;;  %v3564_v14 = vmul.f32 0.1, %v3532_v57 }
 0xf79   : > { %v3494_v19 = vsub.f32 1.5, %v3493_v6  ;;  %v3357_v18 = vpop.f32.mrf.mxu3  ;;  %3978 = vmatmul.bf16.gmra.mxu1 %v3792_v38 }
 0xf7a   : > { %v9952_v42 = vpop.eup %9951  ;;  %v3580_v8 = vsel %vm3548_vm15, %v3532_v57, %v3564_v14  ;;  %v3358_v15 = vadd.f32 1e-05, %v3357_v18  ;;  %vm3506_vm15 = vweird.f32 %v3355_v59 }
 0xf7b   : > { %v3495_v12 = vmul.f32 %v9950_v22, %v3494_v19  ;;  %v3501_v3 = vmul.f32 %v9952_v42, %v3355_v59  ;;  %v3672_v58 = vrot.slane %v3580_v8, 1  ;;  %vm3507_vm10 = vweird.f32 %v9952_v42 }
 0xf7c   : > { %9953 = vrsqrt.f32 %v3358_v15  ;;  %v3720_v17 = vrot.slane %v3580_v8, 7  ;;  %vm3508_vm11 = vmor %vm3506_vm15, %vm3507_vm10  ;;  %vm3516_vm15 = vweird.f32 %v3358_v15 }
 0xf7d   : > { %v3499_v33 = vsel %vm3498_vm13, %v9950_v22, %v3495_v12  ;;  %v3502_v60 = vmul.f32 %v9952_v42, %v3501_v3  ;;  %v3673_v28 = vsel %vm15349_vm8, %v3670_v40, %v3672_v58  ;;  %vm15352_vm13 = vcmask 1040384  }
 0xf7e   : > { %v3533_v21 = vmul.f32 %v3499_v33, %v12354_v39  ;;  %v3772_v51 = vsel %vm15264_vm14, %v3719_v32, %v3673_v28  ;;  %vm15353_vm8 = vmmov %vm15352_vm13 }
 0xf7f   : > { %v3503_v9 = vmul.f32 0.5, %v3502_v60  ;;  %v3794_v1 = vpack.c.bf16 %v3772_v51, %v3671_v41  ;;  %v3721_v41 = vsel %vm15352_vm13, %v3718_v46, %v3720_v17  ;;  %v15355_v60 = vld [vmem:[#allocation32_spill] sm:$0xff] }
 0xf80   : > { %vm3549_vm1 = vcmp.ge.f32.partialorder %v3533_v21, 0.0  ;;  %v3565_v10 = vmul.f32 0.1, %v3533_v21  ;;  %vm15356_vm13 = vnez %v15355_v60 }
 0xf81   : > { %v3504_v44 = vsub.f32 1.5, %v3503_v9  ;;  %4076 = vmatmul.bf16.gmra.mxu0 %v3794_v1 }
 0xf82   : > { %v9954_v55 = vpop.eup %9953  ;;  %v3581_v24 = vsel %vm3549_vm1, %v3533_v21, %v3565_v10 }
 0xf83   : > { %v3505_v5 = vmul.f32 %v9952_v42, %v3504_v44  ;;  %v3511_v22 = vmul.f32 %v9954_v55, %v3358_v15  ;;  %v3674_v54 = vrot.slane %v3581_v24, 1  ;;  %v3722_v40 = vrot.slane %v3581_v24, 7 }
 0xf84   : > { %v3796_v39 = vpack.c.bf16 %v3581_v24, %v3580_v8  ;;  %vm3517_vm10 = vweird.f32 %v9954_v55 }
 0xf85   : > { %v3509_v57 = vsel %vm3508_vm11, %v9952_v42, %v3505_v5  ;;  %v3512_v53 = vmul.f32 %v9954_v55, %v3511_v22  ;;  %v3675_v32 = vsel %vm15351_vm12, %v3672_v58, %v3674_v54  ;;  %v3723_v38 = vsel %vm15353_vm8, %v3720_v17, %v3722_v40  ;;  %vm3518_vm11 = vmor %vm3516_vm15, %vm3517_vm10 }
 0xf86   : > { %v3534_v6 = vmul.f32 %v3509_v57, %v12348_v20  ;;  %4032 = vmatmul.bf16.gmra.mxu2 %v3796_v39  ;;  %v3757_v19 = vsel %vm15158_vm3, %v3675_v32, %v3721_v41  ;;  %vm15358_vm10 = vcmask 1040384   ;;  %v15363_v39 = vld [vmem:[#allocation34_spill] sm:$0xff] }
 0xf87   : > { %v3513_v59 = vmul.f32 0.5, %v3512_v53  ;;  %v3795_v18 = vpack.c.bf16 %v3723_v38, %v3757_v19  ;;  %vm15359_vm15 = vmmov %vm15358_vm10 }
 0xf88   : > { %vm3550_vm1 = vcmp.ge.f32.partialorder %v3534_v6, 0.0  ;;  %v3566_v12 = vmul.f32 0.1, %v3534_v6 }
 0xf89   : > { %v3514_v3 = vsub.f32 1.5, %v3513_v59  ;;  %3983 = vmatmul.bf16.gmra.mxu1 %v3795_v18 }
 0xf8a   : > { %v3582_v42 = vsel %vm3550_vm1, %v3534_v6, %v3566_v12  ;;  %vm15357_vm1 = vmmov %vm15351_vm12 }
 0xf8b   : > { %v3515_v8 = vmul.f32 %v9954_v55, %v3514_v3  ;;  %v3676_v58 = vrot.slane %v3582_v42, 1  ;;  %v3724_v9 = vrot.slane %v3582_v42, 7 }
 0xf8d   : > { %v3519_v46 = vsel %vm3518_vm11, %v9954_v55, %v3515_v8  ;;  %v3677_v20 = vsel %vm15351_vm12, %v3674_v54, %v3676_v58  ;;  %v3725_v55 = vsel %vm15358_vm10, %v3722_v40, %v3724_v9  ;;  %vm15362_vm12 = vmmov %vm15357_vm1 }
 0xf8e   : > { %v3535_v33 = vmul.f32 %v3519_v46, %v12351_v16  ;;  %v3774_v28 = vsel %vm15356_vm13, %v3723_v38, %v3677_v20  ;;  %v15360_v16 = vld [vmem:[#allocation33_spill] sm:$0xff]  ;;  %vm15364_vm13 = vnez %v15363_v39 }
 0xf8f   : > { %v3797_v21 = vpack.c.bf16 %v3774_v28, %v3675_v32  ;;  %vm15361_vm11 = vnez %v15360_v16 }
 0xf90   : > { %vm3551_vm8 = vcmp.ge.f32.partialorder %v3535_v33, 0.0  ;;  %v3567_v51 = vmul.f32 0.1, %v3535_v33 }
 0xf91   : > { %4081 = vmatmul.bf16.gmra.mxu0 %v3797_v21 }
 0xf92   : > { %v3583_v1 = vsel %vm3551_vm8, %v3535_v33, %v3567_v51  ;;  %vm15374_vm8 = vcmask 64512  }
 0xf93   : > { %v3799_v10 = vpack.c.bf16 %v3583_v1, %v3582_v42  ;;  %v3678_v44 = vrot.slane %v3583_v1, 1  ;;  %v3726_v17 = vrot.slane %v3583_v1, 7 }
 0xf95   : > { %v3679_v15 = vsel %vm15357_vm1, %v3676_v58, %v3678_v44  ;;  %v3727_v24 = vsel %vm15359_vm15, %v3724_v9, %v3726_v17  ;;  %v3696_v54 = vsel %vm15362_vm12, %v3678_v44, %v3583_v1  ;;  %vm15375_vm1 = vmmov %vm15374_vm8 }
 0xf96   : > { %4037 = vmatmul.bf16.gmra.mxu2 %v3799_v10  ;;  %v3759_v5 = vsel %vm15361_vm11, %v3679_v15, %v3725_v55  ;;  %v3776_v57 = vsel %vm15364_vm13, %v3727_v24, %v3696_v54  ;;  %vm15376_vm10 = vmmov %vm15375_vm1 }
 0xf97   : > { %v3798_v22 = vpack.c.bf16 %v3727_v24, %v3759_v5  ;;  %v3800_v53 = vpack.c.bf16 %v3776_v57, %v3679_v15  ;;  %vm15377_vm15 = vmmov %vm15375_vm1 }
 0xf98   : > { %vm15378_vm12 = vmmov %vm15375_vm1 }
 0xf99   : > { %3988 = vmatmul.bf16.gmra.mxu1 %v3798_v22  ;;  %vm15392_vm13 = vmmov %vm15375_vm1 }
 0xf9a   : > { %vm15393_vm11 = vmmov %vm15375_vm1 }
 0xfa1   : > { %4086 = vmatmul.bf16.gmra.mxu0 %v3800_v53 }
 0xfa6   : > { %v12650_v32 = vpop.f32.mrf.mxu1 }
 0xfa9   : > { %v12652_v41 = vpop.f32.mrf.mxu2 }
 0xfae   : > { %v12654_v40 = vpop.f32.mrf.mxu1  ;;  %v12656_v6 = vpop.f32.mrf.mxu0 }
 0xfb1   : > { %v12658_v38 = vpop.f32.mrf.mxu2 }
 0xfb6   : > { %v12660_v19 = vpop.f32.mrf.mxu1  ;;  %v12662_v59 = vpop.f32.mrf.mxu0 }
 0xfb9   : > { %v12664_v18 = vpop.f32.mrf.mxu2 }
 0xfbe   : > { %v12666_v12 = vpop.f32.mrf.mxu1  ;;  %v12668_v3 = vpop.f32.mrf.mxu0 }
 0xfc1   : > { %v12670_v42 = vpop.f32.mrf.mxu2 }
 0xfc6   : > { %v12672_v8 = vpop.f32.mrf.mxu1  ;;  %v12674_v58 = vpop.f32.mrf.mxu0 }
 0xfc9   : > { %v12676_v46 = vpop.f32.mrf.mxu2 }
 0xfce   : > { %v3966_v20 = vpop.f32.mrf.mxu1  ;;  %v12678_v33 = vpop.f32.mrf.mxu0 }
 0xfd1   : > { %v4015_v28 = vpop.f32.mrf.mxu2 }
 0xfd6   : > { %v3969_v21 = vpop.f32.mrf.mxu1  ;;  %v4064_v51 = vpop.f32.mrf.mxu0 }
 0xfd9   : > { %v4018_v9 = vpop.f32.mrf.mxu2 }
 0xfde   : > { %v3971_v1 = vpop.f32.mrf.mxu1  ;;  %v4067_v10 = vpop.f32.mrf.mxu0 }
 0xfe1   : > { %v4020_v44 = vpop.f32.mrf.mxu2 }
 0xfe6   : > { %v3974_v17 = vpop.f32.mrf.mxu1  ;;  %v4069_v15 = vpop.f32.mrf.mxu0 }
 0xfe9   : > { %v4023_v55 = vpop.f32.mrf.mxu2 }
 0xfee   : > { %v3976_v24 = vpop.f32.mrf.mxu1  ;;  %v4072_v5 = vpop.f32.mrf.mxu0 }
 0xff1   : > { %v4025_v22 = vpop.f32.mrf.mxu2 }
 0xff6   : > { %v3979_v54 = vpop.f32.mrf.mxu1  ;;  %v4074_v57 = vpop.f32.mrf.mxu0 }
 0xff9   : > { %v4028_v53 = vpop.f32.mrf.mxu2 }
 0xffe   : > { %v3981_v39 = vpop.f32.mrf.mxu1  ;;  %v4077_v16 = vpop.f32.mrf.mxu0 }
0x1001   : > { %v4030_v60 = vpop.f32.mrf.mxu2 }
0x1002   : > { %v4031_v26 = vadd.f32 %v4030_v60, %v3981_v39  ;;  %v4006_v60 = vadd.f32 %v12658_v38, %v12654_v40  ;;  %v4004_v39 = vadd.f32 %v12652_v41, %v12650_v32  ;;  %v12743_v40 = vld [vmem:[#allocation8] sm:$0xff]  ;;  %v15365_v32 = vld [vmem:[#allocation51_spill] sm:$0xff]  ;;  %v15366_v41 = vld [vmem:[#allocation52_spill] sm:$0xff] }
0x1003   : > { %v15368_v38 = vld [vmem:[#allocation54_spill] sm:$0xff] }
0x1006   : > { %v3984_v14 = vpop.f32.mrf.mxu1  ;;  %v4079_v7 = vpop.f32.mrf.mxu0 }
0x1009   : > { %v4033_v29 = vpop.f32.mrf.mxu2 }
0x100a   : > { %v4034_v23 = vadd.f32 %v4033_v29, %v3984_v14 }
0x100e   : > { %v4082_v49 = vpop.f32.mrf.mxu0  ;;  %v3986_v0 = vpop.f32.mrf.mxu1 }
0x100f   : > { %v12688_v35 = vadd.f32 %v4082_v49, %v4034_v23  ;;  %v4016_v23 = vadd.f32 %v4015_v28, %v3966_v20  ;;  %v4011_v49 = vadd.f32 %v12670_v42, %v12666_v12  ;;  %v12735_v12 = vadd.f32 %v12662_v59, %v4006_v60  ;;  %v12762_v59 = vld [vmem:[#allocation10] sm:$0xff]  ;;  %v12774_v42 = vld [vmem:[#allocation10 + $0x18] sm:$0xff]  ;;  %v12798_v28 = vld [vmem:[#allocation10 + $0x48] sm:$0xff] }
0x1010   : > { %v12790_v20 = vld [vmem:[#allocation10 + $0x38] sm:$0xff] }
0x1011   : > { %v4035_v61 = vpop.f32.mrf.mxu2  ;;  %v12723_v14 = vadd.f32 %v12674_v58, %v4011_v49  ;;  %v12782_v58 = vld [vmem:[#allocation10 + $0x28] sm:$0xff] }
0x1012   : > { %v4036_v11 = vadd.f32 %v4035_v61, %v3986_v0  ;;  %v4021_v61 = vadd.f32 %v4020_v44, %v3971_v1  ;;  %v12814_v1 = vld [vmem:[#allocation10 + $0x68] sm:$0xff]  ;;  %v12822_v44 = vld [vmem:[#allocation10 + $0x78] sm:$0xff] }
0x1016   : > { %v4084_v47 = vpop.f32.mrf.mxu0  ;;  %v3989_v31 = vpop.f32.mrf.mxu1 }
0x1017   : > { %v12685_v56 = vadd.f32 %v4084_v47, %v4036_v11 }
0x1019   : > { %v4038_v34 = vpop.f32.mrf.mxu2 }
0x101a   : > { %v4039_v43 = vadd.f32 %v4038_v34, %v3989_v31  ;;  %v4026_v31 = vadd.f32 %v4025_v22, %v3976_v24  ;;  %v4024_v34 = vadd.f32 %v4023_v55, %v3974_v17 }
0x101c   : > { %v12697_v47 = vadd.f32 %v4074_v57, %v4026_v31  ;;  %v12700_v0 = vadd.f32 %v4072_v5, %v4024_v34 }
0x101e   : > { %v4087_v48 = vpop.f32.mrf.mxu0  ;;  %v3991_v27 = vpop.f32.mrf.mxu1 }
0x101f   : > { %v12682_v63 = vadd.f32 %v4087_v48, %v4039_v43  ;;  %v4014_v43 = vadd.f32 %v12676_v46, %v12672_v8  ;;  %v12778_v8 = vld [vmem:[#allocation10 + $0x20] sm:$0xff]  ;;  %v12786_v46 = vld [vmem:[#allocation10 + $0x30] sm:$0xff] }
0x1021   : > { %v4040_v36 = vpop.f32.mrf.mxu2  ;;  %v12717_v29 = vadd.f32 %v12678_v33, %v4014_v43  ;;  %v12794_v33 = vld [vmem:[#allocation10 + $0x40] sm:$0xff] }
0x1022   : > { %v4041_v52 = vadd.f32 %v4040_v36, %v3991_v27  ;;  %v4029_v27 = vadd.f32 %v4028_v53, %v3979_v54  ;;  %v12691_v36 = vadd.f32 %v4079_v7, %v4031_v26  ;;  %v12703_v26 = vadd.f32 %v4069_v15, %v4021_v61 }
0x1023   : > { %v4009_v7 = vadd.f32 %v12664_v18, %v12660_v19  ;;  %v12739_v19 = vadd.f32 %v12656_v6, %v4004_v39  ;;  %v15367_v6 = vld [vmem:[#allocation53_spill] sm:$0xff]  ;;  %v12766_v18 = vld [vmem:[#allocation10 + $0x8] sm:$0xff] }
0x1024   : > { %v12694_v48 = vadd.f32 %v4077_v16, %v4029_v27 }
0x1025   : > { %v12729_v16 = vadd.f32 %v12668_v3, %v4009_v7  ;;  %v12770_v3 = vld [vmem:[#allocation10 + $0x10] sm:$0xff] }
0x1026   : > { %v4089_v37 = vpop.f32.mrf.mxu0 }
0x1027   : > { %v12680_v50 = vadd.f32 %v4089_v37, %v4041_v52  ;;  %v4019_v52 = vadd.f32 %v4018_v9, %v3969_v21  ;;  %v12711_v37 = vadd.f32 %v4064_v51, %v4016_v23  ;;  %v12802_v21 = vld [vmem:[#allocation10 + $0x50] sm:$0xff]  ;;  %v12806_v51 = vld [vmem:[#allocation10 + $0x58] sm:$0xff]  ;;  %v12810_v9 = vld [vmem:[#allocation10 + $0x60] sm:$0xff] }
0x1029   : > { %4092 = vmatpush.msrb.mxu3 %v12680_v50  ;;  %v12706_v11 = vadd.f32 %v4067_v10, %v4019_v52  ;;  %v12818_v10 = vld [vmem:[#allocation10 + $0x70] sm:$0xff] }
0x102b   : > { %4093 = vmatpush.msrb.mxu3 %v12682_v63 }
0x102d   : > { %4094 = vmatpush.msrb.mxu3 %v12685_v56 }
0x102f   : > { %4095 = vmatpush.msrb.mxu3 %v12688_v35 }
0x1031   : > { %4096 = vmatpush.msrb.mxu3 %v12691_v36 }
0x1033   : > { %4097 = vmatpush.msrb.mxu3 %v12694_v48 }
0x1035   : > { %4098 = vmatpush.msrb.mxu3 %v12697_v47 }
0x1037   : > { %4099 = vmatpush.msrb.mxu3 %v12700_v0 }
0x1039   : > { %4100 = vmatpush.msrb.mxu3 %v12703_v26 }
0x103b   : > { %4101 = vmatpush.msrb.mxu3 %v12706_v11 }
0x103d   : > { %4102 = vmatpush.msrb.mxu3 %v12711_v37 }
0x103f   : > { %4103 = vmatpush.msrb.mxu3 %v12717_v29 }
0x1041   : > { %4104 = vmatpush.msrb.mxu3 %v12723_v14 }
0x1043   : > { %4105 = vmatpush.msrb.mxu3 %v12729_v16 }
0x1045   : > { %4106 = vmatpush.msrb.mxu3 %v12735_v12 }
0x1047   : > { %4107 = vmatpush.msrb.mxu3 %v12739_v19 }
0x1048   : > { %4108 = vmatmul.f32.vlgmr.msrb.gmra.mxu3 %v12743_v40 }
0x1049   : > { %4112 = vmatpush.msra.mxu3 %v12470_v25  ;;  %v15369_v25 = vld [vmem:[#allocation55_spill] sm:$0xff] }
0x104b   : > { %4113 = vmatpush.msra.mxu3 %v12473_v30  ;;  %v15370_v30 = vld [vmem:[#allocation56_spill] sm:$0xff] }
0x104d   : > { %4114 = vmatpush.msra.mxu3 %v12481_v13  ;;  %v15371_v13 = vld [vmem:[#allocation57_spill] sm:$0xff] }
0x104f   : > { %4115 = vmatpush.msra.mxu3 %v12490_v2  ;;  %v15372_v2 = vld [vmem:[#allocation58_spill] sm:$0xff] }
0x1051   : > { %4116 = vmatpush.msra.mxu3 %v12501_v62  ;;  %v15373_v62 = vld [vmem:[#allocation59_spill] sm:$0xff] }
0x1053   : > { %4117 = vmatpush.msra.mxu3 %v12504_v4 }
0x1055   : > { %4118 = vmatpush.msra.mxu3 %v12511_v45 }
0x1057   : > { %4119 = vmatpush.msra.mxu3 %v15365_v32 }
0x1059   : > { %4120 = vmatpush.msra.mxu3 %v15366_v41 }
0x105b   : > { %4121 = vmatpush.msra.mxu3 %v15367_v6 }
0x105d   : > { %4122 = vmatpush.msra.mxu3 %v15368_v38 }
0x105f   : > { %4123 = vmatpush.msra.mxu3 %v15369_v25 }
0x1061   : > { %4124 = vmatpush.msra.mxu3 %v15370_v30 }
0x1063   : > { %4125 = vmatpush.msra.mxu3 %v15371_v13 }
0x1065   : > { %4126 = vmatpush.msra.mxu3 %v15372_v2 }
0x1067   : > { %4127 = vmatpush.msra.mxu3 %v15373_v62 }
0x10cb   : > { %v4109_v4 = vpop.f32.mrf.mxu3 }
0x10cc   : > { %4128 = vmatmul.f32.vlgmr.msra.gmra.mxu3 %v4109_v4 }
0x114f   : > { %v4129_v45 = vpop.f32.mrf.mxu3 }
0x1150   : > { %4147 = vmatpush.msrb.mxu3 %v4129_v45 }
0x1151   : > { %9010 = vmatmul.msk.f32.vlgmr.msrb.gmra.mxu3 %vm15374_vm8, %v12762_v59  ;;  %vm15379_vm8 = vmmov %vm15375_vm1 }
0x1159   : > { %9011 = vmatmul.msk.f32.gmra.mxu3 %vm15375_vm1, %v12766_v18 }
0x1161   : > { %9012 = vmatmul.msk.f32.gmra.mxu3 %vm15376_vm10, %v12770_v3  ;;  %vm15380_vm10 = vmmov %vm15375_vm1 }
0x1169   : > { %9013 = vmatmul.msk.f32.gmra.mxu3 %vm15377_vm15, %v12774_v42  ;;  %vm15381_vm15 = vmmov %vm15375_vm1 }
0x1171   : > { %9014 = vmatmul.msk.f32.gmra.mxu3 %vm15378_vm12, %v12778_v8  ;;  %vm15382_vm12 = vmmov %vm15375_vm1 }
0x1179   : > { %9015 = vmatmul.msk.f32.gmra.mxu3 %vm15379_vm8, %v12782_v58  ;;  %vm15383_vm8 = vmmov %vm15375_vm1 }
0x1181   : > { %9016 = vmatmul.msk.f32.gmra.mxu3 %vm15375_vm1, %v12786_v46 }
0x1189   : > { %9017 = vmatmul.msk.f32.gmra.mxu3 %vm15380_vm10, %v12790_v20  ;;  %vm15384_vm10 = vmmov %vm15375_vm1 }
0x1191   : > { %9018 = vmatmul.msk.f32.gmra.mxu3 %vm15381_vm15, %v12794_v33  ;;  %vm15385_vm15 = vmmov %vm15375_vm1 }
0x1199   : > { %9019 = vmatmul.msk.f32.gmra.mxu3 %vm15382_vm12, %v12798_v28  ;;  %vm15386_vm12 = vmmov %vm15375_vm1 }
0x11a1   : > { %9020 = vmatmul.msk.f32.gmra.mxu3 %vm15383_vm8, %v12802_v21  ;;  %vm15387_vm8 = vmmov %vm15375_vm1 }
0x11a9   : > { %9021 = vmatmul.msk.f32.gmra.mxu3 %vm15375_vm1, %v12806_v51 }
0x11b1   : > { %9022 = vmatmul.msk.f32.gmra.mxu3 %vm15384_vm10, %v12810_v9  ;;  %vm15388_vm10 = vmmov %vm15375_vm1 }
0x11b9   : > { %9023 = vmatmul.msk.f32.gmra.mxu3 %vm15385_vm15, %v12814_v1  ;;  %vm15389_vm15 = vmmov %vm15375_vm1 }
0x11c1   : > { %9024 = vmatmul.msk.f32.gmra.mxu3 %vm15386_vm12, %v12818_v10  ;;  %vm15390_vm12 = vmmov %vm15375_vm1 }
0x11c9   : > { %9025 = vmatmul.msk.f32.gmra.mxu3 %vm15387_vm8, %v12822_v44  ;;  %vm15391_vm8 = vmmov %vm15375_vm1 }
0x11d4   : > { %v4149_v17 = vpop.f32.mrf.mxu3 }
0x11dc   : > { %v4152_v15 = vpop.f32.mrf.mxu3 }
0x11e4   : > { %v4155_v55 = vpop.f32.mrf.mxu3 }
0x11ec   : > { %v4158_v24 = vpop.f32.mrf.mxu3 }
0x11f4   : > { %v4161_v5 = vpop.f32.mrf.mxu3 }
0x11fc   : > { %v4164_v22 = vpop.f32.mrf.mxu3 }
0x1204   : > { %v4167_v54 = vpop.f32.mrf.mxu3 }
0x120c   : > { %v4170_v57 = vpop.f32.mrf.mxu3 }
0x1214   : > { %v4173_v53 = vpop.f32.mrf.mxu3 }
0x121c   : > { %v4176_v27 = vpop.f32.mrf.mxu3 }
0x1224   : > { %v4179_v31 = vpop.f32.mrf.mxu3 }
0x122c   : > { %v4182_v34 = vpop.f32.mrf.mxu3 }
0x122d   : > { %v12843_v6 = vsub.f32 %v12691_v36, %v4182_v34  ;;  %v12858_v36 = vsub.f32 %v12700_v0, %v4173_v53  ;;  %v12873_v0 = vsub.f32 %v12711_v37, %v4164_v22  ;;  %v12888_v37 = vsub.f32 %v12729_v16, %v4155_v55  ;;  %v9659_v22 = vld [vmem:[#allocation5 + $0x198] sm:$0xff] }
0x122f   : > { %v4224_v38 = vmul.f32 %v12843_v6, %v12843_v6  ;;  %v4221_v13 = vmul.f32 %v12858_v36, %v12858_v36  ;;  %v4218_v4 = vmul.f32 %v12873_v0, %v12873_v0 }
0x1234   : > { %v4185_v61 = vpop.f32.mrf.mxu3 }
0x1235   : > { %v12838_v32 = vsub.f32 %v12688_v35, %v4185_v61  ;;  %v12853_v35 = vsub.f32 %v12697_v47, %v4176_v27  ;;  %v12868_v47 = vsub.f32 %v12706_v11, %v4167_v54  ;;  %v12883_v11 = vsub.f32 %v12723_v14, %v4158_v24  ;;  %v9666_v54 = vld [vmem:[#allocation5 + $0x1d0] sm:$0xff]  ;;  %v9676_v61 = vld [vmem:[#allocation5 + $0x220] sm:$0xff] }
0x1236   : > { %v12898_v14 = vsub.f32 %v12739_v19, %v4149_v17  ;;  %v4215_v24 = vmul.f32 %v12888_v37, %v12888_v37  ;;  %v9671_v19 = vld [vmem:[#allocation5 + $0x1f8] sm:$0xff] }
0x1237   : > { %v4222_v30 = vmul.f32 %v12853_v35, %v12853_v35  ;;  %v4219_v62 = vmul.f32 %v12868_v47, %v12868_v47  ;;  %4936 = vmatpush.bf16.msra.mxu0 %v9671_v19 }
0x1238   : > { %v4213_v55 = vmul.f32 %v12898_v14, %v12898_v14 }
0x123c   : > { %v4188_v52 = vpop.f32.mrf.mxu3 }
0x123d   : > { %v12833_v60 = vsub.f32 %v12685_v56, %v4188_v52  ;;  %v12848_v56 = vsub.f32 %v12694_v48, %v4179_v31  ;;  %v12863_v48 = vsub.f32 %v12703_v26, %v4170_v57  ;;  %v12878_v26 = vsub.f32 %v12717_v29, %v4161_v5  ;;  %v9677_v57 = vld [vmem:[#allocation5 + $0x228] sm:$0xff] }
0x123e   : > { %v12893_v29 = vsub.f32 %v12735_v12, %v4152_v15  ;;  %v4216_v5 = vmul.f32 %v12883_v11, %v12883_v11 }
0x123f   : > { %v4223_v25 = vmul.f32 %v12848_v56, %v12848_v56  ;;  %v4220_v2 = vmul.f32 %v12863_v48, %v12863_v48  ;;  %v4217_v45 = vmul.f32 %v12878_v26, %v12878_v26 }
0x1240   : > { %v4214_v16 = vmul.f32 %v12893_v29, %v12893_v29 }
0x1244   : > { %v4191_v23 = vpop.f32.mrf.mxu3 }
0x1245   : > { %v12827_v49 = vsub.f32 %v12682_v63, %v4191_v23  ;;  %v4226_v63 = vmul.f32 %v12833_v60, %v12833_v60 }
0x1247   : > { %v4227_v41 = vmul.f32 %v12827_v49, %v12827_v49 }
0x124c   : > { %v4194_v43 = vpop.f32.mrf.mxu3 }
0x124d   : > { %v12830_v7 = vsub.f32 %v12680_v50, %v4194_v43  ;;  %v4225_v50 = vmul.f32 %v12838_v32, %v12838_v32  ;;  %v9658_v43 = vld [vmem:[#allocation5 + $0x190] sm:$0xff] }
0x124f   : > { %v4228_v39 = vmul.f32 %v12830_v7, %v12830_v7 }
0x1251   : > { %4229 = vmatpush.msrb.mxu1 %v4228_v39  ;;  %v9665_v39 = vld [vmem:[#allocation5 + $0x1c8] sm:$0xff] }
0x1253   : > { %4230 = vmatpush.msrb.mxu1 %v4227_v41 }
0x1255   : > { %4231 = vmatpush.msrb.mxu1 %v4226_v63 }
0x1257   : > { %4232 = vmatpush.msrb.mxu1 %v4225_v50 }
0x1259   : > { %4233 = vmatpush.msrb.mxu1 %v4224_v38 }
0x125b   : > { %4234 = vmatpush.msrb.mxu1 %v4223_v25  ;;  %v9657_v25 = vld [vmem:[#allocation5 + $0x188] sm:$0xff] }
0x125d   : > { %4235 = vmatpush.msrb.mxu1 %v4222_v30  ;;  %v9664_v30 = vld [vmem:[#allocation5 + $0x1c0] sm:$0xff] }
0x125f   : > { %4236 = vmatpush.msrb.mxu1 %v4221_v13  ;;  %v9675_v13 = vld [vmem:[#allocation5 + $0x218] sm:$0xff] }
0x1261   : > { %4237 = vmatpush.msrb.mxu1 %v4220_v2 }
0x1263   : > { %4238 = vmatpush.msrb.mxu1 %v4219_v62 }
0x1265   : > { %4239 = vmatpush.msrb.mxu1 %v4218_v4 }
0x1267   : > { %4240 = vmatpush.msrb.mxu1 %v4217_v45 }
0x1269   : > { %4241 = vmatpush.msrb.mxu1 %v4216_v5  ;;  %v9674_v5 = vld [vmem:[#allocation5 + $0x210] sm:$0xff] }
0x126b   : > { %4242 = vmatpush.msrb.mxu1 %v4215_v24 }
0x126d   : > { %4243 = vmatpush.msrb.mxu1 %v4214_v16 }
0x126f   : > { %4244 = vmatpush.msrb.mxu1 %v4213_v55  ;;  %v15401_v55 = vld [vmem:[#allocation39_spill] sm:$0xff] }
0x1270   : > { %4245 = vmatmul.f32.vlgmr.msrb.gmra.mxu1 %v12743_v40 }
0x12ed   : > { %v4246_v12 = vpop.f32.mrf.mxu1 }
0x12ee   : > { %4265 = vmatmul.f32.vlgmr.msra.gmra.mxu2 %v4246_v12 }
0x1371   : > { %v4266_v15 = vpop.f32.mrf.mxu2 }
0x1372   : > { %4284 = vmatpush.msra.mxu1 %v4266_v15 }
0x1373   : > { %9026 = vmatmul.msk.f32.vlgmr.msra.gmra.mxu1 %vm15375_vm1, %v12762_v59 }
0x137b   : > { %9027 = vmatmul.msk.f32.gmra.mxu1 %vm15388_vm10, %v12766_v18  ;;  %vm15394_vm10 = vmmov %vm15375_vm1  ;;  %v9663_v18 = vld [vmem:[#allocation5 + $0x1b8] sm:$0xff] }
0x137c   : > { %4887 = vmatpush.bf16.msrb.mxu2 %v9663_v18  ;;  %v15403_v18 = vld [vmem:[#allocation38_spill] sm:$0xff] }
0x1383   : > { %9028 = vmatmul.msk.f32.gmra.mxu1 %vm15389_vm15, %v12770_v3  ;;  %vm15395_vm15 = vmmov %vm15375_vm1  ;;  %v9670_v3 = vld [vmem:[#allocation5 + $0x1f0] sm:$0xff] }
0x1384   : > { %4937 = vmatpush.bf16.msra.mxu0 %v9670_v3 }
0x138b   : > { %9029 = vmatmul.msk.f32.gmra.mxu1 %vm15390_vm12, %v12774_v42  ;;  %vm15396_vm12 = vmmov %vm15375_vm1  ;;  %v9662_v42 = vld [vmem:[#allocation5 + $0x1b0] sm:$0xff] }
0x138c   : > { %4888 = vmatpush.bf16.msrb.mxu2 %v9662_v42 }
0x1393   : > { %9030 = vmatmul.msk.f32.gmra.mxu1 %vm15391_vm8, %v12778_v8  ;;  %vm15397_vm8 = vmmov %vm15375_vm1  ;;  %v9669_v8 = vld [vmem:[#allocation5 + $0x1e8] sm:$0xff] }
0x1394   : > { %4938 = vmatpush.bf16.msra.mxu0 %v9669_v8  ;;  %v9673_v8 = vld [vmem:[#allocation5 + $0x208] sm:$0xff] }
0x139b   : > { %9031 = vmatmul.msk.f32.gmra.mxu1 %vm15392_vm13, %v12782_v58  ;;  %vm15398_vm13 = vmmov %vm15375_vm1  ;;  %v9661_v58 = vld [vmem:[#allocation5 + $0x1a8] sm:$0xff] }
0x139c   : > { %4889 = vmatpush.bf16.msrb.mxu2 %v9661_v58 }
0x13a3   : > { %9032 = vmatmul.msk.f32.gmra.mxu1 %vm15393_vm11, %v12786_v46  ;;  %vm15399_vm11 = vmmov %vm15375_vm1  ;;  %v9668_v46 = vld [vmem:[#allocation5 + $0x1e0] sm:$0xff] }
0x13a4   : > { %4939 = vmatpush.bf16.msra.mxu0 %v9668_v46 }
0x13ab   : > { %9033 = vmatmul.msk.f32.gmra.mxu1 %vm15375_vm1, %v12790_v20  ;;  %v9679_v20 = vld [vmem:[#allocation5 + $0x238] sm:$0xff] }
0x13ac   : > { %4985 = vmatpush.bf16.msra.mxu3 %v9679_v20 }
0x13b3   : > { %9034 = vmatmul.msk.f32.gmra.mxu1 %vm15394_vm10, %v12794_v33  ;;  %vm15400_vm10 = vmmov %vm15375_vm1 }
0x13bb   : > { %9035 = vmatmul.msk.f32.gmra.mxu1 %vm15395_vm15, %v12798_v28 }
0x13c3   : > { %9036 = vmatmul.msk.f32.gmra.mxu1 %vm15396_vm12, %v12802_v21 }
0x13cb   : > { %9037 = vmatmul.msk.f32.gmra.mxu1 %vm15397_vm8, %v12806_v51  ;;  %v9678_v51 = vld [vmem:[#allocation5 + $0x230] sm:$0xff] }
0x13cc   : > { %4986 = vmatpush.bf16.msra.mxu3 %v9678_v51 }
0x13d0   : > { %4987 = vmatpush.bf16.msra.mxu3 %v9677_v57 }
0x13d3   : > { %9038 = vmatmul.msk.f32.gmra.mxu1 %vm15398_vm13, %v12810_v9 }
0x13d4   : > { %4988 = vmatpush.bf16.msra.mxu3 %v9676_v61 }
0x13d8   : > { %4989 = vmatpush.bf16.msra.mxu3 %v9675_v13 }
0x13db   : > { %9039 = vmatmul.msk.f32.gmra.mxu1 %vm15399_vm11, %v12814_v1  ;;  %v9660_v1 = vld [vmem:[#allocation5 + $0x1a0] sm:$0xff] }
0x13dc   : > { %4890 = vmatpush.bf16.msrb.mxu2 %v9660_v1  ;;  %4990 = vmatpush.bf16.msra.mxu3 %v9674_v5 }
0x13e0   : > { %4891 = vmatpush.bf16.msrb.mxu2 %v9659_v22  ;;  %4991 = vmatpush.bf16.msra.mxu3 %v9673_v8 }
0x13e3   : > { %9040 = vmatmul.msk.f32.gmra.mxu1 %vm15375_vm1, %v12818_v10  ;;  %v9667_v10 = vld [vmem:[#allocation5 + $0x1d8] sm:$0xff] }
0x13e4   : > { %4940 = vmatpush.bf16.msra.mxu0 %v9667_v10  ;;  %4892 = vmatpush.bf16.msrb.mxu2 %v9658_v43 }
0x13e8   : > { %4941 = vmatpush.bf16.msra.mxu0 %v9666_v54  ;;  %4893 = vmatpush.bf16.msrb.mxu2 %v9657_v25 }
0x13eb   : > { %9041 = vmatmul.msk.f32.gmra.mxu1 %vm15400_vm10, %v12822_v44 }
0x13ec   : > { %4942 = vmatpush.bf16.msra.mxu0 %v9665_v39 }
0x13f0   : > { %v4286_v40 = vpop.f32.mrf.mxu1  ;;  %4943 = vmatpush.bf16.msra.mxu0 %v9664_v30 }
0x13f1   : > { %v4287_v59 = vadd.f32 1e-05, %v4286_v40 }
0x13f3   : > { %9955 = vrsqrt.f32 %v4287_v59  ;;  %vm4340_vm12 = vweird.f32 %v4287_v59 }
0x13f8   : > { %v4289_v33 = vpop.f32.mrf.mxu1 }
0x13f9   : > { %v9956_v28 = vpop.eup %9955  ;;  %v4290_v21 = vadd.f32 1e-05, %v4289_v33 }
0x13fa   : > { %v4335_v9 = vmul.f32 %v9956_v28, %v4287_v59  ;;  %vm4341_vm15 = vweird.f32 %v9956_v28 }
0x13fb   : > { %9957 = vrsqrt.f32 %v4290_v21  ;;  %vm4342_vm8 = vmor %vm4340_vm12, %vm4341_vm15  ;;  %vm4350_vm11 = vweird.f32 %v4290_v21 }
0x13fc   : > { %v4336_v44 = vmul.f32 %v9956_v28, %v4335_v9  ;;  %v9672_v9 = vld [vmem:[#allocation5 + $0x200] sm:$0xff] }
0x13fd   : > { %4992 = vmatpush.bf16.msra.mxu3 %v9672_v9 }
0x13fe   : > { %v4337_v17 = vmul.f32 0.5, %v4336_v44 }
0x1400   : > { %v4338_v53 = vsub.f32 1.5, %v4337_v17  ;;  %v4292_v27 = vpop.f32.mrf.mxu1 }
0x1401   : > { %v9958_v31 = vpop.eup %9957  ;;  %v4293_v34 = vadd.f32 1e-05, %v4292_v27 }
0x1402   : > { %v4339_v52 = vmul.f32 %v9956_v28, %v4338_v53  ;;  %v4345_v23 = vmul.f32 %v9958_v31, %v4290_v21  ;;  %vm4351_vm13 = vweird.f32 %v9958_v31 }
0x1403   : > { %9959 = vrsqrt.f32 %v4293_v34  ;;  %vm4352_vm1 = vmor %vm4350_vm11, %vm4351_vm13  ;;  %vm4360_vm15 = vweird.f32 %v4293_v34  ;;  %vm15406_vm13 = vcmask 1040384  }
0x1404   : > { %v4343_v41 = vsel %vm4342_vm8, %v9956_v28, %v4339_v52  ;;  %v4346_v63 = vmul.f32 %v9958_v31, %v4345_v23  ;;  %vm15405_vm8 = vcmask 1046528   ;;  %vm15407_vm11 = vmmov %vm15406_vm13  ;;  %v15409_v52 = vld [vmem:[#allocation40_spill] sm:$0xff] }
0x1405   : > { %v4494_v38 = vmul.f32 %v4343_v41, %v12898_v14  ;;  %v9656_v14 = vld [vmem:[#allocation5 + $0x180] sm:$0xff] }
0x1406   : > { %v4347_v50 = vmul.f32 0.5, %v4346_v63  ;;  %4894 = vmatpush.bf16.msrb.mxu2 %v9656_v14 }
0x1407   : > { %v12941_v12 = vadd.f32 %v4494_v38, %v15401_v55 }
0x1408   : > { %v4348_v2 = vsub.f32 1.5, %v4347_v50  ;;  %v4295_v62 = vpop.f32.mrf.mxu1 }
0x1409   : > { %v9960_v4 = vpop.eup %9959  ;;  %v4296_v45 = vadd.f32 1e-05, %v4295_v62  ;;  %15402 = vst [vmem:[#allocation51_spill] sm:$0xff] %v12941_v12  ;;  %v4639_v42 = vrot.slane %v12941_v12, 7  ;;  %v4591_v20 = vrot.slane %v12941_v12, 1 }
0x140a   : > { %v4349_v24 = vmul.f32 %v9958_v31, %v4348_v2  ;;  %v4355_v16 = vmul.f32 %v9960_v4, %v4293_v34  ;;  %vm4361_vm10 = vweird.f32 %v9960_v4 }
0x140b   : > { %9961 = vrsqrt.f32 %v4296_v45  ;;  %vm4362_vm12 = vmor %vm4360_vm15, %vm4361_vm10  ;;  %v4686_v22 = vsel %vm15407_vm11, %v12941_v12, %v4639_v42  ;;  %vm4370_vm10 = vweird.f32 %v4296_v45 }
0x140c   : > { %v4353_v15 = vsel %vm4352_vm1, %v9958_v31, %v4349_v24  ;;  %v4356_v19 = vmul.f32 %v9960_v4, %v4355_v16  ;;  %v15413_v16 = vld [vmem:[#allocation41_spill] sm:$0xff] }
0x140d   : > { %v4495_v40 = vmul.f32 %v4353_v15, %v12893_v29 }
0x140e   : > { %v4357_v59 = vmul.f32 0.5, %v4356_v19 }
0x140f   : > { %v12945_v3 = vadd.f32 %v4495_v40, %v15403_v18 }
0x1410   : > { %v4358_v58 = vsub.f32 1.5, %v4357_v59  ;;  %v4298_v46 = vpop.f32.mrf.mxu1 }
0x1411   : > { %15404 = vst [vmem:[#allocation52_spill] sm:$0xff] %v12945_v3  ;;  %v9962_v33 = vpop.eup %9961  ;;  %v4592_v28 = vrot.slane %v12945_v3, 1  ;;  %v4299_v21 = vadd.f32 1e-05, %v4298_v46  ;;  %v4720_v29 = vpack.c.bf16 %v12945_v3, %v12941_v12  ;;  %v4640_v51 = vrot.slane %v12945_v3, 7 }
0x1412   : > { %v4359_v1 = vmul.f32 %v9960_v4, %v4358_v58  ;;  %v4365_v10 = vmul.f32 %v9962_v33, %v4296_v45  ;;  %vm4371_vm1 = vweird.f32 %v9962_v33 }
0x1413   : > { %9963 = vrsqrt.f32 %v4299_v21  ;;  %4944 = vmatmul.bf16.vlgmr.msra.gmra.mxu0 %v4720_v29  ;;  %v4593_v44 = vsel %vm15405_vm8, %v4591_v20, %v4592_v28  ;;  %v4641_v17 = vsel %vm15406_vm13, %v4639_v42, %v4640_v51  ;;  %vm4372_vm15 = vmor %vm4370_vm10, %vm4371_vm1  ;;  %vm4380_vm13 = vweird.f32 %v4299_v21 }
0x1414   : > { %v4363_v54 = vsel %vm4362_vm12, %v9960_v4, %v4359_v1  ;;  %v4366_v57 = vmul.f32 %v9962_v33, %v4365_v10  ;;  %v4687_v27 = vsel %vm10812_vm2, %v4593_v44, %v4686_v22  ;;  %vm15411_vm12 = vmmov %vm15405_vm8  ;;  %vm15416_vm10 = vcmask 1040384  }
0x1415   : > { %v4496_v31 = vmul.f32 %v4363_v54, %v12888_v37  ;;  %v4719_v61 = vpack.c.bf16 %v4641_v17, %v4687_v27  ;;  %vm15415_vm1 = vmmov %vm15411_vm12 }
0x1416   : > { %v4367_v34 = vmul.f32 0.5, %v4366_v57 }
0x1417   : > { %v12961_v23 = vadd.f32 %v4496_v31, %v15409_v52  ;;  %4895 = vmatmul.bf16.vlgmr.msrb.gmra.mxu2 %v4719_v61 }
0x1418   : > { %v4368_v43 = vsub.f32 1.5, %v4367_v34  ;;  %v4301_v39 = vpop.f32.mrf.mxu1 }
0x1419   : > { %15410 = vst [vmem:[#allocation53_spill] sm:$0xff] %v12961_v23  ;;  %v9964_v41 = vpop.eup %9963  ;;  %v4302_v63 = vadd.f32 1e-05, %v4301_v39  ;;  %v4594_v50 = vrot.slane %v12961_v23, 1  ;;  %v4642_v45 = vrot.slane %v12961_v23, 7 }
0x141a   : > { %v4369_v38 = vmul.f32 %v9962_v33, %v4368_v43  ;;  %v4375_v25 = vmul.f32 %v9964_v41, %v4299_v21  ;;  %vm4381_vm8 = vweird.f32 %v9964_v41  ;;  %v15419_v21 = vld [vmem:[#allocation42_spill] sm:$0xff] }
0x141b   : > { %9965 = vrsqrt.f32 %v4302_v63  ;;  %v4595_v37 = vsel %vm15411_vm12, %v4592_v28, %v4594_v50  ;;  %vm4382_vm11 = vmor %vm4380_vm13, %vm4381_vm8  ;;  %v4643_v46 = vsel %vm15416_vm10, %v4640_v51, %v4642_v45  ;;  %vm4390_vm8 = vweird.f32 %v4302_v63 }
0x141c   : > { %v4373_v30 = vsel %vm4372_vm15, %v9962_v33, %v4369_v38  ;;  %v4376_v13 = vmul.f32 %v9964_v41, %v4375_v25  ;;  %v4704_v62 = vsel %vm15316_vm0, %v4641_v17, %v4595_v37  ;;  %vm15417_vm15 = vmmov %vm15416_vm10  ;;  %v15423_v25 = vld [vmem:[#allocation43_spill] sm:$0xff] }
0x141d   : > { %v4497_v4 = vmul.f32 %v4373_v30, %v12883_v11  ;;  %v4721_v5 = vpack.c.bf16 %v4704_v62, %v4593_v44 }
0x141e   : > { %v4377_v24 = vmul.f32 0.5, %v4376_v13 }
0x141f   : > { %v12969_v55 = vadd.f32 %v4497_v4, %v15413_v16  ;;  %4993 = vmatmul.bf16.vlgmr.msra.gmra.mxu3 %v4721_v5 }
0x1420   : > { %v4378_v14 = vsub.f32 1.5, %v4377_v24  ;;  %v4304_v15 = vpop.f32.mrf.mxu1 }
0x1421   : > { %15414 = vst [vmem:[#allocation54_spill] sm:$0xff] %v12969_v55  ;;  %v9966_v19 = vpop.eup %9965  ;;  %v4305_v40 = vadd.f32 1e-05, %v4304_v15  ;;  %v4723_v59 = vpack.c.bf16 %v12969_v55, %v12961_v23  ;;  %v4596_v18 = vrot.slane %v12969_v55, 1  ;;  %v4644_v11 = vrot.slane %v12969_v55, 7 }
0x1422   : > { %v4379_v42 = vmul.f32 %v9964_v41, %v4378_v14  ;;  %v4385_v8 = vmul.f32 %v9966_v19, %v4302_v63  ;;  %vm4391_vm12 = vweird.f32 %v9966_v19 }
0x1423   : > { %9967 = vrsqrt.f32 %v4305_v40  ;;  %4949 = vmatmul.bf16.gmra.mxu0 %v4723_v59  ;;  %v4597_v58 = vsel %vm15415_vm1, %v4594_v50, %v4596_v18  ;;  %v4645_v20 = vsel %vm15417_vm15, %v4642_v45, %v4644_v11  ;;  %vm4392_vm13 = vmor %vm4390_vm8, %vm4391_vm12  ;;  %vm4400_vm10 = vweird.f32 %v4305_v40 }
0x1424   : > { %v4383_v33 = vsel %vm4382_vm11, %v9964_v41, %v4379_v42  ;;  %v4386_v28 = vmul.f32 %v9966_v19, %v4385_v8  ;;  %v4689_v9 = vsel %vm10833_vm4, %v4597_v58, %v4643_v46  ;;  %vm15421_vm11 = vmmov %vm15415_vm1  ;;  %vm15426_vm8 = vcmask 1040384  }
0x1425   : > { %v4498_v1 = vmul.f32 %v4383_v33, %v12878_v26  ;;  %v4722_v10 = vpack.c.bf16 %v4645_v20, %v4689_v9  ;;  %vm15425_vm12 = vmmov %vm15421_vm11 }
0x1426   : > { %v4387_v44 = vmul.f32 0.5, %v4386_v28 }
0x1427   : > { %v12983_v17 = vadd.f32 %v4498_v1, %v15419_v21  ;;  %4900 = vmatmul.bf16.gmra.mxu2 %v4722_v10 }
0x1428   : > { %v4388_v22 = vsub.f32 1.5, %v4387_v44  ;;  %v4307_v54 = vpop.f32.mrf.mxu1 }
0x1429   : > { %15420 = vst [vmem:[#allocation55_spill] sm:$0xff] %v12983_v17  ;;  %v9968_v57 = vpop.eup %9967  ;;  %v4308_v51 = vadd.f32 1e-05, %v4307_v54  ;;  %v4598_v27 = vrot.slane %v12983_v17, 1  ;;  %v4646_v63 = vrot.slane %v12983_v17, 7 }
0x142a   : > { %v4389_v31 = vmul.f32 %v9966_v19, %v4388_v22  ;;  %v4395_v61 = vmul.f32 %v9968_v57, %v4305_v40  ;;  %vm4401_vm1 = vweird.f32 %v9968_v57  ;;  %v15429_v40 = vld [vmem:[#allocation44_spill] sm:$0xff] }
0x142b   : > { %9969 = vrsqrt.f32 %v4308_v51  ;;  %v4599_v26 = vsel %vm15421_vm11, %v4596_v18, %v4598_v27  ;;  %vm4402_vm15 = vmor %vm4400_vm10, %vm4401_vm1  ;;  %v4647_v15 = vsel %vm15426_vm8, %v4644_v11, %v4646_v63  ;;  %vm4410_vm1 = vweird.f32 %v4308_v51 }
0x142c   : > { %v4393_v34 = vsel %vm4392_vm13, %v9966_v19, %v4389_v31  ;;  %v4396_v52 = vmul.f32 %v9968_v57, %v4395_v61  ;;  %v4706_v39 = vsel %vm10840_vm5, %v4645_v20, %v4599_v26  ;;  %vm15427_vm13 = vmmov %vm15426_vm8 }
0x142d   : > { %v4499_v41 = vmul.f32 %v4393_v34, %v12873_v0  ;;  %v4724_v50 = vpack.c.bf16 %v4706_v39, %v4597_v58  ;;  %v15433_v34 = vld [vmem:[#allocation45_spill] sm:$0xff] }
0x142e   : > { %v4397_v38 = vmul.f32 0.5, %v4396_v52 }
0x142f   : > { %v12991_v37 = vadd.f32 %v4499_v41, %v15423_v25  ;;  %4998 = vmatmul.bf16.gmra.mxu3 %v4724_v50 }
0x1430   : > { %v4398_v30 = vsub.f32 1.5, %v4397_v38  ;;  %v4310_v13 = vpop.f32.mrf.mxu1 }
0x1431   : > { %15424 = vst [vmem:[#allocation56_spill] sm:$0xff] %v12991_v37  ;;  %v9970_v62 = vpop.eup %9969  ;;  %v4311_v4 = vadd.f32 1e-05, %v4310_v13  ;;  %v4726_v5 = vpack.c.bf16 %v12991_v37, %v12983_v17  ;;  %v4600_v24 = vrot.slane %v12991_v37, 1  ;;  %v4648_v0 = vrot.slane %v12991_v37, 7 }
0x1432   : > { %v4399_v16 = vmul.f32 %v9968_v57, %v4398_v30  ;;  %v4405_v45 = vmul.f32 %v9970_v62, %v4308_v51  ;;  %vm4411_vm11 = vweird.f32 %v9970_v62 }
0x1433   : > { %9971 = vrsqrt.f32 %v4311_v4  ;;  %4954 = vmatmul.bf16.gmra.mxu0 %v4726_v5  ;;  %v4601_v14 = vsel %vm15425_vm12, %v4598_v27, %v4600_v24  ;;  %v4649_v19 = vsel %vm15427_vm13, %v4646_v63, %v4648_v0  ;;  %vm4412_vm10 = vmor %vm4410_vm1, %vm4411_vm11  ;;  %vm4420_vm8 = vweird.f32 %v4311_v4 }
0x1434   : > { %v4403_v59 = vsel %vm4402_vm15, %v9968_v57, %v4399_v16  ;;  %v4406_v18 = vmul.f32 %v9970_v62, %v4405_v45  ;;  %v4691_v8 = vsel %vm10854_vm6, %v4601_v14, %v4647_v15  ;;  %vm15431_vm15 = vmmov %vm15425_vm12  ;;  %vm15436_vm1 = vcmask 1040384  }
0x1435   : > { %v4500_v58 = vmul.f32 %v4403_v59, %v12868_v47  ;;  %v4725_v46 = vpack.c.bf16 %v4649_v19, %v4691_v8  ;;  %vm15435_vm11 = vmmov %vm15431_vm15 }
0x1436   : > { %v4407_v20 = vmul.f32 0.5, %v4406_v18 }
0x1437   : > { %v13005_v33 = vadd.f32 %v4500_v58, %v15429_v40  ;;  %4905 = vmatmul.bf16.gmra.mxu2 %v4725_v46 }
0x1438   : > { %v4408_v28 = vsub.f32 1.5, %v4407_v20  ;;  %v4313_v9 = vpop.f32.mrf.mxu1 }
0x1439   : > { %15430 = vst [vmem:[#allocation57_spill] sm:$0xff] %v13005_v33  ;;  %v9972_v1 = vpop.eup %9971  ;;  %v4314_v11 = vadd.f32 1e-05, %v4313_v9  ;;  %v4602_v10 = vrot.slane %v13005_v33, 1  ;;  %v4650_v51 = vrot.slane %v13005_v33, 7 }
0x143a   : > { %v4409_v44 = vmul.f32 %v9970_v62, %v4408_v28  ;;  %v4415_v21 = vmul.f32 %v9972_v1, %v4311_v4  ;;  %vm4421_vm12 = vweird.f32 %v9972_v1  ;;  %v15440_v4 = vld [vmem:[#allocation46_spill] sm:$0xff] }
0x143b   : > { %9973 = vrsqrt.f32 %v4314_v11  ;;  %v4603_v47 = vsel %vm15431_vm15, %v4600_v24, %v4602_v10  ;;  %vm4422_vm13 = vmor %vm4420_vm8, %vm4421_vm12  ;;  %v4651_v5 = vsel %vm15436_vm1, %v4648_v0, %v4650_v51  ;;  %vm4430_vm8 = vweird.f32 %v4314_v11 }
0x143c   : > { %v4413_v22 = vsel %vm4412_vm10, %v9970_v62, %v4409_v44  ;;  %v4416_v54 = vmul.f32 %v9972_v1, %v4415_v21  ;;  %v4708_v27 = vsel %vm10861_vm7, %v4649_v19, %v4603_v47  ;;  %vm15437_vm10 = vmmov %vm15436_vm1  ;;  %v15442_v44 = vld [vmem:[#allocation26_spill] sm:$0xff] }
0x143d   : > { %v4501_v31 = vmul.f32 %v4413_v22, %v12863_v48  ;;  %v4727_v61 = vpack.c.bf16 %v4708_v27, %v4601_v14  ;;  %v15438_v14 = vld [vmem:[#allocation25_spill] sm:$0xff]  ;;  %vm15443_vm1 = vnez %v15442_v44  ;;  %v15444_v27 = vld [vmem:[#allocation47_spill] sm:$0xff] }
0x143e   : > { %v4417_v26 = vmul.f32 0.5, %v4416_v54  ;;  %vm15439_vm15 = vnez %v15438_v14 }
0x143f   : > { %v13013_v52 = vadd.f32 %v4501_v31, %v15433_v34  ;;  %5003 = vmatmul.bf16.gmra.mxu3 %v4727_v61 }
0x1440   : > { %v4418_v39 = vsub.f32 1.5, %v4417_v26  ;;  %v4316_v41 = vpop.f32.mrf.mxu1 }
0x1441   : > { %15434 = vst [vmem:[#allocation58_spill] sm:$0xff] %v13013_v52  ;;  %v9974_v50 = vpop.eup %9973  ;;  %v4317_v38 = vadd.f32 1e-05, %v4316_v41  ;;  %v4729_v25 = vpack.c.bf16 %v13013_v52, %v13005_v33  ;;  %v4604_v63 = vrot.slane %v13013_v52, 1  ;;  %v4652_v48 = vrot.slane %v13013_v52, 7 }
0x1442   : > { %v4419_v30 = vmul.f32 %v9972_v1, %v4418_v39  ;;  %v4425_v13 = vmul.f32 %v9974_v50, %v4314_v11  ;;  %vm4431_vm12 = vweird.f32 %v9974_v50 }
0x1443   : > { %9975 = vrsqrt.f32 %v4317_v38  ;;  %4959 = vmatmul.bf16.gmra.mxu0 %v4729_v25  ;;  %v4605_v62 = vsel %vm15435_vm11, %v4602_v10, %v4604_v63  ;;  %v4653_v24 = vsel %vm15437_vm10, %v4650_v51, %v4652_v48 }
0x1444   : > { %v4423_v16 = vsel %vm4422_vm13, %v9972_v1, %v4419_v30  ;;  %v4426_v45 = vmul.f32 %v9974_v50, %v4425_v13  ;;  %v4693_v15 = vsel %vm15439_vm15, %v4605_v62, %v4651_v5  ;;  %vm4432_vm13 = vmor %vm4430_vm8, %vm4431_vm12  ;;  %vm4440_vm12 = vweird.f32 %v4317_v38 }
0x1445   : > { %v4502_v19 = vmul.f32 %v4423_v16, %v12858_v36  ;;  %v4728_v59 = vpack.c.bf16 %v4653_v24, %v4693_v15 }
0x1446   : > { %v4427_v18 = vmul.f32 0.5, %v4426_v45 }
0x1447   : > { %v13027_v8 = vadd.f32 %v4502_v19, %v15440_v4  ;;  %4910 = vmatmul.bf16.gmra.mxu2 %v4728_v59 }
0x1448   : > { %v4428_v58 = vsub.f32 1.5, %v4427_v18  ;;  %v4319_v46 = vpop.f32.mrf.mxu1 }
0x1449   : > { %15441 = vst [vmem:[#allocation59_spill] sm:$0xff] %v13027_v8  ;;  %v9976_v20 = vpop.eup %9975  ;;  %v4320_v0 = vadd.f32 1e-05, %v4319_v46  ;;  %v4606_v40 = vrot.slane %v13027_v8, 1  ;;  %v4654_v11 = vrot.slane %v13027_v8, 7 }
0x144a   : > { %v4429_v28 = vmul.f32 %v9974_v50, %v4428_v58  ;;  %v4435_v9 = vmul.f32 %v9976_v20, %v4317_v38  ;;  %vm4441_vm10 = vweird.f32 %v9976_v20  ;;  %v15451_v38 = vld [vmem:[#allocation48_spill] sm:$0xff] }
0x144b   : > { %9977 = vrsqrt.f32 %v4320_v0  ;;  %v4607_v36 = vsel %vm15435_vm11, %v4604_v63, %v4606_v40  ;;  %vm4442_vm8 = vmor %vm4440_vm12, %vm4441_vm10 }
0x144c   : > { %v4433_v1 = vsel %vm4432_vm13, %v9974_v50, %v4429_v28  ;;  %v4436_v10 = vmul.f32 %v9976_v20, %v4435_v9  ;;  %v4710_v21 = vsel %vm15443_vm1, %v4653_v24, %v4607_v36  ;;  %vm15446_vm13 = vmmov %vm15435_vm11  ;;  %vm15447_vm11 = vcmask 1040384   ;;  %v15449_v24 = vld [vmem:[#allocation27_spill] sm:$0xff]  ;;  %v15454_v36 = vld [vmem:[#allocation28_spill] sm:$0xff] }
0x144d   : > { %v4503_v47 = vmul.f32 %v4433_v1, %v12853_v35  ;;  %v4730_v22 = vpack.c.bf16 %v4710_v21, %v4605_v62  ;;  %v4655_v30 = vsel %vm15447_vm11, %v4652_v48, %v4654_v11  ;;  %vm15448_vm1 = vmmov %vm15447_vm11  ;;  %vm15450_vm15 = vnez %v15449_v24 }
0x144e   : > { %v4437_v54 = vmul.f32 0.5, %v4436_v10 }
0x144f   : > { %v13035_v31 = vadd.f32 %v4503_v47, %v15444_v27  ;;  %5008 = vmatmul.bf16.gmra.mxu3 %v4730_v22  ;;  %v15456_v22 = vld [vmem:[#allocation49_spill] sm:$0xff] }
0x1450   : > { %v4438_v61 = vsub.f32 1.5, %v4437_v54  ;;  %v4322_v26 = vpop.f32.mrf.mxu1 }
0x1451   : > { %15445 = vst [vmem:[#allocation39_spill] sm:$0xff] %v13035_v31  ;;  %v9978_v34 = vpop.eup %9977  ;;  %v4323_v51 = vadd.f32 1e-05, %v4322_v26  ;;  %v4732_v39 = vpack.c.bf16 %v13035_v31, %v13027_v8  ;;  %v4608_v41 = vrot.slane %v13035_v31, 1  ;;  %v4656_v35 = vrot.slane %v13035_v31, 7 }
0x1452   : > { %v4439_v50 = vmul.f32 %v9976_v20, %v4438_v61  ;;  %v4445_v25 = vmul.f32 %v9978_v34, %v4320_v0  ;;  %vm4451_vm10 = vweird.f32 %v9978_v34 }
0x1453   : > { %9979 = vrsqrt.f32 %v4323_v51  ;;  %4964 = vmatmul.bf16.gmra.mxu0 %v4732_v39  ;;  %v4609_v63 = vsel %vm15446_vm13, %v4606_v40, %v4608_v41  ;;  %v4657_v13 = vsel %vm15448_vm1, %v4654_v11, %v4656_v35  ;;  %vm4450_vm1 = vweird.f32 %v4320_v0 }
0x1454   : > { %v4443_v62 = vsel %vm4442_vm8, %v9976_v20, %v4439_v50  ;;  %v4446_v5 = vmul.f32 %v9978_v34, %v4445_v25  ;;  %v4695_v16 = vsel %vm15450_vm15, %v4609_v63, %v4655_v30  ;;  %vm4452_vm12 = vmor %vm4450_vm1, %vm4451_vm10  ;;  %vm4460_vm10 = vweird.f32 %v4323_v51 }
0x1455   : > { %v4504_v45 = vmul.f32 %v4443_v62, %v12848_v56  ;;  %v4731_v15 = vpack.c.bf16 %v4657_v13, %v4695_v16  ;;  %vm15453_vm8 = vmmov %vm15446_vm13  ;;  %vm15455_vm13 = vnez %v15454_v36 }
0x1456   : > { %v4447_v19 = vmul.f32 0.5, %v4446_v5 }
0x1457   : > { %v13049_v59 = vadd.f32 %v4504_v45, %v15451_v38  ;;  %4915 = vmatmul.bf16.gmra.mxu2 %v4731_v15 }
0x1458   : > { %v4448_v18 = vsub.f32 1.5, %v4447_v19  ;;  %v4325_v4 = vpop.f32.mrf.mxu1 }
0x1459   : > { %15452 = vst [vmem:[#allocation38_spill] sm:$0xff] %v13049_v59  ;;  %v9980_v58 = vpop.eup %9979  ;;  %v4326_v48 = vadd.f32 1e-05, %v4325_v4  ;;  %v4610_v46 = vrot.slane %v13049_v59, 1  ;;  %v4658_v0 = vrot.slane %v13049_v59, 7 }
0x145a   : > { %v4449_v20 = vmul.f32 %v9978_v34, %v4448_v18  ;;  %v4455_v40 = vmul.f32 %v9980_v58, %v4323_v51  ;;  %vm4461_vm11 = vweird.f32 %v9980_v58  ;;  %v15462_v51 = vld [vmem:[#allocation50_spill] sm:$0xff] }
0x145b   : > { %9981 = vrsqrt.f32 %v4326_v48  ;;  %v4611_v56 = vsel %vm15453_vm8, %v4608_v41, %v4610_v46  ;;  %vm4462_vm1 = vmor %vm4460_vm10, %vm4461_vm11 }
0x145c   : > { %v4453_v28 = vsel %vm4452_vm12, %v9978_v34, %v4449_v20  ;;  %v4456_v9 = vmul.f32 %v9980_v58, %v4455_v40  ;;  %v4712_v1 = vsel %vm15455_vm13, %v4657_v13, %v4611_v56  ;;  %vm15458_vm12 = vmmov %vm15453_vm8  ;;  %vm15459_vm8 = vcmask 1040384  }
0x145d   : > { %v4505_v10 = vmul.f32 %v4453_v28, %v12843_v6  ;;  %v4733_v21 = vpack.c.bf16 %v4712_v1, %v4609_v63  ;;  %v4659_v63 = vsel %vm15459_vm8, %v4656_v35, %v4658_v0  ;;  %vm15460_vm13 = vmmov %vm15459_vm8 }
0x145e   : > { %v4457_v47 = vmul.f32 0.5, %v4456_v9 }
0x145f   : > { %5013 = vmatmul.bf16.gmra.mxu3 %v4733_v21  ;;  %v13057_v54 = vadd.f32 %v4505_v10, %v15456_v22  ;;  %v15466_v22 = vld [vmem:[#allocation37_spill] sm:$0xff] }
0x1460   : > { %v4458_v27 = vsub.f32 1.5, %v4457_v47  ;;  %v4328_v11 = vpop.f32.mrf.mxu1 }
0x1461   : > { %15457 = vst [vmem:[#allocation19_spill] sm:$0xff] %v13057_v54  ;;  %v9982_v61 = vpop.eup %9981  ;;  %v4329_v26 = vadd.f32 1e-05, %v4328_v11  ;;  %v4735_v34 = vpack.c.bf16 %v13057_v54, %v13049_v59  ;;  %v4612_v39 = vrot.slane %v13057_v54, 1  ;;  %v4660_v6 = vrot.slane %v13057_v54, 7 }
0x1462   : > { %v4459_v41 = vmul.f32 %v9980_v58, %v4458_v27  ;;  %v4465_v50 = vmul.f32 %v9982_v61, %v4326_v48  ;;  %vm4471_vm11 = vweird.f32 %v9982_v61 }
0x1463   : > { %9983 = vrsqrt.f32 %v4329_v26  ;;  %4969 = vmatmul.bf16.gmra.mxu0 %v4735_v34  ;;  %v4613_v25 = vsel %vm15458_vm12, %v4610_v46, %v4612_v39  ;;  %v4661_v30 = vsel %vm15460_vm13, %v4658_v0, %v4660_v6  ;;  %vm4470_vm13 = vweird.f32 %v4326_v48 }
0x1464   : > { %v4463_v13 = vsel %vm4462_vm1, %v9980_v58, %v4459_v41  ;;  %v4466_v62 = vmul.f32 %v9982_v61, %v4465_v50  ;;  %v4697_v16 = vsel %vm15261_vm9, %v4613_v25, %v4659_v63  ;;  %vm4472_vm10 = vmor %vm4470_vm13, %vm4471_vm11  ;;  %vm4480_vm8 = vweird.f32 %v4329_v26 }
0x1465   : > { %v4506_v45 = vmul.f32 %v4463_v13, %v12838_v32  ;;  %v4734_v15 = vpack.c.bf16 %v4661_v30, %v4697_v16  ;;  %vm15464_vm1 = vmmov %vm15458_vm12 }
0x1466   : > { %v4467_v19 = vmul.f32 0.5, %v4466_v62  ;;  %vm15468_vm13 = vmmov %vm15464_vm1 }
0x1467   : > { %v13071_v38 = vadd.f32 %v4506_v45, %v15462_v51  ;;  %4920 = vmatmul.bf16.gmra.mxu2 %v4734_v15  ;;  %v15472_v51 = vld [vmem:[#allocation35_spill] sm:$0xff] }
0x1468   : > { %v4468_v18 = vsub.f32 1.5, %v4467_v19  ;;  %v4331_v4 = vpop.f32.mrf.mxu1 }
0x1469   : > { %15463 = vst [vmem:[#allocation40_spill] sm:$0xff] %v13071_v38  ;;  %v9984_v46 = vpop.eup %9983  ;;  %v4332_v35 = vadd.f32 1e-05, %v4331_v4  ;;  %v4614_v20 = vrot.slane %v13071_v38, 1  ;;  %v4662_v48 = vrot.slane %v13071_v38, 7 }
0x146a   : > { %v4469_v58 = vmul.f32 %v9982_v61, %v4468_v18  ;;  %v4475_v40 = vmul.f32 %v9984_v46, %v4329_v26  ;;  %vm4481_vm12 = vweird.f32 %v9984_v46 }
0x146b   : > { %9985 = vrsqrt.f32 %v4332_v35  ;;  %v4615_v32 = vsel %vm15464_vm1, %v4612_v39, %v4614_v20  ;;  %vm4482_vm11 = vmor %vm4480_vm8, %vm4481_vm12  ;;  %vm4490_vm12 = vweird.f32 %v4332_v35 }
0x146c   : > { %v4473_v56 = vsel %vm4472_vm10, %v9982_v61, %v4469_v58  ;;  %v4476_v28 = vmul.f32 %v9984_v46, %v4475_v40  ;;  %v4714_v1 = vsel %vm15264_vm14, %v4661_v30, %v4615_v32  ;;  %vm15469_vm10 = vcmask 1040384   ;;  %v15475_v58 = vld [vmem:[#allocation32_spill] sm:$0xff] }
0x146d   : > { %v4507_v10 = vmul.f32 %v4473_v56, %v12833_v60  ;;  %v4736_v21 = vpack.c.bf16 %v4714_v1, %v4613_v25  ;;  %v4663_v25 = vsel %vm15469_vm10, %v4660_v6, %v4662_v48  ;;  %vm15470_vm1 = vmmov %vm15469_vm10  ;;  %vm15476_vm10 = vnez %v15475_v58  ;;  %v15477_v56 = vld [vmem:[#allocation36_spill] sm:$0xff] }
0x146e   : > { %v4477_v47 = vmul.f32 0.5, %v4476_v28 }
0x146f   : > { %5018 = vmatmul.bf16.gmra.mxu3 %v4736_v21  ;;  %v13079_v0 = vadd.f32 %v4507_v10, %v15466_v22 }
0x1470   : > { %v4478_v27 = vsub.f32 1.5, %v4477_v47 }
0x1471   : > { %15467 = vst [vmem:[#allocation41_spill] sm:$0xff] %v13079_v0  ;;  %v9986_v11 = vpop.eup %9985  ;;  %v4738_v61 = vpack.c.bf16 %v13079_v0, %v13071_v38  ;;  %v4616_v34 = vrot.slane %v13079_v0, 1  ;;  %v4664_v39 = vrot.slane %v13079_v0, 7 }
0x1472   : > { %v4479_v41 = vmul.f32 %v9984_v46, %v4478_v27  ;;  %v4485_v60 = vmul.f32 %v9986_v11, %v4332_v35  ;;  %vm4491_vm8 = vweird.f32 %v9986_v11 }
0x1473   : > { %4974 = vmatmul.bf16.gmra.mxu0 %v4738_v61  ;;  %v4617_v50 = vsel %vm15468_vm13, %v4614_v20, %v4616_v34  ;;  %v4665_v63 = vsel %vm15470_vm1, %v4662_v48, %v4664_v39  ;;  %vm4492_vm13 = vmor %vm4490_vm12, %vm4491_vm8  ;;  %vm15480_vm12 = vcmask 1040384   ;;  %v15482_v48 = vld [vmem:[#allocation33_spill] sm:$0xff] }
0x1474   : > { %v4483_v30 = vsel %vm4482_vm11, %v9984_v46, %v4479_v41  ;;  %v4486_v13 = vmul.f32 %v9986_v11, %v4485_v60  ;;  %v4699_v16 = vsel %vm15158_vm3, %v4617_v50, %v4663_v25  ;;  %vm15474_vm11 = vcmask 1046528   ;;  %vm15481_vm8 = vmmov %vm15480_vm12 }
0x1475   : > { %v4508_v45 = vmul.f32 %v4483_v30, %v12827_v49  ;;  %v4737_v15 = vpack.c.bf16 %v4665_v63, %v4699_v16  ;;  %vm15479_vm1 = vmmov %vm15474_vm11 }
0x1476   : > { %v4487_v19 = vmul.f32 0.5, %v4486_v13 }
0x1477   : > { %v13093_v26 = vadd.f32 %v4508_v45, %v15472_v51  ;;  %4925 = vmatmul.bf16.gmra.mxu2 %v4737_v15 }
0x1478   : > { %v4488_v18 = vsub.f32 1.5, %v4487_v19 }
0x1479   : > { %15473 = vst [vmem:[#allocation42_spill] sm:$0xff] %v13093_v26  ;;  %v4618_v6 = vrot.slane %v13093_v26, 1  ;;  %v4666_v35 = vrot.slane %v13093_v26, 7 }
0x147a   : > { %v4489_v4 = vmul.f32 %v9986_v11, %v4488_v18 }
0x147b   : > { %v4619_v46 = vsel %vm15474_vm11, %v4616_v34, %v4618_v6  ;;  %v4667_v22 = vsel %vm15480_vm12, %v4664_v39, %v4666_v35  ;;  %vm15484_vm11 = vmmov %vm15479_vm1  ;;  %v15485_v34 = vld [vmem:[#allocation34_spill] sm:$0xff] }
0x147c   : > { %v4493_v20 = vsel %vm4492_vm13, %v9986_v11, %v4489_v4  ;;  %v4716_v40 = vsel %vm15476_vm10, %v4665_v63, %v4619_v46  ;;  %vm15483_vm13 = vnez %v15482_v48  ;;  %vm15486_vm10 = vnez %v15485_v34 }
0x147d   : > { %v4509_v49 = vmul.f32 %v4493_v20, %v12830_v7  ;;  %v4739_v32 = vpack.c.bf16 %v4716_v40, %v4617_v50 }
0x147f   : > { %v13101_v28 = vadd.f32 %v4509_v49, %v15477_v56  ;;  %5023 = vmatmul.bf16.gmra.mxu3 %v4739_v32 }
0x1481   : > { %15478 = vst [vmem:[#allocation43_spill] sm:$0xff] %v13101_v28  ;;  %v4741_v1 = vpack.c.bf16 %v13101_v28, %v13093_v26  ;;  %v4620_v10 = vrot.slane %v13101_v28, 1  ;;  %v4668_v21 = vrot.slane %v13101_v28, 7 }
0x1483   : > { %4979 = vmatmul.bf16.gmra.mxu0 %v4741_v1  ;;  %v4621_v47 = vsel %vm15479_vm1, %v4618_v6, %v4620_v10  ;;  %v4669_v7 = vsel %vm15481_vm8, %v4666_v35, %v4668_v21  ;;  %v4638_v61 = vsel %vm15484_vm11, %v4620_v10, %v13101_v28  ;;  %vm15496_vm1 = vcmask 64512  }
0x1484   : > { %v4701_v27 = vsel %vm15483_vm13, %v4621_v47, %v4667_v22  ;;  %v4718_v41 = vsel %vm15486_vm10, %v4669_v7, %v4638_v61  ;;  %vm15497_vm12 = vmmov %vm15496_vm1 }
0x1485   : > { %v4740_v11 = vpack.c.bf16 %v4669_v7, %v4701_v27  ;;  %v4742_v60 = vpack.c.bf16 %v4718_v41, %v4621_v47  ;;  %vm15498_vm8 = vmmov %vm15496_vm1 }
0x1486   : > { %vm15499_vm11 = vmmov %vm15496_vm1 }
0x1487   : > { %4930 = vmatmul.bf16.gmra.mxu2 %v4740_v11  ;;  %vm15500_vm10 = vmmov %vm15496_vm1 }
0x1488   : > { %vm15513_vm13 = vmmov %vm15496_vm1 }
0x1489   : > { %vm15514_vm3 = vmmov %vm15496_vm1 }
0x148f   : > { %5028 = vmatmul.bf16.gmra.mxu3 %v4742_v60 }
0x1490   : > { %v13117_v50 = vpop.f32.mrf.mxu0 }
0x1498   : > { %v13119_v25 = vpop.f32.mrf.mxu0 }
0x149a   : > { %v13121_v39 = vpop.f32.mrf.mxu2 }
0x14a0   : > { %v13123_v63 = vpop.f32.mrf.mxu0 }
0x14a2   : > { %v13125_v30 = vpop.f32.mrf.mxu2  ;;  %v13127_v13 = vpop.f32.mrf.mxu3 }
0x14a8   : > { %v13129_v16 = vpop.f32.mrf.mxu0 }
0x14aa   : > { %v13131_v45 = vpop.f32.mrf.mxu2  ;;  %v13133_v15 = vpop.f32.mrf.mxu3 }
0x14b0   : > { %v13135_v19 = vpop.f32.mrf.mxu0 }
0x14b2   : > { %v13137_v51 = vpop.f32.mrf.mxu2  ;;  %v13139_v18 = vpop.f32.mrf.mxu3 }
0x14b8   : > { %v13141_v6 = vpop.f32.mrf.mxu0 }
0x14ba   : > { %v13143_v4 = vpop.f32.mrf.mxu2  ;;  %v13145_v46 = vpop.f32.mrf.mxu3 }
0x14c0   : > { %v4960_v20 = vpop.f32.mrf.mxu0 }
0x14c2   : > { %v4908_v40 = vpop.f32.mrf.mxu2  ;;  %v13147_v49 = vpop.f32.mrf.mxu3 }
0x14c8   : > { %v4962_v32 = vpop.f32.mrf.mxu0 }
0x14ca   : > { %v4911_v56 = vpop.f32.mrf.mxu2  ;;  %v5006_v35 = vpop.f32.mrf.mxu3 }
0x14d0   : > { %v4965_v1 = vpop.f32.mrf.mxu0 }
0x14d2   : > { %v4913_v10 = vpop.f32.mrf.mxu2  ;;  %v5009_v21 = vpop.f32.mrf.mxu3 }
0x14d8   : > { %v4967_v7 = vpop.f32.mrf.mxu0 }
0x14da   : > { %v4916_v47 = vpop.f32.mrf.mxu2  ;;  %v5011_v22 = vpop.f32.mrf.mxu3 }
0x14e0   : > { %v4970_v61 = vpop.f32.mrf.mxu0 }
0x14e2   : > { %v4918_v27 = vpop.f32.mrf.mxu2  ;;  %v5014_v11 = vpop.f32.mrf.mxu3 }
0x14e8   : > { %v4972_v28 = vpop.f32.mrf.mxu0 }
0x14ea   : > { %v4921_v41 = vpop.f32.mrf.mxu2  ;;  %v5016_v60 = vpop.f32.mrf.mxu3 }
0x14f0   : > { %v4975_v38 = vpop.f32.mrf.mxu0 }
0x14f2   : > { %v4923_v26 = vpop.f32.mrf.mxu2  ;;  %v5019_v0 = vpop.f32.mrf.mxu3 }
0x14f3   : > { %v4973_v24 = vadd.f32 %v4972_v28, %v4923_v26  ;;  %v4948_v28 = vadd.f32 %v13119_v25, %v13125_v30  ;;  %v13213_v25 = vld [vmem:[#allocation8] sm:$0xff] }
0x14f4   : > { %v13216_v30 = vld [vmem:[#allocation11 + $0x78] sm:$0xff] }
0x14f8   : > { %v4977_v52 = vpop.f32.mrf.mxu0 }
0x14fa   : > { %v4926_v54 = vpop.f32.mrf.mxu2  ;;  %v5021_v59 = vpop.f32.mrf.mxu3 }
0x14fb   : > { %v4976_v5 = vadd.f32 %v4975_v38, %v4926_v54  ;;  %v4956_v54 = vadd.f32 %v13135_v19, %v13143_v4  ;;  %v4953_v38 = vadd.f32 %v13129_v16, %v13137_v51  ;;  %v13205_v16 = vadd.f32 %v13133_v15, %v4948_v28  ;;  %v13231_v15 = vld [vmem:[#allocation11 + $0x50] sm:$0xff]  ;;  %v13234_v19 = vld [vmem:[#allocation11 + $0x48] sm:$0xff]  ;;  %v13237_v51 = vld [vmem:[#allocation11 + $0x40] sm:$0xff] }
0x14fc   : > { %15487 = vst [vmem:[#allocation44_spill] sm:$0xff] %v13237_v51  ;;  %v13246_v4 = vld [vmem:[#allocation11 + $0x28] sm:$0xff] }
0x14fd   : > { %v13193_v26 = vadd.f32 %v13145_v46, %v4953_v38  ;;  %15490 = vst [vmem:[#allocation47_spill] sm:$0xff] %v13246_v4  ;;  %v13249_v46 = vld [vmem:[#allocation11 + $0x20] sm:$0xff] }
0x14fe   : > { %15491 = vst [vmem:[#allocation48_spill] sm:$0xff] %v13249_v46 }
0x1500   : > { %v4980_v17 = vpop.f32.mrf.mxu0 }
0x1502   : > { %v4928_v31 = vpop.f32.mrf.mxu2  ;;  %v5024_v8 = vpop.f32.mrf.mxu3 }
0x1503   : > { %v4978_v62 = vadd.f32 %v4977_v52, %v4928_v31  ;;  %v13157_v44 = vadd.f32 %v5024_v8, %v4976_v5  ;;  %v4961_v8 = vadd.f32 %v4960_v20, %v4911_v56  ;;  %v13252_v20 = vld [vmem:[#allocation11 + $0x18] sm:$0xff] }
0x1504   : > { %15492 = vst [vmem:[#allocation49_spill] sm:$0xff] %v13252_v20 }
0x1508   : > { %v4982_v3 = vpop.f32.mrf.mxu0 }
0x150a   : > { %v5026_v33 = vpop.f32.mrf.mxu3  ;;  %v4931_v37 = vpop.f32.mrf.mxu2 }
0x150b   : > { %v4981_v48 = vadd.f32 %v4980_v17, %v4931_v37  ;;  %v13154_v36 = vadd.f32 %v5026_v33, %v4978_v62  ;;  %v4966_v17 = vadd.f32 %v4965_v1, %v4916_v47  ;;  %v4963_v33 = vadd.f32 %v4962_v32, %v4913_v10  ;;  %v13261_v32 = vld [vmem:[#allocation11] sm:$0xff]  ;;  %v13284_v10 = vld [vmem:[#allocation10 + $0x8] sm:$0xff]  ;;  %v13292_v47 = vld [vmem:[#allocation10 + $0x18] sm:$0xff] }
0x150c   : > { %v4951_v62 = vadd.f32 %v13123_v63, %v13131_v45  ;;  %v13228_v45 = vld [vmem:[#allocation11 + $0x58] sm:$0xff]  ;;  %15495 = vst [vmem:[#allocation35_spill] sm:$0xff] %v13261_v32  ;;  %v13280_v1 = vld [vmem:[#allocation10] sm:$0xff] }
0x150d   : > { %v13169_v52 = vadd.f32 %v5014_v11, %v4966_v17  ;;  %v13172_v31 = vadd.f32 %v5011_v22, %v4963_v33  ;;  %v13296_v22 = vld [vmem:[#allocation10 + $0x20] sm:$0xff]  ;;  %v13308_v11 = vld [vmem:[#allocation10 + $0x38] sm:$0xff]  ;;  %v13332_v17 = vld [vmem:[#allocation10 + $0x68] sm:$0xff] }
0x150e   : > { %v13336_v33 = vld [vmem:[#allocation10 + $0x70] sm:$0xff] }
0x1512   : > { %v5029_v55 = vpop.f32.mrf.mxu3  ;;  %v4933_v23 = vpop.f32.mrf.mxu2 }
0x1513   : > { %v4983_v12 = vadd.f32 %v4982_v3, %v4933_v23  ;;  %v13151_v9 = vadd.f32 %v5029_v55, %v4981_v48  ;;  %v4971_v3 = vadd.f32 %v4970_v61, %v4921_v41  ;;  %v13160_v23 = vadd.f32 %v5021_v59, %v4973_v24  ;;  %v13312_v61 = vld [vmem:[#allocation10 + $0x40] sm:$0xff]  ;;  %v13316_v41 = vld [vmem:[#allocation10 + $0x48] sm:$0xff] }
0x1514   : > { %v4958_v24 = vadd.f32 %v13141_v6, %v4908_v40  ;;  %v13176_v59 = vadd.f32 %v5009_v21, %v4961_v8  ;;  %v13199_v48 = vadd.f32 %v13139_v18, %v4951_v62  ;;  %v13240_v18 = vld [vmem:[#allocation11 + $0x38] sm:$0xff]  ;;  %v13243_v6 = vld [vmem:[#allocation11 + $0x30] sm:$0xff] }
0x1515   : > { %v13163_v55 = vadd.f32 %v5019_v0, %v4971_v3  ;;  %v13187_v0 = vadd.f32 %v13147_v49, %v4956_v54  ;;  %15488 = vst [vmem:[#allocation45_spill] sm:$0xff] %v13240_v18  ;;  %v13255_v40 = vld [vmem:[#allocation11 + $0x10] sm:$0xff]  ;;  %v13258_v49 = vld [vmem:[#allocation11 + $0x8] sm:$0xff]  ;;  %v13324_v3 = vld [vmem:[#allocation10 + $0x58] sm:$0xff] }
0x1516   : > { %v13181_v5 = vadd.f32 %v5006_v35, %v4958_v24  ;;  %15489 = vst [vmem:[#allocation46_spill] sm:$0xff] %v13243_v6  ;;  %v13288_v21 = vld [vmem:[#allocation10 + $0x10] sm:$0xff]  ;;  %v13340_v8 = vld [vmem:[#allocation10 + $0x78] sm:$0xff] }
0x1517   : > { %15493 = vst [vmem:[#allocation50_spill] sm:$0xff] %v13255_v40 }
0x1518   : > { %15494 = vst [vmem:[#allocation37_spill] sm:$0xff] %v13258_v49 }
0x151a   : > { %v5031_v34 = vpop.f32.mrf.mxu3 }
0x151b   : > { %v13149_v58 = vadd.f32 %v5031_v34, %v4983_v12  ;;  %v4968_v12 = vadd.f32 %v4967_v7, %v4918_v27  ;;  %v4946_v34 = vadd.f32 %v13117_v50, %v13121_v39  ;;  %v13219_v50 = vld [vmem:[#allocation11 + $0x70] sm:$0xff]  ;;  %v13222_v39 = vld [vmem:[#allocation11 + $0x68] sm:$0xff] }
0x151c   : > { %v13300_v7 = vld [vmem:[#allocation10 + $0x28] sm:$0xff]  ;;  %v13304_v27 = vld [vmem:[#allocation10 + $0x30] sm:$0xff] }
0x151d   : > { %5034 = vmatpush.msrb.mxu1 %v13149_v58  ;;  %v13166_v37 = vadd.f32 %v5016_v60, %v4968_v12  ;;  %v13209_v63 = vadd.f32 %v13127_v13, %v4946_v34  ;;  %v13225_v13 = vld [vmem:[#allocation11 + $0x60] sm:$0xff]  ;;  %v13320_v60 = vld [vmem:[#allocation10 + $0x50] sm:$0xff] }
0x151e   : > { %v13328_v12 = vld [vmem:[#allocation10 + $0x60] sm:$0xff] }
0x151f   : > { %5035 = vmatpush.msrb.mxu1 %v13151_v9 }
0x1521   : > { %5036 = vmatpush.msrb.mxu1 %v13154_v36 }
0x1523   : > { %5037 = vmatpush.msrb.mxu1 %v13157_v44 }
0x1525   : > { %5038 = vmatpush.msrb.mxu1 %v13160_v23 }
0x1527   : > { %5039 = vmatpush.msrb.mxu1 %v13163_v55 }
0x1529   : > { %5040 = vmatpush.msrb.mxu1 %v13166_v37 }
0x152b   : > { %5041 = vmatpush.msrb.mxu1 %v13169_v52 }
0x152d   : > { %5042 = vmatpush.msrb.mxu1 %v13172_v31 }
0x152f   : > { %5043 = vmatpush.msrb.mxu1 %v13176_v59 }
0x1531   : > { %5044 = vmatpush.msrb.mxu1 %v13181_v5 }
0x1533   : > { %5045 = vmatpush.msrb.mxu1 %v13187_v0 }
0x1535   : > { %5046 = vmatpush.msrb.mxu1 %v13193_v26 }
0x1537   : > { %5047 = vmatpush.msrb.mxu1 %v13199_v48 }
0x1539   : > { %5048 = vmatpush.msrb.mxu1 %v13205_v16 }
0x153b   : > { %5049 = vmatpush.msrb.mxu1 %v13209_v63 }
0x153c   : > { %5050 = vmatmul.f32.vlgmr.msrb.gmra.mxu1 %v13213_v25 }
0x153d   : > { %5054 = vmatpush.msra.mxu1 %v13216_v30 }
0x153f   : > { %5055 = vmatpush.msra.mxu1 %v13219_v50 }
0x1541   : > { %5056 = vmatpush.msra.mxu1 %v13222_v39 }
0x1543   : > { %5057 = vmatpush.msra.mxu1 %v13225_v13 }
0x1545   : > { %5058 = vmatpush.msra.mxu1 %v13228_v45 }
0x1547   : > { %5059 = vmatpush.msra.mxu1 %v13231_v15 }
0x1549   : > { %5060 = vmatpush.msra.mxu1 %v13234_v19 }
0x154b   : > { %5061 = vmatpush.msra.mxu1 %v13237_v51 }
0x154d   : > { %5062 = vmatpush.msra.mxu1 %v13240_v18 }
0x154f   : > { %5063 = vmatpush.msra.mxu1 %v13243_v6 }
0x1551   : > { %5064 = vmatpush.msra.mxu1 %v13246_v4 }
0x1553   : > { %5065 = vmatpush.msra.mxu1 %v13249_v46 }
0x1555   : > { %5066 = vmatpush.msra.mxu1 %v13252_v20 }
0x1557   : > { %5067 = vmatpush.msra.mxu1 %v13255_v40 }
0x1559   : > { %5068 = vmatpush.msra.mxu1 %v13258_v49 }
0x155b   : > { %5069 = vmatpush.msra.mxu1 %v13261_v32 }
0x155d   : > { %5191 = vmatpush.msrb.mxu1 %v13216_v30 }
0x155f   : > { %5192 = vmatpush.msrb.mxu1 %v13219_v50 }
0x1561   : > { %5193 = vmatpush.msrb.mxu1 %v13222_v39 }
0x1563   : > { %5194 = vmatpush.msrb.mxu1 %v13225_v13 }
0x1565   : > { %5195 = vmatpush.msrb.mxu1 %v13228_v45 }
0x1567   : > { %5196 = vmatpush.msrb.mxu1 %v13231_v15 }
0x1569   : > { %5197 = vmatpush.msrb.mxu1 %v13234_v19 }
0x156b   : > { %5198 = vmatpush.msrb.mxu1 %v13237_v51 }
0x156d   : > { %5199 = vmatpush.msrb.mxu1 %v13240_v18 }
0x156f   : > { %5200 = vmatpush.msrb.mxu1 %v13243_v6 }
0x1571   : > { %5201 = vmatpush.msrb.mxu1 %v13246_v4 }
0x1573   : > { %5202 = vmatpush.msrb.mxu1 %v13249_v46 }
0x1575   : > { %5203 = vmatpush.msrb.mxu1 %v13252_v20 }
0x1577   : > { %5204 = vmatpush.msrb.mxu1 %v13255_v40 }
0x1579   : > { %5205 = vmatpush.msrb.mxu1 %v13258_v49 }
0x157b   : > { %5206 = vmatpush.msrb.mxu1 %v13261_v32 }
0x15b9   : > { %v5051_v56 = vpop.f32.mrf.mxu1 }
0x15ba   : > { %5070 = vmatmul.f32.vlgmr.msra.gmra.mxu1 %v5051_v56 }
0x1637   : > { %v5071_v35 = vpop.f32.mrf.mxu1 }
0x1638   : > { %5089 = vmatpush.msra.mxu2 %v5071_v35 }
0x1639   : > { %9138 = vmatmul.msk.f32.vlgmr.msra.gmra.mxu2 %vm15496_vm1, %v13280_v1 }
0x1641   : > { %9139 = vmatmul.msk.f32.gmra.mxu2 %vm15497_vm12, %v13284_v10  ;;  %vm15501_vm12 = vmmov %vm15496_vm1 }
0x1649   : > { %9140 = vmatmul.msk.f32.gmra.mxu2 %vm15498_vm8, %v13288_v21  ;;  %vm15502_vm8 = vmmov %vm15496_vm1 }
0x1651   : > { %9141 = vmatmul.msk.f32.gmra.mxu2 %vm15499_vm11, %v13292_v47  ;;  %vm15503_vm11 = vmmov %vm15496_vm1 }
0x1659   : > { %9142 = vmatmul.msk.f32.gmra.mxu2 %vm15500_vm10, %v13296_v22  ;;  %vm15504_vm10 = vmmov %vm15496_vm1 }
0x1661   : > { %9143 = vmatmul.msk.f32.gmra.mxu2 %vm15496_vm1, %v13300_v7 }
0x1669   : > { %9144 = vmatmul.msk.f32.gmra.mxu2 %vm15501_vm12, %v13304_v27  ;;  %vm15505_vm12 = vmmov %vm15496_vm1 }
0x1671   : > { %9145 = vmatmul.msk.f32.gmra.mxu2 %vm15502_vm8, %v13308_v11  ;;  %vm15506_vm8 = vmmov %vm15496_vm1 }
0x1679   : > { %9146 = vmatmul.msk.f32.gmra.mxu2 %vm15503_vm11, %v13312_v61  ;;  %vm15507_vm11 = vmmov %vm15496_vm1 }
0x1681   : > { %9147 = vmatmul.msk.f32.gmra.mxu2 %vm15504_vm10, %v13316_v41  ;;  %vm15508_vm10 = vmmov %vm15496_vm1 }
0x1689   : > { %9148 = vmatmul.msk.f32.gmra.mxu2 %vm15496_vm1, %v13320_v60 }
0x1691   : > { %9149 = vmatmul.msk.f32.gmra.mxu2 %vm15505_vm12, %v13324_v3  ;;  %vm15509_vm12 = vmmov %vm15496_vm1 }
0x1699   : > { %9150 = vmatmul.msk.f32.gmra.mxu2 %vm15506_vm8, %v13328_v12  ;;  %vm15510_vm8 = vmmov %vm15496_vm1 }
0x16a1   : > { %9151 = vmatmul.msk.f32.gmra.mxu2 %vm15507_vm11, %v13332_v17  ;;  %vm15511_vm11 = vmmov %vm15496_vm1 }
0x16a9   : > { %9152 = vmatmul.msk.f32.gmra.mxu2 %vm15508_vm10, %v13336_v33  ;;  %vm15512_vm10 = vmmov %vm15496_vm1 }
0x16b1   : > { %9153 = vmatmul.msk.f32.gmra.mxu2 %vm15496_vm1, %v13340_v8 }
0x16bc   : > { %v5091_v24 = vpop.f32.mrf.mxu2 }
0x16c4   : > { %v5094_v54 = vpop.f32.mrf.mxu2 }
0x16cc   : > { %v5097_v38 = vpop.f32.mrf.mxu2 }
0x16d4   : > { %v5100_v62 = vpop.f32.mrf.mxu2 }
0x16dc   : > { %v5103_v28 = vpop.f32.mrf.mxu2 }
0x16e4   : > { %v5106_v34 = vpop.f32.mrf.mxu2 }
0x16ec   : > { %v5109_v56 = vpop.f32.mrf.mxu2 }
0x16f4   : > { %v5112_v35 = vpop.f32.mrf.mxu2 }
0x16fc   : > { %v5115_v14 = vpop.f32.mrf.mxu2 }
0x1704   : > { %v5118_v57 = vpop.f32.mrf.mxu2 }
0x170c   : > { %v5121_v42 = vpop.f32.mrf.mxu2 }
0x1714   : > { %v5124_v43 = vpop.f32.mrf.mxu2 }
0x1715   : > { %v13361_v51 = vsub.f32 %v13160_v23, %v5124_v43  ;;  %v13376_v43 = vsub.f32 %v13169_v52, %v5115_v14  ;;  %v13391_v14 = vsub.f32 %v13181_v5, %v5106_v34  ;;  %v13396_v52 = vsub.f32 %v13187_v0, %v5103_v28  ;;  %v9683_v34 = vld [vmem:[#allocation7 + $0x198] sm:$0xff] }
0x1716   : > { %v13406_v5 = vsub.f32 %v13199_v48, %v5097_v38  ;;  %v13411_v0 = vsub.f32 %v13205_v16, %v5094_v54 }
0x1718   : > { %v5156_v48 = vmul.f32 %v13411_v0, %v13411_v0 }
0x171c   : > { %v5127_v32 = vpop.f32.mrf.mxu2 }
0x171d   : > { %v13356_v18 = vsub.f32 %v13157_v44, %v5127_v32  ;;  %v13371_v44 = vsub.f32 %v13166_v37, %v5118_v57  ;;  %v13386_v57 = vsub.f32 %v13176_v59, %v5109_v56  ;;  %v13401_v59 = vsub.f32 %v13193_v26, %v5100_v62  ;;  %v9690_v56 = vld [vmem:[#allocation7 + $0x1d0] sm:$0xff] }
0x171e   : > { %v13416_v26 = vsub.f32 %v13209_v63, %v5091_v24  ;;  %v5157_v32 = vmul.f32 %v13406_v5, %v13406_v5  ;;  %v9695_v63 = vld [vmem:[#allocation7 + $0x1f8] sm:$0xff] }
0x171f   : > { %v5164_v23 = vmul.f32 %v13371_v44, %v13371_v44  ;;  %5910 = vmatpush.bf16.msrb.mxu3 %v9695_v63 }
0x1720   : > { %v5155_v38 = vmul.f32 %v13416_v26, %v13416_v26 }
0x1724   : > { %v5130_v49 = vpop.f32.mrf.mxu2 }
0x1725   : > { %v13351_v4 = vsub.f32 %v13154_v36, %v5130_v49  ;;  %v13366_v36 = vsub.f32 %v13163_v55, %v5121_v42  ;;  %v13381_v42 = vsub.f32 %v13172_v31, %v5112_v35  ;;  %v5163_v55 = vmul.f32 %v13376_v43, %v13376_v43 }
0x1726   : > { %v5161_v31 = vmul.f32 %v13386_v57, %v13386_v57  ;;  %v5158_v49 = vmul.f32 %v13401_v59, %v13401_v59 }
0x1727   : > { %v5162_v37 = vmul.f32 %v13381_v42, %v13381_v42 }
0x172c   : > { %v5133_v40 = vpop.f32.mrf.mxu2 }
0x172d   : > { %v13345_v29 = vsub.f32 %v13151_v9, %v5133_v40  ;;  %v5168_v9 = vmul.f32 %v13351_v4, %v13351_v4  ;;  %v5159_v40 = vmul.f32 %v13396_v52, %v13396_v52 }
0x172f   : > { %v5169_v2 = vmul.f32 %v13345_v29, %v13345_v29 }
0x1734   : > { %v5136_v20 = vpop.f32.mrf.mxu2 }
0x1735   : > { %v13348_v46 = vsub.f32 %v13149_v58, %v5136_v20  ;;  %v5167_v58 = vmul.f32 %v13356_v18, %v13356_v18  ;;  %v5160_v20 = vmul.f32 %v13391_v14, %v13391_v14 }
0x1737   : > { %v5170_v6 = vmul.f32 %v13348_v46, %v13348_v46 }
0x1739   : > { %5171 = vmatpush.msrb.mxu0 %v5170_v6  ;;  %v5166_v6 = vmul.f32 %v13361_v51, %v13361_v51 }
0x173b   : > { %5172 = vmatpush.msrb.mxu0 %v5169_v2  ;;  %v5165_v2 = vmul.f32 %v13366_v36, %v13366_v36 }
0x173d   : > { %5173 = vmatpush.msrb.mxu0 %v5168_v9 }
0x173f   : > { %5174 = vmatpush.msrb.mxu0 %v5167_v58  ;;  %v9701_v58 = vld [vmem:[#allocation7 + $0x228] sm:$0xff] }
0x1741   : > { %5175 = vmatpush.msrb.mxu0 %v5166_v6 }
0x1743   : > { %5176 = vmatpush.msrb.mxu0 %v5165_v2 }
0x1745   : > { %5177 = vmatpush.msrb.mxu0 %v5164_v23 }
0x1747   : > { %5178 = vmatpush.msrb.mxu0 %v5163_v55 }
0x1749   : > { %5179 = vmatpush.msrb.mxu0 %v5162_v37  ;;  %v9682_v37 = vld [vmem:[#allocation7 + $0x190] sm:$0xff] }
0x174b   : > { %5180 = vmatpush.msrb.mxu0 %v5161_v31  ;;  %v9689_v31 = vld [vmem:[#allocation7 + $0x1c8] sm:$0xff] }
0x174d   : > { %5181 = vmatpush.msrb.mxu0 %v5160_v20 }
0x174f   : > { %5182 = vmatpush.msrb.mxu0 %v5159_v40  ;;  %v9700_v40 = vld [vmem:[#allocation7 + $0x220] sm:$0xff] }
0x1751   : > { %5183 = vmatpush.msrb.mxu0 %v5158_v49 }
0x1753   : > { %5184 = vmatpush.msrb.mxu0 %v5157_v32 }
0x1755   : > { %5185 = vmatpush.msrb.mxu0 %v5156_v48 }
0x1757   : > { %5186 = vmatpush.msrb.mxu0 %v5155_v38  ;;  %v9681_v38 = vld [vmem:[#allocation7 + $0x188] sm:$0xff] }
0x1758   : > { %5187 = vmatmul.f32.vlgmr.msrb.gmra.mxu0 %v13213_v25  ;;  %v9687_v25 = vld [vmem:[#allocation7 + $0x1b8] sm:$0xff] }
0x1759   : > { %5861 = vmatpush.bf16.msra.mxu1 %v9687_v25 }
0x17d5   : > { %v5188_v16 = vpop.f32.mrf.mxu0 }
0x17d6   : > { %5207 = vmatmul.f32.vlgmr.msrb.gmra.mxu1 %v5188_v16  ;;  %v9688_v16 = vld [vmem:[#allocation7 + $0x1c0] sm:$0xff] }
0x1853   : > { %v5208_v54 = vpop.f32.mrf.mxu1 }
0x1854   : > { %5226 = vmatpush.msra.mxu0 %v5208_v54 }
0x1855   : > { %9154 = vmatmul.msk.f32.vlgmr.msra.gmra.mxu0 %vm15509_vm12, %v13280_v1  ;;  %vm15515_vm12 = vmmov %vm15496_vm1  ;;  %v9694_v1 = vld [vmem:[#allocation7 + $0x1f0] sm:$0xff] }
0x1856   : > { %5911 = vmatpush.bf16.msrb.mxu3 %v9694_v1  ;;  %v9699_v1 = vld [vmem:[#allocation7 + $0x218] sm:$0xff] }
0x185d   : > { %9155 = vmatmul.msk.f32.gmra.mxu0 %vm15510_vm8, %v13284_v10  ;;  %vm15516_vm8 = vmmov %vm15496_vm1 }
0x1865   : > { %9156 = vmatmul.msk.f32.gmra.mxu0 %vm15511_vm11, %v13288_v21  ;;  %vm15517_vm11 = vmmov %vm15496_vm1 }
0x186d   : > { %9157 = vmatmul.msk.f32.gmra.mxu0 %vm15512_vm10, %v13292_v47  ;;  %vm15518_vm10 = vmmov %vm15496_vm1  ;;  %v9686_v47 = vld [vmem:[#allocation7 + $0x1b0] sm:$0xff] }
0x186e   : > { %5862 = vmatpush.bf16.msra.mxu1 %v9686_v47 }
0x1875   : > { %9158 = vmatmul.msk.f32.gmra.mxu0 %vm15496_vm1, %v13296_v22  ;;  %v9693_v22 = vld [vmem:[#allocation7 + $0x1e8] sm:$0xff] }
0x1876   : > { %5912 = vmatpush.bf16.msrb.mxu3 %v9693_v22  ;;  %v9680_v22 = vld [vmem:[#allocation7 + $0x180] sm:$0xff] }
0x187d   : > { %9159 = vmatmul.msk.f32.gmra.mxu0 %vm15513_vm13, %v13300_v7  ;;  %vm15519_vm13 = vmmov %vm15496_vm1 }
0x1885   : > { %9160 = vmatmul.msk.f32.gmra.mxu0 %vm15514_vm3, %v13304_v27  ;;  %vm15520_vm3 = vmmov %vm15496_vm1 }
0x188d   : > { %9161 = vmatmul.msk.f32.gmra.mxu0 %vm15515_vm12, %v13308_v11  ;;  %vm15521_vm12 = vmmov %vm15496_vm1 }
0x1895   : > { %9162 = vmatmul.msk.f32.gmra.mxu0 %vm15516_vm8, %v13312_v61  ;;  %vm15522_vm8 = vmmov %vm15496_vm1 }
0x189d   : > { %9163 = vmatmul.msk.f32.gmra.mxu0 %vm15517_vm11, %v13316_v41  ;;  %v9685_v41 = vld [vmem:[#allocation7 + $0x1a8] sm:$0xff] }
0x189e   : > { %5863 = vmatpush.bf16.msra.mxu1 %v9685_v41 }
0x18a5   : > { %9164 = vmatmul.msk.f32.gmra.mxu0 %vm15518_vm10, %v13320_v60  ;;  %v9692_v60 = vld [vmem:[#allocation7 + $0x1e0] sm:$0xff] }
0x18a6   : > { %5913 = vmatpush.bf16.msrb.mxu3 %v9692_v60 }
0x18ad   : > { %9165 = vmatmul.msk.f32.gmra.mxu0 %vm15496_vm1, %v13324_v3  ;;  %v9703_v3 = vld [vmem:[#allocation7 + $0x238] sm:$0xff] }
0x18ae   : > { %5959 = vmatpush.bf16.msrb.mxu2 %v9703_v3 }
0x18b5   : > { %9166 = vmatmul.msk.f32.gmra.mxu0 %vm15519_vm13, %v13328_v12 }
0x18bd   : > { %9167 = vmatmul.msk.f32.gmra.mxu0 %vm15520_vm3, %v13332_v17  ;;  %v9684_v17 = vld [vmem:[#allocation7 + $0x1a0] sm:$0xff] }
0x18be   : > { %5864 = vmatpush.bf16.msra.mxu1 %v9684_v17 }
0x18c2   : > { %5865 = vmatpush.bf16.msra.mxu1 %v9683_v34 }
0x18c5   : > { %9168 = vmatmul.msk.f32.gmra.mxu0 %vm15521_vm12, %v13336_v33  ;;  %v9691_v33 = vld [vmem:[#allocation7 + $0x1d8] sm:$0xff] }
0x18c6   : > { %5914 = vmatpush.bf16.msrb.mxu3 %v9691_v33  ;;  %5866 = vmatpush.bf16.msra.mxu1 %v9682_v37 }
0x18ca   : > { %5915 = vmatpush.bf16.msrb.mxu3 %v9690_v56  ;;  %5867 = vmatpush.bf16.msra.mxu1 %v9681_v38 }
0x18cd   : > { %9169 = vmatmul.msk.f32.gmra.mxu0 %vm15522_vm8, %v13340_v8  ;;  %v9702_v8 = vld [vmem:[#allocation7 + $0x230] sm:$0xff] }
0x18ce   : > { %5960 = vmatpush.bf16.msrb.mxu2 %v9702_v8  ;;  %5916 = vmatpush.bf16.msrb.mxu3 %v9689_v31  ;;  %v9697_v8 = vld [vmem:[#allocation7 + $0x208] sm:$0xff] }
0x18cf   : > { %5868 = vmatpush.bf16.msra.mxu1 %v9680_v22 }
0x18d2   : > { %v5228_v10 = vpop.f32.mrf.mxu0  ;;  %5961 = vmatpush.bf16.msrb.mxu2 %v9701_v58  ;;  %5917 = vmatpush.bf16.msrb.mxu3 %v9688_v16 }
0x18d3   : > { %v5229_v21 = vadd.f32 1e-05, %v5228_v10 }
0x18d5   : > { %9987 = vrsqrt.f32 %v5229_v21  ;;  %vm5282_vm10 = vweird.f32 %v5229_v21 }
0x18d6   : > { %5962 = vmatpush.bf16.msrb.mxu2 %v9700_v40  ;;  %6165 = vmatpush.msra.mxu3 %v13216_v30 }
0x18d8   : > { %6166 = vmatpush.msra.mxu3 %v13219_v50 }
0x18da   : > { %v5231_v7 = vpop.f32.mrf.mxu0  ;;  %5963 = vmatpush.bf16.msrb.mxu2 %v9699_v1  ;;  %6167 = vmatpush.msra.mxu3 %v13222_v39 }
0x18db   : > { %v9988_v27 = vpop.eup %9987  ;;  %v5232_v11 = vadd.f32 1e-05, %v5231_v7 }
0x18dc   : > { %v5277_v61 = vmul.f32 %v9988_v27, %v5229_v21  ;;  %vm5283_vm11 = vweird.f32 %v9988_v27  ;;  %6168 = vmatpush.msra.mxu3 %v13225_v13 }
0x18dd   : > { %9989 = vrsqrt.f32 %v5232_v11  ;;  %vm5284_vm1 = vmor %vm5282_vm10, %vm5283_vm11  ;;  %vm5292_vm12 = vweird.f32 %v5232_v11 }
0x18de   : > { %v5278_v12 = vmul.f32 %v9988_v27, %v5277_v61  ;;  %v9698_v61 = vld [vmem:[#allocation7 + $0x210] sm:$0xff]  ;;  %6169 = vmatpush.msra.mxu3 %v13228_v45 }
0x18df   : > { %5964 = vmatpush.bf16.msrb.mxu2 %v9698_v61 }
0x18e0   : > { %v5279_v24 = vmul.f32 0.5, %v5278_v12  ;;  %6170 = vmatpush.msra.mxu3 %v13231_v15 }
0x18e2   : > { %v5280_v62 = vsub.f32 1.5, %v5279_v24  ;;  %v5234_v28 = vpop.f32.mrf.mxu0  ;;  %6171 = vmatpush.msra.mxu3 %v13234_v19 }
0x18e3   : > { %v9990_v35 = vpop.eup %9989  ;;  %v13457_v9 = vadd.f32 1e-05, %v5234_v28  ;;  %5965 = vmatpush.bf16.msrb.mxu2 %v9697_v8 }
0x18e4   : > { %v5281_v6 = vmul.f32 %v9988_v27, %v5280_v62  ;;  %v5287_v2 = vmul.f32 %v9990_v35, %v5232_v11  ;;  %vm5293_vm13 = vweird.f32 %v9990_v35 }
0x18e5   : > { %9991 = vrsqrt.f32 %v13457_v9  ;;  %vm5294_vm8 = vmor %vm5292_vm12, %vm5293_vm13  ;;  %vm15524_vm12 = vcmask 1040384  }
0x18e6   : > { %v5285_v23 = vsel %vm5284_vm1, %v9988_v27, %v5281_v6  ;;  %v5288_v55 = vmul.f32 %v9990_v35, %v5287_v2  ;;  %vm5302_vm1 = vweird.f32 %v13457_v9 }
0x18e7   : > { %v5436_v20 = vmul.f32 %v5285_v23, %v13416_v26  ;;  %v9696_v23 = vld [vmem:[#allocation7 + $0x200] sm:$0xff] }
0x18e8   : > { %v5289_v49 = vmul.f32 0.5, %v5288_v55  ;;  %5966 = vmatpush.bf16.msrb.mxu2 %v9696_v23 }
0x18e9   : > { %v5468_v63 = vmul.f32 0.1, %v5436_v20  ;;  %vm5452_vm3 = vcmp.ge.f32.partialorder %v5436_v20, 0.0 }
0x18ea   : > { %v5290_v32 = vsub.f32 1.5, %v5289_v49  ;;  %v5237_v48 = vpop.f32.mrf.mxu0 }
0x18eb   : > { %v9992_v54 = vpop.eup %9991  ;;  %v13461_v25 = vadd.f32 1e-05, %v5237_v48  ;;  %v5484_v7 = vsel %vm5452_vm3, %v5436_v20, %v5468_v63  ;;  %vm15523_vm3 = vcmask 1046528  }
0x18ec   : > { %v5291_v10 = vmul.f32 %v9990_v35, %v5290_v32  ;;  %v5297_v26 = vmul.f32 %v9992_v54, %v13457_v9  ;;  %vm5303_vm10 = vweird.f32 %v9992_v54  ;;  %v5613_v12 = vrot.slane %v5484_v7, 7 }
0x18ed   : > { %9993 = vrsqrt.f32 %v13461_v25  ;;  %v5565_v30 = vrot.slane %v5484_v7, 1  ;;  %vm5304_vm13 = vmor %vm5302_vm1, %vm5303_vm10  ;;  %vm5312_vm1 = vweird.f32 %v13461_v25 }
0x18ee   : > { %v5295_v21 = vsel %vm5294_vm8, %v9990_v35, %v5291_v10  ;;  %v5298_v47 = vmul.f32 %v9992_v54, %v5297_v26  ;;  %v5660_v9 = vsel %vm15524_vm12, %v5484_v7, %v5613_v12  ;;  %vm15525_vm8 = vmmov %vm15524_vm12 }
0x18ef   : > { %v5437_v27 = vmul.f32 %v5295_v21, %v13411_v0  ;;  %v15528_v21 = vld [vmem:[#allocation45_spill] sm:$0xff] }
0x18f0   : > { %v5299_v41 = vmul.f32 0.5, %v5298_v47 }
0x18f1   : > { %vm5453_vm11 = vcmp.ge.f32.partialorder %v5437_v27, 0.0  ;;  %v5469_v11 = vmul.f32 0.1, %v5437_v27 }
0x18f2   : > { %v5300_v60 = vsub.f32 1.5, %v5299_v41  ;;  %v5240_v3 = vpop.f32.mrf.mxu0 }
0x18f3   : > { %v9994_v17 = vpop.eup %9993  ;;  %v13470_v33 = vadd.f32 1e-05, %v5240_v3  ;;  %v13472_v0 = vsel %vm5453_vm11, %v5437_v27, %v5469_v11  ;;  %v15529_v27 = vld [vmem:[#allocation46_spill] sm:$0xff] }
0x18f4   : > { %v5301_v24 = vmul.f32 %v9992_v54, %v5300_v60  ;;  %v5307_v50 = vmul.f32 %v9994_v17, %v13461_v25  ;;  %v5566_v62 = vrot.slane %v13472_v0, 1  ;;  %v5614_v28 = vrot.slane %v13472_v0, 7 }
0x18f5   : > { %9995 = vrsqrt.f32 %v13470_v33  ;;  %v5694_v34 = vpack.c.bf16 %v13472_v0, %v5484_v7  ;;  %vm5313_vm10 = vweird.f32 %v9994_v17 }
0x18f6   : > { %v5305_v56 = vsel %vm5304_vm13, %v9992_v54, %v5301_v24  ;;  %v5308_v35 = vmul.f32 %v9994_v17, %v5307_v50  ;;  %v5567_v39 = vsel %vm15523_vm3, %v5565_v30, %v5566_v62  ;;  %v5615_v6 = vsel %vm15525_vm8, %v5613_v12, %v5614_v28  ;;  %vm5314_vm13 = vmor %vm5312_vm1, %vm5313_vm10  ;;  %v15526_v54 = vld [vmem:[#allocation44_spill] sm:$0xff]  ;;  %v15530_v12 = vld [vmem:[#allocation47_spill] sm:$0xff] }
0x18f7   : > { %v5438_v58 = vmul.f32 %v5305_v56, %v13406_v5  ;;  %5918 = vmatmul.bf16.vlgmr.msrb.gmra.mxu3 %v5694_v34  ;;  %v5661_v2 = vsel %vm10812_vm2, %v5567_v39, %v5660_v9  ;;  %vm15531_vm1 = vmmov %vm15523_vm3 }
0x18f8   : > { %v5309_v55 = vmul.f32 0.5, %v5308_v35  ;;  %v5693_v13 = vpack.c.bf16 %v5615_v6, %v5661_v2  ;;  %6172 = vmatpush.msra.mxu3 %v15526_v54 }
0x18f9   : > { %vm5454_vm11 = vcmp.ge.f32.partialorder %v5438_v58, 0.0  ;;  %v5470_v37 = vmul.f32 0.1, %v5438_v58 }
0x18fa   : > { %v5310_v31 = vsub.f32 1.5, %v5309_v55  ;;  %v5243_v20 = vpop.f32.mrf.mxu0  ;;  %5869 = vmatmul.bf16.vlgmr.msra.gmra.mxu1 %v5693_v13  ;;  %6173 = vmatpush.msra.mxu3 %v15528_v21 }
0x18fb   : > { %v9996_v5 = vpop.eup %9995  ;;  %v5486_v40 = vsel %vm5454_vm11, %v5438_v58, %v5470_v37  ;;  %v13492_v49 = vadd.f32 1e-05, %v5243_v20  ;;  %vm5322_vm11 = vweird.f32 %v13470_v33 }
0x18fc   : > { %v5568_v32 = vrot.slane %v5486_v40, 1  ;;  %v5311_v48 = vmul.f32 %v9994_v17, %v5310_v31  ;;  %v5317_v38 = vmul.f32 %v9996_v5, %v13470_v33  ;;  %vm5323_vm8 = vweird.f32 %v9996_v5  ;;  %6174 = vmatpush.msra.mxu3 %v15529_v27 }
0x18fd   : > { %9997 = vrsqrt.f32 %v13492_v49  ;;  %v5616_v7 = vrot.slane %v5486_v40, 7  ;;  %vm5324_vm10 = vmor %vm5322_vm11, %vm5323_vm8  ;;  %vm5332_vm11 = vweird.f32 %v13492_v49 }
0x18fe   : > { %v5315_v45 = vsel %vm5314_vm13, %v9994_v17, %v5311_v48  ;;  %v5318_v16 = vmul.f32 %v9996_v5, %v5317_v38  ;;  %v5569_v15 = vsel %vm15523_vm3, %v5566_v62, %v5568_v32  ;;  %6175 = vmatpush.msra.mxu3 %v15530_v12  ;;  %vm15532_vm13 = vcmask 1040384   ;;  %v15533_v62 = vld [vmem:[#allocation48_spill] sm:$0xff]  ;;  %v15539_v38 = vld [vmem:[#allocation35_spill] sm:$0xff] }
0x18ff   : > { %v5439_v63 = vmul.f32 %v5315_v45, %v13401_v59  ;;  %v5678_v10 = vsel %vm15316_vm0, %v5615_v6, %v5569_v15  ;;  %v5617_v33 = vsel %vm15532_vm13, %v5614_v28, %v5616_v7  ;;  %vm15534_vm3 = vmmov %vm15532_vm13  ;;  %v15536_v6 = vld [vmem:[#allocation49_spill] sm:$0xff]  ;;  %v15537_v28 = vld [vmem:[#allocation50_spill] sm:$0xff] }
0x1900   : > { %v5319_v26 = vmul.f32 0.5, %v5318_v16  ;;  %v5695_v25 = vpack.c.bf16 %v5678_v10, %v5567_v39  ;;  %6176 = vmatpush.msra.mxu3 %v15533_v62 }
0x1901   : > { %vm5455_vm12 = vcmp.ge.f32.partialorder %v5439_v63, 0.0  ;;  %v5471_v19 = vmul.f32 0.1, %v5439_v63 }
0x1902   : > { %v5320_v47 = vsub.f32 1.5, %v5319_v26  ;;  %v5246_v22 = vpop.f32.mrf.mxu0  ;;  %5967 = vmatmul.bf16.vlgmr.msrb.gmra.mxu2 %v5695_v25  ;;  %6177 = vmatpush.msra.mxu3 %v15536_v6 }
0x1903   : > { %v9998_v61 = vpop.eup %9997  ;;  %v5247_v41 = vadd.f32 1e-05, %v5246_v22  ;;  %v13505_v11 = vsel %vm5455_vm12, %v5439_v63, %v5471_v19 }
0x1904   : > { %v5321_v59 = vmul.f32 %v9996_v5, %v5320_v47  ;;  %v5327_v60 = vmul.f32 %v9998_v61, %v13492_v49  ;;  %v5570_v3 = vrot.slane %v13505_v11, 1  ;;  %v5618_v17 = vrot.slane %v13505_v11, 7  ;;  %6178 = vmatpush.msra.mxu3 %v15537_v28 }
0x1905   : > { %9999 = vrsqrt.f32 %v5247_v41  ;;  %v5697_v8 = vpack.c.bf16 %v13505_v11, %v5486_v40  ;;  %vm5333_vm8 = vweird.f32 %v9998_v61 }
0x1906   : > { %v5325_v30 = vsel %vm5324_vm10, %v9996_v5, %v5321_v59  ;;  %v5328_v24 = vmul.f32 %v9998_v61, %v5327_v60  ;;  %v5571_v50 = vsel %vm15531_vm1, %v5568_v32, %v5570_v3  ;;  %v5619_v56 = vsel %vm15534_vm3, %v5616_v7, %v5618_v17  ;;  %v15538_v5 = vld [vmem:[#allocation37_spill] sm:$0xff]  ;;  %vm5334_vm10 = vmor %vm5332_vm11, %vm5333_vm8 }
0x1907   : > { %v5440_v34 = vmul.f32 %v5325_v30, %v13396_v52  ;;  %5923 = vmatmul.bf16.gmra.mxu3 %v5697_v8  ;;  %v5663_v39 = vsel %vm10833_vm4, %v5571_v50, %v5617_v33  ;;  %vm15541_vm11 = vmmov %vm15531_vm1 }
0x1908   : > { %v5329_v9 = vmul.f32 0.5, %v5328_v24  ;;  %v5696_v58 = vpack.c.bf16 %v5619_v56, %v5663_v39  ;;  %6179 = vmatpush.msra.mxu3 %v15538_v5 }
0x1909   : > { %vm5456_vm12 = vcmp.ge.f32.partialorder %v5440_v34, 0.0  ;;  %v5472_v2 = vmul.f32 0.1, %v5440_v34 }
0x190a   : > { %v5330_v23 = vsub.f32 1.5, %v5329_v9  ;;  %v5249_v0 = vpop.f32.mrf.mxu0  ;;  %5874 = vmatmul.bf16.gmra.mxu1 %v5696_v58  ;;  %6180 = vmatpush.msra.mxu3 %v15539_v38 }
0x190b   : > { %v10000_v55 = vpop.eup %9999  ;;  %v5250_v52 = vadd.f32 1e-05, %v5249_v0  ;;  %v5488_v13 = vsel %vm5456_vm12, %v5440_v34, %v5472_v2  ;;  %vm5342_vm12 = vweird.f32 %v5247_v41 }
0x190c   : > { %v5331_v37 = vmul.f32 %v9998_v61, %v5330_v23  ;;  %v5337_v31 = vmul.f32 %v10000_v55, %v5247_v41  ;;  %v5572_v20 = vrot.slane %v5488_v13, 1  ;;  %vm5343_vm3 = vweird.f32 %v10000_v55 }
0x190d   : > { %10001 = vrsqrt.f32 %v5250_v52  ;;  %v5620_v25 = vrot.slane %v5488_v13, 7  ;;  %vm5344_vm8 = vmor %vm5342_vm12, %vm5343_vm3  ;;  %vm5352_vm12 = vweird.f32 %v5250_v52 }
0x190e   : > { %v5335_v40 = vsel %vm5334_vm10, %v9998_v61, %v5331_v37  ;;  %v5338_v32 = vmul.f32 %v10000_v55, %v5337_v31  ;;  %v5573_v48 = vsel %vm15531_vm1, %v5570_v3, %v5572_v20  ;;  %vm15542_vm10 = vcmask 1040384  }
0x190f   : > { %v5441_v45 = vmul.f32 %v5335_v40, %v13391_v14  ;;  %v5680_v15 = vsel %vm10840_vm5, %v5619_v56, %v5573_v48  ;;  %v5621_v3 = vsel %vm15542_vm10, %v5618_v17, %v5620_v25  ;;  %vm15543_vm1 = vmmov %vm15542_vm10 }
0x1910   : > { %v5339_v54 = vmul.f32 0.5, %v5338_v32  ;;  %v5698_v63 = vpack.c.bf16 %v5680_v15, %v5571_v50 }
0x1911   : > { %vm5457_vm13 = vcmp.ge.f32.partialorder %v5441_v45, 0.0  ;;  %v5473_v49 = vmul.f32 0.1, %v5441_v45 }
0x1912   : > { %v5340_v10 = vsub.f32 1.5, %v5339_v54  ;;  %v5252_v26 = vpop.f32.mrf.mxu0  ;;  %5972 = vmatmul.bf16.gmra.mxu2 %v5698_v63 }
0x1913   : > { %v10002_v21 = vpop.eup %10001  ;;  %v5253_v19 = vadd.f32 1e-05, %v5252_v26  ;;  %v13531_v47 = vsel %vm5457_vm13, %v5441_v45, %v5473_v49 }
0x1914   : > { %v5341_v22 = vmul.f32 %v10000_v55, %v5340_v10  ;;  %v5347_v7 = vmul.f32 %v10002_v21, %v5250_v52  ;;  %v5574_v14 = vrot.slane %v13531_v47, 1  ;;  %v5622_v27 = vrot.slane %v13531_v47, 7 }
0x1915   : > { %10003 = vrsqrt.f32 %v5253_v19  ;;  %v5700_v61 = vpack.c.bf16 %v13531_v47, %v5488_v13  ;;  %vm5353_vm3 = vweird.f32 %v10002_v21 }
0x1916   : > { %v5345_v11 = vsel %vm5344_vm8, %v10000_v55, %v5341_v22  ;;  %v5348_v59 = vmul.f32 %v10002_v21, %v5347_v7  ;;  %v5575_v60 = vsel %vm15541_vm11, %v5572_v20, %v5574_v14  ;;  %v5623_v41 = vsel %vm15543_vm1, %v5620_v25, %v5622_v27  ;;  %vm5354_vm8 = vmor %vm5352_vm12, %vm5353_vm3 }
0x1917   : > { %v5442_v12 = vmul.f32 %v5345_v11, %v13386_v57  ;;  %5928 = vmatmul.bf16.gmra.mxu3 %v5700_v61  ;;  %v5665_v30 = vsel %vm10854_vm6, %v5575_v60, %v5621_v3  ;;  %vm15546_vm12 = vmmov %vm15541_vm11 }
0x1918   : > { %v5349_v24 = vmul.f32 0.5, %v5348_v59  ;;  %v5699_v50 = vpack.c.bf16 %v5623_v41, %v5665_v30 }
0x1919   : > { %vm5458_vm13 = vcmp.ge.f32.partialorder %v5442_v12, 0.0  ;;  %v5474_v33 = vmul.f32 0.1, %v5442_v12 }
0x191a   : > { %v5350_v62 = vsub.f32 1.5, %v5349_v24  ;;  %v5255_v34 = vpop.f32.mrf.mxu0  ;;  %5879 = vmatmul.bf16.gmra.mxu1 %v5699_v50 }
0x191b   : > { %v10004_v56 = vpop.eup %10003  ;;  %v5256_v39 = vadd.f32 1e-05, %v5255_v34  ;;  %v5490_v9 = vsel %vm5458_vm13, %v5442_v12, %v5474_v33  ;;  %vm5362_vm13 = vweird.f32 %v5253_v19  ;;  %v15552_v33 = vld [vmem:[#allocation26_spill] sm:$0xff] }
0x191c   : > { %v5351_v17 = vmul.f32 %v10002_v21, %v5350_v62  ;;  %v5357_v57 = vmul.f32 %v10004_v56, %v5253_v19  ;;  %v5576_v58 = vrot.slane %v5490_v9, 1  ;;  %vm5363_vm1 = vweird.f32 %v10004_v56  ;;  %v15549_v19 = vld [vmem:[#allocation25_spill] sm:$0xff] }
0x191d   : > { %10005 = vrsqrt.f32 %v5256_v39  ;;  %v5624_v5 = vrot.slane %v5490_v9, 7  ;;  %vm5364_vm3 = vmor %vm5362_vm13, %vm5363_vm1 }
0x191e   : > { %v5355_v6 = vsel %vm5354_vm8, %v10002_v21, %v5351_v17  ;;  %v5358_v2 = vmul.f32 %v10004_v56, %v5357_v57  ;;  %v5577_v23 = vsel %vm15541_vm11, %v5574_v14, %v5576_v58  ;;  %vm15547_vm8 = vcmask 1040384  }
0x191f   : > { %v5443_v0 = vmul.f32 %v5355_v6, %v13381_v42  ;;  %v5682_v55 = vsel %vm10861_vm7, %v5623_v41, %v5577_v23  ;;  %v5625_v26 = vsel %vm15547_vm8, %v5622_v27, %v5624_v5  ;;  %vm15548_vm11 = vmmov %vm15547_vm8  ;;  %vm15551_vm8 = vcmask 1046528  }
0x1920   : > { %v5359_v13 = vmul.f32 0.5, %v5358_v2  ;;  %v5701_v37 = vpack.c.bf16 %v5682_v55, %v5575_v60 }
0x1921   : > { %vm5459_vm10 = vcmp.ge.f32.partialorder %v5443_v0, 0.0  ;;  %v5475_v31 = vmul.f32 0.1, %v5443_v0 }
0x1922   : > { %v5360_v20 = vsub.f32 1.5, %v5359_v13  ;;  %v5258_v52 = vpop.f32.mrf.mxu0  ;;  %5977 = vmatmul.bf16.gmra.mxu2 %v5701_v37 }
0x1923   : > { %v10006_v40 = vpop.eup %10005  ;;  %v5259_v32 = vadd.f32 1e-05, %v5258_v52  ;;  %v13546_v48 = vsel %vm5459_vm10, %v5443_v0, %v5475_v31  ;;  %vm15550_vm10 = vnez %v15549_v19 }
0x1924   : > { %v5361_v38 = vmul.f32 %v10004_v56, %v5360_v20  ;;  %v5367_v45 = vmul.f32 %v10006_v40, %v5256_v39  ;;  %v5578_v42 = vrot.slane %v13546_v48, 1  ;;  %v5626_v15 = vrot.slane %v13546_v48, 7 }
0x1925   : > { %10007 = vrsqrt.f32 %v5259_v32  ;;  %v5703_v54 = vpack.c.bf16 %v13546_v48, %v5490_v9  ;;  %vm5373_vm13 = vweird.f32 %v10006_v40 }
0x1926   : > { %v5365_v63 = vsel %vm5364_vm3, %v10004_v56, %v5361_v38  ;;  %v5368_v49 = vmul.f32 %v10006_v40, %v5367_v45  ;;  %v5579_v10 = vsel %vm15546_vm12, %v5576_v58, %v5578_v42  ;;  %v5627_v21 = vsel %vm15548_vm11, %v5624_v5, %v5626_v15 }
0x1927   : > { %v5444_v25 = vmul.f32 %v5365_v63, %v13376_v43  ;;  %5933 = vmatmul.bf16.gmra.mxu3 %v5703_v54  ;;  %v5667_v47 = vsel %vm15550_vm10, %v5579_v10, %v5625_v26  ;;  %vm5372_vm3 = vweird.f32 %v5256_v39  ;;  %vm15553_vm11 = vnez %v15552_v33 }
0x1928   : > { %v5369_v22 = vmul.f32 0.5, %v5368_v49  ;;  %v5702_v7 = vpack.c.bf16 %v5627_v21, %v5667_v47  ;;  %vm5374_vm12 = vmor %vm5372_vm3, %vm5373_vm13  ;;  %vm5382_vm13 = vweird.f32 %v5259_v32 }
0x1929   : > { %vm5460_vm1 = vcmp.ge.f32.partialorder %v5444_v25, 0.0  ;;  %v5476_v14 = vmul.f32 0.1, %v5444_v25 }
0x192a   : > { %v5370_v61 = vsub.f32 1.5, %v5369_v22  ;;  %v5261_v11 = vpop.f32.mrf.mxu0  ;;  %5884 = vmatmul.bf16.gmra.mxu1 %v5702_v7 }
0x192b   : > { %v10008_v59 = vpop.eup %10007  ;;  %v5262_v60 = vadd.f32 1e-05, %v5261_v11  ;;  %v5492_v3 = vsel %vm5460_vm1, %v5444_v25, %v5476_v14  ;;  %v15559_v14 = vld [vmem:[#allocation28_spill] sm:$0xff] }
0x192c   : > { %v5371_v27 = vmul.f32 %v10006_v40, %v5370_v61  ;;  %v5377_v43 = vmul.f32 %v10008_v59, %v5259_v32  ;;  %v5580_v12 = vrot.slane %v5492_v3, 1  ;;  %vm5383_vm1 = vweird.f32 %v10008_v59 }
0x192d   : > { %10009 = vrsqrt.f32 %v5262_v60  ;;  %v5628_v57 = vrot.slane %v5492_v3, 7  ;;  %vm5384_vm3 = vmor %vm5382_vm13, %vm5383_vm1 }
0x192e   : > { %v5375_v41 = vsel %vm5374_vm12, %v10006_v40, %v5371_v27  ;;  %v5378_v30 = vmul.f32 %v10008_v59, %v5377_v43  ;;  %v5581_v24 = vsel %vm15551_vm8, %v5578_v42, %v5580_v12  ;;  %vm15554_vm12 = vmmov %vm15551_vm8  ;;  %vm15555_vm8 = vcmask 1040384  }
0x192f   : > { %v5445_v50 = vmul.f32 %v5375_v41, %v13371_v44  ;;  %v5684_v62 = vsel %vm15553_vm11, %v5627_v21, %v5581_v24  ;;  %v5629_v52 = vsel %vm15555_vm8, %v5626_v15, %v5628_v57 }
0x1930   : > { %v5379_v34 = vmul.f32 0.5, %v5378_v30  ;;  %v5704_v56 = vpack.c.bf16 %v5684_v62, %v5579_v10 }
0x1931   : > { %vm5461_vm10 = vcmp.ge.f32.partialorder %v5445_v50, 0.0  ;;  %v5477_v9 = vmul.f32 0.1, %v5445_v50 }
0x1932   : > { %v5380_v17 = vsub.f32 1.5, %v5379_v34  ;;  %v5264_v39 = vpop.f32.mrf.mxu0  ;;  %5982 = vmatmul.bf16.gmra.mxu2 %v5704_v56 }
0x1933   : > { %v10010_v58 = vpop.eup %10009  ;;  %v5265_v6 = vadd.f32 1e-05, %v5264_v39  ;;  %v13561_v2 = vsel %vm5461_vm10, %v5445_v50, %v5477_v9  ;;  %vm15556_vm10 = vmmov %vm15555_vm8  ;;  %vm15558_vm8 = vcmask 1046528  }
0x1934   : > { %v5381_v23 = vmul.f32 %v10008_v59, %v5380_v17  ;;  %v5387_v0 = vmul.f32 %v10010_v58, %v5262_v60  ;;  %v5582_v44 = vrot.slane %v13561_v2, 1  ;;  %v5630_v55 = vrot.slane %v13561_v2, 7 }
0x1935   : > { %10011 = vrsqrt.f32 %v5265_v6  ;;  %v5706_v13 = vpack.c.bf16 %v13561_v2, %v5492_v3  ;;  %vm5393_vm13 = vweird.f32 %v10010_v58 }
0x1936   : > { %v5385_v37 = vsel %vm5384_vm3, %v10008_v59, %v5381_v23  ;;  %v5388_v31 = vmul.f32 %v10010_v58, %v5387_v0  ;;  %v5583_v20 = vsel %vm15554_vm12, %v5580_v12, %v5582_v44  ;;  %v5631_v40 = vsel %vm15556_vm10, %v5628_v57, %v5630_v55 }
0x1937   : > { %v5446_v5 = vmul.f32 %v5385_v37, %v13366_v36  ;;  %5938 = vmatmul.bf16.gmra.mxu3 %v5706_v13  ;;  %v5669_v48 = vsel %vm15450_vm15, %v5583_v20, %v5629_v52  ;;  %vm5392_vm3 = vweird.f32 %v5262_v60  ;;  %vm15560_vm10 = vnez %v15559_v14 }
0x1938   : > { %v5389_v38 = vmul.f32 0.5, %v5388_v31  ;;  %v5705_v45 = vpack.c.bf16 %v5631_v40, %v5669_v48  ;;  %vm5394_vm12 = vmor %vm5392_vm3, %vm5393_vm13  ;;  %vm5402_vm13 = vweird.f32 %v5265_v6 }
0x1939   : > { %vm5462_vm1 = vcmp.ge.f32.partialorder %v5446_v5, 0.0  ;;  %v5478_v42 = vmul.f32 0.1, %v5446_v5 }
0x193a   : > { %v5390_v54 = vsub.f32 1.5, %v5389_v38  ;;  %v5267_v63 = vpop.f32.mrf.mxu0  ;;  %5889 = vmatmul.bf16.gmra.mxu1 %v5705_v45 }
0x193b   : > { %v10012_v49 = vpop.eup %10011  ;;  %v5494_v10 = vsel %vm5462_vm1, %v5446_v5, %v5478_v42  ;;  %v5268_v26 = vadd.f32 1e-05, %v5267_v63 }
0x193c   : > { %v5391_v15 = vmul.f32 %v10010_v58, %v5390_v54  ;;  %v5397_v36 = vmul.f32 %v10012_v49, %v5265_v6  ;;  %v5584_v25 = vrot.slane %v5494_v10, 1  ;;  %vm5403_vm1 = vweird.f32 %v10012_v49 }
0x193d   : > { %10013 = vrsqrt.f32 %v5268_v26  ;;  %v5632_v43 = vrot.slane %v5494_v10, 7  ;;  %vm5404_vm3 = vmor %vm5402_vm13, %vm5403_vm1  ;;  %vm5412_vm13 = vweird.f32 %v5268_v26 }
0x193e   : > { %v5395_v21 = vsel %vm5394_vm12, %v10010_v58, %v5391_v15  ;;  %v5398_v47 = vmul.f32 %v10012_v49, %v5397_v36  ;;  %v5585_v22 = vsel %vm15558_vm8, %v5582_v44, %v5584_v25  ;;  %vm15561_vm12 = vmmov %vm15558_vm8  ;;  %vm15562_vm8 = vcmask 1040384  }
0x193f   : > { %v5447_v7 = vmul.f32 %v5395_v21, %v13361_v51  ;;  %v5686_v61 = vsel %vm15560_vm10, %v5631_v40, %v5585_v22  ;;  %v5633_v39 = vsel %vm15562_vm8, %v5630_v55, %v5632_v43  ;;  %vm15563_vm10 = vmmov %vm15562_vm8 }
0x1940   : > { %v5399_v11 = vmul.f32 0.5, %v5398_v47  ;;  %v5707_v59 = vpack.c.bf16 %v5686_v61, %v5583_v20 }
0x1941   : > { %vm5463_vm15 = vcmp.ge.f32.partialorder %v5447_v7, 0.0  ;;  %v5479_v3 = vmul.f32 0.1, %v5447_v7 }
0x1942   : > { %v5400_v27 = vsub.f32 1.5, %v5399_v11  ;;  %v5270_v60 = vpop.f32.mrf.mxu0  ;;  %5987 = vmatmul.bf16.gmra.mxu2 %v5707_v59 }
0x1943   : > { %v10014_v12 = vpop.eup %10013  ;;  %v5271_v41 = vadd.f32 1e-05, %v5270_v60  ;;  %v5495_v30 = vsel %vm5463_vm15, %v5447_v7, %v5479_v3 }
0x1944   : > { %v5401_v24 = vmul.f32 %v10012_v49, %v5400_v27  ;;  %v5407_v50 = vmul.f32 %v10014_v12, %v5268_v26  ;;  %v5586_v62 = vrot.slane %v5495_v30, 1  ;;  %v5634_v51 = vrot.slane %v5495_v30, 7 }
0x1945   : > { %10015 = vrsqrt.f32 %v5271_v41  ;;  %v5709_v34 = vpack.c.bf16 %v5495_v30, %v5494_v10  ;;  %vm5413_vm1 = vweird.f32 %v10014_v12 }
0x1946   : > { %v5405_v56 = vsel %vm5404_vm3, %v10012_v49, %v5401_v24  ;;  %v5408_v9 = vmul.f32 %v10014_v12, %v5407_v50  ;;  %v5587_v17 = vsel %vm15561_vm12, %v5584_v25, %v5586_v62  ;;  %v5635_v58 = vsel %vm15563_vm10, %v5632_v43, %v5634_v51  ;;  %vm5414_vm3 = vmor %vm5412_vm13, %vm5413_vm1  ;;  %v15570_v43 = vld [vmem:[#allocation31_spill] sm:$0xff] }
0x1947   : > { %v5448_v57 = vmul.f32 %v5405_v56, %v13356_v18  ;;  %5943 = vmatmul.bf16.gmra.mxu3 %v5709_v34  ;;  %v5671_v6 = vsel %vm15261_vm9, %v5587_v17, %v5633_v39  ;;  %vm15565_vm10 = vmmov %vm15561_vm12 }
0x1948   : > { %v5409_v23 = vmul.f32 0.5, %v5408_v9  ;;  %v5708_v0 = vpack.c.bf16 %v5635_v58, %v5671_v6  ;;  %vm15567_vm13 = vmmov %vm15565_vm10 }
0x1949   : > { %vm5464_vm15 = vcmp.ge.f32.partialorder %v5448_v57, 0.0  ;;  %v5480_v44 = vmul.f32 0.1, %v5448_v57 }
0x194a   : > { %v5410_v13 = vsub.f32 1.5, %v5409_v23  ;;  %v5273_v37 = vpop.f32.mrf.mxu0  ;;  %5894 = vmatmul.bf16.gmra.mxu1 %v5708_v0 }
0x194b   : > { %v10016_v31 = vpop.eup %10015  ;;  %v5496_v20 = vsel %vm5464_vm15, %v5448_v57, %v5480_v44  ;;  %v5274_v52 = vadd.f32 1e-05, %v5273_v37  ;;  %vm5422_vm15 = vweird.f32 %v5271_v41 }
0x194c   : > { %v5411_v55 = vmul.f32 %v10014_v12, %v5410_v13  ;;  %v5417_v18 = vmul.f32 %v10016_v31, %v5271_v41  ;;  %v5588_v5 = vrot.slane %v5496_v20, 1  ;;  %vm5423_vm8 = vweird.f32 %v10016_v31 }
0x194d   : > { %10017 = vrsqrt.f32 %v5274_v52  ;;  %v5636_v26 = vrot.slane %v5496_v20, 7  ;;  %vm5424_vm1 = vmor %vm5422_vm15, %vm5423_vm8  ;;  %vm5432_vm8 = vweird.f32 %v5274_v52 }
0x194e   : > { %v5415_v40 = vsel %vm5414_vm3, %v10014_v12, %v5411_v55  ;;  %v5418_v48 = vmul.f32 %v10016_v31, %v5417_v18  ;;  %v5589_v38 = vsel %vm15565_vm10, %v5586_v62, %v5588_v5  ;;  %vm15568_vm3 = vcmask 1040384  }
0x194f   : > { %v5449_v45 = vmul.f32 %v5415_v40, %v13351_v4  ;;  %v5688_v54 = vsel %vm15264_vm14, %v5635_v58, %v5589_v38  ;;  %v5637_v3 = vsel %vm15568_vm3, %v5634_v51, %v5636_v26  ;;  %vm15569_vm10 = vmmov %vm15568_vm3 }
0x1950   : > { %v5419_v63 = vmul.f32 0.5, %v5418_v48  ;;  %v5710_v49 = vpack.c.bf16 %v5688_v54, %v5587_v17  ;;  %v15572_v17 = vld [vmem:[#allocation32_spill] sm:$0xff] }
0x1951   : > { %vm5465_vm12 = vcmp.ge.f32.partialorder %v5449_v45, 0.0  ;;  %v5481_v10 = vmul.f32 0.1, %v5449_v45  ;;  %vm15573_vm3 = vnez %v15572_v17 }
0x1952   : > { %v5420_v15 = vsub.f32 1.5, %v5419_v63  ;;  %5992 = vmatmul.bf16.gmra.mxu2 %v5710_v49 }
0x1953   : > { %v10018_v36 = vpop.eup %10017  ;;  %v5497_v25 = vsel %vm5465_vm12, %v5449_v45, %v5481_v10  ;;  %vm15571_vm12 = vnez %v15570_v43 }
0x1954   : > { %v5421_v21 = vmul.f32 %v10016_v31, %v5420_v15  ;;  %v5427_v47 = vmul.f32 %v10018_v36, %v5274_v52  ;;  %v5590_v22 = vrot.slane %v5497_v25, 1  ;;  %v5638_v7 = vrot.slane %v5497_v25, 7 }
0x1955   : > { %v5712_v4 = vpack.c.bf16 %v5497_v25, %v5496_v20  ;;  %vm5433_vm15 = vweird.f32 %v10018_v36 }
0x1956   : > { %v5425_v61 = vsel %vm5424_vm1, %v10016_v31, %v5421_v21  ;;  %v5428_v11 = vmul.f32 %v10018_v36, %v5427_v47  ;;  %v5591_v59 = vsel %vm15567_vm13, %v5588_v5, %v5590_v22  ;;  %v5639_v60 = vsel %vm15569_vm10, %v5636_v26, %v5638_v7  ;;  %vm5434_vm1 = vmor %vm5432_vm8, %vm5433_vm15  ;;  %v15579_v5 = vld [vmem:[#allocation34_spill] sm:$0xff] }
0x1957   : > { %v5450_v27 = vmul.f32 %v5425_v61, %v13345_v29  ;;  %5948 = vmatmul.bf16.gmra.mxu3 %v5712_v4  ;;  %v5673_v12 = vsel %vm15571_vm12, %v5591_v59, %v5637_v3  ;;  %vm15575_vm8 = vcmask 1040384  }
0x1958   : > { %v5429_v41 = vmul.f32 0.5, %v5428_v11  ;;  %v5711_v30 = vpack.c.bf16 %v5639_v60, %v5673_v12  ;;  %vm15576_vm15 = vmmov %vm15575_vm8 }
0x1959   : > { %vm5466_vm14 = vcmp.ge.f32.partialorder %v5450_v27, 0.0  ;;  %v5482_v24 = vmul.f32 0.1, %v5450_v27 }
0x195a   : > { %v5430_v50 = vsub.f32 1.5, %v5429_v41  ;;  %5899 = vmatmul.bf16.gmra.mxu1 %v5711_v30 }
0x195b   : > { %v5498_v62 = vsel %vm5466_vm14, %v5450_v27, %v5482_v24  ;;  %vm15574_vm14 = vmmov %vm15567_vm13 }
0x195c   : > { %v5431_v34 = vmul.f32 %v10018_v36, %v5430_v50  ;;  %v5592_v56 = vrot.slane %v5498_v62, 1  ;;  %v5640_v6 = vrot.slane %v5498_v62, 7 }
0x195e   : > { %v5435_v51 = vsel %vm5434_vm1, %v10018_v36, %v5431_v34  ;;  %v5593_v29 = vsel %vm15567_vm13, %v5590_v22, %v5592_v56  ;;  %v5641_v31 = vsel %vm15575_vm8, %v5638_v7, %v5640_v6 }
0x195f   : > { %v5451_v9 = vmul.f32 %v5435_v51, %v13348_v46  ;;  %v5690_v39 = vsel %vm15573_vm3, %v5639_v60, %v5593_v29  ;;  %v15577_v46 = vld [vmem:[#allocation33_spill] sm:$0xff]  ;;  %vm15580_vm3 = vnez %v15579_v5 }
0x1960   : > { %v5713_v57 = vpack.c.bf16 %v5690_v39, %v5591_v59  ;;  %vm15578_vm1 = vnez %v15577_v46 }
0x1961   : > { %vm5467_vm10 = vcmp.ge.f32.partialorder %v5451_v9, 0.0  ;;  %v5483_v58 = vmul.f32 0.1, %v5451_v9 }
0x1962   : > { %5997 = vmatmul.bf16.gmra.mxu2 %v5713_v57 }
0x1963   : > { %v5499_v23 = vsel %vm5467_vm10, %v5451_v9, %v5483_v58  ;;  %vm15590_vm10 = vcmask 64512  }
0x1964   : > { %v5715_v0 = vpack.c.bf16 %v5499_v23, %v5498_v62  ;;  %v5594_v44 = vrot.slane %v5499_v23, 1  ;;  %v5642_v13 = vrot.slane %v5499_v23, 7  ;;  %vm15592_vm8 = vmmov %vm15590_vm10 }
0x1966   : > { %v5595_v37 = vsel %vm15574_vm14, %v5592_v56, %v5594_v44  ;;  %v5643_v20 = vsel %vm15576_vm15, %v5640_v6, %v5642_v13  ;;  %v5612_v18 = vsel %vm15567_vm13, %v5594_v44, %v5499_v23  ;;  %vm15591_vm14 = vmmov %vm15590_vm10 }
0x1967   : > { %5953 = vmatmul.bf16.gmra.mxu3 %v5715_v0  ;;  %v5675_v52 = vsel %vm15578_vm1, %v5595_v37, %v5641_v31  ;;  %v5692_v40 = vsel %vm15580_vm3, %v5643_v20, %v5612_v18  ;;  %vm15593_vm15 = vmmov %vm15592_vm8 }
0x1968   : > { %v5714_v55 = vpack.c.bf16 %v5643_v20, %v5675_v52  ;;  %v5716_v48 = vpack.c.bf16 %v5692_v40, %v5595_v37  ;;  %vm15594_vm13 = vmmov %vm15592_vm8 }
0x1969   : > { %vm15608_vm3 = vmmov %vm15592_vm8 }
0x196a   : > { %5904 = vmatmul.bf16.gmra.mxu1 %v5714_v55  ;;  %vm15609_vm1 = vmmov %vm15608_vm3 }
0x1972   : > { %6002 = vmatmul.bf16.gmra.mxu2 %v5716_v48 }
0x1977   : > { %v13604_v38 = vpop.f32.mrf.mxu1 }
0x197a   : > { %v13606_v45 = vpop.f32.mrf.mxu3 }
0x197f   : > { %v13608_v54 = vpop.f32.mrf.mxu1 }
0x1982   : > { %v13610_v63 = vpop.f32.mrf.mxu3 }
0x1985   : > { %v13612_v49 = vpop.f32.mrf.mxu2 }
0x1987   : > { %v13614_v10 = vpop.f32.mrf.mxu1 }
0x198a   : > { %v13616_v15 = vpop.f32.mrf.mxu3 }
0x198d   : > { %v13618_v26 = vpop.f32.mrf.mxu2 }
0x198f   : > { %v13620_v36 = vpop.f32.mrf.mxu1 }
0x1992   : > { %v13622_v25 = vpop.f32.mrf.mxu3 }
0x1995   : > { %v13624_v21 = vpop.f32.mrf.mxu2 }
0x1997   : > { %v13626_v47 = vpop.f32.mrf.mxu1 }
0x199a   : > { %v13628_v22 = vpop.f32.mrf.mxu3 }
0x199d   : > { %v13630_v7 = vpop.f32.mrf.mxu2 }
0x199f   : > { %v5882_v4 = vpop.f32.mrf.mxu1 }
0x19a2   : > { %v5931_v61 = vpop.f32.mrf.mxu3 }
0x19a5   : > { %v13632_v11 = vpop.f32.mrf.mxu2 }
0x19a7   : > { %v5885_v59 = vpop.f32.mrf.mxu1 }
0x19aa   : > { %v5934_v3 = vpop.f32.mrf.mxu3 }
0x19ad   : > { %v5980_v27 = vpop.f32.mrf.mxu2 }
0x19af   : > { %v5887_v60 = vpop.f32.mrf.mxu1 }
0x19b2   : > { %v5936_v12 = vpop.f32.mrf.mxu3 }
0x19b5   : > { %v5983_v41 = vpop.f32.mrf.mxu2 }
0x19b7   : > { %v5890_v30 = vpop.f32.mrf.mxu1 }
0x19ba   : > { %v5939_v24 = vpop.f32.mrf.mxu3 }
0x19bd   : > { %v5985_v50 = vpop.f32.mrf.mxu2 }
0x19bf   : > { %v5892_v62 = vpop.f32.mrf.mxu1 }
0x19c2   : > { %v5941_v34 = vpop.f32.mrf.mxu3 }
0x19c5   : > { %v5988_v56 = vpop.f32.mrf.mxu2 }
0x19c7   : > { %v5895_v51 = vpop.f32.mrf.mxu1 }
0x19ca   : > { %v5944_v29 = vpop.f32.mrf.mxu3 }
0x19cd   : > { %v5990_v9 = vpop.f32.mrf.mxu2 }
0x19cf   : > { %v5897_v57 = vpop.f32.mrf.mxu1 }
0x19d2   : > { %v5946_v39 = vpop.f32.mrf.mxu3 }
0x19d3   : > { %v5947_v32 = vadd.f32 %v5946_v39, %v5897_v57  ;;  %v5937_v39 = vadd.f32 %v5936_v12, %v5887_v60  ;;  %v5927_v60 = vadd.f32 %v13622_v25, %v13620_v36  ;;  %v5920_v36 = vadd.f32 %v13606_v45, %v13604_v38  ;;  %v13703_v38 = vld [vmem:[#allocation11 + $0x70] sm:$0xff]  ;;  %v13706_v45 = vld [vmem:[#allocation11 + $0x68] sm:$0xff]  ;;  %v13733_v12 = vld [vmem:[#allocation11 + $0x20] sm:$0xff] }
0x19d4   : > { %15585 = vst [vmem:[#allocation47_spill] sm:$0xff] %v13733_v12 }
0x19d5   : > { %v5993_v58 = vpop.f32.mrf.mxu2 }
0x19d7   : > { %v5900_v23 = vpop.f32.mrf.mxu1 }
0x19da   : > { %v5949_v6 = vpop.f32.mrf.mxu3 }
0x19db   : > { %v5950_v2 = vadd.f32 %v5949_v6, %v5900_v23  ;;  %v5940_v6 = vadd.f32 %v5939_v24, %v5890_v30  ;;  %v5930_v30 = vadd.f32 %v13628_v22, %v13626_v47  ;;  %v5922_v47 = vadd.f32 %v13610_v63, %v13608_v54  ;;  %v13697_v54 = vld [vmem:[#allocation8] sm:$0xff]  ;;  %v13752_v23 = vld [vmem:[#allocation10 + $0x8] sm:$0xff] }
0x19dc   : > { %v13700_v63 = vld [vmem:[#allocation11 + $0x78] sm:$0xff] }
0x19dd   : > { %v5995_v0 = vpop.f32.mrf.mxu2  ;;  %v13689_v25 = vadd.f32 %v13618_v26, %v5922_v47  ;;  %v13715_v26 = vld [vmem:[#allocation11 + $0x50] sm:$0xff] }
0x19df   : > { %v5902_v37 = vpop.f32.mrf.mxu1 }
0x19e2   : > { %v5951_v44 = vpop.f32.mrf.mxu3 }
0x19e3   : > { %v5952_v43 = vadd.f32 %v5951_v44, %v5902_v37  ;;  %v13760_v44 = vld [vmem:[#allocation10 + $0x18] sm:$0xff]  ;;  %v13768_v37 = vld [vmem:[#allocation10 + $0x28] sm:$0xff] }
0x19e5   : > { %v5998_v13 = vpop.f32.mrf.mxu2 }
0x19e6   : > { %v13642_v33 = vadd.f32 %v5998_v13, %v5950_v2  ;;  %v13654_v2 = vadd.f32 %v5988_v56, %v5940_v6  ;;  %v13742_v56 = vld [vmem:[#allocation11 + $0x8] sm:$0xff]  ;;  %v13764_v13 = vld [vmem:[#allocation10 + $0x20] sm:$0xff] }
0x19e7   : > { %v5905_v52 = vpop.f32.mrf.mxu1  ;;  %15588 = vst [vmem:[#allocation50_spill] sm:$0xff] %v13742_v56  ;;  %v13800_v6 = vld [vmem:[#allocation10 + $0x68] sm:$0xff] }
0x19ea   : > { %v5954_v20 = vpop.f32.mrf.mxu3 }
0x19eb   : > { %v5955_v46 = vadd.f32 %v5954_v20, %v5905_v52  ;;  %v13776_v20 = vld [vmem:[#allocation10 + $0x38] sm:$0xff]  ;;  %v13780_v52 = vld [vmem:[#allocation10 + $0x40] sm:$0xff] }
0x19ed   : > { %v6000_v31 = vpop.f32.mrf.mxu2 }
0x19ee   : > { %v13639_v14 = vadd.f32 %v6000_v31, %v5952_v43  ;;  %v13772_v31 = vld [vmem:[#allocation10 + $0x30] sm:$0xff] }
0x19ef   : > { %v5907_v40 = vpop.f32.mrf.mxu1 }
0x19f2   : > { %v5956_v18 = vpop.f32.mrf.mxu3 }
0x19f3   : > { %v5957_v48 = vadd.f32 %v5956_v18, %v5907_v40  ;;  %v5945_v18 = vadd.f32 %v5944_v29, %v5895_v51  ;;  %v13645_v40 = vadd.f32 %v5995_v0, %v5947_v32  ;;  %v5935_v51 = vadd.f32 %v5934_v3, %v5885_v59  ;;  %v13727_v3 = vld [vmem:[#allocation11 + $0x30] sm:$0xff]  ;;  %v13745_v29 = vld [vmem:[#allocation11] sm:$0xff] }
0x19f4   : > { %v13657_v32 = vadd.f32 %v5985_v50, %v5937_v39  ;;  %v13671_v59 = vadd.f32 %v13632_v11, %v5930_v30  ;;  %v13724_v11 = vld [vmem:[#allocation11 + $0x38] sm:$0xff]  ;;  %15583 = vst [vmem:[#allocation45_spill] sm:$0xff] %v13727_v3  ;;  %v13739_v50 = vld [vmem:[#allocation11 + $0x10] sm:$0xff] }
0x19f5   : > { %v6003_v55 = vpop.f32.mrf.mxu2  ;;  %15582 = vst [vmem:[#allocation44_spill] sm:$0xff] %v13724_v11  ;;  %v13756_v0 = vld [vmem:[#allocation10 + $0x10] sm:$0xff] }
0x19f6   : > { %v13636_v42 = vadd.f32 %v6003_v55, %v5955_v46  ;;  %v13648_v46 = vadd.f32 %v5993_v58, %v5945_v18  ;;  %15587 = vst [vmem:[#allocation49_spill] sm:$0xff] %v13739_v50  ;;  %v13748_v58 = vld [vmem:[#allocation10] sm:$0xff]  ;;  %v13784_v55 = vld [vmem:[#allocation10 + $0x48] sm:$0xff]  ;;  %v13792_v18 = vld [vmem:[#allocation10 + $0x58] sm:$0xff] }
0x19f7   : > { %15589 = vst [vmem:[#allocation37_spill] sm:$0xff] %v13745_v29  ;;  %v13804_v39 = vld [vmem:[#allocation10 + $0x70] sm:$0xff] }
0x19fd   : > { %v6005_v5 = vpop.f32.mrf.mxu2 }
0x19fe   : > { %v13634_v17 = vadd.f32 %v6005_v5, %v5957_v48  ;;  %v5942_v5 = vadd.f32 %v5941_v34, %v5892_v62  ;;  %v5932_v62 = vadd.f32 %v5931_v61, %v5882_v4  ;;  %v13660_v34 = vadd.f32 %v5983_v41, %v5935_v51  ;;  %v13736_v41 = vld [vmem:[#allocation11 + $0x18] sm:$0xff]  ;;  %v13788_v48 = vld [vmem:[#allocation10 + $0x50] sm:$0xff] }
0x19ff   : > { %v5925_v4 = vadd.f32 %v13616_v15, %v13614_v10  ;;  %v13677_v61 = vadd.f32 %v13630_v7, %v5927_v60  ;;  %v13693_v10 = vadd.f32 %v13612_v49, %v5920_v36  ;;  %v13709_v49 = vld [vmem:[#allocation11 + $0x60] sm:$0xff]  ;;  %v13712_v15 = vld [vmem:[#allocation11 + $0x58] sm:$0xff]  ;;  %15586 = vst [vmem:[#allocation48_spill] sm:$0xff] %v13736_v41 }
0x1a00   : > { %6008 = vmatpush.msrb.mxu0 %v13634_v17  ;;  %v13651_v43 = vadd.f32 %v5990_v9, %v5942_v5  ;;  %v13665_v24 = vadd.f32 %v5980_v27, %v5932_v62  ;;  %v13721_v7 = vld [vmem:[#allocation11 + $0x40] sm:$0xff]  ;;  %v13730_v27 = vld [vmem:[#allocation11 + $0x28] sm:$0xff]  ;;  %v13808_v51 = vld [vmem:[#allocation10 + $0x78] sm:$0xff] }
0x1a01   : > { %v13683_v22 = vadd.f32 %v13624_v21, %v5925_v4  ;;  %v13718_v21 = vld [vmem:[#allocation11 + $0x48] sm:$0xff]  ;;  %15581 = vst [vmem:[#allocation36_spill] sm:$0xff] %v13721_v7  ;;  %v13796_v5 = vld [vmem:[#allocation10 + $0x60] sm:$0xff] }
0x1a02   : > { %6009 = vmatpush.msrb.mxu0 %v13636_v42  ;;  %15584 = vst [vmem:[#allocation46_spill] sm:$0xff] %v13730_v27 }
0x1a04   : > { %6010 = vmatpush.msrb.mxu0 %v13639_v14 }
0x1a06   : > { %6011 = vmatpush.msrb.mxu0 %v13642_v33 }
0x1a08   : > { %6012 = vmatpush.msrb.mxu0 %v13645_v40 }
0x1a0a   : > { %6013 = vmatpush.msrb.mxu0 %v13648_v46 }
0x1a0c   : > { %6014 = vmatpush.msrb.mxu0 %v13651_v43 }
0x1a0e   : > { %6015 = vmatpush.msrb.mxu0 %v13654_v2 }
0x1a10   : > { %6016 = vmatpush.msrb.mxu0 %v13657_v32 }
0x1a12   : > { %6017 = vmatpush.msrb.mxu0 %v13660_v34 }
0x1a14   : > { %6018 = vmatpush.msrb.mxu0 %v13665_v24 }
0x1a16   : > { %6019 = vmatpush.msrb.mxu0 %v13671_v59 }
0x1a18   : > { %6020 = vmatpush.msrb.mxu0 %v13677_v61 }
0x1a1a   : > { %6021 = vmatpush.msrb.mxu0 %v13683_v22 }
0x1a1c   : > { %6022 = vmatpush.msrb.mxu0 %v13689_v25 }
0x1a1e   : > { %6023 = vmatpush.msrb.mxu0 %v13693_v10 }
0x1a1f   : > { %6024 = vmatmul.f32.vlgmr.msrb.gmra.mxu0 %v13697_v54 }
0x1a20   : > { %6028 = vmatpush.msra.mxu0 %v13700_v63 }
0x1a22   : > { %6029 = vmatpush.msra.mxu0 %v13703_v38 }
0x1a24   : > { %6030 = vmatpush.msra.mxu0 %v13706_v45 }
0x1a26   : > { %6031 = vmatpush.msra.mxu0 %v13709_v49 }
0x1a28   : > { %6032 = vmatpush.msra.mxu0 %v13712_v15 }
0x1a2a   : > { %6033 = vmatpush.msra.mxu0 %v13715_v26 }
0x1a2c   : > { %6034 = vmatpush.msra.mxu0 %v13718_v21 }
0x1a2e   : > { %6035 = vmatpush.msra.mxu0 %v13721_v7 }
0x1a30   : > { %6036 = vmatpush.msra.mxu0 %v13724_v11 }
0x1a32   : > { %6037 = vmatpush.msra.mxu0 %v13727_v3 }
0x1a34   : > { %6038 = vmatpush.msra.mxu0 %v13730_v27 }
0x1a36   : > { %6039 = vmatpush.msra.mxu0 %v13733_v12 }
0x1a38   : > { %6040 = vmatpush.msra.mxu0 %v13736_v41 }
0x1a3a   : > { %6041 = vmatpush.msra.mxu0 %v13739_v50 }
0x1a3c   : > { %6042 = vmatpush.msra.mxu0 %v13742_v56 }
0x1a3e   : > { %6043 = vmatpush.msra.mxu0 %v13745_v29 }
0x1a9c   : > { %v6025_v9 = vpop.f32.mrf.mxu0 }
0x1a9d   : > { %6044 = vmatmul.f32.vlgmr.msra.gmra.mxu0 %v6025_v9 }
0x1b1a   : > { %v6045_v57 = vpop.f32.mrf.mxu0 }
0x1b1b   : > { %6063 = vmatpush.msrb.mxu0 %v6045_v57 }
0x1b1c   : > { %9266 = vmatmul.msk.f32.vlgmr.msrb.gmra.mxu0 %vm15590_vm10, %v13748_v58  ;;  %vm15595_vm10 = vmmov %vm15592_vm8 }
0x1b24   : > { %9267 = vmatmul.msk.f32.gmra.mxu0 %vm15591_vm14, %v13752_v23  ;;  %vm15596_vm14 = vmmov %vm15592_vm8 }
0x1b2c   : > { %9268 = vmatmul.msk.f32.gmra.mxu0 %vm15592_vm8, %v13756_v0 }
0x1b34   : > { %9269 = vmatmul.msk.f32.gmra.mxu0 %vm15593_vm15, %v13760_v44  ;;  %vm15597_vm15 = vmmov %vm15592_vm8 }
0x1b3c   : > { %9270 = vmatmul.msk.f32.gmra.mxu0 %vm15594_vm13, %v13764_v13  ;;  %vm15598_vm13 = vmmov %vm15592_vm8 }
0x1b44   : > { %9271 = vmatmul.msk.f32.gmra.mxu0 %vm15595_vm10, %v13768_v37  ;;  %vm15599_vm10 = vmmov %vm15592_vm8 }
0x1b4c   : > { %9272 = vmatmul.msk.f32.gmra.mxu0 %vm15596_vm14, %v13772_v31  ;;  %vm15600_vm14 = vmmov %vm15592_vm8 }
0x1b54   : > { %9273 = vmatmul.msk.f32.gmra.mxu0 %vm15592_vm8, %v13776_v20 }
0x1b5c   : > { %9274 = vmatmul.msk.f32.gmra.mxu0 %vm15597_vm15, %v13780_v52  ;;  %vm15601_vm15 = vmmov %vm15592_vm8 }
0x1b64   : > { %9275 = vmatmul.msk.f32.gmra.mxu0 %vm15598_vm13, %v13784_v55  ;;  %vm15602_vm13 = vmmov %vm15592_vm8 }
0x1b6c   : > { %9276 = vmatmul.msk.f32.gmra.mxu0 %vm15599_vm10, %v13788_v48  ;;  %vm15603_vm10 = vmmov %vm15592_vm8 }
0x1b74   : > { %9277 = vmatmul.msk.f32.gmra.mxu0 %vm15600_vm14, %v13792_v18  ;;  %vm15604_vm14 = vmmov %vm15592_vm8 }
0x1b7c   : > { %9278 = vmatmul.msk.f32.gmra.mxu0 %vm15592_vm8, %v13796_v5 }
0x1b84   : > { %9279 = vmatmul.msk.f32.gmra.mxu0 %vm15601_vm15, %v13800_v6  ;;  %vm15605_vm15 = vmmov %vm15592_vm8 }
0x1b8c   : > { %9280 = vmatmul.msk.f32.gmra.mxu0 %vm15602_vm13, %v13804_v39  ;;  %vm15606_vm13 = vmmov %vm15592_vm8 }
0x1b94   : > { %9281 = vmatmul.msk.f32.gmra.mxu0 %vm15603_vm10, %v13808_v51  ;;  %vm15607_vm10 = vmmov %vm15592_vm8 }
0x1b99   : > { %v6065_v62 = vpop.f32.mrf.mxu0 }
0x1ba1   : > { %v6068_v30 = vpop.f32.mrf.mxu0 }
0x1ba9   : > { %v6071_v60 = vpop.f32.mrf.mxu0 }
0x1bb1   : > { %v6074_v4 = vpop.f32.mrf.mxu0 }
0x1bb9   : > { %v6077_v47 = vpop.f32.mrf.mxu0 }
0x1bc1   : > { %v6080_v36 = vpop.f32.mrf.mxu0 }
0x1bc9   : > { %v6083_v9 = vpop.f32.mrf.mxu0 }
0x1bd1   : > { %v6086_v57 = vpop.f32.mrf.mxu0 }
0x1bd9   : > { %v6089_v19 = vpop.f32.mrf.mxu0 }
0x1be1   : > { %v6092_v28 = vpop.f32.mrf.mxu0 }
0x1be9   : > { %v6095_v8 = vpop.f32.mrf.mxu0 }
0x1bf1   : > { %v6098_v16 = vpop.f32.mrf.mxu0 }
0x1bf2   : > { %v13829_v7 = vsub.f32 %v13645_v40, %v6098_v16  ;;  %v13844_v16 = vsub.f32 %v13654_v2, %v6089_v19  ;;  %v13859_v19 = vsub.f32 %v13665_v24, %v6080_v36  ;;  %v13874_v24 = vsub.f32 %v13683_v22, %v6071_v60  ;;  %v9725_v36 = vld [vmem:[#allocation5 + $0x2e8] sm:$0xff] }
0x1bf9   : > { %v6101_v29 = vpop.f32.mrf.mxu0 }
0x1bfa   : > { %v13824_v1 = vsub.f32 %v13642_v33, %v6101_v29  ;;  %v13839_v33 = vsub.f32 %v13651_v43, %v6092_v28  ;;  %v13854_v28 = vsub.f32 %v13660_v34, %v6083_v9  ;;  %v6137_v43 = vmul.f32 %v13844_v16, %v13844_v16 }
0x1bfb   : > { %v13869_v34 = vsub.f32 %v13677_v61, %v6074_v4  ;;  %v13884_v61 = vsub.f32 %v13693_v10, %v6065_v62  ;;  %v6131_v29 = vmul.f32 %v13874_v24, %v13874_v24  ;;  %v9719_v10 = vld [vmem:[#allocation5 + $0x2b8] sm:$0xff]  ;;  %v9714_v4 = vld [vmem:[#allocation5 + $0x290] sm:$0xff] }
0x1bfc   : > { %6852 = vmatpush.bf16.msra.mxu2 %v9719_v10  ;;  %v9707_v62 = vld [vmem:[#allocation5 + $0x258] sm:$0xff] }
0x1bfd   : > { %v6129_v60 = vmul.f32 %v13884_v61, %v13884_v61 }
0x1c01   : > { %v6104_v56 = vpop.f32.mrf.mxu0 }
0x1c02   : > { %v13819_v27 = vsub.f32 %v13639_v14, %v6104_v56  ;;  %v13834_v14 = vsub.f32 %v13648_v46, %v6095_v8  ;;  %v13849_v8 = vsub.f32 %v13657_v32, %v6086_v57  ;;  %v6138_v46 = vmul.f32 %v13839_v33, %v13839_v33 }
0x1c03   : > { %v13864_v32 = vsub.f32 %v13671_v59, %v6077_v47  ;;  %v13879_v59 = vsub.f32 %v13689_v25, %v6068_v30  ;;  %v6132_v56 = vmul.f32 %v13869_v34, %v13869_v34 }
0x1c04   : > { %v6139_v40 = vmul.f32 %v13834_v14, %v13834_v14  ;;  %v6136_v2 = vmul.f32 %v13849_v8, %v13849_v8 }
0x1c05   : > { %v6130_v22 = vmul.f32 %v13879_v59, %v13879_v59 }
0x1c09   : > { %v6107_v50 = vpop.f32.mrf.mxu0 }
0x1c0a   : > { %v13813_v41 = vsub.f32 %v13636_v42, %v6107_v50  ;;  %v6141_v42 = vmul.f32 %v13824_v1, %v13824_v1  ;;  %v6133_v50 = vmul.f32 %v13864_v32, %v13864_v32 }
0x1c0c   : > { %v6143_v11 = vmul.f32 %v13813_v41, %v13813_v41 }
0x1c11   : > { %v6110_v35 = vpop.f32.mrf.mxu0 }
0x1c12   : > { %v13816_v12 = vsub.f32 %v13634_v17, %v6110_v35  ;;  %v6142_v35 = vmul.f32 %v13819_v27, %v13819_v27  ;;  %v6140_v17 = vmul.f32 %v13829_v7, %v13829_v7 }
0x1c14   : > { %v6144_v3 = vmul.f32 %v13816_v12, %v13816_v12 }
0x1c16   : > { %6145 = vmatpush.msrb.mxu1 %v6144_v3  ;;  %v6134_v3 = vmul.f32 %v13859_v19, %v13859_v19 }
0x1c18   : > { %6146 = vmatpush.msrb.mxu1 %v6143_v11  ;;  %v6135_v11 = vmul.f32 %v13854_v28, %v13854_v28 }
0x1c1a   : > { %6147 = vmatpush.msrb.mxu1 %v6142_v35 }
0x1c1c   : > { %6148 = vmatpush.msrb.mxu1 %v6141_v42 }
0x1c1e   : > { %6149 = vmatpush.msrb.mxu1 %v6140_v17  ;;  %v9706_v17 = vld [vmem:[#allocation5 + $0x250] sm:$0xff] }
0x1c20   : > { %6150 = vmatpush.msrb.mxu1 %v6139_v40  ;;  %v9713_v40 = vld [vmem:[#allocation5 + $0x288] sm:$0xff] }
0x1c22   : > { %6151 = vmatpush.msrb.mxu1 %v6138_v46 }
0x1c24   : > { %6152 = vmatpush.msrb.mxu1 %v6137_v43 }
0x1c26   : > { %6153 = vmatpush.msrb.mxu1 %v6136_v2  ;;  %v9724_v2 = vld [vmem:[#allocation5 + $0x2e0] sm:$0xff] }
0x1c28   : > { %6154 = vmatpush.msrb.mxu1 %v6135_v11 }
0x1c2a   : > { %6155 = vmatpush.msrb.mxu1 %v6134_v3 }
0x1c2c   : > { %6156 = vmatpush.msrb.mxu1 %v6133_v50 }
0x1c2e   : > { %6157 = vmatpush.msrb.mxu1 %v6132_v56 }
0x1c30   : > { %6158 = vmatpush.msrb.mxu1 %v6131_v29  ;;  %v9705_v29 = vld [vmem:[#allocation5 + $0x248] sm:$0xff] }
0x1c32   : > { %6159 = vmatpush.msrb.mxu1 %v6130_v22  ;;  %v9712_v22 = vld [vmem:[#allocation5 + $0x280] sm:$0xff] }
0x1c34   : > { %6160 = vmatpush.msrb.mxu1 %v6129_v60  ;;  %v9723_v60 = vld [vmem:[#allocation5 + $0x2d8] sm:$0xff] }
0x1c35   : > { %6161 = vmatmul.f32.vlgmr.msrb.gmra.mxu1 %v13697_v54  ;;  %v9711_v54 = vld [vmem:[#allocation5 + $0x278] sm:$0xff] }
0x1c36   : > { %6803 = vmatpush.bf16.msrb.mxu3 %v9711_v54 }
0x1cb2   : > { %v6162_v25 = vpop.f32.mrf.mxu1 }
0x1cb3   : > { %6181 = vmatmul.f32.vlgmr.msra.gmra.mxu3 %v6162_v25 }
0x1d36   : > { %v6182_v30 = vpop.f32.mrf.mxu3 }
0x1d37   : > { %6200 = vmatpush.msra.mxu1 %v6182_v30 }
0x1d38   : > { %9282 = vmatmul.msk.f32.vlgmr.msra.gmra.mxu1 %vm15604_vm14, %v13748_v58  ;;  %vm15610_vm14 = vmmov %vm15609_vm1  ;;  %v9718_v58 = vld [vmem:[#allocation5 + $0x2b0] sm:$0xff] }
0x1d39   : > { %6853 = vmatpush.bf16.msra.mxu2 %v9718_v58  ;;  %v9704_v58 = vld [vmem:[#allocation5 + $0x240] sm:$0xff] }
0x1d40   : > { %9283 = vmatmul.msk.f32.gmra.mxu1 %vm15592_vm8, %v13752_v23  ;;  %vm15611_vm8 = vmmov %vm15609_vm1 }
0x1d48   : > { %9284 = vmatmul.msk.f32.gmra.mxu1 %vm15605_vm15, %v13756_v0  ;;  %vm15612_vm15 = vmmov %vm15609_vm1 }
0x1d50   : > { %9285 = vmatmul.msk.f32.gmra.mxu1 %vm15606_vm13, %v13760_v44  ;;  %vm15613_vm13 = vmmov %vm15609_vm1  ;;  %v9710_v44 = vld [vmem:[#allocation5 + $0x270] sm:$0xff] }
0x1d51   : > { %6804 = vmatpush.bf16.msrb.mxu3 %v9710_v44  ;;  %v9722_v44 = vld [vmem:[#allocation5 + $0x2d0] sm:$0xff] }
0x1d58   : > { %9286 = vmatmul.msk.f32.gmra.mxu1 %vm15607_vm10, %v13764_v13  ;;  %vm15614_vm10 = vmmov %vm15609_vm1  ;;  %v9717_v13 = vld [vmem:[#allocation5 + $0x2a8] sm:$0xff] }
0x1d59   : > { %6854 = vmatpush.bf16.msra.mxu2 %v9717_v13 }
0x1d60   : > { %9287 = vmatmul.msk.f32.gmra.mxu1 %vm15608_vm3, %v13768_v37  ;;  %vm15615_vm3 = vmmov %vm15609_vm1  ;;  %v9709_v37 = vld [vmem:[#allocation5 + $0x268] sm:$0xff] }
0x1d61   : > { %6805 = vmatpush.bf16.msrb.mxu3 %v9709_v37 }
0x1d68   : > { %9288 = vmatmul.msk.f32.gmra.mxu1 %vm15609_vm1, %v13772_v31  ;;  %v9716_v31 = vld [vmem:[#allocation5 + $0x2a0] sm:$0xff] }
0x1d69   : > { %6855 = vmatpush.bf16.msra.mxu2 %v9716_v31 }
0x1d70   : > { %9289 = vmatmul.msk.f32.gmra.mxu1 %vm15610_vm14, %v13776_v20  ;;  %vm15616_vm14 = vmmov %vm15609_vm1  ;;  %v9727_v20 = vld [vmem:[#allocation5 + $0x2f8] sm:$0xff] }
0x1d71   : > { %6901 = vmatpush.bf16.msra.mxu0 %v9727_v20 }
0x1d78   : > { %9290 = vmatmul.msk.f32.gmra.mxu1 %vm15611_vm8, %v13780_v52  ;;  %vm15617_vm8 = vmmov %vm15609_vm1 }
0x1d80   : > { %9291 = vmatmul.msk.f32.gmra.mxu1 %vm15612_vm15, %v13784_v55 }
0x1d88   : > { %9292 = vmatmul.msk.f32.gmra.mxu1 %vm15613_vm13, %v13788_v48 }
0x1d90   : > { %9293 = vmatmul.msk.f32.gmra.mxu1 %vm15614_vm10, %v13792_v18  ;;  %v9708_v18 = vld [vmem:[#allocation5 + $0x260] sm:$0xff] }
0x1d91   : > { %6806 = vmatpush.bf16.msrb.mxu3 %v9708_v18 }
0x1d95   : > { %6807 = vmatpush.bf16.msrb.mxu3 %v9707_v62 }
0x1d98   : > { %9294 = vmatmul.msk.f32.gmra.mxu1 %vm15615_vm3, %v13796_v5  ;;  %v9715_v5 = vld [vmem:[#allocation5 + $0x298] sm:$0xff] }
0x1d99   : > { %6856 = vmatpush.bf16.msra.mxu2 %v9715_v5  ;;  %6808 = vmatpush.bf16.msrb.mxu3 %v9706_v17 }
0x1d9d   : > { %6857 = vmatpush.bf16.msra.mxu2 %v9714_v4  ;;  %6809 = vmatpush.bf16.msrb.mxu3 %v9705_v29 }
0x1da0   : > { %9295 = vmatmul.msk.f32.gmra.mxu1 %vm15609_vm1, %v13800_v6 }
0x1da1   : > { %6858 = vmatpush.bf16.msra.mxu2 %v9713_v40  ;;  %6810 = vmatpush.bf16.msrb.mxu3 %v9704_v58 }
0x1da5   : > { %6859 = vmatpush.bf16.msra.mxu2 %v9712_v22 }
0x1da8   : > { %9296 = vmatmul.msk.f32.gmra.mxu1 %vm15616_vm14, %v13804_v39  ;;  %v9726_v39 = vld [vmem:[#allocation5 + $0x2f0] sm:$0xff] }
0x1da9   : > { %6902 = vmatpush.bf16.msra.mxu0 %v9726_v39  ;;  %7107 = vmatpush.msrb.mxu2 %v13700_v63 }
0x1dab   : > { %7108 = vmatpush.msrb.mxu2 %v13703_v38 }
0x1dad   : > { %6903 = vmatpush.bf16.msra.mxu0 %v9725_v36  ;;  %7109 = vmatpush.msrb.mxu2 %v13706_v45  ;;  %v9720_v36 = vld [vmem:[#allocation5 + $0x2c0] sm:$0xff] }
0x1daf   : > { %7110 = vmatpush.msrb.mxu2 %v13709_v49 }
0x1db0   : > { %9297 = vmatmul.msk.f32.gmra.mxu1 %vm15617_vm8, %v13808_v51 }
0x1db1   : > { %6904 = vmatpush.bf16.msra.mxu0 %v9724_v2  ;;  %7111 = vmatpush.msrb.mxu2 %v13712_v15 }
0x1db3   : > { %7112 = vmatpush.msrb.mxu2 %v13715_v26 }
0x1db5   : > { %v6202_v23 = vpop.f32.mrf.mxu1  ;;  %6905 = vmatpush.bf16.msra.mxu0 %v9723_v60  ;;  %7113 = vmatpush.msrb.mxu2 %v13718_v21  ;;  %v15628_v60 = vld [vmem:[#allocation44_spill] sm:$0xff] }
0x1db6   : > { %v6203_v0 = vadd.f32 1e-05, %v6202_v23 }
0x1db8   : > { %10019 = vrsqrt.f32 %v6203_v0  ;;  %vm6256_vm13 = vweird.f32 %v6203_v0 }
0x1db9   : > { %6906 = vmatpush.bf16.msra.mxu0 %v9722_v44 }
0x1dbd   : > { %v6205_v52 = vpop.f32.mrf.mxu1 }
0x1dbe   : > { %v10020_v55 = vpop.eup %10019  ;;  %v6206_v48 = vadd.f32 1e-05, %v6205_v52 }
0x1dbf   : > { %v6251_v6 = vmul.f32 %v10020_v55, %v6203_v0  ;;  %vm6257_vm15 = vweird.f32 %v10020_v55 }
0x1dc0   : > { %10021 = vrsqrt.f32 %v6206_v48  ;;  %vm6258_vm10 = vmor %vm6256_vm13, %vm6257_vm15  ;;  %vm6266_vm1 = vweird.f32 %v6206_v48 }
0x1dc1   : > { %v6252_v51 = vmul.f32 %v10020_v55, %v6251_v6 }
0x1dc3   : > { %v6253_v47 = vmul.f32 0.5, %v6252_v51 }
0x1dc5   : > { %v6254_v9 = vsub.f32 1.5, %v6253_v47  ;;  %v6208_v57 = vpop.f32.mrf.mxu1 }
0x1dc6   : > { %v10022_v35 = vpop.eup %10021  ;;  %v13925_v42 = vadd.f32 1e-05, %v6208_v57 }
0x1dc7   : > { %v6255_v46 = vmul.f32 %v10020_v55, %v6254_v9  ;;  %v6261_v43 = vmul.f32 %v10022_v35, %v6206_v48  ;;  %vm6267_vm3 = vweird.f32 %v10022_v35  ;;  %v15620_v48 = vld [vmem:[#allocation52_spill] sm:$0xff] }
0x1dc8   : > { %10023 = vrsqrt.f32 %v13925_v42  ;;  %vm6268_vm14 = vmor %vm6266_vm1, %vm6267_vm3  ;;  %vm6276_vm15 = vweird.f32 %v13925_v42  ;;  %vm15623_vm3 = vcmask 1040384  }
0x1dc9   : > { %v6259_v11 = vsel %vm6258_vm10, %v10020_v55, %v6255_v46  ;;  %v6262_v3 = vmul.f32 %v10022_v35, %v6261_v43  ;;  %v9721_v55 = vld [vmem:[#allocation5 + $0x2c8] sm:$0xff]  ;;  %vm15622_vm10 = vcmask 1046528   ;;  %vm15624_vm1 = vmmov %vm15623_vm3  ;;  %v15625_v43 = vld [vmem:[#allocation53_spill] sm:$0xff] }
0x1dca   : > { %v6410_v56 = vmul.f32 %v6259_v11, %v13884_v61  ;;  %v15618_v61 = vld [vmem:[#allocation51_spill] sm:$0xff]  ;;  %6907 = vmatpush.bf16.msra.mxu0 %v9721_v55 }
0x1dcb   : > { %v6263_v50 = vmul.f32 0.5, %v6262_v3 }
0x1dcc   : > { %v13934_v13 = vadd.f32 %v6410_v56, %v15618_v61 }
0x1dcd   : > { %v6264_v25 = vsub.f32 1.5, %v6263_v50  ;;  %v6211_v30 = vpop.f32.mrf.mxu1  ;;  %v15627_v50 = vld [vmem:[#allocation36_spill] sm:$0xff] }
0x1dce   : > { %v10024_v10 = vpop.eup %10023  ;;  %v13929_v54 = vadd.f32 1e-05, %v6211_v30  ;;  %15619 = vst [vmem:[#allocation35_spill] sm:$0xff] %v13934_v13  ;;  %v6555_v18 = vrot.slane %v13934_v13, 7  ;;  %v6507_v39 = vrot.slane %v13934_v13, 1  ;;  %6908 = vmatpush.bf16.msra.mxu0 %v9720_v36  ;;  %7114 = vmatpush.msrb.mxu2 %v15627_v50 }
0x1dcf   : > { %v6265_v23 = vmul.f32 %v10022_v35, %v6264_v25  ;;  %v6271_v0 = vmul.f32 %v10024_v10, %v13925_v42  ;;  %vm6277_vm8 = vweird.f32 %v10024_v10 }
0x1dd0   : > { %10025 = vrsqrt.f32 %v13929_v54  ;;  %vm6278_vm13 = vmor %vm6276_vm15, %vm6277_vm8  ;;  %v6602_v57 = vsel %vm15624_vm1, %v13934_v13, %v6555_v18  ;;  %vm6286_vm8 = vweird.f32 %v13929_v54  ;;  %7115 = vmatpush.msrb.mxu2 %v15628_v60 }
0x1dd1   : > { %v6269_v37 = vsel %vm6268_vm14, %v10022_v35, %v6265_v23  ;;  %v6272_v31 = vmul.f32 %v10024_v10, %v6271_v0  ;;  %v15631_v23 = vld [vmem:[#allocation45_spill] sm:$0xff] }
0x1dd2   : > { %v6411_v20 = vmul.f32 %v6269_v37, %v13879_v59  ;;  %7116 = vmatpush.msrb.mxu2 %v15631_v23  ;;  %v15633_v37 = vld [vmem:[#allocation54_spill] sm:$0xff] }
0x1dd3   : > { %v6273_v52 = vmul.f32 0.5, %v6272_v31 }
0x1dd4   : > { %v13941_v63 = vadd.f32 %v6411_v20, %v15620_v48  ;;  %v15635_v48 = vld [vmem:[#allocation47_spill] sm:$0xff] }
0x1dd5   : > { %v6274_v5 = vsub.f32 1.5, %v6273_v52  ;;  %v6214_v6 = vpop.f32.mrf.mxu1 }
0x1dd6   : > { %15621 = vst [vmem:[#allocation51_spill] sm:$0xff] %v13941_v63  ;;  %v10026_v38 = vpop.eup %10025  ;;  %v13946_v59 = vadd.f32 1e-05, %v6214_v6  ;;  %v6636_v51 = vpack.c.bf16 %v13941_v63, %v13934_v13  ;;  %v6508_v45 = vrot.slane %v13941_v63, 1  ;;  %v6556_v62 = vrot.slane %v13941_v63, 7 }
0x1dd7   : > { %v6275_v4 = vmul.f32 %v10024_v10, %v6274_v5  ;;  %v6281_v47 = vmul.f32 %v10026_v38, %v13929_v54  ;;  %vm6287_vm14 = vweird.f32 %v10026_v38  ;;  %v15632_v54 = vld [vmem:[#allocation46_spill] sm:$0xff] }
0x1dd8   : > { %10027 = vrsqrt.f32 %v13946_v59  ;;  %6860 = vmatmul.bf16.vlgmr.msra.gmra.mxu2 %v6636_v51  ;;  %v6509_v49 = vsel %vm15622_vm10, %v6507_v39, %v6508_v45  ;;  %v6557_v9 = vsel %vm15623_vm3, %v6555_v18, %v6556_v62  ;;  %vm6288_vm15 = vmor %vm6286_vm8, %vm6287_vm14  ;;  %vm6296_vm3 = vweird.f32 %v13946_v59 }
0x1dd9   : > { %v6279_v35 = vsel %vm6278_vm13, %v10024_v10, %v6275_v4  ;;  %v6282_v42 = vmul.f32 %v10026_v38, %v6281_v47  ;;  %v6603_v17 = vsel %vm10812_vm2, %v6509_v49, %v6602_v57  ;;  %vm15629_vm13 = vmmov %vm15622_vm10  ;;  %7117 = vmatpush.msrb.mxu2 %v15632_v54  ;;  %vm15638_vm8 = vcmask 1040384  }
0x1dda   : > { %v6412_v15 = vmul.f32 %v6279_v35, %v13874_v24  ;;  %v6635_v40 = vpack.c.bf16 %v6557_v9, %v6603_v17  ;;  %vm15637_vm14 = vmmov %vm15629_vm13 }
0x1ddb   : > { %v6283_v46 = vmul.f32 0.5, %v6282_v42  ;;  %7118 = vmatpush.msrb.mxu2 %v15635_v48 }
0x1ddc   : > { %v13969_v2 = vadd.f32 %v6412_v15, %v15625_v43  ;;  %6811 = vmatmul.bf16.vlgmr.msrb.gmra.mxu3 %v6635_v40  ;;  %v15642_v40 = vld [vmem:[#allocation50_spill] sm:$0xff] }
0x1ddd   : > { %v6284_v11 = vsub.f32 1.5, %v6283_v46  ;;  %v6217_v3 = vpop.f32.mrf.mxu1  ;;  %v15643_v46 = vld [vmem:[#allocation55_spill] sm:$0xff] }
0x1dde   : > { %15626 = vst [vmem:[#allocation52_spill] sm:$0xff] %v13969_v2  ;;  %v10028_v56 = vpop.eup %10027  ;;  %v6218_v29 = vadd.f32 1e-05, %v6217_v3  ;;  %v6510_v26 = vrot.slane %v13969_v2, 1  ;;  %v6558_v20 = vrot.slane %v13969_v2, 7  ;;  %v15645_v3 = vld [vmem:[#allocation37_spill] sm:$0xff] }
0x1ddf   : > { %v6285_v22 = vmul.f32 %v10026_v38, %v6284_v11  ;;  %v6291_v24 = vmul.f32 %v10028_v56, %v13946_v59  ;;  %vm6297_vm10 = vweird.f32 %v10028_v56  ;;  %v15641_v59 = vld [vmem:[#allocation49_spill] sm:$0xff] }
0x1de0   : > { %10029 = vrsqrt.f32 %v6218_v29  ;;  %v6511_v21 = vsel %vm15629_vm13, %v6508_v45, %v6510_v26  ;;  %v15636_v45 = vld [vmem:[#allocation48_spill] sm:$0xff]  ;;  %vm6298_vm1 = vmor %vm6296_vm3, %vm6297_vm10  ;;  %v6559_v47 = vsel %vm15638_vm8, %v6556_v62, %v6558_v20  ;;  %vm6306_vm10 = vweird.f32 %v6218_v29 }
0x1de1   : > { %v6289_v25 = vsel %vm6288_vm15, %v10026_v38, %v6285_v22  ;;  %v6292_v30 = vmul.f32 %v10028_v56, %v6291_v24  ;;  %v6620_v58 = vsel %vm15316_vm0, %v6557_v9, %v6511_v21  ;;  %7119 = vmatpush.msrb.mxu2 %v15636_v45  ;;  %vm15639_vm15 = vmmov %vm15638_vm8 }
0x1de2   : > { %v6413_v0 = vmul.f32 %v6289_v25, %v13869_v34  ;;  %v6637_v44 = vpack.c.bf16 %v6620_v58, %v6509_v49 }
0x1de3   : > { %v6293_v61 = vmul.f32 0.5, %v6292_v30  ;;  %7120 = vmatpush.msrb.mxu2 %v15641_v59 }
0x1de4   : > { %6909 = vmatmul.bf16.vlgmr.msra.gmra.mxu0 %v6637_v44  ;;  %v13983_v31 = vadd.f32 %v6413_v0, %v15633_v37  ;;  %v15648_v44 = vld [vmem:[#allocation56_spill] sm:$0xff] }
0x1de5   : > { %v6294_v52 = vsub.f32 1.5, %v6293_v61  ;;  %v6220_v55 = vpop.f32.mrf.mxu1  ;;  %7121 = vmatpush.msrb.mxu2 %v15642_v40 }
0x1de6   : > { %15634 = vst [vmem:[#allocation53_spill] sm:$0xff] %v13983_v31  ;;  %v10030_v18 = vpop.eup %10029  ;;  %v6221_v5 = vadd.f32 1e-05, %v6220_v55  ;;  %v6639_v34 = vpack.c.bf16 %v13983_v31, %v13969_v2  ;;  %v6512_v6 = vrot.slane %v13983_v31, 1  ;;  %v6560_v39 = vrot.slane %v13983_v31, 7 }
0x1de7   : > { %v6295_v38 = vmul.f32 %v10028_v56, %v6294_v52  ;;  %v6301_v51 = vmul.f32 %v10030_v18, %v6218_v29  ;;  %vm6307_vm13 = vweird.f32 %v10030_v18  ;;  %7122 = vmatpush.msrb.mxu2 %v15645_v3 }
0x1de8   : > { %10031 = vrsqrt.f32 %v6221_v5  ;;  %6865 = vmatmul.bf16.gmra.mxu2 %v6639_v34  ;;  %v6513_v4 = vsel %vm15637_vm14, %v6510_v26, %v6512_v6  ;;  %v6561_v36 = vsel %vm15639_vm15, %v6558_v20, %v6560_v39  ;;  %vm6308_vm3 = vmor %vm6306_vm10, %vm6307_vm13  ;;  %vm6316_vm8 = vweird.f32 %v6221_v5 }
0x1de9   : > { %v6299_v49 = vsel %vm6298_vm1, %v10028_v56, %v6295_v38  ;;  %v6302_v9 = vmul.f32 %v10030_v18, %v6301_v51  ;;  %v6605_v35 = vsel %vm10833_vm4, %v6513_v4, %v6559_v47  ;;  %vm15646_vm1 = vmmov %vm15637_vm14  ;;  %vm15651_vm10 = vcmask 1040384  }
0x1dea   : > { %v6414_v42 = vmul.f32 %v6299_v49, %v13864_v32  ;;  %v6638_v17 = vpack.c.bf16 %v6561_v36, %v6605_v35  ;;  %vm15650_vm13 = vmmov %vm15646_vm1 }
0x1deb   : > { %v6303_v15 = vmul.f32 0.5, %v6302_v9 }
0x1dec   : > { %v14004_v43 = vadd.f32 %v6414_v42, %v15643_v46  ;;  %6816 = vmatmul.bf16.gmra.mxu3 %v6638_v17 }
0x1ded   : > { %v6304_v62 = vsub.f32 1.5, %v6303_v15  ;;  %v6223_v11 = vpop.f32.mrf.mxu1 }
0x1dee   : > { %15644 = vst [vmem:[#allocation36_spill] sm:$0xff] %v14004_v43  ;;  %v10032_v50 = vpop.eup %10031  ;;  %v6224_v56 = vadd.f32 1e-05, %v6223_v11  ;;  %v6514_v26 = vrot.slane %v14004_v43, 1  ;;  %v6562_v29 = vrot.slane %v14004_v43, 7 }
0x1def   : > { %v6305_v22 = vmul.f32 %v10030_v18, %v6304_v62  ;;  %v6311_v32 = vmul.f32 %v10032_v50, %v6221_v5  ;;  %vm6317_vm14 = vweird.f32 %v10032_v50  ;;  %v15654_v5 = vld [vmem:[#allocation57_spill] sm:$0xff] }
0x1df0   : > { %10033 = vrsqrt.f32 %v6224_v56  ;;  %v6515_v24 = vsel %vm15646_vm1, %v6512_v6, %v6514_v26  ;;  %vm6318_vm15 = vmor %vm6316_vm8, %vm6317_vm14  ;;  %v6563_v38 = vsel %vm15651_vm10, %v6560_v39, %v6562_v29  ;;  %vm6326_vm14 = vweird.f32 %v6224_v56 }
0x1df1   : > { %v6309_v60 = vsel %vm6308_vm3, %v10030_v18, %v6305_v22  ;;  %v6312_v21 = vmul.f32 %v10032_v50, %v6311_v32  ;;  %v6622_v30 = vsel %vm10840_vm5, %v6561_v36, %v6515_v24  ;;  %vm15652_vm3 = vmmov %vm15651_vm10 }
0x1df2   : > { %v6415_v58 = vmul.f32 %v6309_v60, %v13859_v19  ;;  %v6640_v23 = vpack.c.bf16 %v6622_v30, %v6513_v4  ;;  %v15658_v60 = vld [vmem:[#allocation58_spill] sm:$0xff] }
0x1df3   : > { %v6313_v0 = vmul.f32 0.5, %v6312_v21 }
0x1df4   : > { %6914 = vmatmul.bf16.gmra.mxu0 %v6640_v23  ;;  %v14013_v61 = vadd.f32 %v6415_v58, %v15648_v44 }
0x1df5   : > { %v6314_v54 = vsub.f32 1.5, %v6313_v0  ;;  %v6226_v37 = vpop.f32.mrf.mxu1 }
0x1df6   : > { %15649 = vst [vmem:[#allocation44_spill] sm:$0xff] %v14013_v61  ;;  %v10034_v20 = vpop.eup %10033  ;;  %v6227_v52 = vadd.f32 1e-05, %v6226_v37  ;;  %v6642_v55 = vpack.c.bf16 %v14013_v61, %v14004_v43  ;;  %v6516_v48 = vrot.slane %v14013_v61, 1  ;;  %v6564_v19 = vrot.slane %v14013_v61, 7 }
0x1df7   : > { %v6315_v18 = vmul.f32 %v10032_v50, %v6314_v54  ;;  %v6321_v34 = vmul.f32 %v10034_v20, %v6224_v56  ;;  %vm6327_vm1 = vweird.f32 %v10034_v20 }
0x1df8   : > { %10035 = vrsqrt.f32 %v6227_v52  ;;  %6870 = vmatmul.bf16.gmra.mxu2 %v6642_v55  ;;  %v6517_v6 = vsel %vm15650_vm13, %v6514_v26, %v6516_v48  ;;  %v6565_v51 = vsel %vm15652_vm3, %v6562_v29, %v6564_v19  ;;  %vm6328_vm8 = vmor %vm6326_vm14, %vm6327_vm1  ;;  %vm6336_vm10 = vweird.f32 %v6227_v52 }
0x1df9   : > { %v6319_v45 = vsel %vm6318_vm15, %v10032_v50, %v6315_v18  ;;  %v6322_v4 = vmul.f32 %v10034_v20, %v6321_v34  ;;  %v6607_v36 = vsel %vm10854_vm6, %v6517_v6, %v6563_v38  ;;  %vm15656_vm15 = vmmov %vm15650_vm13  ;;  %vm15661_vm14 = vcmask 1040384  }
0x1dfa   : > { %v6416_v49 = vmul.f32 %v6319_v45, %v13854_v28  ;;  %v6641_v9 = vpack.c.bf16 %v6565_v51, %v6607_v36  ;;  %vm15660_vm1 = vmmov %vm15656_vm15 }
0x1dfb   : > { %v6323_v35 = vmul.f32 0.5, %v6322_v4 }
0x1dfc   : > { %v14027_v59 = vadd.f32 %v6416_v49, %v15654_v5  ;;  %6821 = vmatmul.bf16.gmra.mxu3 %v6641_v9 }
0x1dfd   : > { %v6324_v42 = vsub.f32 1.5, %v6323_v35  ;;  %v6229_v17 = vpop.f32.mrf.mxu1 }
0x1dfe   : > { %15655 = vst [vmem:[#allocation20_spill] sm:$0xff] %v14027_v59  ;;  %v10036_v15 = vpop.eup %10035  ;;  %v6230_v39 = vadd.f32 1e-05, %v6229_v17  ;;  %v6518_v40 = vrot.slane %v14027_v59, 1  ;;  %v6566_v56 = vrot.slane %v14027_v59, 7 }
0x1dff   : > { %v6325_v46 = vmul.f32 %v10034_v20, %v6324_v42  ;;  %v6331_v62 = vmul.f32 %v10036_v15, %v6227_v52  ;;  %vm6337_vm13 = vweird.f32 %v10036_v15  ;;  %v15665_v52 = vld [vmem:[#allocation59_spill] sm:$0xff] }
0x1e00   : > { %10037 = vrsqrt.f32 %v6230_v39  ;;  %v6519_v28 = vsel %vm15656_vm15, %v6516_v48, %v6518_v40  ;;  %vm6338_vm3 = vmor %vm6336_vm10, %vm6337_vm13  ;;  %v6567_v55 = vsel %vm15661_vm14, %v6564_v19, %v6566_v56  ;;  %vm6346_vm10 = vweird.f32 %v6230_v39 }
0x1e01   : > { %v6329_v11 = vsel %vm6328_vm8, %v10034_v20, %v6325_v46  ;;  %v6332_v3 = vmul.f32 %v10036_v15, %v6331_v62  ;;  %v6624_v26 = vsel %vm10861_vm7, %v6565_v51, %v6519_v28  ;;  %vm15662_vm8 = vmmov %vm15661_vm14 }
0x1e02   : > { %v6417_v22 = vmul.f32 %v6329_v11, %v13849_v8  ;;  %v6643_v32 = vpack.c.bf16 %v6624_v26, %v6517_v6  ;;  %v15663_v6 = vld [vmem:[#allocation25_spill] sm:$0xff]  ;;  %v15668_v26 = vld [vmem:[#allocation39_spill] sm:$0xff] }
0x1e03   : > { %v6333_v24 = vmul.f32 0.5, %v6332_v3  ;;  %vm15664_vm15 = vnez %v15663_v6 }
0x1e04   : > { %6919 = vmatmul.bf16.gmra.mxu0 %v6643_v32  ;;  %v14035_v21 = vadd.f32 %v6417_v22, %v15658_v60 }
0x1e05   : > { %v6334_v30 = vsub.f32 1.5, %v6333_v24  ;;  %v6232_v58 = vpop.f32.mrf.mxu1 }
0x1e06   : > { %15659 = vst [vmem:[#allocation45_spill] sm:$0xff] %v14035_v21  ;;  %v10038_v23 = vpop.eup %10037  ;;  %v6233_v0 = vadd.f32 1e-05, %v6232_v58  ;;  %v6645_v44 = vpack.c.bf16 %v14035_v21, %v14027_v59  ;;  %v6520_v29 = vrot.slane %v14035_v21, 1  ;;  %v6568_v8 = vrot.slane %v14035_v21, 7 }
0x1e07   : > { %v6335_v54 = vmul.f32 %v10036_v15, %v6334_v30  ;;  %v6341_v37 = vmul.f32 %v10038_v23, %v6230_v39  ;;  %vm6347_vm13 = vweird.f32 %v10038_v23 }
0x1e08   : > { %10039 = vrsqrt.f32 %v6233_v0  ;;  %6875 = vmatmul.bf16.gmra.mxu2 %v6645_v44  ;;  %v6521_v20 = vsel %vm15660_vm1, %v6518_v40, %v6520_v29  ;;  %v6569_v48 = vsel %vm15662_vm8, %v6566_v56, %v6568_v8  ;;  %vm6356_vm8 = vweird.f32 %v6233_v0 }
0x1e09   : > { %v6339_v18 = vsel %vm6338_vm3, %v10036_v15, %v6335_v54  ;;  %v6342_v34 = vmul.f32 %v10038_v23, %v6341_v37  ;;  %v6609_v38 = vsel %vm15664_vm15, %v6521_v20, %v6567_v55  ;;  %vm6348_vm3 = vmor %vm6346_vm10, %vm6347_vm13 }
0x1e0a   : > { %v6418_v51 = vmul.f32 %v6339_v18, %v13844_v16  ;;  %v6644_v45 = vpack.c.bf16 %v6569_v48, %v6609_v38  ;;  %vm15670_vm10 = vmmov %vm15660_vm1 }
0x1e0b   : > { %v6343_v4 = vmul.f32 0.5, %v6342_v34 }
0x1e0c   : > { %v14049_v36 = vadd.f32 %v6418_v51, %v15665_v52  ;;  %6826 = vmatmul.bf16.gmra.mxu3 %v6644_v45 }
0x1e0d   : > { %v6344_v49 = vsub.f32 1.5, %v6343_v4  ;;  %v6235_v9 = vpop.f32.mrf.mxu1 }
0x1e0e   : > { %15666 = vst [vmem:[#allocation46_spill] sm:$0xff] %v14049_v36  ;;  %v10040_v35 = vpop.eup %10039  ;;  %v6236_v19 = vadd.f32 1e-05, %v6235_v9  ;;  %v6522_v5 = vrot.slane %v14049_v36, 1  ;;  %v6570_v39 = vrot.slane %v14049_v36, 7 }
0x1e0f   : > { %v6345_v42 = vmul.f32 %v10038_v23, %v6344_v49  ;;  %v6351_v17 = vmul.f32 %v10040_v35, %v6233_v0  ;;  %vm6357_vm14 = vweird.f32 %v10040_v35  ;;  %v15675_v0 = vld [vmem:[#allocation38_spill] sm:$0xff] }
0x1e10   : > { %10041 = vrsqrt.f32 %v6236_v19  ;;  %v6523_v16 = vsel %vm15660_vm1, %v6520_v29, %v6522_v5  ;;  %vm6358_vm13 = vmor %vm6356_vm8, %vm6357_vm14  ;;  %vm6366_vm8 = vweird.f32 %v6236_v19 }
0x1e11   : > { %v6349_v15 = vsel %vm6348_vm3, %v10038_v23, %v6345_v42  ;;  %v6352_v40 = vmul.f32 %v10040_v35, %v6351_v17  ;;  %v6626_v62 = vsel %vm15553_vm11, %v6569_v48, %v6523_v16  ;;  %vm15671_vm3 = vcmask 1040384   ;;  %v15673_v48 = vld [vmem:[#allocation27_spill] sm:$0xff]  ;;  %v15677_v16 = vld [vmem:[#allocation28_spill] sm:$0xff] }
0x1e12   : > { %v6419_v28 = vmul.f32 %v6349_v15, %v13839_v33  ;;  %v6646_v11 = vpack.c.bf16 %v6626_v62, %v6521_v20  ;;  %v6571_v54 = vsel %vm15671_vm3, %v6568_v8, %v6570_v39  ;;  %vm15672_vm1 = vmmov %vm15671_vm3  ;;  %vm15674_vm11 = vnez %v15673_v48 }
0x1e13   : > { %v6353_v3 = vmul.f32 0.5, %v6352_v40  ;;  %vm15678_vm3 = vnez %v15677_v16 }
0x1e14   : > { %6924 = vmatmul.bf16.gmra.mxu0 %v6646_v11  ;;  %v14057_v22 = vadd.f32 %v6419_v28, %v15668_v26  ;;  %v15679_v11 = vld [vmem:[#allocation19_spill] sm:$0xff] }
0x1e15   : > { %v6354_v32 = vsub.f32 1.5, %v6353_v3  ;;  %v6238_v24 = vpop.f32.mrf.mxu1 }
0x1e16   : > { %15669 = vst [vmem:[#allocation54_spill] sm:$0xff] %v14057_v22  ;;  %v10042_v60 = vpop.eup %10041  ;;  %v6239_v56 = vadd.f32 1e-05, %v6238_v24  ;;  %v6648_v30 = vpack.c.bf16 %v14057_v22, %v14049_v36  ;;  %v6524_v58 = vrot.slane %v14057_v22, 1  ;;  %v6572_v33 = vrot.slane %v14057_v22, 7 }
0x1e17   : > { %v6355_v23 = vmul.f32 %v10040_v35, %v6354_v32  ;;  %v6361_v44 = vmul.f32 %v10042_v60, %v6236_v19  ;;  %vm6367_vm14 = vweird.f32 %v10042_v60 }
0x1e18   : > { %10043 = vrsqrt.f32 %v6239_v56  ;;  %6880 = vmatmul.bf16.gmra.mxu2 %v6648_v30  ;;  %v6525_v29 = vsel %vm15670_vm10, %v6522_v5, %v6524_v58  ;;  %v6573_v37 = vsel %vm15672_vm1, %v6570_v39, %v6572_v33 }
0x1e19   : > { %v6359_v20 = vsel %vm6358_vm13, %v10040_v35, %v6355_v23  ;;  %v6362_v55 = vmul.f32 %v10042_v60, %v6361_v44  ;;  %v6611_v18 = vsel %vm15674_vm11, %v6525_v29, %v6571_v54  ;;  %vm6368_vm13 = vmor %vm6366_vm8, %vm6367_vm14  ;;  %vm6376_vm14 = vweird.f32 %v6239_v56 }
0x1e1a   : > { %v6420_v34 = vmul.f32 %v6359_v20, %v13834_v14  ;;  %v6647_v38 = vpack.c.bf16 %v6573_v37, %v6611_v18 }
0x1e1b   : > { %v6363_v51 = vmul.f32 0.5, %v6362_v55 }
0x1e1c   : > { %v14071_v45 = vadd.f32 %v6420_v34, %v15675_v0  ;;  %6831 = vmatmul.bf16.gmra.mxu3 %v6647_v38 }
0x1e1d   : > { %v6364_v4 = vsub.f32 1.5, %v6363_v51  ;;  %v6241_v52 = vpop.f32.mrf.mxu1 }
0x1e1e   : > { %15676 = vst [vmem:[#allocation47_spill] sm:$0xff] %v14071_v45  ;;  %v10044_v49 = vpop.eup %10043  ;;  %v6242_v8 = vadd.f32 1e-05, %v6241_v52  ;;  %v6526_v9 = vrot.slane %v14071_v45, 1  ;;  %v6574_v19 = vrot.slane %v14071_v45, 7 }
0x1e1f   : > { %v6365_v35 = vmul.f32 %v10042_v60, %v6364_v4  ;;  %v6371_v5 = vmul.f32 %v10044_v49, %v6239_v56  ;;  %vm6377_vm1 = vweird.f32 %v10044_v49  ;;  %v15685_v56 = vld [vmem:[#allocation40_spill] sm:$0xff] }
0x1e20   : > { %10045 = vrsqrt.f32 %v6242_v8  ;;  %v6527_v14 = vsel %vm15670_vm10, %v6524_v58, %v6526_v9  ;;  %vm6378_vm8 = vmor %vm6376_vm14, %vm6377_vm1 }
0x1e21   : > { %v6369_v42 = vsel %vm6368_vm13, %v10042_v60, %v6365_v35  ;;  %v6372_v17 = vmul.f32 %v10044_v49, %v6371_v5  ;;  %v6628_v15 = vsel %vm15678_vm3, %v6573_v37, %v6527_v14  ;;  %vm15681_vm13 = vmmov %vm15670_vm10  ;;  %vm15682_vm10 = vcmask 1040384  }
0x1e22   : > { %v6421_v40 = vmul.f32 %v6369_v42, %v13829_v7  ;;  %v6649_v62 = vpack.c.bf16 %v6628_v15, %v6525_v29  ;;  %v6575_v29 = vsel %vm15682_vm10, %v6572_v33, %v6574_v19  ;;  %vm15683_vm3 = vmmov %vm15682_vm10 }
0x1e23   : > { %v6373_v28 = vmul.f32 0.5, %v6372_v17  ;;  %v15688_v17 = vld [vmem:[#allocation30_spill] sm:$0xff] }
0x1e24   : > { %6929 = vmatmul.bf16.gmra.mxu0 %v6649_v62  ;;  %v14079_v3 = vadd.f32 %v6421_v40, %v15679_v11  ;;  %v15690_v11 = vld [vmem:[#allocation41_spill] sm:$0xff] }
0x1e25   : > { %v6374_v26 = vsub.f32 1.5, %v6373_v28  ;;  %v6244_v39 = vpop.f32.mrf.mxu1 }
0x1e26   : > { %15680 = vst [vmem:[#allocation48_spill] sm:$0xff] %v14079_v3  ;;  %v10046_v32 = vpop.eup %10045  ;;  %v6245_v24 = vadd.f32 1e-05, %v6244_v39  ;;  %v6651_v60 = vpack.c.bf16 %v14079_v3, %v14071_v45  ;;  %v6528_v30 = vrot.slane %v14079_v3, 1  ;;  %v6576_v7 = vrot.slane %v14079_v3, 7 }
0x1e27   : > { %v6375_v58 = vmul.f32 %v10044_v49, %v6374_v26  ;;  %v6381_v23 = vmul.f32 %v10046_v32, %v6242_v8  ;;  %vm6387_vm1 = vweird.f32 %v10046_v32 }
0x1e28   : > { %10047 = vrsqrt.f32 %v6245_v24  ;;  %6885 = vmatmul.bf16.gmra.mxu2 %v6651_v60  ;;  %v6529_v44 = vsel %vm15681_vm13, %v6526_v9, %v6528_v30  ;;  %v6577_v54 = vsel %vm15683_vm3, %v6574_v19, %v6576_v7  ;;  %vm6386_vm3 = vweird.f32 %v6242_v8 }
0x1e29   : > { %v6379_v37 = vsel %vm6378_vm8, %v10044_v49, %v6375_v58  ;;  %v6382_v20 = vmul.f32 %v10046_v32, %v6381_v23  ;;  %v6613_v18 = vsel %vm15261_vm9, %v6529_v44, %v6575_v29  ;;  %vm6388_vm14 = vmor %vm6386_vm3, %vm6387_vm1  ;;  %vm6396_vm1 = vweird.f32 %v6245_v24 }
0x1e2a   : > { %v6422_v34 = vmul.f32 %v6379_v37, %v13824_v1  ;;  %v6650_v38 = vpack.c.bf16 %v6577_v54, %v6613_v18  ;;  %vm15687_vm8 = vmmov %vm15681_vm13  ;;  %vm15689_vm13 = vnez %v15688_v17 }
0x1e2b   : > { %v6383_v51 = vmul.f32 0.5, %v6382_v20 }
0x1e2c   : > { %v14093_v0 = vadd.f32 %v6422_v34, %v15685_v56  ;;  %6836 = vmatmul.bf16.gmra.mxu3 %v6650_v38  ;;  %v15696_v56 = vld [vmem:[#allocation42_spill] sm:$0xff] }
0x1e2d   : > { %v6384_v4 = vsub.f32 1.5, %v6383_v51  ;;  %v6247_v52 = vpop.f32.mrf.mxu1 }
0x1e2e   : > { %15686 = vst [vmem:[#allocation21_spill] sm:$0xff] %v14093_v0  ;;  %v10048_v9 = vpop.eup %10047  ;;  %v6248_v33 = vadd.f32 1e-05, %v6247_v52  ;;  %v6530_v35 = vrot.slane %v14093_v0, 1  ;;  %v6578_v8 = vrot.slane %v14093_v0, 7 }
0x1e2f   : > { %v6385_v49 = vmul.f32 %v10046_v32, %v6384_v4  ;;  %v6391_v5 = vmul.f32 %v10048_v9, %v6245_v24  ;;  %vm6397_vm10 = vweird.f32 %v10048_v9 }
0x1e30   : > { %10049 = vrsqrt.f32 %v6248_v33  ;;  %v6531_v1 = vsel %vm15687_vm8, %v6528_v30, %v6530_v35  ;;  %vm6398_vm3 = vmor %vm6396_vm1, %vm6397_vm10  ;;  %vm6406_vm1 = vweird.f32 %v6248_v33 }
0x1e31   : > { %v6389_v14 = vsel %vm6388_vm14, %v10046_v32, %v6385_v49  ;;  %v6392_v42 = vmul.f32 %v10048_v9, %v6391_v5  ;;  %v6630_v15 = vsel %vm15689_vm13, %v6577_v54, %v6531_v1  ;;  %vm15692_vm14 = vmmov %vm15687_vm8  ;;  %vm15693_vm8 = vcmask 1040384   ;;  %v15699_v49 = vld [vmem:[#allocation32_spill] sm:$0xff] }
0x1e32   : > { %v6423_v40 = vmul.f32 %v6389_v14, %v13819_v27  ;;  %v6652_v62 = vpack.c.bf16 %v6630_v15, %v6529_v44  ;;  %v6579_v44 = vsel %vm15693_vm8, %v6576_v7, %v6578_v8  ;;  %vm15694_vm13 = vmmov %vm15693_vm8  ;;  %v15701_v14 = vld [vmem:[#allocation43_spill] sm:$0xff] }
0x1e33   : > { %v6393_v28 = vmul.f32 0.5, %v6392_v42 }
0x1e34   : > { %6934 = vmatmul.bf16.gmra.mxu0 %v6652_v62  ;;  %v14101_v19 = vadd.f32 %v6423_v40, %v15690_v11 }
0x1e35   : > { %v6394_v26 = vsub.f32 1.5, %v6393_v28 }
0x1e36   : > { %15691 = vst [vmem:[#allocation49_spill] sm:$0xff] %v14101_v19  ;;  %v10050_v39 = vpop.eup %10049  ;;  %v6654_v32 = vpack.c.bf16 %v14101_v19, %v14093_v0  ;;  %v6532_v60 = vrot.slane %v14101_v19, 1  ;;  %v6580_v30 = vrot.slane %v14101_v19, 7 }
0x1e37   : > { %v6395_v58 = vmul.f32 %v10048_v9, %v6394_v26  ;;  %v6401_v27 = vmul.f32 %v10050_v39, %v6248_v33  ;;  %vm6407_vm10 = vweird.f32 %v10050_v39 }
0x1e38   : > { %6890 = vmatmul.bf16.gmra.mxu2 %v6654_v32  ;;  %v6533_v23 = vsel %vm15692_vm14, %v6530_v35, %v6532_v60  ;;  %v6581_v29 = vsel %vm15694_vm13, %v6578_v8, %v6580_v30  ;;  %vm6408_vm13 = vmor %vm6406_vm1, %vm6407_vm10  ;;  %vm15704_vm10 = vcmask 1040384   ;;  %v15706_v8 = vld [vmem:[#allocation33_spill] sm:$0xff] }
0x1e39   : > { %v6399_v54 = vsel %vm6398_vm3, %v10048_v9, %v6395_v58  ;;  %v6402_v37 = vmul.f32 %v10050_v39, %v6401_v27  ;;  %v6615_v18 = vsel %vm15571_vm12, %v6533_v23, %v6579_v44  ;;  %vm15698_vm3 = vmmov %vm15692_vm14  ;;  %vm15700_vm14 = vnez %v15699_v49 }
0x1e3a   : > { %v6424_v34 = vmul.f32 %v6399_v54, %v13813_v41  ;;  %v6653_v38 = vpack.c.bf16 %v6581_v29, %v6615_v18  ;;  %vm15703_vm8 = vmmov %vm15698_vm3 }
0x1e3b   : > { %v6403_v51 = vmul.f32 0.5, %v6402_v37  ;;  %vm15705_vm1 = vmmov %vm15704_vm10 }
0x1e3c   : > { %v14115_v24 = vadd.f32 %v6424_v34, %v15696_v56  ;;  %6841 = vmatmul.bf16.gmra.mxu3 %v6653_v38 }
0x1e3d   : > { %v6404_v4 = vsub.f32 1.5, %v6403_v51 }
0x1e3e   : > { %15697 = vst [vmem:[#allocation50_spill] sm:$0xff] %v14115_v24  ;;  %v6534_v52 = vrot.slane %v14115_v24, 1  ;;  %v6582_v15 = vrot.slane %v14115_v24, 7 }
0x1e3f   : > { %v6405_v7 = vmul.f32 %v10050_v39, %v6404_v4 }
0x1e40   : > { %v6535_v9 = vsel %vm15698_vm3, %v6532_v60, %v6534_v52  ;;  %v6583_v11 = vsel %vm15704_vm10, %v6580_v30, %v6582_v15  ;;  %v15708_v60 = vld [vmem:[#allocation34_spill] sm:$0xff] }
0x1e41   : > { %v6409_v35 = vsel %vm6408_vm13, %v10050_v39, %v6405_v7  ;;  %v6632_v5 = vsel %vm15700_vm14, %v6581_v29, %v6535_v9  ;;  %vm15707_vm13 = vnez %v15706_v8  ;;  %vm15709_vm14 = vnez %v15708_v60 }
0x1e42   : > { %v6425_v41 = vmul.f32 %v6409_v35, %v13816_v12  ;;  %v6655_v1 = vpack.c.bf16 %v6632_v5, %v6533_v23 }
0x1e44   : > { %v14123_v42 = vadd.f32 %v6425_v41, %v15701_v14  ;;  %6939 = vmatmul.bf16.gmra.mxu0 %v6655_v1 }
0x1e46   : > { %15702 = vst [vmem:[#allocation55_spill] sm:$0xff] %v14123_v42  ;;  %v6657_v40 = vpack.c.bf16 %v14123_v42, %v14115_v24  ;;  %v6536_v33 = vrot.slane %v14123_v42, 1  ;;  %v6584_v62 = vrot.slane %v14123_v42, 7 }
0x1e48   : > { %6895 = vmatmul.bf16.gmra.mxu2 %v6657_v40  ;;  %v6537_v28 = vsel %vm15703_vm8, %v6534_v52, %v6536_v33  ;;  %v6585_v12 = vsel %vm15705_vm1, %v6582_v15, %v6584_v62  ;;  %v6554_v32 = vsel %vm15698_vm3, %v6536_v33, %v14123_v42  ;;  %vm15710_vm8 = vcmask 64512  }
0x1e49   : > { %v6617_v26 = vsel %vm15707_vm13, %v6537_v28, %v6583_v11  ;;  %v6634_v58 = vsel %vm15709_vm14, %v6585_v12, %v6554_v32  ;;  %vm15711_vm10 = vmmov %vm15710_vm8 }
0x1e4a   : > { %v6656_v39 = vpack.c.bf16 %v6585_v12, %v6617_v26  ;;  %v6658_v27 = vpack.c.bf16 %v6634_v58, %v6537_v28  ;;  %vm15712_vm1 = vmmov %vm15710_vm8 }
0x1e4b   : > { %vm15713_vm3 = vmmov %vm15712_vm1 }
0x1e4c   : > { %6846 = vmatmul.bf16.gmra.mxu3 %v6656_v39  ;;  %vm15714_vm14 = vmmov %vm15712_vm1 }
0x1e4d   : > { %vm15728_vm13 = vmmov %vm15712_vm1 }
0x1e4e   : > { %vm15729_vm12 = vmmov %vm15712_vm1 }
0x1e54   : > { %6944 = vmatmul.bf16.gmra.mxu0 %v6658_v27 }
0x1e5b   : > { %v14139_v23 = vpop.f32.mrf.mxu2 }
0x1e5f   : > { %v14141_v44 = vpop.f32.mrf.mxu3 }
0x1e61   : > { %v14143_v30 = vpop.f32.mrf.mxu0 }
0x1e63   : > { %v14145_v29 = vpop.f32.mrf.mxu2 }
0x1e67   : > { %v14147_v54 = vpop.f32.mrf.mxu3 }
0x1e69   : > { %v14149_v37 = vpop.f32.mrf.mxu0 }
0x1e6b   : > { %v14151_v18 = vpop.f32.mrf.mxu2 }
0x1e6f   : > { %v14153_v34 = vpop.f32.mrf.mxu3 }
0x1e71   : > { %v14155_v38 = vpop.f32.mrf.mxu0 }
0x1e73   : > { %v14157_v51 = vpop.f32.mrf.mxu2 }
0x1e77   : > { %v14159_v56 = vpop.f32.mrf.mxu3 }
0x1e79   : > { %v14161_v4 = vpop.f32.mrf.mxu0 }
0x1e7b   : > { %v14163_v52 = vpop.f32.mrf.mxu2 }
0x1e7f   : > { %v14165_v7 = vpop.f32.mrf.mxu3 }
0x1e81   : > { %v14167_v9 = vpop.f32.mrf.mxu0 }
0x1e83   : > { %v6873_v35 = vpop.f32.mrf.mxu2 }
0x1e87   : > { %v6824_v5 = vpop.f32.mrf.mxu3 }
0x1e89   : > { %v14169_v41 = vpop.f32.mrf.mxu0 }
0x1e8b   : > { %v6876_v1 = vpop.f32.mrf.mxu2 }
0x1e8f   : > { %v6827_v14 = vpop.f32.mrf.mxu3 }
0x1e91   : > { %v6925_v15 = vpop.f32.mrf.mxu0 }
0x1e93   : > { %v6878_v40 = vpop.f32.mrf.mxu2 }
0x1e97   : > { %v6829_v33 = vpop.f32.mrf.mxu3 }
0x1e99   : > { %v6927_v62 = vpop.f32.mrf.mxu0 }
0x1e9b   : > { %v6881_v28 = vpop.f32.mrf.mxu2 }
0x1e9f   : > { %v6832_v11 = vpop.f32.mrf.mxu3 }
0x1ea1   : > { %v6930_v12 = vpop.f32.mrf.mxu0 }
0x1ea3   : > { %v6883_v26 = vpop.f32.mrf.mxu2 }
0x1ea7   : > { %v6834_v39 = vpop.f32.mrf.mxu3 }
0x1ea9   : > { %v6932_v32 = vpop.f32.mrf.mxu0 }
0x1eab   : > { %v6886_v58 = vpop.f32.mrf.mxu2 }
0x1eaf   : > { %v6837_v27 = vpop.f32.mrf.mxu3 }
0x1eb0   : > { %v6887_v46 = vadd.f32 %v6886_v58, %v6837_v27  ;;  %v14282_v58 = vld [vmem:[#allocation10 + $0x58] sm:$0xff]  ;;  %v14286_v27 = vld [vmem:[#allocation10 + $0x60] sm:$0xff] }
0x1eb1   : > { %v6935_v42 = vpop.f32.mrf.mxu0 }
0x1eb3   : > { %v6888_v24 = vpop.f32.mrf.mxu2 }
0x1eb7   : > { %v6839_v19 = vpop.f32.mrf.mxu3 }
0x1eb8   : > { %v6889_v16 = vadd.f32 %v6888_v24, %v6839_v19  ;;  %v6864_v19 = vadd.f32 %v14145_v29, %v14147_v54  ;;  %v14235_v29 = vld [vmem:[#allocation8] sm:$0xff]  ;;  %v10283_v54 = vld [vmem:[#allocation11 + $0x68] sm:$0xff] }
0x1eb9   : > { %v6937_v0 = vpop.f32.mrf.mxu0 }
0x1ebb   : > { %v6891_v3 = vpop.f32.mrf.mxu2 }
0x1ebf   : > { %v6842_v45 = vpop.f32.mrf.mxu3 }
0x1ec0   : > { %v6892_v17 = vadd.f32 %v6891_v3, %v6842_v45 }
0x1ec1   : > { %v6940_v22 = vpop.f32.mrf.mxu0 }
0x1ec2   : > { %v14179_v6 = vadd.f32 %v6940_v22, %v6892_v17 }
0x1ec3   : > { %v6893_v36 = vpop.f32.mrf.mxu2 }
0x1ec7   : > { %v6844_v21 = vpop.f32.mrf.mxu3 }
0x1ec8   : > { %v6894_v49 = vadd.f32 %v6893_v36, %v6844_v21  ;;  %v6874_v36 = vadd.f32 %v6873_v35, %v6824_v5  ;;  %v10295_v35 = vld [vmem:[#allocation11 + $0x8] sm:$0xff]  ;;  %v10296_v5 = vld [vmem:[#allocation11] sm:$0xff] }
0x1ec9   : > { %v6942_v59 = vpop.f32.mrf.mxu0 }
0x1eca   : > { %v14176_v48 = vadd.f32 %v6942_v59, %v6894_v49  ;;  %v6877_v59 = vadd.f32 %v6876_v1, %v6827_v14  ;;  %v14205_v3 = vadd.f32 %v14169_v41, %v6874_v36  ;;  %v6862_v49 = vadd.f32 %v14139_v23, %v14141_v44  ;;  %v10281_v23 = vld [vmem:[#allocation11 + $0x78] sm:$0xff]  ;;  %v10282_v44 = vld [vmem:[#allocation11 + $0x70] sm:$0xff]  ;;  %v14238_v14 = vld [vmem:[#allocation10] sm:$0xff] }
0x1ecb   : > { %v6896_v61 = vpop.f32.mrf.mxu2 }
0x1ecc   : > { %v14199_v45 = vadd.f32 %v6925_v15, %v6877_v59  ;;  %v14242_v15 = vld [vmem:[#allocation10 + $0x8] sm:$0xff] }
0x1ecf   : > { %v6847_v43 = vpop.f32.mrf.mxu3 }
0x1ed0   : > { %v6897_v13 = vadd.f32 %v6896_v61, %v6847_v43  ;;  %v6882_v43 = vadd.f32 %v6881_v28, %v6832_v11  ;;  %v14258_v28 = vld [vmem:[#allocation10 + $0x28] sm:$0xff]  ;;  %v14262_v11 = vld [vmem:[#allocation10 + $0x30] sm:$0xff] }
0x1ed1   : > { %v6945_v31 = vpop.f32.mrf.mxu0 }
0x1ed2   : > { %v14173_v55 = vadd.f32 %v6945_v31, %v6897_v13  ;;  %v14185_v13 = vadd.f32 %v6935_v42, %v6887_v46  ;;  %v6879_v31 = vadd.f32 %v6878_v40, %v6829_v33  ;;  %v14191_v21 = vadd.f32 %v6930_v12, %v6882_v43  ;;  %v14246_v40 = vld [vmem:[#allocation10 + $0x10] sm:$0xff]  ;;  %v14250_v33 = vld [vmem:[#allocation10 + $0x18] sm:$0xff] }
0x1ed3   : > { %v6898_v2 = vpop.f32.mrf.mxu2  ;;  %v6872_v46 = vadd.f32 %v14163_v52, %v14165_v7  ;;  %v10292_v52 = vld [vmem:[#allocation11 + $0x20] sm:$0xff]  ;;  %v10293_v7 = vld [vmem:[#allocation11 + $0x18] sm:$0xff]  ;;  %v14294_v43 = vld [vmem:[#allocation10 + $0x70] sm:$0xff] }
0x1ed4   : > { %v14194_v22 = vadd.f32 %v6927_v62, %v6879_v31  ;;  %v14254_v62 = vld [vmem:[#allocation10 + $0x20] sm:$0xff]  ;;  %v14266_v12 = vld [vmem:[#allocation10 + $0x38] sm:$0xff] }
0x1ed5   : > { %v14211_v17 = vadd.f32 %v14167_v9, %v6872_v46  ;;  %v10294_v9 = vld [vmem:[#allocation11 + $0x10] sm:$0xff]  ;;  %v14298_v31 = vld [vmem:[#allocation10 + $0x78] sm:$0xff] }
0x1ed7   : > { %v6849_v63 = vpop.f32.mrf.mxu3 }
0x1ed8   : > { %v6899_v60 = vadd.f32 %v6898_v2, %v6849_v63  ;;  %v6884_v63 = vadd.f32 %v6883_v26, %v6834_v39  ;;  %v14182_v2 = vadd.f32 %v6937_v0, %v6889_v16  ;;  %v6869_v16 = vadd.f32 %v14157_v51, %v14159_v56  ;;  %v10289_v51 = vld [vmem:[#allocation11 + $0x38] sm:$0xff]  ;;  %v10290_v56 = vld [vmem:[#allocation11 + $0x30] sm:$0xff]  ;;  %v14270_v26 = vld [vmem:[#allocation10 + $0x40] sm:$0xff] }
0x1ed9   : > { %v6947_v8 = vpop.f32.mrf.mxu0  ;;  %v6867_v0 = vadd.f32 %v14151_v18, %v14153_v34  ;;  %v10285_v18 = vld [vmem:[#allocation11 + $0x58] sm:$0xff]  ;;  %v10287_v34 = vld [vmem:[#allocation11 + $0x48] sm:$0xff] }
0x1eda   : > { %v14171_v20 = vadd.f32 %v6947_v8, %v6899_v60  ;;  %v14188_v61 = vadd.f32 %v6932_v32, %v6884_v63  ;;  %v14217_v24 = vadd.f32 %v14161_v4, %v6869_v16  ;;  %v14227_v8 = vadd.f32 %v14149_v37, %v6864_v19  ;;  %v10284_v37 = vld [vmem:[#allocation11 + $0x60] sm:$0xff]  ;;  %v10291_v4 = vld [vmem:[#allocation11 + $0x28] sm:$0xff]  ;;  %v14278_v32 = vld [vmem:[#allocation10 + $0x50] sm:$0xff] }
0x1edb   : > { %v14223_v42 = vadd.f32 %v14155_v38, %v6867_v0  ;;  %v14231_v60 = vadd.f32 %v14143_v30, %v6862_v49  ;;  %v10286_v30 = vld [vmem:[#allocation11 + $0x50] sm:$0xff]  ;;  %v10288_v38 = vld [vmem:[#allocation11 + $0x40] sm:$0xff]  ;;  %v14274_v39 = vld [vmem:[#allocation10 + $0x48] sm:$0xff] }
0x1edc   : > { %6950 = vmatpush.msrb.mxu1 %v14171_v20  ;;  %v14290_v63 = vld [vmem:[#allocation10 + $0x68] sm:$0xff] }
0x1ede   : > { %6951 = vmatpush.msrb.mxu1 %v14173_v55 }
0x1ee0   : > { %6952 = vmatpush.msrb.mxu1 %v14176_v48 }
0x1ee2   : > { %6953 = vmatpush.msrb.mxu1 %v14179_v6 }
0x1ee4   : > { %6954 = vmatpush.msrb.mxu1 %v14182_v2 }
0x1ee6   : > { %6955 = vmatpush.msrb.mxu1 %v14185_v13 }
0x1ee8   : > { %6956 = vmatpush.msrb.mxu1 %v14188_v61 }
0x1eea   : > { %6957 = vmatpush.msrb.mxu1 %v14191_v21 }
0x1eec   : > { %6958 = vmatpush.msrb.mxu1 %v14194_v22 }
0x1eee   : > { %6959 = vmatpush.msrb.mxu1 %v14199_v45 }
0x1ef0   : > { %6960 = vmatpush.msrb.mxu1 %v14205_v3 }
0x1ef2   : > { %6961 = vmatpush.msrb.mxu1 %v14211_v17 }
0x1ef4   : > { %6962 = vmatpush.msrb.mxu1 %v14217_v24 }
0x1ef6   : > { %6963 = vmatpush.msrb.mxu1 %v14223_v42 }
0x1ef8   : > { %6964 = vmatpush.msrb.mxu1 %v14227_v8 }
0x1efa   : > { %6965 = vmatpush.msrb.mxu1 %v14231_v60 }
0x1efb   : > { %6966 = vmatmul.f32.vlgmr.msrb.gmra.mxu1 %v14235_v29 }
0x1efc   : > { %6970 = vmatpush.msra.mxu1 %v10281_v23 }
0x1efe   : > { %6971 = vmatpush.msra.mxu1 %v10282_v44 }
0x1f00   : > { %6972 = vmatpush.msra.mxu1 %v10283_v54 }
0x1f02   : > { %6973 = vmatpush.msra.mxu1 %v10284_v37 }
0x1f04   : > { %6974 = vmatpush.msra.mxu1 %v10285_v18 }
0x1f06   : > { %6975 = vmatpush.msra.mxu1 %v10286_v30 }
0x1f08   : > { %6976 = vmatpush.msra.mxu1 %v10287_v34 }
0x1f0a   : > { %6977 = vmatpush.msra.mxu1 %v10288_v38 }
0x1f0c   : > { %6978 = vmatpush.msra.mxu1 %v10289_v51 }
0x1f0e   : > { %6979 = vmatpush.msra.mxu1 %v10290_v56 }
0x1f10   : > { %6980 = vmatpush.msra.mxu1 %v10291_v4 }
0x1f12   : > { %6981 = vmatpush.msra.mxu1 %v10292_v52 }
0x1f14   : > { %6982 = vmatpush.msra.mxu1 %v10293_v7 }
0x1f16   : > { %6983 = vmatpush.msra.mxu1 %v10294_v9 }
0x1f18   : > { %6984 = vmatpush.msra.mxu1 %v10295_v35 }
0x1f1a   : > { %6985 = vmatpush.msra.mxu1 %v10296_v5 }
0x1f78   : > { %v6967_v41 = vpop.f32.mrf.mxu1 }
0x1f79   : > { %6986 = vmatmul.f32.vlgmr.msra.gmra.mxu1 %v6967_v41 }
0x1ff6   : > { %v6987_v1 = vpop.f32.mrf.mxu1 }
0x1ff7   : > { %7005 = vmatpush.msrb.mxu1 %v6987_v1 }
0x1ff8   : > { %9394 = vmatmul.msk.f32.vlgmr.msrb.gmra.mxu1 %vm15710_vm8, %v14238_v14  ;;  %vm15715_vm8 = vmmov %vm15712_vm1 }
0x2000   : > { %9395 = vmatmul.msk.f32.gmra.mxu1 %vm15711_vm10, %v14242_v15  ;;  %vm15716_vm10 = vmmov %vm15712_vm1 }
0x2008   : > { %9396 = vmatmul.msk.f32.gmra.mxu1 %vm15712_vm1, %v14246_v40 }
0x2010   : > { %9397 = vmatmul.msk.f32.gmra.mxu1 %vm15713_vm3, %v14250_v33  ;;  %vm15717_vm3 = vmmov %vm15712_vm1 }
0x2018   : > { %9398 = vmatmul.msk.f32.gmra.mxu1 %vm15714_vm14, %v14254_v62  ;;  %vm15718_vm14 = vmmov %vm15712_vm1 }
0x2020   : > { %9399 = vmatmul.msk.f32.gmra.mxu1 %vm15715_vm8, %v14258_v28  ;;  %vm15719_vm8 = vmmov %vm15712_vm1 }
0x2028   : > { %9400 = vmatmul.msk.f32.gmra.mxu1 %vm15716_vm10, %v14262_v11  ;;  %vm15720_vm10 = vmmov %vm15712_vm1 }
0x2030   : > { %9401 = vmatmul.msk.f32.gmra.mxu1 %vm15712_vm1, %v14266_v12 }
0x2038   : > { %9402 = vmatmul.msk.f32.gmra.mxu1 %vm15717_vm3, %v14270_v26  ;;  %vm15721_vm3 = vmmov %vm15712_vm1 }
0x2040   : > { %9403 = vmatmul.msk.f32.gmra.mxu1 %vm15718_vm14, %v14274_v39  ;;  %vm15722_vm14 = vmmov %vm15712_vm1 }
0x2048   : > { %9404 = vmatmul.msk.f32.gmra.mxu1 %vm15719_vm8, %v14278_v32  ;;  %vm15723_vm8 = vmmov %vm15712_vm1 }
0x2050   : > { %9405 = vmatmul.msk.f32.gmra.mxu1 %vm15720_vm10, %v14282_v58  ;;  %vm15724_vm10 = vmmov %vm15712_vm1 }
0x2058   : > { %9406 = vmatmul.msk.f32.gmra.mxu1 %vm15712_vm1, %v14286_v27 }
0x2060   : > { %9407 = vmatmul.msk.f32.gmra.mxu1 %vm15721_vm3, %v14290_v63  ;;  %vm15725_vm3 = vmmov %vm15712_vm1 }
0x2068   : > { %9408 = vmatmul.msk.f32.gmra.mxu1 %vm15722_vm14, %v14294_v43  ;;  %vm15726_vm14 = vmmov %vm15712_vm1 }
0x2070   : > { %9409 = vmatmul.msk.f32.gmra.mxu1 %vm15723_vm8, %v14298_v31  ;;  %vm15727_vm8 = vmmov %vm15712_vm1 }
0x2075   : > { %v7007_v59 = vpop.f32.mrf.mxu1 }
0x207d   : > { %v7010_v36 = vpop.f32.mrf.mxu1 }
0x2085   : > { %v7013_v46 = vpop.f32.mrf.mxu1 }
0x208d   : > { %v7016_v16 = vpop.f32.mrf.mxu1 }
0x2095   : > { %v7019_v0 = vpop.f32.mrf.mxu1 }
0x209d   : > { %v7022_v19 = vpop.f32.mrf.mxu1 }
0x20a5   : > { %v7025_v49 = vpop.f32.mrf.mxu1 }
0x20ad   : > { %v7028_v23 = vpop.f32.mrf.mxu1 }
0x20b5   : > { %v7031_v44 = vpop.f32.mrf.mxu1 }
0x20bd   : > { %v7034_v54 = vpop.f32.mrf.mxu1 }
0x20c5   : > { %v7037_v37 = vpop.f32.mrf.mxu1 }
0x20cd   : > { %v7040_v18 = vpop.f32.mrf.mxu1 }
0x20ce   : > { %v14319_v5 = vsub.f32 %v14182_v2, %v7040_v18  ;;  %v14334_v2 = vsub.f32 %v14191_v21, %v7031_v44  ;;  %v14349_v21 = vsub.f32 %v14205_v3, %v7022_v19  ;;  %v14364_v3 = vsub.f32 %v14223_v42, %v7013_v46 }
0x20d0   : > { %v7082_v41 = vmul.f32 %v14319_v5, %v14319_v5 }
0x20d5   : > { %v7043_v30 = vpop.f32.mrf.mxu1 }
0x20d6   : > { %v14314_v9 = vsub.f32 %v14179_v6, %v7043_v30  ;;  %v14329_v6 = vsub.f32 %v14188_v61, %v7034_v54  ;;  %v14344_v61 = vsub.f32 %v14199_v45, %v7025_v49  ;;  %v7079_v54 = vmul.f32 %v14334_v2, %v14334_v2 }
0x20d7   : > { %v14359_v45 = vsub.f32 %v14217_v24, %v7016_v16  ;;  %v7076_v49 = vmul.f32 %v14349_v21, %v14349_v21  ;;  %v14374_v24 = vsub.f32 %v14231_v60, %v7007_v59  ;;  %v7073_v16 = vmul.f32 %v14364_v3, %v14364_v3  ;;  %v9743_v60 = vld [vmem:[#allocation7 + $0x2b8] sm:$0xff] }
0x20d8   : > { %7826 = vmatpush.bf16.msrb.mxu0 %v9743_v60  ;;  %v9747_v60 = vld [vmem:[#allocation7 + $0x2d8] sm:$0xff] }
0x20d9   : > { %v7071_v46 = vmul.f32 %v14374_v24, %v14374_v24 }
0x20dd   : > { %v7046_v34 = vpop.f32.mrf.mxu1 }
0x20de   : > { %v14309_v52 = vsub.f32 %v14176_v48, %v7046_v34  ;;  %v14324_v48 = vsub.f32 %v14185_v13, %v7037_v37  ;;  %v14339_v13 = vsub.f32 %v14194_v22, %v7028_v23  ;;  %v7080_v37 = vmul.f32 %v14329_v6, %v14329_v6  ;;  %v9731_v34 = vld [vmem:[#allocation7 + $0x258] sm:$0xff] }
0x20df   : > { %v14354_v22 = vsub.f32 %v14211_v17, %v7019_v0  ;;  %v7077_v23 = vmul.f32 %v14344_v61, %v14344_v61  ;;  %v14369_v17 = vsub.f32 %v14227_v8, %v7010_v36  ;;  %v7074_v0 = vmul.f32 %v14359_v45, %v14359_v45 }
0x20e0   : > { %v7081_v1 = vmul.f32 %v14324_v48, %v14324_v48  ;;  %v7078_v44 = vmul.f32 %v14339_v13, %v14339_v13 }
0x20e1   : > { %v7075_v19 = vmul.f32 %v14354_v22, %v14354_v22  ;;  %v7072_v42 = vmul.f32 %v14369_v17, %v14369_v17 }
0x20e5   : > { %v7049_v38 = vpop.f32.mrf.mxu1 }
0x20e6   : > { %v14303_v56 = vsub.f32 %v14173_v55, %v7049_v38  ;;  %v7084_v55 = vmul.f32 %v14309_v52, %v14309_v52  ;;  %v9738_v38 = vld [vmem:[#allocation7 + $0x290] sm:$0xff] }
0x20e8   : > { %v7085_v35 = vmul.f32 %v14303_v56, %v14303_v56 }
0x20ed   : > { %v7052_v51 = vpop.f32.mrf.mxu1 }
0x20ee   : > { %v14306_v4 = vsub.f32 %v14171_v20, %v7052_v51  ;;  %v7083_v20 = vmul.f32 %v14314_v9, %v14314_v9 }
0x20f0   : > { %v7086_v7 = vmul.f32 %v14306_v4, %v14306_v4 }
0x20f2   : > { %7087 = vmatpush.msra.mxu3 %v7086_v7 }
0x20f4   : > { %7088 = vmatpush.msra.mxu3 %v7085_v35  ;;  %v9749_v35 = vld [vmem:[#allocation7 + $0x2e8] sm:$0xff] }
0x20f6   : > { %7089 = vmatpush.msra.mxu3 %v7084_v55 }
0x20f8   : > { %7090 = vmatpush.msra.mxu3 %v7083_v20 }
0x20fa   : > { %7091 = vmatpush.msra.mxu3 %v7082_v41 }
0x20fc   : > { %7092 = vmatpush.msra.mxu3 %v7081_v1 }
0x20fe   : > { %7093 = vmatpush.msra.mxu3 %v7080_v37  ;;  %v9730_v37 = vld [vmem:[#allocation7 + $0x250] sm:$0xff] }
0x2100   : > { %7094 = vmatpush.msra.mxu3 %v7079_v54  ;;  %v9737_v54 = vld [vmem:[#allocation7 + $0x288] sm:$0xff] }
0x2102   : > { %7095 = vmatpush.msra.mxu3 %v7078_v44 }
0x2104   : > { %7096 = vmatpush.msra.mxu3 %v7077_v23  ;;  %v9748_v23 = vld [vmem:[#allocation7 + $0x2e0] sm:$0xff] }
0x2106   : > { %7097 = vmatpush.msra.mxu3 %v7076_v49 }
0x2108   : > { %7098 = vmatpush.msra.mxu3 %v7075_v19 }
0x210a   : > { %7099 = vmatpush.msra.mxu3 %v7074_v0 }
0x210c   : > { %7100 = vmatpush.msra.mxu3 %v7073_v16 }
0x210e   : > { %7101 = vmatpush.msra.mxu3 %v7072_v42 }
0x2110   : > { %7102 = vmatpush.msra.mxu3 %v7071_v46 }
0x2111   : > { %7103 = vmatmul.f32.vlgmr.msra.gmra.mxu3 %v14235_v29 }
0x2194   : > { %v7104_v8 = vpop.f32.mrf.mxu3 }
0x2195   : > { %7123 = vmatmul.f32.vlgmr.msrb.gmra.mxu2 %v7104_v8  ;;  %v9729_v8 = vld [vmem:[#allocation7 + $0x248] sm:$0xff] }
0x2218   : > { %v7124_v36 = vpop.f32.mrf.mxu2 }
0x2219   : > { %7142 = vmatpush.msrb.mxu3 %v7124_v36  ;;  %v9736_v36 = vld [vmem:[#allocation7 + $0x280] sm:$0xff] }
0x221a   : > { %9410 = vmatmul.msk.f32.vlgmr.msrb.gmra.mxu3 %vm15724_vm10, %v14238_v14  ;;  %vm15730_vm10 = vmmov %vm15712_vm1 }
0x2222   : > { %9411 = vmatmul.msk.f32.gmra.mxu3 %vm15712_vm1, %v14242_v15  ;;  %v9735_v15 = vld [vmem:[#allocation7 + $0x278] sm:$0xff] }
0x2223   : > { %7777 = vmatpush.bf16.msra.mxu2 %v9735_v15 }
0x222a   : > { %9412 = vmatmul.msk.f32.gmra.mxu3 %vm15725_vm3, %v14246_v40  ;;  %vm15731_vm3 = vmmov %vm15712_vm1  ;;  %v9742_v40 = vld [vmem:[#allocation7 + $0x2b0] sm:$0xff] }
0x222b   : > { %7827 = vmatpush.bf16.msrb.mxu0 %v9742_v40 }
0x2232   : > { %9413 = vmatmul.msk.f32.gmra.mxu3 %vm15726_vm14, %v14250_v33  ;;  %vm15732_vm14 = vmmov %vm15712_vm1  ;;  %v9734_v33 = vld [vmem:[#allocation7 + $0x270] sm:$0xff] }
0x2233   : > { %7778 = vmatpush.bf16.msra.mxu2 %v9734_v33  ;;  %v9728_v33 = vld [vmem:[#allocation7 + $0x240] sm:$0xff] }
0x223a   : > { %9414 = vmatmul.msk.f32.gmra.mxu3 %vm15727_vm8, %v14254_v62  ;;  %vm15733_vm8 = vmmov %vm15712_vm1  ;;  %v9741_v62 = vld [vmem:[#allocation7 + $0x2a8] sm:$0xff] }
0x223b   : > { %7828 = vmatpush.bf16.msrb.mxu0 %v9741_v62 }
0x2242   : > { %9415 = vmatmul.msk.f32.gmra.mxu3 %vm15728_vm13, %v14258_v28  ;;  %vm15734_vm13 = vmmov %vm15712_vm1 }
0x224a   : > { %9416 = vmatmul.msk.f32.gmra.mxu3 %vm15729_vm12, %v14262_v11  ;;  %vm15735_vm12 = vmmov %vm15712_vm1 }
0x2252   : > { %9417 = vmatmul.msk.f32.gmra.mxu3 %vm15730_vm10, %v14266_v12  ;;  %vm15736_vm10 = vmmov %vm15712_vm1 }
0x225a   : > { %9418 = vmatmul.msk.f32.gmra.mxu3 %vm15712_vm1, %v14270_v26 }
0x2262   : > { %9419 = vmatmul.msk.f32.gmra.mxu3 %vm15731_vm3, %v14274_v39  ;;  %v9733_v39 = vld [vmem:[#allocation7 + $0x268] sm:$0xff] }
0x2263   : > { %7779 = vmatpush.bf16.msra.mxu2 %v9733_v39 }
0x226a   : > { %9420 = vmatmul.msk.f32.gmra.mxu3 %vm15732_vm14, %v14278_v32  ;;  %v9740_v32 = vld [vmem:[#allocation7 + $0x2a0] sm:$0xff] }
0x226b   : > { %7829 = vmatpush.bf16.msrb.mxu0 %v9740_v32 }
0x2272   : > { %9421 = vmatmul.msk.f32.gmra.mxu3 %vm15733_vm8, %v14282_v58  ;;  %v9751_v58 = vld [vmem:[#allocation7 + $0x2f8] sm:$0xff] }
0x2273   : > { %7875 = vmatpush.bf16.msra.mxu1 %v9751_v58 }
0x227a   : > { %9422 = vmatmul.msk.f32.gmra.mxu3 %vm15734_vm13, %v14286_v27 }
0x2282   : > { %9423 = vmatmul.msk.f32.gmra.mxu3 %vm15735_vm12, %v14290_v63  ;;  %v9732_v63 = vld [vmem:[#allocation7 + $0x260] sm:$0xff] }
0x2283   : > { %7780 = vmatpush.bf16.msra.mxu2 %v9732_v63 }
0x2287   : > { %7781 = vmatpush.bf16.msra.mxu2 %v9731_v34 }
0x228a   : > { %9424 = vmatmul.msk.f32.gmra.mxu3 %vm15736_vm10, %v14294_v43  ;;  %v9739_v43 = vld [vmem:[#allocation7 + $0x298] sm:$0xff] }
0x228b   : > { %7830 = vmatpush.bf16.msrb.mxu0 %v9739_v43  ;;  %7782 = vmatpush.bf16.msra.mxu2 %v9730_v37 }
0x228f   : > { %7831 = vmatpush.bf16.msrb.mxu0 %v9738_v38  ;;  %7783 = vmatpush.bf16.msra.mxu2 %v9729_v8 }
0x2292   : > { %9425 = vmatmul.msk.f32.gmra.mxu3 %vm15712_vm1, %v14298_v31  ;;  %v9750_v31 = vld [vmem:[#allocation7 + $0x2f0] sm:$0xff] }
0x2293   : > { %7876 = vmatpush.bf16.msra.mxu1 %v9750_v31  ;;  %7832 = vmatpush.bf16.msrb.mxu0 %v9737_v54  ;;  %v9745_v31 = vld [vmem:[#allocation7 + $0x2c8] sm:$0xff] }
0x2294   : > { %7784 = vmatpush.bf16.msra.mxu2 %v9728_v33 }
0x2297   : > { %7877 = vmatpush.bf16.msra.mxu1 %v9749_v35  ;;  %7833 = vmatpush.bf16.msrb.mxu0 %v9736_v36 }
0x229b   : > { %7878 = vmatpush.bf16.msra.mxu1 %v9748_v23 }
0x229d   : > { %v7144_v29 = vpop.f32.mrf.mxu3 }
0x229e   : > { %v7145_v14 = vadd.f32 1e-05, %v7144_v29 }
0x229f   : > { %7879 = vmatpush.bf16.msra.mxu1 %v9747_v60 }
0x22a0   : > { %10051 = vrsqrt.f32 %v7145_v14  ;;  %vm7198_vm14 = vweird.f32 %v7145_v14 }
0x22a5   : > { %v7147_v28 = vpop.f32.mrf.mxu3 }
0x22a6   : > { %v10052_v11 = vpop.eup %10051  ;;  %v7148_v12 = vadd.f32 1e-05, %v7147_v28  ;;  %v9746_v28 = vld [vmem:[#allocation7 + $0x2d0] sm:$0xff] }
0x22a7   : > { %v7193_v26 = vmul.f32 %v10052_v11, %v7145_v14  ;;  %vm7199_vm3 = vweird.f32 %v10052_v11  ;;  %7880 = vmatpush.bf16.msra.mxu1 %v9746_v28 }
0x22a8   : > { %10053 = vrsqrt.f32 %v7148_v12  ;;  %vm7200_vm8 = vmor %vm7198_vm14, %vm7199_vm3  ;;  %vm7208_vm10 = vweird.f32 %v7148_v12 }
0x22a9   : > { %v7194_v27 = vmul.f32 %v10052_v11, %v7193_v26 }
0x22ab   : > { %v7195_v59 = vmul.f32 0.5, %v7194_v27  ;;  %7881 = vmatpush.bf16.msra.mxu1 %v9745_v31 }
0x22ad   : > { %v7196_v18 = vsub.f32 1.5, %v7195_v59  ;;  %v7150_v30 = vpop.f32.mrf.mxu3 }
0x22ae   : > { %v10054_v51 = vpop.eup %10053  ;;  %v14415_v7 = vadd.f32 1e-05, %v7150_v30 }
0x22af   : > { %v7197_v55 = vmul.f32 %v10052_v11, %v7196_v18  ;;  %v7203_v20 = vmul.f32 %v10054_v51, %v7148_v12  ;;  %vm7209_vm13 = vweird.f32 %v10054_v51 }
0x22b0   : > { %10055 = vrsqrt.f32 %v14415_v7  ;;  %vm7210_vm1 = vmor %vm7208_vm10, %vm7209_vm13  ;;  %vm15738_vm10 = vcmask 1046528  }
0x22b1   : > { %v7201_v41 = vsel %vm7200_vm8, %v10052_v11, %v7197_v55  ;;  %v7204_v1 = vmul.f32 %v10054_v51, %v7203_v20  ;;  %vm7218_vm8 = vweird.f32 %v14415_v7 }
0x22b2   : > { %v7352_v44 = vmul.f32 %v7201_v41, %v14374_v24 }
0x22b3   : > { %v7205_v49 = vmul.f32 0.5, %v7204_v1  ;;  %v9744_v1 = vld [vmem:[#allocation7 + $0x2c0] sm:$0xff] }
0x22b4   : > { %v7384_v19 = vmul.f32 0.1, %v7352_v44  ;;  %vm7368_vm12 = vcmp.ge.f32.partialorder %v7352_v44, 0.0  ;;  %7882 = vmatpush.bf16.msra.mxu1 %v9744_v1 }
0x22b5   : > { %v7206_v0 = vsub.f32 1.5, %v7205_v49  ;;  %v7153_v16 = vpop.f32.mrf.mxu3 }
0x22b6   : > { %v10056_v42 = vpop.eup %10055  ;;  %v14419_v46 = vadd.f32 1e-05, %v7153_v16  ;;  %v7400_v14 = vsel %vm7368_vm12, %v7352_v44, %v7384_v19  ;;  %vm15737_vm12 = vcmask 1040384  }
0x22b7   : > { %v7207_v29 = vmul.f32 %v10054_v51, %v7206_v0  ;;  %v7213_v24 = vmul.f32 %v10056_v42, %v14415_v7  ;;  %v7529_v39 = vrot.slane %v7400_v14, 7  ;;  %vm7219_vm14 = vweird.f32 %v10056_v42 }
0x22b8   : > { %10057 = vrsqrt.f32 %v14419_v46  ;;  %v7481_v27 = vrot.slane %v7400_v14, 1  ;;  %vm7220_vm13 = vmor %vm7218_vm8, %vm7219_vm14  ;;  %vm7228_vm8 = vweird.f32 %v14419_v46 }
0x22b9   : > { %v7211_v15 = vsel %vm7210_vm1, %v10054_v51, %v7207_v29  ;;  %v7214_v40 = vmul.f32 %v10056_v42, %v7213_v24  ;;  %v7576_v38 = vsel %vm15737_vm12, %v7400_v14, %v7529_v39  ;;  %vm15739_vm1 = vmmov %vm15737_vm12 }
0x22ba   : > { %v7353_v62 = vmul.f32 %v7211_v15, %v14369_v17 }
0x22bb   : > { %v7215_v11 = vmul.f32 0.5, %v7214_v40 }
0x22bc   : > { %vm7369_vm3 = vcmp.ge.f32.partialorder %v7353_v62, 0.0  ;;  %v7385_v26 = vmul.f32 0.1, %v7353_v62 }
0x22bd   : > { %v7216_v12 = vsub.f32 1.5, %v7215_v11  ;;  %v7156_v32 = vpop.f32.mrf.mxu3 }
0x22be   : > { %v10058_v58 = vpop.eup %10057  ;;  %v14424_v63 = vsel %vm7369_vm3, %v7353_v62, %v7385_v26  ;;  %v7157_v43 = vadd.f32 1e-05, %v7156_v32 }
0x22bf   : > { %v7482_v17 = vrot.slane %v14424_v63, 1  ;;  %v7530_v59 = vrot.slane %v14424_v63, 7  ;;  %v7217_v18 = vmul.f32 %v10056_v42, %v7216_v12  ;;  %v7223_v30 = vmul.f32 %v10058_v58, %v14419_v46 }
0x22c0   : > { %10059 = vrsqrt.f32 %v7157_v43  ;;  %v7610_v34 = vpack.c.bf16 %v14424_v63, %v7400_v14  ;;  %vm7229_vm14 = vweird.f32 %v10058_v58 }
0x22c1   : > { %v7221_v51 = vsel %vm7220_vm13, %v10056_v42, %v7217_v18  ;;  %v7224_v35 = vmul.f32 %v10058_v58, %v7223_v30  ;;  %v7483_v7 = vsel %vm15738_vm10, %v7481_v27, %v7482_v17  ;;  %v7531_v55 = vsel %vm15739_vm1, %v7529_v39, %v7530_v59  ;;  %vm15740_vm13 = vmmov %vm15738_vm10 }
0x22c2   : > { %v7354_v20 = vmul.f32 %v7221_v51, %v14364_v3  ;;  %7834 = vmatmul.bf16.vlgmr.msrb.gmra.mxu0 %v7610_v34  ;;  %v7577_v41 = vsel %vm10812_vm2, %v7483_v7, %v7576_v38  ;;  %vm7230_vm2 = vmor %vm7228_vm8, %vm7229_vm14  ;;  %vm7238_vm1 = vweird.f32 %v7157_v43  ;;  %vm15742_vm14 = vcmask 1040384  }
0x22c3   : > { %v7225_v37 = vmul.f32 0.5, %v7224_v35  ;;  %v7609_v54 = vpack.c.bf16 %v7531_v55, %v7577_v41  ;;  %vm15743_vm8 = vmmov %vm15742_vm14 }
0x22c4   : > { %vm7370_vm3 = vcmp.ge.f32.partialorder %v7354_v20, 0.0  ;;  %v7386_v44 = vmul.f32 0.1, %v7354_v20 }
0x22c5   : > { %v7226_v23 = vsub.f32 1.5, %v7225_v37  ;;  %v7159_v49 = vpop.f32.mrf.mxu3  ;;  %7785 = vmatmul.bf16.vlgmr.msra.gmra.mxu2 %v7609_v54 }
0x22c6   : > { %v10060_v19 = vpop.eup %10059  ;;  %v7402_v0 = vsel %vm7370_vm3, %v7354_v20, %v7386_v44  ;;  %v7160_v16 = vadd.f32 1e-05, %v7159_v49 }
0x22c7   : > { %v7484_v42 = vrot.slane %v7402_v0, 1  ;;  %v7227_v3 = vmul.f32 %v10058_v58, %v7226_v23  ;;  %v7233_v53 = vmul.f32 %v10060_v19, %v7157_v43  ;;  %vm7239_vm10 = vweird.f32 %v10060_v19 }
0x22c8   : > { %10061 = vrsqrt.f32 %v7160_v16  ;;  %v7532_v46 = vrot.slane %v7402_v0, 7  ;;  %vm7240_vm3 = vmor %vm7238_vm1, %vm7239_vm10 }
0x22c9   : > { %v7231_v8 = vsel %vm7230_vm2, %v10058_v58, %v7227_v3  ;;  %v7234_v36 = vmul.f32 %v10060_v19, %v7233_v53  ;;  %v7485_v60 = vsel %vm15740_vm13, %v7482_v17, %v7484_v42 }
0x22ca   : > { %v7355_v29 = vmul.f32 %v7231_v8, %v14359_v45  ;;  %v7594_v24 = vsel %vm15316_vm0, %v7531_v55, %v7485_v60  ;;  %vm15741_vm0 = vmmov %vm15740_vm13  ;;  %v7533_v17 = vsel %vm15742_vm14, %v7530_v59, %v7532_v46 }
0x22cb   : > { %v7235_v14 = vmul.f32 0.5, %v7234_v36  ;;  %v7611_v15 = vpack.c.bf16 %v7594_v24, %v7483_v7 }
0x22cc   : > { %vm7371_vm12 = vcmp.ge.f32.partialorder %v7355_v29, 0.0  ;;  %v7387_v40 = vmul.f32 0.1, %v7355_v29 }
0x22cd   : > { %v7236_v33 = vsub.f32 1.5, %v7235_v14  ;;  %v7162_v62 = vpop.f32.mrf.mxu3  ;;  %7883 = vmatmul.bf16.vlgmr.msra.gmra.mxu1 %v7611_v15 }
0x22ce   : > { %v10062_v28 = vpop.eup %10061  ;;  %v7163_v11 = vadd.f32 1e-05, %v7162_v62  ;;  %v14444_v26 = vsel %vm7371_vm12, %v7355_v29, %v7387_v40  ;;  %vm7248_vm12 = vweird.f32 %v7160_v16 }
0x22cf   : > { %v7237_v39 = vmul.f32 %v10060_v19, %v7236_v33  ;;  %v7243_v12 = vmul.f32 %v10062_v28, %v7160_v16  ;;  %v7486_v45 = vrot.slane %v14444_v26, 1  ;;  %v7534_v10 = vrot.slane %v14444_v26, 7 }
0x22d0   : > { %10063 = vrsqrt.f32 %v7163_v11  ;;  %v7613_v32 = vpack.c.bf16 %v14444_v26, %v7402_v0  ;;  %vm7249_vm13 = vweird.f32 %v10062_v28 }
0x22d1   : > { %v7241_v58 = vsel %vm7240_vm3, %v10060_v19, %v7237_v39  ;;  %v7244_v27 = vmul.f32 %v10062_v28, %v7243_v12  ;;  %v7487_v31 = vsel %vm15741_vm0, %v7484_v42, %v7486_v45  ;;  %v7535_v43 = vsel %vm15743_vm8, %v7532_v46, %v7534_v10  ;;  %vm7250_vm10 = vmor %vm7248_vm12, %vm7249_vm13 }
0x22d2   : > { %v7356_v18 = vmul.f32 %v7241_v58, %v14354_v22  ;;  %7839 = vmatmul.bf16.gmra.mxu0 %v7613_v32  ;;  %v7579_v30 = vsel %vm10833_vm4, %v7487_v31, %v7533_v17  ;;  %vm15744_vm4 = vmmov %vm15741_vm0  ;;  %vm7258_vm0 = vweird.f32 %v7163_v11 }
0x22d3   : > { %v7245_v34 = vmul.f32 0.5, %v7244_v27  ;;  %v7612_v38 = vpack.c.bf16 %v7535_v43, %v7579_v30 }
0x22d4   : > { %vm7372_vm2 = vcmp.ge.f32.partialorder %v7356_v18, 0.0  ;;  %v7388_v51 = vmul.f32 0.1, %v7356_v18 }
0x22d5   : > { %v7246_v35 = vsub.f32 1.5, %v7245_v34  ;;  %v7165_v7 = vpop.f32.mrf.mxu3  ;;  %7790 = vmatmul.bf16.gmra.mxu2 %v7612_v38 }
0x22d6   : > { %v10064_v55 = vpop.eup %10063  ;;  %v7404_v63 = vsel %vm7372_vm2, %v7356_v18, %v7388_v51  ;;  %v7166_v20 = vadd.f32 1e-05, %v7165_v7  ;;  %vm15746_vm2 = vmmov %vm15743_vm8 }
0x22d7   : > { %v7247_v59 = vmul.f32 %v10062_v28, %v7246_v35  ;;  %v7253_v22 = vmul.f32 %v10064_v55, %v7163_v11  ;;  %v7488_v41 = vrot.slane %v7404_v63, 1  ;;  %vm7259_vm3 = vweird.f32 %v10064_v55 }
0x22d8   : > { %10065 = vrsqrt.f32 %v7166_v20  ;;  %v7536_v42 = vrot.slane %v7404_v63, 7  ;;  %vm7260_vm14 = vmor %vm7258_vm0, %vm7259_vm3 }
0x22d9   : > { %v7251_v1 = vsel %vm7250_vm10, %v10062_v28, %v7247_v59  ;;  %v7254_v57 = vmul.f32 %v10064_v55, %v7253_v22  ;;  %v7489_v37 = vsel %vm15744_vm4, %v7486_v45, %v7488_v41  ;;  %vm7268_vm10 = vweird.f32 %v7166_v20 }
0x22da   : > { %v7357_v54 = vmul.f32 %v7251_v1, %v14349_v21  ;;  %v7596_v44 = vsel %vm10840_vm5, %v7535_v43, %v7489_v37  ;;  %vm15745_vm5 = vmmov %vm15744_vm4  ;;  %v7537_v40 = vsel %vm15743_vm8, %v7534_v10, %v7536_v42 }
0x22db   : > { %v7255_v23 = vmul.f32 0.5, %v7254_v57  ;;  %v7614_v49 = vpack.c.bf16 %v7596_v44, %v7487_v31  ;;  %vm15750_vm8 = vmmov %vm15746_vm2 }
0x22dc   : > { %vm7373_vm1 = vcmp.ge.f32.partialorder %v7357_v54, 0.0  ;;  %v7389_v19 = vmul.f32 0.1, %v7357_v54 }
0x22dd   : > { %v7256_v0 = vsub.f32 1.5, %v7255_v23  ;;  %v7168_v16 = vpop.f32.mrf.mxu3  ;;  %7888 = vmatmul.bf16.gmra.mxu1 %v7614_v49 }
0x22de   : > { %v10066_v3 = vpop.eup %10065  ;;  %v7169_v53 = vadd.f32 1e-05, %v7168_v16  ;;  %v14461_v8 = vsel %vm7373_vm1, %v7357_v54, %v7389_v19 }
0x22df   : > { %v7257_v36 = vmul.f32 %v10064_v55, %v7256_v0  ;;  %v7263_v60 = vmul.f32 %v10066_v3, %v7166_v20  ;;  %v7490_v21 = vrot.slane %v14461_v8, 1  ;;  %v7538_v25 = vrot.slane %v14461_v8, 7 }
0x22e0   : > { %10067 = vrsqrt.f32 %v7169_v53  ;;  %v7616_v29 = vpack.c.bf16 %v14461_v8, %v7404_v63  ;;  %vm7269_vm12 = vweird.f32 %v10066_v3  ;;  %vm7278_vm0 = vweird.f32 %v7169_v53 }
0x22e1   : > { %v7261_v24 = vsel %vm7260_vm14, %v10064_v55, %v7257_v36  ;;  %v7264_v14 = vmul.f32 %v10066_v3, %v7263_v60  ;;  %v7491_v15 = vsel %vm15745_vm5, %v7488_v41, %v7490_v21  ;;  %v7539_v62 = vsel %vm15746_vm2, %v7536_v42, %v7538_v25  ;;  %vm7270_vm4 = vmor %vm7268_vm10, %vm7269_vm12 }
0x22e2   : > { %v7358_v33 = vmul.f32 %v7261_v24, %v14344_v61  ;;  %7844 = vmatmul.bf16.gmra.mxu0 %v7616_v29  ;;  %v7581_v46 = vsel %vm10854_vm6, %v7491_v15, %v7537_v40  ;;  %vm15747_vm6 = vmmov %vm15745_vm5  ;;  %v15753_v40 = vld [vmem:[#allocation26_spill] sm:$0xff] }
0x22e3   : > { %v7265_v28 = vmul.f32 0.5, %v7264_v14  ;;  %v7615_v11 = vpack.c.bf16 %v7539_v62, %v7581_v46 }
0x22e4   : > { %vm7374_vm13 = vcmp.ge.f32.partialorder %v7358_v33, 0.0  ;;  %v7390_v26 = vmul.f32 0.1, %v7358_v33 }
0x22e5   : > { %v7266_v39 = vsub.f32 1.5, %v7265_v28  ;;  %v7171_v12 = vpop.f32.mrf.mxu3  ;;  %7795 = vmatmul.bf16.gmra.mxu2 %v7615_v11 }
0x22e6   : > { %v10068_v45 = vpop.eup %10067  ;;  %v7406_v32 = vsel %vm7374_vm13, %v7358_v33, %v7390_v26  ;;  %v7172_v58 = vadd.f32 1e-05, %v7171_v12 }
0x22e7   : > { %v7267_v10 = vmul.f32 %v10066_v3, %v7266_v39  ;;  %v7273_v61 = vmul.f32 %v10068_v45, %v7169_v53  ;;  %v7492_v27 = vrot.slane %v7406_v32, 1  ;;  %vm7279_vm3 = vweird.f32 %v10068_v45 }
0x22e8   : > { %10069 = vrsqrt.f32 %v7172_v58  ;;  %v7540_v7 = vrot.slane %v7406_v32, 7  ;;  %vm7280_vm14 = vmor %vm7278_vm0, %vm7279_vm3  ;;  %vm7288_vm12 = vweird.f32 %v7172_v58 }
0x22e9   : > { %v7271_v31 = vsel %vm7270_vm4, %v10066_v3, %v7267_v10  ;;  %v7274_v47 = vmul.f32 %v10068_v45, %v7273_v61  ;;  %v7493_v17 = vsel %vm15747_vm6, %v7490_v21, %v7492_v27  ;;  %vm15754_vm4 = vnez %v15753_v40 }
0x22ea   : > { %v7359_v18 = vmul.f32 %v7271_v31, %v14339_v13  ;;  %v7598_v43 = vsel %vm10861_vm7, %v7539_v62, %v7493_v17  ;;  %vm15748_vm7 = vmmov %vm15745_vm5 }
0x22eb   : > { %v7275_v30 = vmul.f32 0.5, %v7274_v47  ;;  %v7617_v34 = vpack.c.bf16 %v7598_v43, %v7491_v15  ;;  %vm15749_vm5 = vmmov %vm15746_vm2 }
0x22ec   : > { %vm7375_vm1 = vcmp.ge.f32.partialorder %v7359_v18, 0.0  ;;  %v7391_v38 = vmul.f32 0.1, %v7359_v18  ;;  %v7541_v54 = vsel %vm15749_vm5, %v7538_v25, %v7540_v7 }
0x22ed   : > { %v7276_v51 = vsub.f32 1.5, %v7275_v30  ;;  %v7174_v35 = vpop.f32.mrf.mxu3  ;;  %7893 = vmatmul.bf16.gmra.mxu1 %v7617_v34 }
0x22ee   : > { %v10070_v55 = vpop.eup %10069  ;;  %v7175_v63 = vadd.f32 1e-05, %v7174_v35  ;;  %v14476_v20 = vsel %vm7375_vm1, %v7359_v18, %v7391_v38 }
0x22ef   : > { %v7277_v59 = vmul.f32 %v10068_v45, %v7276_v51  ;;  %v7283_v22 = vmul.f32 %v10070_v55, %v7172_v58  ;;  %v7494_v13 = vrot.slane %v14476_v20, 1  ;;  %v7542_v50 = vrot.slane %v14476_v20, 7 }
0x22f0   : > { %10071 = vrsqrt.f32 %v7175_v63  ;;  %v7619_v41 = vpack.c.bf16 %v14476_v20, %v7406_v32  ;;  %vm7289_vm13 = vweird.f32 %v10070_v55  ;;  %vm7298_vm3 = vweird.f32 %v7175_v63 }
0x22f1   : > { %v7281_v1 = vsel %vm7280_vm14, %v10068_v45, %v7277_v59  ;;  %v7284_v57 = vmul.f32 %v10070_v55, %v7283_v22  ;;  %v7495_v37 = vsel %vm15748_vm7, %v7492_v27, %v7494_v13  ;;  %v7543_v23 = vsel %vm15750_vm8, %v7540_v7, %v7542_v50  ;;  %vm7290_vm10 = vmor %vm7288_vm12, %vm7289_vm13 }
0x22f2   : > { %v7360_v44 = vmul.f32 %v7281_v1, %v14334_v2  ;;  %7849 = vmatmul.bf16.gmra.mxu0 %v7619_v41  ;;  %v7583_v19 = vsel %vm15664_vm15, %v7495_v37, %v7541_v54  ;;  %vm15752_vm15 = vmmov %vm15747_vm6  ;;  %v15759_v54 = vld [vmem:[#allocation28_spill] sm:$0xff] }
0x22f3   : > { %v7285_v0 = vmul.f32 0.5, %v7284_v57  ;;  %v7618_v16 = vpack.c.bf16 %v7543_v23, %v7583_v19  ;;  %vm15755_vm14 = vmmov %vm15748_vm7 }
0x22f4   : > { %vm7376_vm2 = vcmp.ge.f32.partialorder %v7360_v44, 0.0  ;;  %v7392_v42 = vmul.f32 0.1, %v7360_v44  ;;  %vm15756_vm7 = vmmov %vm15749_vm5 }
0x22f5   : > { %v7286_v3 = vsub.f32 1.5, %v7285_v0  ;;  %v7177_v53 = vpop.f32.mrf.mxu3  ;;  %7800 = vmatmul.bf16.gmra.mxu2 %v7618_v16 }
0x22f6   : > { %v10072_v8 = vpop.eup %10071  ;;  %v7408_v36 = vsel %vm7376_vm2, %v7360_v44, %v7392_v42  ;;  %v7178_v60 = vadd.f32 1e-05, %v7177_v53 }
0x22f7   : > { %v7287_v21 = vmul.f32 %v10070_v55, %v7286_v3  ;;  %v7293_v2 = vmul.f32 %v10072_v8, %v7175_v63  ;;  %v7496_v25 = vrot.slane %v7408_v36, 1  ;;  %vm7299_vm1 = vweird.f32 %v10072_v8 }
0x22f8   : > { %10073 = vrsqrt.f32 %v7178_v60  ;;  %v7544_v39 = vrot.slane %v7408_v36, 7  ;;  %vm7300_vm0 = vmor %vm7298_vm3, %vm7299_vm1  ;;  %vm7308_vm13 = vweird.f32 %v7178_v60 }
0x22f9   : > { %v7291_v29 = vsel %vm7290_vm10, %v10070_v55, %v7287_v21  ;;  %v7294_v24 = vmul.f32 %v10072_v8, %v7293_v2  ;;  %v7497_v14 = vsel %vm15752_vm15, %v7494_v13, %v7496_v25  ;;  %vm15760_vm10 = vnez %v15759_v54 }
0x22fa   : > { %v7361_v15 = vmul.f32 %v7291_v29, %v14329_v6  ;;  %v7600_v33 = vsel %vm15754_vm4, %v7543_v23, %v7497_v14  ;;  %v7545_v18 = vsel %vm15756_vm7, %v7542_v50, %v7544_v39 }
0x22fb   : > { %v7295_v62 = vmul.f32 0.5, %v7294_v24  ;;  %v7620_v46 = vpack.c.bf16 %v7600_v33, %v7495_v37 }
0x22fc   : > { %vm7377_vm6 = vcmp.ge.f32.partialorder %v7361_v15, 0.0  ;;  %v7393_v28 = vmul.f32 0.1, %v7361_v15 }
0x22fd   : > { %v7296_v11 = vsub.f32 1.5, %v7295_v62  ;;  %v7180_v26 = vpop.f32.mrf.mxu3  ;;  %7898 = vmatmul.bf16.gmra.mxu1 %v7620_v46 }
0x22fe   : > { %v10074_v12 = vpop.eup %10073  ;;  %v7181_v45 = vadd.f32 1e-05, %v7180_v26  ;;  %v14491_v32 = vsel %vm7377_vm6, %v7361_v15, %v7393_v28 }
0x22ff   : > { %v7297_v58 = vmul.f32 %v10072_v8, %v7296_v11  ;;  %v7303_v10 = vmul.f32 %v10074_v12, %v7178_v60  ;;  %v7498_v6 = vrot.slane %v14491_v32, 1  ;;  %v7546_v61 = vrot.slane %v14491_v32, 7 }
0x2300   : > { %10075 = vrsqrt.f32 %v7181_v45  ;;  %v7622_v27 = vpack.c.bf16 %v14491_v32, %v7408_v36  ;;  %vm7309_vm2 = vweird.f32 %v10074_v12  ;;  %vm7318_vm6 = vweird.f32 %v7181_v45 }
0x2301   : > { %v7301_v31 = vsel %vm7300_vm0, %v10072_v8, %v7297_v58  ;;  %v7304_v47 = vmul.f32 %v10074_v12, %v7303_v10  ;;  %v7499_v17 = vsel %vm15755_vm14, %v7496_v25, %v7498_v6  ;;  %v7547_v30 = vsel %vm15749_vm5, %v7544_v39, %v7546_v61  ;;  %vm7310_vm12 = vmor %vm7308_vm13, %vm7309_vm2 }
0x2302   : > { %v7362_v43 = vmul.f32 %v7301_v31, %v14324_v48  ;;  %7854 = vmatmul.bf16.gmra.mxu0 %v7622_v27  ;;  %v7585_v38 = vsel %vm15674_vm11, %v7499_v17, %v7545_v18  ;;  %vm15758_vm11 = vmmov %vm15755_vm14 }
0x2303   : > { %v7305_v51 = vmul.f32 0.5, %v7304_v47  ;;  %v7621_v35 = vpack.c.bf16 %v7547_v30, %v7585_v38  ;;  %vm15761_vm3 = vmmov %vm15758_vm11  ;;  %v15766_v47 = vld [vmem:[#allocation30_spill] sm:$0xff] }
0x2304   : > { %vm7378_vm8 = vcmp.ge.f32.partialorder %v7362_v43, 0.0  ;;  %v7394_v7 = vmul.f32 0.1, %v7362_v43  ;;  %vm15762_vm0 = vmmov %vm15749_vm5  ;;  %vm15767_vm13 = vnez %v15766_v47 }
0x2305   : > { %v7306_v55 = vsub.f32 1.5, %v7305_v51  ;;  %v7183_v63 = vpop.f32.mrf.mxu3  ;;  %7805 = vmatmul.bf16.gmra.mxu2 %v7621_v35  ;;  %vm15763_vm14 = vmmov %vm15762_vm0 }
0x2306   : > { %v10076_v20 = vpop.eup %10075  ;;  %v7410_v59 = vsel %vm7378_vm8, %v7362_v43, %v7394_v7  ;;  %v7184_v22 = vadd.f32 1e-05, %v7183_v63 }
0x2307   : > { %v7307_v13 = vmul.f32 %v10074_v12, %v7306_v55  ;;  %v7313_v48 = vmul.f32 %v10076_v20, %v7181_v45  ;;  %v7500_v50 = vrot.slane %v7410_v59, 1  ;;  %vm7319_vm4 = vweird.f32 %v10076_v20 }
0x2308   : > { %10077 = vrsqrt.f32 %v7184_v22  ;;  %v7548_v42 = vrot.slane %v7410_v59, 7  ;;  %vm7320_vm1 = vmor %vm7318_vm6, %vm7319_vm4  ;;  %vm7328_vm8 = vweird.f32 %v7184_v22 }
0x2309   : > { %v7311_v41 = vsel %vm7310_vm12, %v10074_v12, %v7307_v13  ;;  %v7314_v1 = vmul.f32 %v10076_v20, %v7313_v48  ;;  %v7501_v57 = vsel %vm15758_vm11, %v7498_v6, %v7500_v50  ;;  %vm15768_vm4 = vmmov %vm15761_vm3 }
0x230a   : > { %v7363_v37 = vmul.f32 %v7311_v41, %v14319_v5  ;;  %v7602_v44 = vsel %vm15760_vm10, %v7547_v30, %v7501_v57  ;;  %v7549_v14 = vsel %vm15762_vm0, %v7546_v61, %v7548_v42  ;;  %vm15769_vm6 = vmmov %vm15762_vm0 }
0x230b   : > { %v7315_v23 = vmul.f32 0.5, %v7314_v1  ;;  %v7623_v49 = vpack.c.bf16 %v7602_v44, %v7499_v17  ;;  %v15771_v1 = vld [vmem:[#allocation31_spill] sm:$0xff] }
0x230c   : > { %vm7379_vm15 = vcmp.ge.f32.partialorder %v7363_v37, 0.0  ;;  %v7395_v19 = vmul.f32 0.1, %v7363_v37 }
0x230d   : > { %v7316_v0 = vsub.f32 1.5, %v7315_v23  ;;  %v7186_v16 = vpop.f32.mrf.mxu3  ;;  %7903 = vmatmul.bf16.gmra.mxu1 %v7623_v49 }
0x230e   : > { %v10078_v3 = vpop.eup %10077  ;;  %v7187_v53 = vadd.f32 1e-05, %v7186_v16  ;;  %v7411_v8 = vsel %vm7379_vm15, %v7363_v37, %v7395_v19 }
0x230f   : > { %v7317_v36 = vmul.f32 %v10076_v20, %v7316_v0  ;;  %v7323_v60 = vmul.f32 %v10078_v3, %v7184_v22  ;;  %v7502_v21 = vrot.slane %v7411_v8, 1  ;;  %v7550_v5 = vrot.slane %v7411_v8, 7 }
0x2310   : > { %10079 = vrsqrt.f32 %v7187_v53  ;;  %v7625_v2 = vpack.c.bf16 %v7411_v8, %v7410_v59  ;;  %vm7329_vm5 = vweird.f32 %v10078_v3  ;;  %vm7338_vm10 = vweird.f32 %v7187_v53 }
0x2311   : > { %v7321_v25 = vsel %vm7320_vm1, %v10076_v20, %v7317_v36  ;;  %v7324_v29 = vmul.f32 %v10078_v3, %v7323_v60  ;;  %v7503_v24 = vsel %vm15761_vm3, %v7500_v50, %v7502_v21  ;;  %v7551_v40 = vsel %vm15763_vm14, %v7548_v42, %v7550_v5  ;;  %vm7330_vm2 = vmor %vm7328_vm8, %vm7329_vm5 }
0x2312   : > { %v7364_v15 = vmul.f32 %v7321_v25, %v14314_v9  ;;  %7859 = vmatmul.bf16.gmra.mxu0 %v7625_v2  ;;  %v7587_v62 = vsel %vm15261_vm9, %v7503_v24, %v7549_v14  ;;  %vm15765_vm9 = vmmov %vm15761_vm3  ;;  %vm15772_vm3 = vnez %v15771_v1 }
0x2313   : > { %v7325_v46 = vmul.f32 0.5, %v7324_v29  ;;  %v7624_v28 = vpack.c.bf16 %v7551_v40, %v7587_v62  ;;  %vm15770_vm1 = vmmov %vm15762_vm0  ;;  %v15782_v62 = vld [vmem:[#allocation34_spill] sm:$0xff] }
0x2314   : > { %vm7380_vm7 = vcmp.ge.f32.partialorder %v7364_v15, 0.0  ;;  %v7396_v11 = vmul.f32 0.1, %v7364_v15  ;;  %vm15773_vm8 = vmmov %vm15768_vm4 }
0x2315   : > { %v7326_v26 = vsub.f32 1.5, %v7325_v46  ;;  %v7189_v39 = vpop.f32.mrf.mxu3  ;;  %7810 = vmatmul.bf16.gmra.mxu2 %v7624_v28 }
0x2316   : > { %v10080_v12 = vpop.eup %10079  ;;  %v7412_v45 = vsel %vm7380_vm7, %v7364_v15, %v7396_v11  ;;  %v7190_v32 = vadd.f32 1e-05, %v7189_v39 }
0x2317   : > { %v7327_v58 = vmul.f32 %v10078_v3, %v7326_v26  ;;  %v7333_v9 = vmul.f32 %v10080_v12, %v7187_v53  ;;  %v7504_v10 = vrot.slane %v7412_v45, 1  ;;  %vm7339_vm11 = vweird.f32 %v10080_v12 }
0x2318   : > { %10081 = vrsqrt.f32 %v7190_v32  ;;  %v7552_v38 = vrot.slane %v7412_v45, 7  ;;  %vm7340_vm15 = vmor %vm7338_vm10, %vm7339_vm11  ;;  %vm7348_vm7 = vweird.f32 %v7190_v32 }
0x2319   : > { %v7331_v6 = vsel %vm7330_vm2, %v10078_v3, %v7327_v58  ;;  %v7334_v61 = vmul.f32 %v10080_v12, %v7333_v9  ;;  %v7505_v27 = vsel %vm15765_vm9, %v7502_v21, %v7504_v10  ;;  %v15774_v3 = vld [vmem:[#allocation32_spill] sm:$0xff]  ;;  %vm15778_vm11 = vmmov %vm15770_vm1 }
0x231a   : > { %v7365_v31 = vmul.f32 %v7331_v6, %v14309_v52  ;;  %v7604_v17 = vsel %vm15767_vm13, %v7551_v40, %v7505_v27  ;;  %v7553_v48 = vsel %vm15769_vm6, %v7550_v5, %v7552_v38  ;;  %vm15775_vm2 = vnez %v15774_v3  ;;  %vm15776_vm13 = vmmov %vm15768_vm4 }
0x231b   : > { %v7335_v18 = vmul.f32 0.5, %v7334_v61  ;;  %v7626_v43 = vpack.c.bf16 %v7604_v17, %v7503_v24  ;;  %vm15784_vm6 = vcmask 64512  }
0x231c   : > { %vm7381_vm12 = vcmp.ge.f32.partialorder %v7365_v31, 0.0  ;;  %v7397_v30 = vmul.f32 0.1, %v7365_v31 }
0x231d   : > { %v7336_v34 = vsub.f32 1.5, %v7335_v18  ;;  %7908 = vmatmul.bf16.gmra.mxu1 %v7626_v43 }
0x231e   : > { %v10082_v51 = vpop.eup %10081  ;;  %v7413_v35 = vsel %vm7381_vm12, %v7365_v31, %v7397_v30  ;;  %vm15777_vm12 = vmmov %vm15770_vm1 }
0x231f   : > { %v7337_v7 = vmul.f32 %v10080_v12, %v7336_v34  ;;  %v7343_v55 = vmul.f32 %v10082_v51, %v7190_v32  ;;  %v7506_v63 = vrot.slane %v7413_v35, 1  ;;  %v7554_v20 = vrot.slane %v7413_v35, 7 }
0x2320   : > { %v7628_v52 = vpack.c.bf16 %v7413_v35, %v7412_v45  ;;  %vm7349_vm14 = vweird.f32 %v10082_v51 }
0x2321   : > { %v7341_v59 = vsel %vm7340_vm15, %v10080_v12, %v7337_v7  ;;  %v7344_v22 = vmul.f32 %v10082_v51, %v7343_v55  ;;  %v7507_v13 = vsel %vm15768_vm4, %v7504_v10, %v7506_v63  ;;  %v7555_v41 = vsel %vm15770_vm1, %v7552_v38, %v7554_v20  ;;  %vm7350_vm5 = vmor %vm7348_vm7, %vm7349_vm14 }
0x2322   : > { %v7366_v50 = vmul.f32 %v7341_v59, %v14303_v56  ;;  %7864 = vmatmul.bf16.gmra.mxu0 %v7628_v52  ;;  %v7589_v57 = vsel %vm15772_vm3, %v7507_v13, %v7553_v48  ;;  %vm15781_vm15 = vmmov %vm15768_vm4  ;;  %vm15783_vm4 = vnez %v15782_v62 }
0x2323   : > { %v7345_v37 = vmul.f32 0.5, %v7344_v22  ;;  %v7627_v54 = vpack.c.bf16 %v7555_v41, %v7589_v57  ;;  %vm15785_vm1 = vmmov %vm15784_vm6 }
0x2324   : > { %vm7382_vm0 = vcmp.ge.f32.partialorder %v7366_v50, 0.0  ;;  %v7398_v44 = vmul.f32 0.1, %v7366_v50  ;;  %vm15786_vm3 = vmmov %vm15785_vm1 }
0x2325   : > { %v7346_v23 = vsub.f32 1.5, %v7345_v37  ;;  %7815 = vmatmul.bf16.gmra.mxu2 %v7627_v54 }
0x2326   : > { %v7414_v49 = vsel %vm7382_vm0, %v7366_v50, %v7398_v44  ;;  %vm15787_vm0 = vmmov %vm15785_vm1 }
0x2327   : > { %v7347_v19 = vmul.f32 %v10082_v51, %v7346_v23  ;;  %v7508_v0 = vrot.slane %v7414_v49, 1  ;;  %v7556_v60 = vrot.slane %v7414_v49, 7  ;;  %vm15788_vm14 = vmmov %vm15787_vm0 }
0x2328   : > { %vm15789_vm7 = vmmov %vm15787_vm0 }
0x2329   : > { %v7351_v16 = vsel %vm7350_vm5, %v10082_v51, %v7347_v19  ;;  %v7509_v56 = vsel %vm15773_vm8, %v7506_v63, %v7508_v0  ;;  %v7557_v24 = vsel %vm15777_vm12, %v7554_v20, %v7556_v60  ;;  %vm15790_vm5 = vmmov %vm15787_vm0 }
0x232a   : > { %v7367_v42 = vmul.f32 %v7351_v16, %v14306_v4  ;;  %v7606_v53 = vsel %vm15775_vm2, %v7555_v41, %v7509_v56  ;;  %v15779_v4 = vld [vmem:[#allocation33_spill] sm:$0xff]  ;;  %vm15791_vm8 = vmmov %vm15787_vm0 }
0x232b   : > { %v7629_v8 = vpack.c.bf16 %v7606_v53, %v7507_v13  ;;  %vm15780_vm10 = vnez %v15779_v4  ;;  %vm15792_vm2 = vmmov %vm15787_vm0 }
0x232c   : > { %vm7383_vm9 = vcmp.ge.f32.partialorder %v7367_v42, 0.0  ;;  %v7399_v36 = vmul.f32 0.1, %v7367_v42  ;;  %vm15795_vm12 = vmmov %vm15787_vm0 }
0x232d   : > { %7913 = vmatmul.bf16.gmra.mxu1 %v7629_v8 }
0x232e   : > { %v7415_v21 = vsel %vm7383_vm9, %v7367_v42, %v7399_v36  ;;  %vm15793_vm9 = vmmov %vm15787_vm0 }
0x232f   : > { %v7631_v5 = vpack.c.bf16 %v7415_v21, %v7414_v49  ;;  %v7510_v2 = vrot.slane %v7415_v21, 1  ;;  %v7558_v25 = vrot.slane %v7415_v21, 7 }
0x2331   : > { %v7511_v29 = vsel %vm15776_vm13, %v7508_v0, %v7510_v2  ;;  %v7559_v14 = vsel %vm15778_vm11, %v7556_v60, %v7558_v25  ;;  %v7528_v33 = vsel %vm15781_vm15, %v7510_v2, %v7415_v21  ;;  %vm15794_vm13 = vmmov %vm15787_vm0 }
0x2332   : > { %7869 = vmatmul.bf16.gmra.mxu0 %v7631_v5  ;;  %v7591_v15 = vsel %vm15780_vm10, %v7511_v29, %v7557_v24  ;;  %v7608_v46 = vsel %vm15783_vm4, %v7559_v14, %v7528_v33  ;;  %vm15796_vm11 = vmmov %vm15787_vm0 }
0x2333   : > { %v7630_v40 = vpack.c.bf16 %v7559_v14, %v7591_v15  ;;  %v7632_v28 = vpack.c.bf16 %v7608_v46, %v7511_v29  ;;  %vm15797_vm10 = vmmov %vm15787_vm0 }
0x2334   : > { %vm15798_vm15 = vmmov %vm15787_vm0 }
0x2335   : > { %7820 = vmatmul.bf16.gmra.mxu2 %v7630_v40  ;;  %vm15799_vm4 = vmmov %vm15787_vm0 }
0x233d   : > { %7918 = vmatmul.bf16.gmra.mxu1 %v7632_v28 }
0x233f   : > { %v14534_v11 = vpop.f32.mrf.mxu0 }
0x2347   : > { %v14536_v26 = vpop.f32.mrf.mxu0 }
0x2348   : > { %v14538_v39 = vpop.f32.mrf.mxu2 }
0x234a   : > { %v14540_v12 = vpop.f32.mrf.mxu1 }
0x234f   : > { %v14542_v45 = vpop.f32.mrf.mxu0 }
0x2350   : > { %v14544_v32 = vpop.f32.mrf.mxu2 }
0x2352   : > { %v14546_v58 = vpop.f32.mrf.mxu1 }
0x2357   : > { %v7842_v9 = vpop.f32.mrf.mxu0 }
0x2358   : > { %v14548_v10 = vpop.f32.mrf.mxu2 }
0x235a   : > { %v14550_v6 = vpop.f32.mrf.mxu1 }
0x235f   : > { %v7845_v61 = vpop.f32.mrf.mxu0 }
0x2360   : > { %v7793_v27 = vpop.f32.mrf.mxu2 }
0x2361   : > { %v7843_v31 = vadd.f32 %v7842_v9, %v7793_v27 }
0x2362   : > { %v7891_v47 = vpop.f32.mrf.mxu1 }
0x2363   : > { %v14552_v17 = vadd.f32 %v7891_v47, %v7843_v31 }
0x2367   : > { %v7847_v18 = vpop.f32.mrf.mxu0 }
0x2368   : > { %v7796_v43 = vpop.f32.mrf.mxu2 }
0x2369   : > { %v7846_v30 = vadd.f32 %v7845_v61, %v7796_v43 }
0x236a   : > { %v7894_v34 = vpop.f32.mrf.mxu1 }
0x236b   : > { %v14554_v38 = vadd.f32 %v7894_v34, %v7846_v30 }
0x236f   : > { %v7850_v51 = vpop.f32.mrf.mxu0 }
0x2370   : > { %v7798_v35 = vpop.f32.mrf.mxu2 }
0x2371   : > { %v7848_v7 = vadd.f32 %v7847_v18, %v7798_v35  ;;  %v7841_v35 = vadd.f32 %v14542_v45, %v14548_v10  ;;  %v10318_v10 = vld [vmem:[#allocation11 + $0x58] sm:$0xff] }
0x2372   : > { %v7896_v55 = vpop.f32.mrf.mxu1 }
0x2373   : > { %v14556_v63 = vadd.f32 %v7896_v55, %v7848_v7  ;;  %v7838_v7 = vadd.f32 %v14536_v26, %v14544_v32  ;;  %v7836_v55 = vadd.f32 %v14534_v11, %v14538_v39  ;;  %v14609_v26 = vld [vmem:[#allocation8] sm:$0xff]  ;;  %v10315_v39 = vld [vmem:[#allocation11 + $0x70] sm:$0xff]  ;;  %v10316_v32 = vld [vmem:[#allocation11 + $0x68] sm:$0xff] }
0x2374   : > { %v10314_v11 = vld [vmem:[#allocation11 + $0x78] sm:$0xff] }
0x2375   : > { %v14605_v45 = vadd.f32 %v14540_v12, %v7836_v55  ;;  %v10319_v12 = vld [vmem:[#allocation11 + $0x50] sm:$0xff] }
0x2377   : > { %v7852_v20 = vpop.f32.mrf.mxu0 }
0x2378   : > { %v7801_v52 = vpop.f32.mrf.mxu2 }
0x2379   : > { %v7851_v59 = vadd.f32 %v7850_v51, %v7801_v52  ;;  %v14601_v52 = vadd.f32 %v14546_v58, %v7838_v7  ;;  %v10317_v58 = vld [vmem:[#allocation11 + $0x60] sm:$0xff] }
0x237a   : > { %v7899_v22 = vpop.f32.mrf.mxu1 }
0x237b   : > { %v14558_v13 = vadd.f32 %v7899_v22, %v7851_v59  ;;  %v10321_v59 = vld [vmem:[#allocation11 + $0x40] sm:$0xff]  ;;  %v10322_v22 = vld [vmem:[#allocation11 + $0x38] sm:$0xff] }
0x237f   : > { %v7855_v48 = vpop.f32.mrf.mxu0 }
0x2380   : > { %v7803_v50 = vpop.f32.mrf.mxu2 }
0x2381   : > { %v7853_v41 = vadd.f32 %v7852_v20, %v7803_v50  ;;  %v14597_v20 = vadd.f32 %v14550_v6, %v7841_v35  ;;  %v10320_v6 = vld [vmem:[#allocation11 + $0x48] sm:$0xff] }
0x2382   : > { %v7901_v1 = vpop.f32.mrf.mxu1  ;;  %v10324_v50 = vld [vmem:[#allocation11 + $0x28] sm:$0xff] }
0x2383   : > { %v14560_v57 = vadd.f32 %v7901_v1, %v7853_v41  ;;  %v10325_v41 = vld [vmem:[#allocation11 + $0x20] sm:$0xff]  ;;  %v10326_v1 = vld [vmem:[#allocation11 + $0x18] sm:$0xff] }
0x2387   : > { %v7857_v37 = vpop.f32.mrf.mxu0 }
0x2388   : > { %v7806_v54 = vpop.f32.mrf.mxu2 }
0x2389   : > { %v7856_v44 = vadd.f32 %v7855_v48, %v7806_v54  ;;  %v10323_v48 = vld [vmem:[#allocation11 + $0x30] sm:$0xff]  ;;  %v10328_v54 = vld [vmem:[#allocation11 + $0x8] sm:$0xff] }
0x238a   : > { %v7904_v23 = vpop.f32.mrf.mxu1 }
0x238b   : > { %v14562_v49 = vadd.f32 %v7904_v23, %v7856_v44  ;;  %v10329_v44 = vld [vmem:[#allocation11] sm:$0xff] }
0x238f   : > { %v7860_v19 = vpop.f32.mrf.mxu0 }
0x2390   : > { %v7808_v0 = vpop.f32.mrf.mxu2 }
0x2391   : > { %v7858_v43 = vadd.f32 %v7857_v37, %v7808_v0  ;;  %v10327_v37 = vld [vmem:[#allocation11 + $0x10] sm:$0xff]  ;;  %v14612_v0 = vld [vmem:[#allocation10] sm:$0xff] }
0x2392   : > { %v7906_v16 = vpop.f32.mrf.mxu1 }
0x2393   : > { %v14581_v51 = vadd.f32 %v7906_v16, %v7858_v43  ;;  %v14616_v16 = vld [vmem:[#allocation10 + $0x58] sm:$0xff] }
0x2397   : > { %v7862_v56 = vpop.f32.mrf.mxu0 }
0x2398   : > { %v7811_v42 = vpop.f32.mrf.mxu2 }
0x2399   : > { %v7861_v47 = vadd.f32 %v7860_v19, %v7811_v42  ;;  %v14624_v42 = vld [vmem:[#allocation10 + $0x60] sm:$0xff] }
0x239a   : > { %v7909_v3 = vpop.f32.mrf.mxu1 }
0x239b   : > { %v14578_v34 = vadd.f32 %v7909_v3, %v7861_v47  ;;  %v14628_v3 = vld [vmem:[#allocation10 + $0x10] sm:$0xff] }
0x239f   : > { %v7865_v8 = vpop.f32.mrf.mxu0 }
0x23a0   : > { %v7813_v53 = vpop.f32.mrf.mxu2 }
0x23a1   : > { %v7863_v27 = vadd.f32 %v7862_v56, %v7813_v53  ;;  %v14620_v56 = vld [vmem:[#allocation10 + $0x8] sm:$0xff] }
0x23a2   : > { %v7911_v36 = vpop.f32.mrf.mxu1  ;;  %v14632_v53 = vld [vmem:[#allocation10 + $0x68] sm:$0xff] }
0x23a3   : > { %v14575_v30 = vadd.f32 %v7911_v36, %v7863_v27  ;;  %v14640_v36 = vld [vmem:[#allocation10 + $0x70] sm:$0xff] }
0x23a7   : > { %v7867_v5 = vpop.f32.mrf.mxu0 }
0x23a8   : > { %v7816_v60 = vpop.f32.mrf.mxu2 }
0x23a9   : > { %v7866_v9 = vadd.f32 %v7865_v8, %v7816_v60  ;;  %v14636_v8 = vld [vmem:[#allocation10 + $0x18] sm:$0xff]  ;;  %v14644_v60 = vld [vmem:[#allocation10 + $0x20] sm:$0xff] }
0x23aa   : > { %v7914_v21 = vpop.f32.mrf.mxu1 }
0x23ab   : > { %v14572_v18 = vadd.f32 %v7914_v21, %v7866_v9  ;;  %v14648_v21 = vld [vmem:[#allocation10 + $0x78] sm:$0xff] }
0x23af   : > { %v7870_v29 = vpop.f32.mrf.mxu0 }
0x23b0   : > { %v7818_v2 = vpop.f32.mrf.mxu2 }
0x23b1   : > { %v7868_v46 = vadd.f32 %v7867_v5, %v7818_v2  ;;  %v14652_v5 = vld [vmem:[#allocation10 + $0x28] sm:$0xff]  ;;  %v14656_v2 = vld [vmem:[#allocation10 + $0x30] sm:$0xff] }
0x23b2   : > { %v7916_v25 = vpop.f32.mrf.mxu1 }
0x23b3   : > { %v14569_v31 = vadd.f32 %v7916_v25, %v7868_v46  ;;  %v14660_v25 = vld [vmem:[#allocation10 + $0x38] sm:$0xff] }
0x23b7   : > { %v7872_v4 = vpop.f32.mrf.mxu0 }
0x23b8   : > { %v7821_v24 = vpop.f32.mrf.mxu2 }
0x23b9   : > { %v7871_v40 = vadd.f32 %v7870_v29, %v7821_v24  ;;  %v14664_v29 = vld [vmem:[#allocation10 + $0x40] sm:$0xff]  ;;  %v14668_v24 = vld [vmem:[#allocation10 + $0x48] sm:$0xff] }
0x23ba   : > { %v7919_v14 = vpop.f32.mrf.mxu1 }
0x23bb   : > { %v14566_v61 = vadd.f32 %v7919_v14, %v7871_v40  ;;  %v14672_v14 = vld [vmem:[#allocation10 + $0x50] sm:$0xff] }
0x23c0   : > { %v7823_v15 = vpop.f32.mrf.mxu2 }
0x23c1   : > { %v7873_v33 = vadd.f32 %v7872_v4, %v7823_v15 }
0x23c2   : > { %v7921_v62 = vpop.f32.mrf.mxu1 }
0x23c3   : > { %v14564_v28 = vadd.f32 %v7921_v62, %v7873_v33 }
0x23c5   : > { %7924 = vmatpush.msra.mxu3 %v14564_v28 }
0x23c7   : > { %7925 = vmatpush.msra.mxu3 %v14566_v61 }
0x23c9   : > { %7926 = vmatpush.msra.mxu3 %v14569_v31 }
0x23cb   : > { %7927 = vmatpush.msra.mxu3 %v14572_v18 }
0x23cd   : > { %7928 = vmatpush.msra.mxu3 %v14575_v30 }
0x23cf   : > { %7929 = vmatpush.msra.mxu3 %v14578_v34 }
0x23d1   : > { %7930 = vmatpush.msra.mxu3 %v14581_v51 }
0x23d3   : > { %7931 = vmatpush.msra.mxu3 %v14562_v49 }
0x23d5   : > { %7932 = vmatpush.msra.mxu3 %v14560_v57 }
0x23d7   : > { %7933 = vmatpush.msra.mxu3 %v14558_v13 }
0x23d9   : > { %7934 = vmatpush.msra.mxu3 %v14556_v63 }
0x23db   : > { %7935 = vmatpush.msra.mxu3 %v14554_v38 }
0x23dd   : > { %7936 = vmatpush.msra.mxu3 %v14552_v17 }
0x23df   : > { %7937 = vmatpush.msra.mxu3 %v14597_v20 }
0x23e1   : > { %7938 = vmatpush.msra.mxu3 %v14601_v52 }
0x23e3   : > { %7939 = vmatpush.msra.mxu3 %v14605_v45 }
0x23e4   : > { %7940 = vmatmul.f32.vlgmr.msra.gmra.mxu3 %v14609_v26 }
0x23e5   : > { %7944 = vmatpush.msrb.mxu3 %v10314_v11 }
0x23e7   : > { %7945 = vmatpush.msrb.mxu3 %v10315_v39 }
0x23e9   : > { %7946 = vmatpush.msrb.mxu3 %v10316_v32 }
0x23eb   : > { %7947 = vmatpush.msrb.mxu3 %v10317_v58 }
0x23ed   : > { %7948 = vmatpush.msrb.mxu3 %v10318_v10 }
0x23ef   : > { %7949 = vmatpush.msrb.mxu3 %v10319_v12 }
0x23f1   : > { %7950 = vmatpush.msrb.mxu3 %v10320_v6 }
0x23f3   : > { %7951 = vmatpush.msrb.mxu3 %v10321_v59 }
0x23f5   : > { %7952 = vmatpush.msrb.mxu3 %v10322_v22 }
0x23f7   : > { %7953 = vmatpush.msrb.mxu3 %v10323_v48 }
0x23f9   : > { %7954 = vmatpush.msrb.mxu3 %v10324_v50 }
0x23fb   : > { %7955 = vmatpush.msrb.mxu3 %v10325_v41 }
0x23fd   : > { %7956 = vmatpush.msrb.mxu3 %v10326_v1 }
0x23ff   : > { %7957 = vmatpush.msrb.mxu3 %v10327_v37 }
0x2401   : > { %7958 = vmatpush.msrb.mxu3 %v10328_v54 }
0x2403   : > { %7959 = vmatpush.msrb.mxu3 %v10329_v44 }
0x2467   : > { %v7941_v23 = vpop.f32.mrf.mxu3 }
0x2468   : > { %7960 = vmatmul.f32.vlgmr.msrb.gmra.mxu3 %v7941_v23 }
0x24eb   : > { %v7961_v19 = vpop.f32.mrf.mxu3 }
0x24ec   : > { %7979 = vmatpush.msrb.mxu2 %v7961_v19  ;;  %9755 = vmatpush.msra.mxu3 %v7961_v19 }
0x24ed   : > { %9522 = vmatmul.msk.f32.vlgmr.msrb.gmra.mxu2 %vm15784_vm6, %v14612_v0  ;;  %9533 = vmatmul.msk.f32.vlgmr.msra.gmra.mxu3 %vm15785_vm1, %v14616_v16  ;;  %vm15800_vm6 = vmmov %vm15787_vm0 }
0x24ee   : > { %8081 = vmatpush.msrb.mxu3 %v10314_v11  ;;  %vm15801_vm1 = vmmov %vm15787_vm0 }
0x24f0   : > { %8082 = vmatpush.msrb.mxu3 %v10315_v39 }
0x24f2   : > { %8083 = vmatpush.msrb.mxu3 %v10316_v32 }
0x24f4   : > { %8084 = vmatpush.msrb.mxu3 %v10317_v58 }
0x24f5   : > { %9523 = vmatmul.msk.f32.gmra.mxu2 %vm15786_vm3, %v14620_v56  ;;  %9534 = vmatmul.msk.f32.gmra.mxu3 %vm15787_vm0, %v14624_v42  ;;  %vm15802_vm3 = vmmov %vm15787_vm0 }
0x24f6   : > { %8085 = vmatpush.msrb.mxu3 %v10318_v10 }
0x24f8   : > { %8086 = vmatpush.msrb.mxu3 %v10319_v12 }
0x24fa   : > { %8087 = vmatpush.msrb.mxu3 %v10320_v6 }
0x24fc   : > { %8088 = vmatpush.msrb.mxu3 %v10321_v59 }
0x24fd   : > { %9524 = vmatmul.msk.f32.gmra.mxu2 %vm15788_vm14, %v14628_v3  ;;  %9535 = vmatmul.msk.f32.gmra.mxu3 %vm15789_vm7, %v14632_v53  ;;  %vm15803_vm14 = vmmov %vm15787_vm0 }
0x24fe   : > { %8089 = vmatpush.msrb.mxu3 %v10322_v22  ;;  %vm15804_vm7 = vmmov %vm15787_vm0 }
0x2500   : > { %8090 = vmatpush.msrb.mxu3 %v10323_v48 }
0x2502   : > { %8091 = vmatpush.msrb.mxu3 %v10324_v50 }
0x2504   : > { %8092 = vmatpush.msrb.mxu3 %v10325_v41 }
0x2505   : > { %9525 = vmatmul.msk.f32.gmra.mxu2 %vm15790_vm5, %v14636_v8  ;;  %9536 = vmatmul.msk.f32.gmra.mxu3 %vm15791_vm8, %v14640_v36  ;;  %vm15805_vm5 = vmmov %vm15787_vm0 }
0x2506   : > { %8093 = vmatpush.msrb.mxu3 %v10326_v1  ;;  %vm15806_vm8 = vmmov %vm15787_vm0 }
0x2508   : > { %8094 = vmatpush.msrb.mxu3 %v10327_v37 }
0x250a   : > { %8095 = vmatpush.msrb.mxu3 %v10328_v54 }
0x250c   : > { %8096 = vmatpush.msrb.mxu3 %v10329_v44 }
0x250d   : > { %9526 = vmatmul.msk.f32.gmra.mxu2 %vm15792_vm2, %v14644_v60  ;;  %9537 = vmatmul.msk.f32.gmra.mxu3 %vm15793_vm9, %v14648_v21  ;;  %vm15807_vm2 = vmmov %vm15787_vm0 }
0x250e   : > { %vm15808_vm9 = vmmov %vm15787_vm0 }
0x2515   : > { %9527 = vmatmul.msk.f32.gmra.mxu2 %vm15794_vm13, %v14652_v5  ;;  %vm15809_vm13 = vmmov %vm15787_vm0 }
0x251d   : > { %9528 = vmatmul.msk.f32.gmra.mxu2 %vm15795_vm12, %v14656_v2  ;;  %vm15810_vm12 = vmmov %vm15787_vm0 }
0x2525   : > { %9529 = vmatmul.msk.f32.gmra.mxu2 %vm15796_vm11, %v14660_v25  ;;  %vm15811_vm11 = vmmov %vm15787_vm0 }
0x252d   : > { %9530 = vmatmul.msk.f32.gmra.mxu2 %vm15797_vm10, %v14664_v29  ;;  %vm15812_vm10 = vmmov %vm15787_vm0 }
0x2535   : > { %9531 = vmatmul.msk.f32.gmra.mxu2 %vm15798_vm15, %v14668_v24  ;;  %vm15813_vm15 = vmmov %vm15787_vm0 }
0x253d   : > { %9532 = vmatmul.msk.f32.gmra.mxu2 %vm15799_vm4, %v14672_v14  ;;  %vm15814_vm4 = vmmov %vm15787_vm0 }
0x2570   : > { %v7981_v4 = vpop.f32.mrf.mxu2  ;;  %v8014_v15 = vpop.f32.mrf.mxu3 }
0x2571   : > { %v14693_v58 = vsub.f32 %v14575_v30, %v8014_v15 }
0x2578   : > { %v7984_v40 = vpop.f32.mrf.mxu2  ;;  %v8017_v33 = vpop.f32.mrf.mxu3 }
0x2579   : > { %v14688_v39 = vsub.f32 %v14572_v18, %v8017_v33  ;;  %v8056_v18 = vmul.f32 %v14693_v58, %v14693_v58 }
0x2580   : > { %v7987_v62 = vpop.f32.mrf.mxu2  ;;  %v8020_v46 = vpop.f32.mrf.mxu3 }
0x2581   : > { %v14683_v55 = vsub.f32 %v14569_v31, %v8020_v46  ;;  %v8057_v31 = vmul.f32 %v14688_v39, %v14688_v39 }
0x2588   : > { %v7990_v9 = vpop.f32.mrf.mxu2  ;;  %v8023_v27 = vpop.f32.mrf.mxu3 }
0x2589   : > { %v14677_v35 = vsub.f32 %v14566_v61, %v8023_v27 }
0x258b   : > { %v8059_v32 = vmul.f32 %v14677_v35, %v14677_v35 }
0x2590   : > { %v7993_v47 = vpop.f32.mrf.mxu2  ;;  %v8026_v43 = vpop.f32.mrf.mxu3 }
0x2591   : > { %v14680_v7 = vsub.f32 %v14564_v28, %v8026_v43  ;;  %v8058_v28 = vmul.f32 %v14683_v55, %v14683_v55 }
0x2593   : > { %v8060_v11 = vmul.f32 %v14680_v7, %v14680_v7 }
0x2595   : > { %8061 = vmatpush.msra.mxu0 %v8060_v11 }
0x2597   : > { %8062 = vmatpush.msra.mxu0 %v8059_v32 }
0x2598   : > { %v7996_v61 = vpop.f32.mrf.mxu2 }
0x2599   : > { %8063 = vmatpush.msra.mxu0 %v8058_v28 }
0x259b   : > { %8064 = vmatpush.msra.mxu0 %v8057_v31 }
0x259d   : > { %8065 = vmatpush.msra.mxu0 %v8056_v18 }
0x25a0   : > { %v7999_v10 = vpop.f32.mrf.mxu2 }
0x25a1   : > { %v14718_v54 = vsub.f32 %v14558_v13, %v7999_v10  ;;  %v14733_v13 = vsub.f32 %v14552_v17, %v7990_v9  ;;  %v8029_v17 = vsub.f32 %v14605_v45, %v7981_v4  ;;  %v15815_v4 = vld [vmem:[#allocation35_spill] sm:$0xff] }
0x25a2   : > { %v15816_v10 = vld [vmem:[#allocation51_spill] sm:$0xff] }
0x25a3   : > { %v8051_v44 = vmul.f32 %v14718_v54, %v14718_v54  ;;  %v8048_v15 = vmul.f32 %v14733_v13, %v14733_v13 }
0x25a8   : > { %v8002_v12 = vpop.f32.mrf.mxu2 }
0x25a9   : > { %v14713_v1 = vsub.f32 %v14560_v57, %v8002_v12  ;;  %v14728_v57 = vsub.f32 %v14554_v38, %v7993_v47  ;;  %v14743_v38 = vsub.f32 %v14601_v52, %v7984_v40 }
0x25ab   : > { %v8049_v19 = vmul.f32 %v14728_v57, %v14728_v57 }
0x25b0   : > { %v8005_v6 = vpop.f32.mrf.mxu2 }
0x25b1   : > { %v14708_v50 = vsub.f32 %v14562_v49, %v8005_v6  ;;  %v14723_v49 = vsub.f32 %v14556_v63, %v7996_v61  ;;  %v14738_v63 = vsub.f32 %v14597_v20, %v7987_v62  ;;  %v8046_v20 = vmul.f32 %v14743_v38, %v14743_v38 }
0x25b2   : > { %v8045_v62 = vmul.f32 %v8029_v17, %v8029_v17 }
0x25b3   : > { %v8050_v23 = vmul.f32 %v14723_v49, %v14723_v49  ;;  %v8047_v33 = vmul.f32 %v14738_v63, %v14738_v63 }
0x25b8   : > { %v8008_v59 = vpop.f32.mrf.mxu2 }
0x25b9   : > { %v14702_v22 = vsub.f32 %v14581_v51, %v8008_v59  ;;  %v8052_v51 = vmul.f32 %v14713_v1, %v14713_v1 }
0x25bb   : > { %v8054_v37 = vmul.f32 %v14702_v22, %v14702_v22 }
0x25c0   : > { %v8011_v30 = vpop.f32.mrf.mxu2 }
0x25c1   : > { %v14705_v48 = vsub.f32 %v14578_v34, %v8011_v30  ;;  %v8053_v34 = vmul.f32 %v14708_v50, %v14708_v50 }
0x25c3   : > { %v8055_v41 = vmul.f32 %v14705_v48, %v14705_v48 }
0x25c5   : > { %8066 = vmatpush.msra.mxu0 %v8055_v41 }
0x25c7   : > { %8067 = vmatpush.msra.mxu0 %v8054_v37 }
0x25c9   : > { %8068 = vmatpush.msra.mxu0 %v8053_v34 }
0x25cb   : > { %8069 = vmatpush.msra.mxu0 %v8052_v51 }
0x25cd   : > { %8070 = vmatpush.msra.mxu0 %v8051_v44 }
0x25cf   : > { %8071 = vmatpush.msra.mxu0 %v8050_v23 }
0x25d1   : > { %8072 = vmatpush.msra.mxu0 %v8049_v19 }
0x25d3   : > { %8073 = vmatpush.msra.mxu0 %v8048_v15 }
0x25d5   : > { %8074 = vmatpush.msra.mxu0 %v8047_v33 }
0x25d7   : > { %8075 = vmatpush.msra.mxu0 %v8046_v20 }
0x25d9   : > { %8076 = vmatpush.msra.mxu0 %v8045_v62 }
0x25da   : > { %8077 = vmatmul.f32.vlgmr.msra.gmra.mxu0 %v14609_v26 }
0x2657   : > { %v8078_v52 = vpop.f32.mrf.mxu0 }
0x2658   : > { %8097 = vmatmul.f32.vlgmr.msrb.gmra.mxu3 %v8078_v52 }
0x26db   : > { %v8098_v40 = vpop.f32.mrf.mxu3 }
0x26dc   : > { %8116 = vmatpush.msrb.mxu0 %v8098_v40 }
0x26dd   : > { %9538 = vmatmul.msk.f32.vlgmr.msrb.gmra.mxu0 %vm15800_vm6, %v14612_v0 }
0x26e5   : > { %9539 = vmatmul.msk.f32.gmra.mxu0 %vm15801_vm1, %v14620_v56 }
0x26ed   : > { %9540 = vmatmul.msk.f32.gmra.mxu0 %vm15802_vm3, %v14628_v3 }
0x26f5   : > { %9541 = vmatmul.msk.f32.gmra.mxu0 %vm15787_vm0, %v14636_v8 }
0x26fd   : > { %9542 = vmatmul.msk.f32.gmra.mxu0 %vm15803_vm14, %v14644_v60 }
0x2705   : > { %9543 = vmatmul.msk.f32.gmra.mxu0 %vm15804_vm7, %v14652_v5 }
0x270d   : > { %9544 = vmatmul.msk.f32.gmra.mxu0 %vm15805_vm5, %v14656_v2 }
0x2715   : > { %9545 = vmatmul.msk.f32.gmra.mxu0 %vm15806_vm8, %v14660_v25 }
0x271d   : > { %9546 = vmatmul.msk.f32.gmra.mxu0 %vm15807_vm2, %v14664_v29 }
0x2725   : > { %9547 = vmatmul.msk.f32.gmra.mxu0 %vm15808_vm9, %v14668_v24 }
0x272d   : > { %9548 = vmatmul.msk.f32.gmra.mxu0 %vm15809_vm13, %v14672_v14 }
0x2735   : > { %9549 = vmatmul.msk.f32.gmra.mxu0 %vm15810_vm12, %v14616_v16 }
0x273d   : > { %9550 = vmatmul.msk.f32.gmra.mxu0 %vm15811_vm11, %v14624_v42 }
0x2745   : > { %9551 = vmatmul.msk.f32.gmra.mxu0 %vm15812_vm10, %v14632_v53 }
0x274d   : > { %9552 = vmatmul.msk.f32.gmra.mxu0 %vm15813_vm15, %v14640_v36 }
0x2755   : > { %9553 = vmatmul.msk.f32.gmra.mxu0 %vm15814_vm4, %v14648_v21 }
0x275a   : > { %v8118_v45 = vpop.f32.mrf.mxu0 }
0x275b   : > { %v8119_v26 = vadd.f32 1e-05, %v8118_v45 }
0x275d   : > { %10083 = vrsqrt.f32 %v8119_v26  ;;  %vm8172_vm1 = vweird.f32 %v8119_v26 }
0x2762   : > { %v8121_v0 = vpop.f32.mrf.mxu0 }
0x2763   : > { %v10084_v56 = vpop.eup %10083  ;;  %v8122_v3 = vadd.f32 1e-05, %v8121_v0 }
0x2764   : > { %v8167_v8 = vmul.f32 %v10084_v56, %v8119_v26  ;;  %vm8173_vm6 = vweird.f32 %v10084_v56 }
0x2765   : > { %10085 = vrsqrt.f32 %v8122_v3  ;;  %vm8174_vm3 = vmor %vm8172_vm1, %vm8173_vm6  ;;  %vm8182_vm14 = vweird.f32 %v8122_v3 }
0x2766   : > { %v8168_v16 = vmul.f32 %v10084_v56, %v8167_v8 }
0x2768   : > { %v8169_v60 = vmul.f32 0.5, %v8168_v16 }
0x276a   : > { %v8170_v42 = vsub.f32 1.5, %v8169_v60  ;;  %v8124_v5 = vpop.f32.mrf.mxu0 }
0x276b   : > { %v10086_v53 = vpop.eup %10085  ;;  %v8125_v2 = vadd.f32 1e-05, %v8124_v5 }
0x276c   : > { %v8171_v36 = vmul.f32 %v10084_v56, %v8170_v42  ;;  %v8177_v25 = vmul.f32 %v10086_v53, %v8122_v3  ;;  %vm8183_vm0 = vweird.f32 %v10086_v53 }
0x276d   : > { %10087 = vrsqrt.f32 %v8125_v2  ;;  %vm8184_vm7 = vmor %vm8182_vm14, %vm8183_vm0  ;;  %vm8192_vm8 = vweird.f32 %v8125_v2 }
0x276e   : > { %v8175_v21 = vsel %vm8174_vm3, %v10084_v56, %v8171_v36  ;;  %v8178_v29 = vmul.f32 %v10086_v53, %v8177_v25  ;;  %v15818_v56 = vld [vmem:[#allocation53_spill] sm:$0xff] }
0x276f   : > { %v8326_v24 = vmul.f32 %v8175_v21, %v8029_v17  ;;  %v15819_v21 = vld [vmem:[#allocation36_spill] sm:$0xff] }
0x2770   : > { %v8179_v14 = vmul.f32 0.5, %v8178_v29 }
0x2771   : > { %v8342_v46 = vadd.f32 %v8326_v24, %v15815_v4 }
0x2772   : > { %v8180_v9 = vsub.f32 1.5, %v8179_v14  ;;  %v8127_v27 = vpop.f32.mrf.mxu0 }
0x2773   : > { %v10088_v47 = vpop.eup %10087  ;;  %8358 = vst [vmem:[%s14788_s29] sm:$0xff] %v8342_v46  ;;  %v8128_v43 = vadd.f32 1e-05, %v8127_v27 }
0x2774   : > { %v8181_v11 = vmul.f32 %v10086_v53, %v8180_v9  ;;  %v8187_v32 = vmul.f32 %v10088_v47, %v8125_v2  ;;  %vm8193_vm5 = vweird.f32 %v10088_v47 }
0x2775   : > { %10089 = vrsqrt.f32 %v8128_v43  ;;  %vm8194_vm2 = vmor %vm8192_vm8, %vm8193_vm5  ;;  %vm8202_vm13 = vweird.f32 %v8128_v43 }
0x2776   : > { %v8185_v28 = vsel %vm8184_vm7, %v10086_v53, %v8181_v11  ;;  %v8188_v61 = vmul.f32 %v10088_v47, %v8187_v32  ;;  %v15820_v32 = vld [vmem:[#allocation44_spill] sm:$0xff] }
0x2777   : > { %v8327_v31 = vmul.f32 %v8185_v28, %v14743_v38  ;;  %v15817_v38 = vld [vmem:[#allocation52_spill] sm:$0xff] }
0x2778   : > { %v8189_v18 = vmul.f32 0.5, %v8188_v61 }
0x2779   : > { %v8343_v12 = vadd.f32 %v8327_v31, %v15816_v10 }
0x277a   : > { %v8190_v6 = vsub.f32 1.5, %v8189_v18  ;;  %v8130_v59 = vpop.f32.mrf.mxu0 }
0x277b   : > { %v10090_v30 = vpop.eup %10089  ;;  %8359 = vst [vmem:[%s14788_s29 + $0x8] sm:$0xff] %v8343_v12  ;;  %v8131_v41 = vadd.f32 1e-05, %v8130_v59 }
0x277c   : > { %v8191_v37 = vmul.f32 %v10088_v47, %v8190_v6  ;;  %v8197_v34 = vmul.f32 %v10090_v30, %v8128_v43  ;;  %vm8203_vm9 = vweird.f32 %v10090_v30 }
0x277d   : > { %10091 = vrsqrt.f32 %v8131_v41  ;;  %vm8204_vm12 = vmor %vm8202_vm13, %vm8203_vm9  ;;  %vm8212_vm10 = vweird.f32 %v8131_v41 }
0x277e   : > { %v8195_v51 = vsel %vm8194_vm2, %v10088_v47, %v8191_v37  ;;  %v8198_v44 = vmul.f32 %v10090_v30, %v8197_v34  ;;  %v15821_v37 = vld [vmem:[#allocation20_spill] sm:$0xff] }
0x277f   : > { %v8328_v23 = vmul.f32 %v8195_v51, %v14738_v63 }
0x2780   : > { %v8199_v19 = vmul.f32 0.5, %v8198_v44 }
0x2781   : > { %v8344_v15 = vadd.f32 %v8328_v23, %v15817_v38 }
0x2782   : > { %v8200_v17 = vsub.f32 1.5, %v8199_v19  ;;  %v8133_v33 = vpop.f32.mrf.mxu0 }
0x2783   : > { %v10092_v20 = vpop.eup %10091  ;;  %8360 = vst [vmem:[%s14788_s29 + $0x10] sm:$0xff] %v8344_v15  ;;  %v8134_v62 = vadd.f32 1e-05, %v8133_v33 }
0x2784   : > { %v8201_v52 = vmul.f32 %v10090_v30, %v8200_v17  ;;  %v8207_v40 = vmul.f32 %v10092_v20, %v8131_v41  ;;  %vm8213_vm11 = vweird.f32 %v10092_v20 }
0x2785   : > { %10093 = vrsqrt.f32 %v8134_v62  ;;  %vm8214_vm15 = vmor %vm8212_vm10, %vm8213_vm11  ;;  %vm8222_vm6 = vweird.f32 %v8134_v62 }
0x2786   : > { %v8205_v45 = vsel %vm8204_vm12, %v10090_v30, %v8201_v52  ;;  %v8208_v26 = vmul.f32 %v10092_v20, %v8207_v40 }
0x2787   : > { %v8329_v0 = vmul.f32 %v8205_v45, %v14733_v13 }
0x2788   : > { %v8209_v63 = vmul.f32 0.5, %v8208_v26 }
0x2789   : > { %v8345_v3 = vadd.f32 %v8329_v0, %v15818_v56 }
0x278a   : > { %v8210_v8 = vsub.f32 1.5, %v8209_v63  ;;  %v8136_v16 = vpop.f32.mrf.mxu0 }
0x278b   : > { %v10094_v60 = vpop.eup %10093  ;;  %8361 = vst [vmem:[%s14788_s29 + $0x18] sm:$0xff] %v8345_v3  ;;  %v8137_v42 = vadd.f32 1e-05, %v8136_v16 }
0x278c   : > { %v8211_v5 = vmul.f32 %v10092_v20, %v8210_v8  ;;  %v8217_v53 = vmul.f32 %v10094_v60, %v8134_v62  ;;  %vm8223_vm4 = vweird.f32 %v10094_v60  ;;  %v15822_v62 = vld [vmem:[#allocation45_spill] sm:$0xff] }
0x278d   : > { %10095 = vrsqrt.f32 %v8137_v42  ;;  %vm8224_vm1 = vmor %vm8222_vm6, %vm8223_vm4  ;;  %vm8232_vm0 = vweird.f32 %v8137_v42 }
0x278e   : > { %v8215_v2 = vsel %vm8214_vm15, %v10092_v20, %v8211_v5  ;;  %v8218_v36 = vmul.f32 %v10094_v60, %v8217_v53 }
0x278f   : > { %v8330_v25 = vmul.f32 %v8215_v2, %v14728_v57 }
0x2790   : > { %v8219_v13 = vmul.f32 0.5, %v8218_v36 }
0x2791   : > { %v8346_v29 = vadd.f32 %v8330_v25, %v15819_v21 }
0x2792   : > { %v8220_v24 = vsub.f32 1.5, %v8219_v13  ;;  %v8139_v14 = vpop.f32.mrf.mxu0 }
0x2793   : > { %v10096_v4 = vpop.eup %10095  ;;  %8362 = vst [vmem:[%s14788_s29 + $0x20] sm:$0xff] %v8346_v29  ;;  %v8140_v46 = vadd.f32 1e-05, %v8139_v14  ;;  %v15824_v14 = vld [vmem:[#allocation54_spill] sm:$0xff] }
0x2794   : > { %v8221_v9 = vmul.f32 %v10094_v60, %v8220_v24  ;;  %v8227_v27 = vmul.f32 %v10096_v4, %v8137_v42  ;;  %vm8233_vm3 = vweird.f32 %v10096_v4 }
0x2795   : > { %10097 = vrsqrt.f32 %v8140_v46  ;;  %vm8234_vm14 = vmor %vm8232_vm0, %vm8233_vm3  ;;  %vm8242_vm5 = vweird.f32 %v8140_v46 }
0x2796   : > { %v8225_v47 = vsel %vm8224_vm1, %v10094_v60, %v8221_v9  ;;  %v8228_v43 = vmul.f32 %v10096_v4, %v8227_v27  ;;  %v15823_v60 = vld [vmem:[#allocation46_spill] sm:$0xff] }
0x2797   : > { %v8331_v11 = vmul.f32 %v8225_v47, %v14723_v49 }
0x2798   : > { %v8229_v57 = vmul.f32 0.5, %v8228_v43 }
0x2799   : > { %v8347_v28 = vadd.f32 %v8331_v11, %v15820_v32 }
0x279a   : > { %v8230_v61 = vsub.f32 1.5, %v8229_v57  ;;  %v8142_v31 = vpop.f32.mrf.mxu0 }
0x279b   : > { %v10098_v18 = vpop.eup %10097  ;;  %8363 = vst [vmem:[%s14788_s29 + $0x28] sm:$0xff] %v8347_v28  ;;  %v8143_v10 = vadd.f32 1e-05, %v8142_v31 }
0x279c   : > { %v8231_v12 = vmul.f32 %v10096_v4, %v8230_v61  ;;  %v8237_v6 = vmul.f32 %v10098_v18, %v8140_v46  ;;  %vm8243_vm7 = vweird.f32 %v10098_v18  ;;  %v15825_v61 = vld [vmem:[#allocation47_spill] sm:$0xff] }
0x279d   : > { %10099 = vrsqrt.f32 %v8143_v10  ;;  %vm8244_vm8 = vmor %vm8242_vm5, %vm8243_vm7  ;;  %vm8252_vm9 = vweird.f32 %v8143_v10 }
0x279e   : > { %v8235_v59 = vsel %vm8234_vm14, %v10096_v4, %v8231_v12  ;;  %v8238_v30 = vmul.f32 %v10098_v18, %v8237_v6 }
0x279f   : > { %v8332_v41 = vmul.f32 %v8235_v59, %v14718_v54 }
0x27a0   : > { %v8239_v49 = vmul.f32 0.5, %v8238_v30 }
0x27a1   : > { %v8348_v34 = vadd.f32 %v8332_v41, %v15821_v37 }
0x27a2   : > { %v8240_v51 = vsub.f32 1.5, %v8239_v49  ;;  %v8145_v44 = vpop.f32.mrf.mxu0 }
0x27a3   : > { %v10100_v23 = vpop.eup %10099  ;;  %8364 = vst [vmem:[%s14788_s29 + $0x30] sm:$0xff] %v8348_v34  ;;  %v8146_v19 = vadd.f32 1e-05, %v8145_v44  ;;  %v15826_v34 = vld [vmem:[#allocation48_spill] sm:$0xff] }
0x27a4   : > { %v8241_v38 = vmul.f32 %v10098_v18, %v8240_v51  ;;  %v8247_v15 = vmul.f32 %v10100_v23, %v8143_v10  ;;  %vm8253_vm2 = vweird.f32 %v10100_v23 }
0x27a5   : > { %10101 = vrsqrt.f32 %v8146_v19  ;;  %vm8254_vm13 = vmor %vm8252_vm9, %vm8253_vm2  ;;  %vm8262_vm11 = vweird.f32 %v8146_v19 }
0x27a6   : > { %v8245_v17 = vsel %vm8244_vm8, %v10098_v18, %v8241_v38  ;;  %v8248_v33 = vmul.f32 %v10100_v23, %v8247_v15 }
0x27a7   : > { %v8333_v20 = vmul.f32 %v8245_v17, %v14713_v1 }
0x27a8   : > { %v8249_v54 = vmul.f32 0.5, %v8248_v33 }
0x27a9   : > { %v8349_v52 = vadd.f32 %v8333_v20, %v15822_v62  ;;  %v15827_v62 = vld [vmem:[#allocation21_spill] sm:$0xff] }
0x27aa   : > { %v8250_v40 = vsub.f32 1.5, %v8249_v54  ;;  %v8148_v45 = vpop.f32.mrf.mxu0 }
0x27ab   : > { %v10102_v26 = vpop.eup %10101  ;;  %8365 = vst [vmem:[%s14788_s29 + $0x38] sm:$0xff] %v8349_v52  ;;  %v8149_v0 = vadd.f32 1e-05, %v8148_v45 }
0x27ac   : > { %v8251_v63 = vmul.f32 %v10100_v23, %v8250_v40  ;;  %v8257_v56 = vmul.f32 %v10102_v26, %v8146_v19  ;;  %vm8263_vm12 = vweird.f32 %v10102_v26 }
0x27ad   : > { %10103 = vrsqrt.f32 %v8149_v0  ;;  %vm8264_vm10 = vmor %vm8262_vm11, %vm8263_vm12  ;;  %vm8272_vm4 = vweird.f32 %v8149_v0 }
0x27ae   : > { %v8255_v3 = vsel %vm8254_vm13, %v10100_v23, %v8251_v63  ;;  %v8258_v8 = vmul.f32 %v10102_v26, %v8257_v56 }
0x27af   : > { %v8334_v16 = vmul.f32 %v8255_v3, %v14708_v50 }
0x27b0   : > { %v8259_v1 = vmul.f32 0.5, %v8258_v8 }
0x27b1   : > { %v8350_v42 = vadd.f32 %v8334_v16, %v15823_v60 }
0x27b2   : > { %v8260_v5 = vsub.f32 1.5, %v8259_v1  ;;  %v8151_v53 = vpop.f32.mrf.mxu0  ;;  %v15828_v1 = vld [vmem:[#allocation49_spill] sm:$0xff] }
0x27b3   : > { %v10104_v2 = vpop.eup %10103  ;;  %8366 = vst [vmem:[%s14788_s29 + $0x40] sm:$0xff] %v8350_v42  ;;  %v8152_v36 = vadd.f32 1e-05, %v8151_v53 }
0x27b4   : > { %v8261_v25 = vmul.f32 %v10102_v26, %v8260_v5  ;;  %v8267_v13 = vmul.f32 %v10104_v2, %v8149_v0  ;;  %vm8273_vm15 = vweird.f32 %v10104_v2 }
0x27b5   : > { %10105 = vrsqrt.f32 %v8152_v36  ;;  %vm8274_vm6 = vmor %vm8272_vm4, %vm8273_vm15  ;;  %vm8282_vm3 = vweird.f32 %v8152_v36 }
0x27b6   : > { %v8265_v21 = vsel %vm8264_vm10, %v10102_v26, %v8261_v25  ;;  %v8268_v29 = vmul.f32 %v10104_v2, %v8267_v13 }
0x27b7   : > { %v8335_v24 = vmul.f32 %v8265_v21, %v14702_v22 }
0x27b8   : > { %v8269_v50 = vmul.f32 0.5, %v8268_v29 }
0x27b9   : > { %v8351_v4 = vadd.f32 %v8335_v24, %v15824_v14 }
0x27ba   : > { %v8270_v46 = vsub.f32 1.5, %v8269_v50  ;;  %v8154_v9 = vpop.f32.mrf.mxu0 }
0x27bb   : > { %v10106_v27 = vpop.eup %10105  ;;  %8367 = vst [vmem:[%s14788_s29 + $0x48] sm:$0xff] %v8351_v4  ;;  %v8155_v47 = vadd.f32 1e-05, %v8154_v9  ;;  %v15830_v4 = vld [vmem:[#allocation55_spill] sm:$0xff] }
0x27bc   : > { %v8271_v43 = vmul.f32 %v10104_v2, %v8270_v46  ;;  %v8277_v11 = vmul.f32 %v10106_v27, %v8152_v36  ;;  %vm8283_vm1 = vweird.f32 %v10106_v27 }
0x27bd   : > { %10107 = vrsqrt.f32 %v8155_v47  ;;  %vm8284_vm0 = vmor %vm8282_vm3, %vm8283_vm1  ;;  %vm8292_vm7 = vweird.f32 %v8155_v47 }
0x27be   : > { %v8275_v57 = vsel %vm8274_vm6, %v10104_v2, %v8271_v43  ;;  %v8278_v32 = vmul.f32 %v10106_v27, %v8277_v11 }
0x27bf   : > { %v8336_v28 = vmul.f32 %v8275_v57, %v14705_v48 }
0x27c0   : > { %v8279_v22 = vmul.f32 0.5, %v8278_v32 }
0x27c1   : > { %v8352_v31 = vadd.f32 %v8336_v28, %v15825_v61 }
0x27c2   : > { %v8280_v18 = vsub.f32 1.5, %v8279_v22  ;;  %v8157_v10 = vpop.f32.mrf.mxu0 }
0x27c3   : > { %v10108_v12 = vpop.eup %10107  ;;  %8368 = vst [vmem:[%s14788_s29 + $0x50] sm:$0xff] %v8352_v31  ;;  %v8158_v6 = vadd.f32 1e-05, %v8157_v10 }
0x27c4   : > { %v8281_v59 = vmul.f32 %v10106_v27, %v8280_v18  ;;  %v8287_v30 = vmul.f32 %v10108_v12, %v8155_v47  ;;  %vm8293_vm14 = vweird.f32 %v10108_v12 }
0x27c5   : > { %10109 = vrsqrt.f32 %v8158_v6  ;;  %vm8294_vm5 = vmor %vm8292_vm7, %vm8293_vm14  ;;  %vm8302_vm2 = vweird.f32 %v8158_v6 }
0x27c6   : > { %v8285_v41 = vsel %vm8284_vm0, %v10106_v27, %v8281_v59  ;;  %v8288_v49 = vmul.f32 %v10108_v12, %v8287_v30 }
0x27c7   : > { %v8337_v37 = vmul.f32 %v8285_v41, %v14693_v58 }
0x27c8   : > { %v8289_v48 = vmul.f32 0.5, %v8288_v49 }
0x27c9   : > { %v8353_v51 = vadd.f32 %v8337_v37, %v15826_v34 }
0x27ca   : > { %v8290_v44 = vsub.f32 1.5, %v8289_v48  ;;  %v8160_v23 = vpop.f32.mrf.mxu0 }
0x27cb   : > { %v10110_v19 = vpop.eup %10109  ;;  %8369 = vst [vmem:[%s14788_s29 + $0x58] sm:$0xff] %v8353_v51  ;;  %v8161_v38 = vadd.f32 1e-05, %v8160_v23 }
0x27cc   : > { %v8291_v15 = vmul.f32 %v10108_v12, %v8290_v44  ;;  %v8297_v17 = vmul.f32 %v10110_v19, %v8158_v6  ;;  %vm8303_vm8 = vweird.f32 %v10110_v19 }
0x27cd   : > { %10111 = vrsqrt.f32 %v8161_v38  ;;  %vm8304_vm9 = vmor %vm8302_vm2, %vm8303_vm8  ;;  %vm8312_vm12 = vweird.f32 %v8161_v38 }
0x27ce   : > { %v8295_v33 = vsel %vm8294_vm5, %v10108_v12, %v8291_v15  ;;  %v8298_v20 = vmul.f32 %v10110_v19, %v8297_v17 }
0x27cf   : > { %v8338_v54 = vmul.f32 %v8295_v33, %v14688_v39 }
0x27d0   : > { %v8299_v58 = vmul.f32 0.5, %v8298_v20 }
0x27d1   : > { %v8354_v52 = vadd.f32 %v8338_v54, %v15827_v62 }
0x27d2   : > { %v8300_v40 = vsub.f32 1.5, %v8299_v58  ;;  %v8163_v45 = vpop.f32.mrf.mxu0 }
0x27d3   : > { %v10112_v26 = vpop.eup %10111  ;;  %8370 = vst [vmem:[%s14788_s29 + $0x60] sm:$0xff] %v8354_v52  ;;  %v8164_v0 = vadd.f32 1e-05, %v8163_v45 }
0x27d4   : > { %v8301_v63 = vmul.f32 %v10110_v19, %v8300_v40  ;;  %v8307_v56 = vmul.f32 %v10112_v26, %v8161_v38  ;;  %vm8313_vm13 = vweird.f32 %v10112_v26 }
0x27d5   : > { %10113 = vrsqrt.f32 %v8164_v0  ;;  %vm8314_vm11 = vmor %vm8312_vm12, %vm8313_vm13  ;;  %vm8322_vm15 = vweird.f32 %v8164_v0 }
0x27d6   : > { %v8305_v3 = vsel %vm8304_vm9, %v10110_v19, %v8301_v63  ;;  %v8308_v8 = vmul.f32 %v10112_v26, %v8307_v56 }
0x27d7   : > { %v8339_v39 = vmul.f32 %v8305_v3, %v14683_v55  ;;  %v15829_v55 = vld [vmem:[#allocation50_spill] sm:$0xff] }
0x27d8   : > { %v8309_v16 = vmul.f32 0.5, %v8308_v8 }
0x27d9   : > { %v8355_v60 = vadd.f32 %v8339_v39, %v15828_v1 }
0x27da   : > { %v8310_v42 = vsub.f32 1.5, %v8309_v16 }
0x27db   : > { %v10114_v5 = vpop.eup %10113  ;;  %8371 = vst [vmem:[%s14788_s29 + $0x68] sm:$0xff] %v8355_v60 }
0x27dc   : > { %v8311_v53 = vmul.f32 %v10112_v26, %v8310_v42  ;;  %v8317_v2 = vmul.f32 %v10114_v5, %v8164_v0  ;;  %vm8323_vm10 = vweird.f32 %v10114_v5 }
0x27dd   : > { %vm8324_vm4 = vmor %vm8322_vm15, %vm8323_vm10 }
0x27de   : > { %v8315_v36 = vsel %vm8314_vm11, %v10112_v26, %v8311_v53  ;;  %v8318_v25 = vmul.f32 %v10114_v5, %v8317_v2 }
0x27df   : > { %v8340_v13 = vmul.f32 %v8315_v36, %v14677_v35 }
0x27e0   : > { %v8319_v21 = vmul.f32 0.5, %v8318_v25 }
0x27e1   : > { %v8356_v29 = vadd.f32 %v8340_v13, %v15829_v55 }
0x27e2   : > { %v8320_v24 = vsub.f32 1.5, %v8319_v21 }
0x27e3   : > { %8372 = vst [vmem:[%s14788_s29 + $0x70] sm:$0xff] %v8356_v29 }
0x27e4   : > { %v8321_v50 = vmul.f32 %v10114_v5, %v8320_v24 }
0x27e6   : > { %v8325_v35 = vsel %vm8324_vm4, %v10114_v5, %v8321_v50 }
0x27e7   : > { %v8341_v14 = vmul.f32 %v8325_v35, %v14680_v7 }
0x27e9   : > { %v8357_v46 = vadd.f32 %v8341_v14, %v15830_v4 }
0x27eb   : > { %8373 = vst [vmem:[%s14788_s29 + $0x78] sm:$0xff] %v8357_v46 }
0x27ec   : > { %10553 = shalt.err (!%p10550_p9)
}
0x27ed   : > { %s10615_s7 = smov 128   ;;  %s10616_s29 = smov 8  }
0x27ee   : > { %9778 = dma.vmem_to_hbm [thread:$0]  (%p10744_p13), %s8388_s19, 2048, %s8390_s27, %s8375_s28, %s10615_s7, %s10615_s7, %s10616_s29  }
0x27ef PF: > { %s8404_s11 = sand.u32 1, %s10592_s21   ;;  %p15831_p10 = scmp.ge.s32.totalorder %s10604_s24, 2 }
0x27f0   : > { %s8405_s14 = scalar_lea.sflag [#allocation4], %s8404_s11 }
0x27f1   : > { %p9801_p11 = pnand %p15831_p10, %p10749_p4 }
0x27f3   : > { %p9802_p0 = pneg %p9801_p11 }
0x27f5   : > { %10587 = dma.done.wait (%p9802_p0), %s8405_s14, 2048  }
0x27f6   : > { %10589 = vsyncadd (%p9802_p0), %s8405_s14, 4294965248  ;;  %p22_p2 = scmp.ge.s32.totalorder %s10724_s17, 4   ;;  %s15832_s21 = smov %s10596_s22 }
0x27f7   : > { %s15833_s22 = smov %s10600_s23  ;;  %s15834_s23 = smov %s10736_s20 }
0x27f8   : > { %s15835_s24 = smov %s10724_s17  ;;  %24 = sbr.rel (!%p22_p2) target bundleno = 8 (0x8), region = 115 }
0x27fd   :  { %8411 = vsyncpa [#allocation3], 1 }
0x27fe   :  { %8413 = vsyncpa [#allocation3 + $0x1], 1 }
0x27ff   :  { %8414 = vsyncpa [#allocation6], 1 }
0x2800   :  { %8415 = vsyncpa [#allocation9], 1 }
0x2801   :  { %8416 = vsyncpa [#allocation12], 1 }
0x2802   :  { %8417 = vsyncpa [#allocation4], 1 }
0x2803   :  { %8419 = vsyncpa [#allocation4 + $0x1], 1 }

</bundles_post_ra>
